<compile_context>
chip_gen: v5e
topology: v5e:2x2
jax: 0.10.0
libtpu: 0.0.40
codegen_flags: <defaults>
</compile_context>

<pallas_src>
import jax
import jax.numpy as jnp
from jax import lax
from jax.experimental import pallas as pl
from jax.experimental.pallas import tpu as pltpu

# ----------------------------- model dims ------------------------------------
N = 2            # batch
E = 32           # embed_size
H = 4            # heads
HD = E // H      # head_dim
FE = 2           # forward_expansion
HID = FE * E     # ffn hidden
LAYERS = 2       # encoder layers == decoder layers

EXTRA_LEN = 8    # extra_src length
S_SRC = 8        # src length (== decoder cross-attention key length)
S_ENC = EXTRA_LEN + S_SRC
TRG_LEN = 8      # trg length
MAX_LEN = 16     # position-embedding table size

EPS = 1e-5
NEG = -1e30                       # additive mask bias (finite, avoids -inf NaNs)
SCALE = 1.0 / float(E) ** 0.5     # reference scales by sqrt(embed_size)


# ----------------------------- in-kernel helpers ------------------------------
def _split_heads(x_flat, n, s):
    """(n*s, E) flat activations -> (H*n, s, HD), head-major on the leading axis."""
    x3 = x_flat.reshape(n, s, E)
    return jnp.concatenate([x3[:, :, h * HD:(h + 1) * HD] for h in range(H)], axis=0)


def _merge_heads(ctx, n, s):
    """(H*n, s, HD) head-major contexts -> (n*s, E) with heads concatenated on lanes."""
    return jnp.concatenate(
        [ctx[h * n:(h + 1) * n].reshape(n * s, HD) for h in range(H)], axis=-1)


def _attention(qh, kvh, bias, w_out, b_out, n, sq):
    """SelfAttention with keys == values (true for every call site in this model).

    qh  : (H*n, sq, HD) head-split queries.
    kvh : (H*n, sk, HD) head-split keys/values.
    bias: (H*n, sq, sk) additive mask bias (0 keep / -1e30 masked).
    w_out: (E, E) = fc_out.weight^T, b_out: (1, E) = fc_out.bias.
    Returns the projected attention output, (n*sq, E).
    """
    # One batched matmul for all heads/batches; scale folded into Q so the mask bias
    # is added to an already-scaled energy.
    energy = jnp.einsum("bqd,bkd->bqk", qh * SCALE, kvh,
                        preferred_element_type=jnp.float32) + bias      # (H*n, sq, sk)
    m = jnp.max(energy, axis=-1, keepdims=True)
    p = jnp.exp(energy - m)
    attn = p / jnp.sum(p, axis=-1, keepdims=True)        # exact divide (accuracy)
    ctx = jnp.einsum("bqk,bkd->bqd", attn, kvh,
                     preferred_element_type=jnp.float32)                # (H*n, sq, HD)
    # "concat heads + fc_out" = one lane-concat + ONE 32-deep matmul (was 4 K=8 matmuls).
    merged = _merge_heads(ctx, n, sq)                                   # (n*sq, E)
    return jnp.dot(merged, w_out, preferred_element_type=jnp.float32) + b_out


def _layer_norm(z, g, b):
    mu = jnp.mean(z, axis=-1, keepdims=True)
    c = z - mu
    var = jnp.mean(c * c, axis=-1, keepdims=True)
    return c * lax.rsqrt(var + EPS) * g + b


# ----------------------------- the ONE fused kernel ----------------------------
def transformer_kernel(xe_ref, xt_ref, ebias_ref, tbias_ref, sbias_ref,
                       ewa_ref, ewb_ref, evec_ref,
                       dwa_ref, dwb_ref, dvec_ref, out_ref):
    """Whole Transformer forward: LAYERS encoder blocks + LAYERS decoder blocks.

    Stacked weight layouts (per layer l):
      ewa_ref[l] (E,128): [wo^T | w1^T | pad]     ewb_ref[l] (HID,E): w2^T
      evec_ref[l] (8,HID): bo,g1,be1,b1,b2,g2,be2,pad
      dwa_ref[l] (E,128): [wo1^T | wo2^T | w1^T]  dwb_ref[l] (HID,E): w2^T
      dvec_ref[l] (16,HID): bo1,g0,be0,bo2,g1,be1,b1,b2,g2,be2,pad...
    """
    # ----------------- encoder: value = key = query = x -----------------------
    x = xe_ref[...]                                   # (N*S_ENC, E)
    ebias = ebias_ref[...]                            # (H*N, S_ENC, S_ENC)
    for l in range(LAYERS):
        wa = ewa_ref[l]                               # (E, 128)
        wb = ewb_ref[l]                               # (HID, E)
        vec = evec_ref[l]                             # (8, HID)
        bo, g1, be1 = vec[0:1, 0:E], vec[1:2, 0:E], vec[2:3, 0:E]
        b1 = vec[3:4, :]                              # (1, HID)
        b2, g2, be2 = vec[4:5, 0:E], vec[5:6, 0:E], vec[6:7, 0:E]

        xh = _split_heads(x, N, S_ENC)
        attn = _attention(xh, xh, ebias, wa[:, 0:E], bo, N, S_ENC)
        h1 = _layer_norm(attn + x, g1, be1)           # dropout = identity (p = 0)
        hid = jnp.maximum(
            jnp.dot(h1, wa[:, E:E + HID], preferred_element_type=jnp.float32) + b1, 0.0)
        ff = jnp.dot(hid, wb, preferred_element_type=jnp.float32) + b2
        x = _layer_norm(ff + h1, g2, be2)

    # encoder output restricted to the src positions; head-split ONCE for all decoder
    # layers (shared K == V of the cross attention).
    enc = x.reshape(N, S_ENC, E)[:, EXTRA_LEN:, :]    # (N, S_SRC, E)
    kvh = jnp.concatenate([enc[:, :, h * HD:(h + 1) * HD] for h in range(H)], axis=0)

    # ----------------- decoder ------------------------------------------------
    y = xt_ref[...]                                   # (N*TRG_LEN, E)
    tbias = tbias_ref[...]                            # (H*N, TRG, TRG)
    sbias = sbias_ref[...]                            # (H*N, TRG, S_SRC)
    for l in range(LAYERS):
        wa = dwa_ref[l]
        wb = dwb_ref[l]
        vec = dvec_ref[l]                             # (16, HID)
        bo1, g0, be0 = vec[0:1, 0:E], vec[1:2, 0:E], vec[2:3, 0:E]
        bo2, g1, be1 = vec[3:4, 0:E], vec[4:5, 0:E], vec[5:6, 0:E]
        b1 = vec[6:7, :]
        b2, g2, be2 = vec[7:8, 0:E], vec[8:9, 0:E], vec[9:10, 0:E]

        # masked self-attention on the target sequence + residual + norm
        yh = _split_heads(y, N, TRG_LEN)
        attn1 = _attention(yh, yh, tbias, wa[:, 0:E], bo1, N, TRG_LEN)
        query = _layer_norm(attn1 + y, g0, be0)

        # cross-attention against the encoder output + residual + norm
        qh = _split_heads(query, N, TRG_LEN)
        attn2 = _attention(qh, kvh, sbias, wa[:, E:2 * E], bo2, N, TRG_LEN)
        x2 = _layer_norm(attn2 + query, g1, be1)

        # feed forward + residual + norm
        hid = jnp.maximum(
            jnp.dot(x2, wa[:, 2 * E:2 * E + HID],
                    preferred_element_type=jnp.float32) + b1, 0.0)
        ff = jnp.dot(hid, wb, preferred_element_type=jnp.float32) + b2
        y = _layer_norm(ff + x2, g2, be2)

    out_ref[...] = y


# ----------------------------- pallas_call plumbing ---------------------------
def _full_spec(shape):
    zeros = (0,) * len(shape)
    return pl.BlockSpec(tuple(shape), lambda i, _z=zeros: _z)


def _pcall(kernel, inputs, out_shape):
    return pl.pallas_call(
        kernel,
        out_shape=jax.ShapeDtypeStruct(out_shape, jnp.float32),
        grid_spec=pltpu.PrefetchScalarGridSpec(
            num_scalar_prefetch=0,
            grid=(1,),                     # whole model in one grid step
            in_specs=[_full_spec(a.shape) for a in inputs],
            out_specs=_full_spec(out_shape),
        ),
        compiler_params=pltpu.CompilerParams(
            dimension_semantics=("arbitrary",)),
    )(*inputs)


def mask_to_bias(mask, sq, sk):
    """torch masked_fill(mask==0, -inf) -> additive bias tiled per (head, batch)."""
    m = jnp.broadcast_to(mask, (N, H, sq, sk))
    bias = jnp.where(m == 0, jnp.float32(NEG), jnp.float32(0.0))
    return bias.transpose(1, 0, 2, 3).reshape(H * N, sq, sk)


# ----------------------------- weight packing (done once, outside the call path)
def _padv(v):
    return jnp.pad(v, (0, HID - v.shape[0]))


def pack_params(raw):
    zrow = jnp.zeros((HID,), jnp.float32)
    enc_wa = jnp.stack([
        jnp.pad(jnp.concatenate([p["wo"].T, p["w1"].T], axis=1),
                ((0, 0), (0, 128 - (E + HID))))            # pad to 128 lanes
        for p in raw["enc_layers"]])                       # (L, 32, 128)
    enc_wb = jnp.stack([p["w2"].T for p in raw["enc_layers"]])      # (L, 64, 32)
    enc_vec = jnp.stack([
        jnp.stack([_padv(p["bo"]), _padv(p["g1"]), _padv(p["be1"]), p["b1"],
                   _padv(p["b2"]), _padv(p["g2"]), _padv(p["be2"]), zrow])
        for p in raw["enc_layers"]])                       # (L, 8, 64)
    dec_wa = jnp.stack([
        jnp.concatenate([p["wo1"].T, p["wo2"].T, p["w1"].T], axis=1)
        for p in raw["dec_layers"]])                       # (L, 32, 128)
    dec_wb = jnp.stack([p["w2"].T for p in raw["dec_layers"]])      # (L, 64, 32)
    dec_vec = jnp.stack([
        jnp.stack([_padv(p["bo1"]), _padv(p["g0"]), _padv(p["be0"]),
                   _padv(p["bo2"]), _padv(p["g1"]), _padv(p["be1"]),
                   p["b1"], _padv(p["b2"]), _padv(p["g2"]), _padv(p["be2"])]
                  + [zrow] * 6)
        for p in raw["dec_layers"]])                       # (L, 16, 64)
    return {
        "enc_pos": raw["enc_pos"], "dec_pos": raw["dec_pos"],
        "enc_wa": enc_wa, "enc_wb": enc_wb, "enc_vec": enc_vec,
        "dec_wa": dec_wa, "dec_wb": dec_wb, "dec_vec": dec_vec,
    }


# ----------------------------- full Transformer forward -----------------------
def transformer_forward(extra_src, src, trg, extra_src_mask, src_mask, packed,
                        trg_mask=None):
    n, trg_len = trg.shape[0], trg.shape[1]
    if trg_mask is None:                                   # Transformer.make_trg_mask
        trg_mask4 = jnp.ones((n, 1, trg_len, trg_len), jnp.float32)
    else:
        trg_mask4 = trg_mask[:, None, None, :]
    extra_len = extra_src.shape[1]
    s_src = src.shape[1]

    # cheap host-side prep (one small XLA fusion feeding the single kernel)
    concat_src = jnp.concatenate([extra_src, src], axis=1)             # (N, S_enc, E)
    concat_mask = jnp.concatenate([extra_src_mask, src_mask], axis=-1)
    s_enc = concat_src.shape[1]
    pe = packed["enc_pos"]
    x = concat_src
    x = x.at[:, :extra_len].add(pe[:extra_len])
    x = x.at[:, extra_len:].add(pe[extra_len])             # shared pos-emb for the tail
    y = trg + packed["dec_pos"][:trg_len]

    enc_bias = mask_to_bias(concat_mask, s_enc, s_enc)
    trg_bias = mask_to_bias(trg_mask4, trg_len, trg_len)
    src_bias = mask_to_bias(src_mask, trg_len, s_src)

    inputs = (x.reshape(n * s_enc, E), y.reshape(n * trg_len, E),
              enc_bias, trg_bias, src_bias,
              packed["enc_wa"], packed["enc_wb"], packed["enc_vec"],
              packed["dec_wa"], packed["dec_wb"], packed["dec_vec"])
    out = _pcall(transformer_kernel, inputs, (n * trg_len, E))
    return out.reshape(n, trg_len, E)


# ----------------------------- pure-JAX reference (torch-faithful) ------------
def _ref_attention(values, keys, query, mask, w, b):
    n, q_len = query.shape[0], query.shape[1]
    v = values.reshape(n, values.shape[1], H, HD)
    k = keys.reshape(n, keys.shape[1], H, HD)
    q = query.reshape(n, q_len, H, HD)
    energy = jnp.einsum("nqhd,nkhd->nhqk", q, k)
    energy = jnp.where(mask == 0, -jnp.inf, energy)
    attn = jax.nn.softmax(energy / jnp.sqrt(jnp.float32(E)), axis=3)
    out = jnp.einsum("nhql,nlhd->nqhd", attn, v).reshape(n, q_len, E)
    return out @ w.T + b


def _ref_layer_norm(z, g, b):
    mu = jnp.mean(z, axis=-1, keepdims=True)
    var = jnp.mean((z - mu) ** 2, axis=-1, keepdims=True)
    return (z - mu) / jnp.sqrt(var + EPS) * g + b


def _ref_transformer_block(value, key, query, mask, p):
    a = _ref_attention(value, key, query, mask, p["wo"], p["bo"])
    x = _ref_layer_norm(a + query, p["g1"], p["be1"])
    ff = jnp.maximum(x @ p["w1"].T + p["b1"], 0.0) @ p["w2"].T + p["b2"]
    return _ref_layer_norm(ff + x, p["g2"], p["be2"])


def _ref_decoder_block(x, value, key, src_mask, trg_mask, p):
    a = _ref_attention(x, x, x, trg_mask, p["wo1"], p["bo1"])
    query = _ref_layer_norm(a + x, p["g0"], p["be0"])
    tb = dict(wo=p["wo2"], bo=p["bo2"], g1=p["g1"], be1=p["be1"], w1=p["w1"],
              b1=p["b1"], w2=p["w2"], b2=p["b2"], g2=p["g2"], be2=p["be2"])
    return _ref_transformer_block(value, key, query, src_mask, tb)


def ref_transformer(extra_src, src, trg, extra_src_mask, src_mask, raw, trg_mask=None):
    n, trg_len = trg.shape[0], trg.shape[1]
    if trg_mask is None:
        trg_mask4 = jnp.ones((n, 1, trg_len, trg_len), jnp.float32)
    else:
        trg_mask4 = trg_mask[:, None, None, :]
    extra_len = extra_src.shape[1]
    concat_src = jnp.concatenate([extra_src, src], axis=1)
    concat_mask = jnp.concatenate([extra_src_mask, src_mask], axis=-1)
    pe = raw["enc_pos"]
    x = concat_src
    x = x.at[:, :extra_len].add(pe[:extra_len])
    x = x.at[:, extra_len:].add(pe[extra_len])
    for p in raw["enc_layers"]:
        x = _ref_transformer_block(x, x, x, concat_mask, p)
    enc_src = x[:, extra_len:]
    y = trg + raw["dec_pos"][:trg_len]
    for p in raw["dec_layers"]:
        y = _ref_decoder_block(y, enc_src, enc_src, src_mask, trg_mask4, p)
    return y


# ----------------------------- parameter init ---------------------------------
def _init_linear(k, out_f, in_f):
    kw, kb = jax.random.split(k)
    bound = 1.0 / float(in_f) ** 0.5
    w = jax.random.uniform(kw, (out_f, in_f), jnp.float32, -bound, bound)
    b = jax.random.uniform(kb, (out_f,), jnp.float32, -bound, bound)
    return w, b


def _init_transformer_block(k):
    k0, k1, k2 = jax.random.split(k, 3)
    wo, bo = _init_linear(k0, E, E)
    w1, b1 = _init_linear(k1, HID, E)
    w2, b2 = _init_linear(k2, E, HID)
    ones = jnp.ones((E,), jnp.float32)
    zeros = jnp.zeros((E,), jnp.float32)
    return dict(wo=wo, bo=bo, g1=ones, be1=zeros, w1=w1, b1=b1,
                w2=w2, b2=b2, g2=ones, be2=zeros)


def _init_decoder_block(k):
    k0, k1 = jax.random.split(k)
    wo1, bo1 = _init_linear(k0, E, E)
    tb = _init_transformer_block(k1)
    ones = jnp.ones((E,), jnp.float32)
    zeros = jnp.zeros((E,), jnp.float32)
    return dict(wo1=wo1, bo1=bo1, g0=ones, be0=zeros,
                wo2=tb["wo"], bo2=tb["bo"], g1=tb["g1"], be1=tb["be1"],
                w1=tb["w1"], b1=tb["b1"], w2=tb["w2"], b2=tb["b2"],
                g2=tb["g2"], be2=tb["be2"])


# ----------------------------- main --------------------------------------------
if __name__ == "__main__":
    root = jax.random.PRNGKey(0)
    k_es, k_s, k_t, k_pe, k_pd, k_enc, k_dec = jax.random.split(root, 7)

    extra_src = jax.random.normal(k_es, (N, EXTRA_LEN, E), jnp.float32)
    src = jax.random.normal(k_s, (N, S_SRC, E), jnp.float32)
    trg = jax.random.normal(k_t, (N, TRG_LEN, E), jnp.float32)

    extra_src_mask = jnp.ones((N, 1, 1, EXTRA_LEN), jnp.float32)
    src_mask = jnp.ones((N, 1, 1, S_SRC), jnp.float32)
    src_mask = src_mask.at[1, 0, 0, S_SRC - 1].set(0.0)   # exercise the masking path

    raw = {
        "enc_pos": jax.random.normal(k_pe, (MAX_LEN, E), jnp.float32),
        "dec_pos": jax.random.normal(k_pd, (MAX_LEN, E), jnp.float32),
        "enc_layers": [_init_transformer_block(k)
                       for k in jax.random.split(k_enc, LAYERS)],
        "dec_layers": [_init_decoder_block(k)
                       for k in jax.random.split(k_dec, LAYERS)],
    }
    # weight transposition / stacking / padding done once, outside the per-call path
    packed = pack_params(raw)

    fwd = jax.jit(transformer_forward)
    out = fwd(extra_src, src, trg, extra_src_mask, src_mask, packed)
    out = jax.block_until_ready(out)

    expected = ref_transformer(extra_src, src, trg, extra_src_mask, src_mask, raw)
    assert out.shape == (N, TRG_LEN, E)
    err = float(jnp.max(jnp.abs(out - expected)))
    # exact softmax divide -> tight tolerance
    assert jnp.allclose(out, expected, rtol=5e-4, atol=5e-4), err
    print("KERNEL_OK")
</pallas_src>

<mosaic_0001>
module attributes {stable_mosaic.version = 11 : i64} {
  func.func @transformer_kernel(%arg0: i32, %arg1: memref<32x32xf32, #tpu.memory_space<vmem>>, %arg2: memref<16x32xf32, #tpu.memory_space<vmem>>, %arg3: memref<8x16x16xf32, #tpu.memory_space<vmem>>, %arg4: memref<8x8x8xf32, #tpu.memory_space<vmem>>, %arg5: memref<8x8x8xf32, #tpu.memory_space<vmem>>, %arg6: memref<2x32x128xf32, #tpu.memory_space<vmem>>, %arg7: memref<2x64x32xf32, #tpu.memory_space<vmem>>, %arg8: memref<2x8x64xf32, #tpu.memory_space<vmem>>, %arg9: memref<2x32x128xf32, #tpu.memory_space<vmem>>, %arg10: memref<2x64x32xf32, #tpu.memory_space<vmem>>, %arg11: memref<2x16x64xf32, #tpu.memory_space<vmem>>, %arg12: memref<16x32xf32, #tpu.memory_space<vmem>>) attributes {dimension_semantics = [#tpu.dimension_semantics<arbitrary>], iteration_bounds = array<i64: 1>, scalar_prefetch = 0 : i64, scratch_operands = 0 : i64, tpu.core_type = #tpu.core_type<tc>, window_params = [{pipeline_mode = #tpu.pipeline_mode<synchronous>, transform_indices = @transform_0, window_bounds = array<i64: 32, 32>}, {pipeline_mode = #tpu.pipeline_mode<synchronous>, transform_indices = @transform_1, window_bounds = array<i64: 16, 32>}, {pipeline_mode = #tpu.pipeline_mode<synchronous>, transform_indices = @transform_2, window_bounds = array<i64: 8, 16, 16>}, {pipeline_mode = #tpu.pipeline_mode<synchronous>, transform_indices = @transform_3, window_bounds = array<i64: 8, 8, 8>}, {pipeline_mode = #tpu.pipeline_mode<synchronous>, transform_indices = @transform_4, window_bounds = array<i64: 8, 8, 8>}, {pipeline_mode = #tpu.pipeline_mode<synchronous>, transform_indices = @transform_5, window_bounds = array<i64: 2, 32, 128>}, {pipeline_mode = #tpu.pipeline_mode<synchronous>, transform_indices = @transform_6, window_bounds = array<i64: 2, 64, 32>}, {pipeline_mode = #tpu.pipeline_mode<synchronous>, transform_indices = @transform_7, window_bounds = array<i64: 2, 8, 64>}, {pipeline_mode = #tpu.pipeline_mode<synchronous>, transform_indices = @transform_8, window_bounds = array<i64: 2, 32, 128>}, {pipeline_mode = #tpu.pipeline_mode<synchronous>, transform_indices = @transform_9, window_bounds = array<i64: 2, 64, 32>}, {pipeline_mode = #tpu.pipeline_mode<synchronous>, transform_indices = @transform_10, window_bounds = array<i64: 2, 16, 64>}, {pipeline_mode = #tpu.pipeline_mode<synchronous>, transform_indices = @transform_11, window_bounds = array<i64: 16, 32>}]} {
    %c0 = arith.constant 0 : index
    %c0_0 = arith.constant 0 : index
    %0 = vector.load %arg1[%c0, %c0_0] : memref<32x32xf32, #tpu.memory_space<vmem>>, vector<32x32xf32>
    %c0_1 = arith.constant 0 : index
    %c0_2 = arith.constant 0 : index
    %c0_3 = arith.constant 0 : index
    %1 = vector.load %arg3[%c0_1, %c0_2, %c0_3] : memref<8x16x16xf32, #tpu.memory_space<vmem>>, vector<8x16x16xf32>
    %c0_4 = arith.constant 0 : index
    %c0_5 = arith.constant 0 : index
    %c0_6 = arith.constant 0 : index
    %2 = vector.load %arg6[%c0_4, %c0_5, %c0_6] : memref<2x32x128xf32, #tpu.memory_space<vmem>>, vector<1x32x128xf32>
    %3 = vector.shape_cast %2 : vector<1x32x128xf32> to vector<32x128xf32>
    %c0_7 = arith.constant 0 : index
    %c0_8 = arith.constant 0 : index
    %c0_9 = arith.constant 0 : index
    %4 = vector.load %arg7[%c0_7, %c0_8, %c0_9] : memref<2x64x32xf32, #tpu.memory_space<vmem>>, vector<1x64x32xf32>
    %5 = vector.shape_cast %4 : vector<1x64x32xf32> to vector<64x32xf32>
    %c0_10 = arith.constant 0 : index
    %c0_11 = arith.constant 0 : index
    %c0_12 = arith.constant 0 : index
    %6 = vector.load %arg8[%c0_10, %c0_11, %c0_12] : memref<2x8x64xf32, #tpu.memory_space<vmem>>, vector<1x8x64xf32>
    %7 = vector.shape_cast %6 : vector<1x8x64xf32> to vector<8x64xf32>
    %8 = vector.extract_strided_slice %7 {offsets = [0, 0], sizes = [1, 32], strides = [1, 1]} : vector<8x64xf32> to vector<1x32xf32>
    %9 = vector.extract_strided_slice %7 {offsets = [1, 0], sizes = [1, 32], strides = [1, 1]} : vector<8x64xf32> to vector<1x32xf32>
    %10 = vector.extract_strided_slice %7 {offsets = [2, 0], sizes = [1, 32], strides = [1, 1]} : vector<8x64xf32> to vector<1x32xf32>
    %11 = vector.extract_strided_slice %7 {offsets = [3, 0], sizes = [1, 64], strides = [1, 1]} : vector<8x64xf32> to vector<1x64xf32>
    %12 = vector.extract_strided_slice %7 {offsets = [4, 0], sizes = [1, 32], strides = [1, 1]} : vector<8x64xf32> to vector<1x32xf32>
    %13 = vector.extract_strided_slice %7 {offsets = [5, 0], sizes = [1, 32], strides = [1, 1]} : vector<8x64xf32> to vector<1x32xf32>
    %14 = vector.extract_strided_slice %7 {offsets = [6, 0], sizes = [1, 32], strides = [1, 1]} : vector<8x64xf32> to vector<1x32xf32>
    %15 = vector.shape_cast %0 : vector<32x32xf32> to vector<2x16x32xf32>
    %16 = vector.extract_strided_slice %15 {offsets = [0, 0, 0], sizes = [2, 16, 8], strides = [1, 1, 1]} : vector<2x16x32xf32> to vector<2x16x8xf32>
    %17 = vector.extract_strided_slice %15 {offsets = [0, 0, 8], sizes = [2, 16, 8], strides = [1, 1, 1]} : vector<2x16x32xf32> to vector<2x16x8xf32>
    %18 = vector.extract_strided_slice %15 {offsets = [0, 0, 16], sizes = [2, 16, 8], strides = [1, 1, 1]} : vector<2x16x32xf32> to vector<2x16x8xf32>
    %19 = vector.extract_strided_slice %15 {offsets = [0, 0, 24], sizes = [2, 16, 8], strides = [1, 1, 1]} : vector<2x16x32xf32> to vector<2x16x8xf32>
    %20 = tpu.concatenate %16, %17, %18, %19 in 0 : vector<2x16x8xf32>, vector<2x16x8xf32>, vector<2x16x8xf32>, vector<2x16x8xf32> -> vector<8x16x8xf32>
    %21 = vector.extract_strided_slice %3 {offsets = [0, 0], sizes = [32, 32], strides = [1, 1]} : vector<32x128xf32> to vector<32x32xf32>
    %cst = arith.constant 0.176776692 : f32
    %22 = vector.broadcast %cst : f32 to vector<8x16x8xf32>
    %23 = arith.mulf %20, %22 : vector<8x16x8xf32>
    "tpu.trace_start"() <{level = 10 : i32, message = "bqd,bkd->bqk"}> : () -> ()
    %cst_13 = arith.constant dense<0.000000e+00> : vector<8x16x16xf32>
    %24 = tpu.matmul %23, %20, %cst_13 {dimension_numbers = #tpu.dot_dimension_numbers<[2], [2], [1], [1], [0, 0, 0, 1, 1, 1], [0], [0]>} : vector<8x16x8xf32>, vector<8x16x8xf32>, vector<8x16x16xf32> -> vector<8x16x16xf32>
    "tpu.trace_stop"() : () -> ()
    %25 = arith.addf %24, %1 : vector<8x16x16xf32>
    %cst_14 = arith.constant dense<0xFF800000> : vector<8x16xf32>
    %26 = vector.multi_reduction <maximumf>, %25, %cst_14 [2] : vector<8x16x16xf32> to vector<8x16xf32>
    %27 = vector.shape_cast %26 : vector<8x16xf32> to vector<8x16x1xf32>
    %28 = vector.broadcast %27 : vector<8x16x1xf32> to vector<8x16x16xf32>
    %29 = arith.subf %25, %28 : vector<8x16x16xf32>
    %30 = math.exp %29 : vector<8x16x16xf32>
    %cst_15 = arith.constant dense<0.000000e+00> : vector<8x16xf32>
    %31 = vector.multi_reduction <add>, %30, %cst_15 [2] : vector<8x16x16xf32> to vector<8x16xf32>
    %32 = vector.shape_cast %31 : vector<8x16xf32> to vector<8x16x1xf32>
    %33 = vector.broadcast %32 : vector<8x16x1xf32> to vector<8x16x16xf32>
    %34 = arith.divf %30, %33 : vector<8x16x16xf32>
    "tpu.trace_start"() <{level = 10 : i32, message = "bqk,bkd->bqd"}> : () -> ()
    %cst_16 = arith.constant dense<0.000000e+00> : vector<8x16x8xf32>
    %35 = tpu.matmul %34, %20, %cst_16 {dimension_numbers = #tpu.dot_dimension_numbers<[2], [1], [1], [2], [0, 0, 0, 1, 1, 2], [0], [0]>} : vector<8x16x16xf32>, vector<8x16x8xf32>, vector<8x16x8xf32> -> vector<8x16x8xf32>
    "tpu.trace_stop"() : () -> ()
    %36 = vector.extract_strided_slice %35 {offsets = [0, 0, 0], sizes = [2, 16, 8], strides = [1, 1, 1]} : vector<8x16x8xf32> to vector<2x16x8xf32>
    %37 = vector.shape_cast %36 : vector<2x16x8xf32> to vector<32x8xf32>
    %38 = vector.extract_strided_slice %35 {offsets = [2, 0, 0], sizes = [2, 16, 8], strides = [1, 1, 1]} : vector<8x16x8xf32> to vector<2x16x8xf32>
    %39 = vector.shape_cast %38 : vector<2x16x8xf32> to vector<32x8xf32>
    %40 = vector.extract_strided_slice %35 {offsets = [4, 0, 0], sizes = [2, 16, 8], strides = [1, 1, 1]} : vector<8x16x8xf32> to vector<2x16x8xf32>
    %41 = vector.shape_cast %40 : vector<2x16x8xf32> to vector<32x8xf32>
    %42 = vector.extract_strided_slice %35 {offsets = [6, 0, 0], sizes = [2, 16, 8], strides = [1, 1, 1]} : vector<8x16x8xf32> to vector<2x16x8xf32>
    %43 = vector.shape_cast %42 : vector<2x16x8xf32> to vector<32x8xf32>
    %44 = tpu.concatenate %37, %39, %41, %43 in 1 : vector<32x8xf32>, vector<32x8xf32>, vector<32x8xf32>, vector<32x8xf32> -> vector<32x32xf32>
    %cst_17 = arith.constant dense<0.000000e+00> : vector<32x32xf32>
    %45 = tpu.matmul %44, %21, %cst_17 {dimension_numbers = #tpu.dot_dimension_numbers<[1], [0], [0], [1], [0, 0, 1, 1], [], []>} : vector<32x32xf32>, vector<32x32xf32>, vector<32x32xf32> -> vector<32x32xf32>
    %46 = vector.broadcast %8 : vector<1x32xf32> to vector<32x32xf32>
    %47 = arith.addf %45, %46 : vector<32x32xf32>
    %48 = arith.addf %47, %0 : vector<32x32xf32>
    %cst_18 = arith.constant dense<0.000000e+00> : vector<32xf32>
    %49 = vector.multi_reduction <add>, %48, %cst_18 [1] : vector<32x32xf32> to vector<32xf32>
    %50 = vector.shape_cast %49 : vector<32xf32> to vector<32x1xf32>
    %cst_19 = arith.constant 3.200000e+01 : f32
    %51 = vector.broadcast %cst_19 : f32 to vector<32x1xf32>
    %52 = arith.divf %50, %51 : vector<32x1xf32>
    %53 = vector.broadcast %52 : vector<32x1xf32> to vector<32x32xf32>
    %54 = arith.subf %48, %53 : vector<32x32xf32>
    %55 = arith.mulf %54, %54 : vector<32x32xf32>
    %cst_20 = arith.constant dense<0.000000e+00> : vector<32xf32>
    %56 = vector.multi_reduction <add>, %55, %cst_20 [1] : vector<32x32xf32> to vector<32xf32>
    %57 = vector.shape_cast %56 : vector<32xf32> to vector<32x1xf32>
    %cst_21 = arith.constant 3.200000e+01 : f32
    %58 = vector.broadcast %cst_21 : f32 to vector<32x1xf32>
    %59 = arith.divf %57, %58 : vector<32x1xf32>
    %cst_22 = arith.constant 9.99999974E-6 : f32
    %60 = vector.broadcast %cst_22 : f32 to vector<32x1xf32>
    %61 = arith.addf %59, %60 : vector<32x1xf32>
    %62 = math.rsqrt %61 : vector<32x1xf32>
    %63 = vector.broadcast %62 : vector<32x1xf32> to vector<32x32xf32>
    %64 = arith.mulf %54, %63 : vector<32x32xf32>
    %65 = vector.broadcast %9 : vector<1x32xf32> to vector<32x32xf32>
    %66 = arith.mulf %64, %65 : vector<32x32xf32>
    %67 = vector.broadcast %10 : vector<1x32xf32> to vector<32x32xf32>
    %68 = arith.addf %66, %67 : vector<32x32xf32>
    %69 = vector.extract_strided_slice %3 {offsets = [0, 32], sizes = [32, 64], strides = [1, 1]} : vector<32x128xf32> to vector<32x64xf32>
    %cst_23 = arith.constant dense<0.000000e+00> : vector<32x64xf32>
    %70 = tpu.matmul %68, %69, %cst_23 {dimension_numbers = #tpu.dot_dimension_numbers<[1], [0], [0], [1], [0, 0, 1, 1], [], []>} : vector<32x32xf32>, vector<32x64xf32>, vector<32x64xf32> -> vector<32x64xf32>
    %71 = vector.broadcast %11 : vector<1x64xf32> to vector<32x64xf32>
    %72 = arith.addf %70, %71 : vector<32x64xf32>
    %cst_24 = arith.constant 0.000000e+00 : f32
    %73 = vector.broadcast %cst_24 : f32 to vector<32x64xf32>
    %74 = arith.maximumf %72, %73 : vector<32x64xf32>
    %cst_25 = arith.constant dense<0.000000e+00> : vector<32x32xf32>
    %75 = tpu.matmul %74, %5, %cst_25 {dimension_numbers = #tpu.dot_dimension_numbers<[1], [0], [0], [1], [0, 0, 1, 1], [], []>} : vector<32x64xf32>, vector<64x32xf32>, vector<32x32xf32> -> vector<32x32xf32>
    %76 = vector.broadcast %12 : vector<1x32xf32> to vector<32x32xf32>
    %77 = arith.addf %75, %76 : vector<32x32xf32>
    %78 = arith.addf %77, %68 : vector<32x32xf32>
    %cst_26 = arith.constant dense<0.000000e+00> : vector<32xf32>
    %79 = vector.multi_reduction <add>, %78, %cst_26 [1] : vector<32x32xf32> to vector<32xf32>
    %80 = vector.shape_cast %79 : vector<32xf32> to vector<32x1xf32>
    %cst_27 = arith.constant 3.200000e+01 : f32
    %81 = vector.broadcast %cst_27 : f32 to vector<32x1xf32>
    %82 = arith.divf %80, %81 : vector<32x1xf32>
    %83 = vector.broadcast %82 : vector<32x1xf32> to vector<32x32xf32>
    %84 = arith.subf %78, %83 : vector<32x32xf32>
    %85 = arith.mulf %84, %84 : vector<32x32xf32>
    %cst_28 = arith.constant dense<0.000000e+00> : vector<32xf32>
    %86 = vector.multi_reduction <add>, %85, %cst_28 [1] : vector<32x32xf32> to vector<32xf32>
    %87 = vector.shape_cast %86 : vector<32xf32> to vector<32x1xf32>
    %cst_29 = arith.constant 3.200000e+01 : f32
    %88 = vector.broadcast %cst_29 : f32 to vector<32x1xf32>
    %89 = arith.divf %87, %88 : vector<32x1xf32>
    %cst_30 = arith.constant 9.99999974E-6 : f32
    %90 = vector.broadcast %cst_30 : f32 to vector<32x1xf32>
    %91 = arith.addf %89, %90 : vector<32x1xf32>
    %92 = math.rsqrt %91 : vector<32x1xf32>
    %93 = vector.broadcast %92 : vector<32x1xf32> to vector<32x32xf32>
    %94 = arith.mulf %84, %93 : vector<32x32xf32>
    %95 = vector.broadcast %13 : vector<1x32xf32> to vector<32x32xf32>
    %96 = arith.mulf %94, %95 : vector<32x32xf32>
    %97 = vector.broadcast %14 : vector<1x32xf32> to vector<32x32xf32>
    %98 = arith.addf %96, %97 : vector<32x32xf32>
    %c1 = arith.constant 1 : index
    %c0_31 = arith.constant 0 : index
    %c0_32 = arith.constant 0 : index
    %99 = vector.load %arg6[%c1, %c0_31, %c0_32] : memref<2x32x128xf32, #tpu.memory_space<vmem>>, vector<1x32x128xf32>
    %100 = vector.shape_cast %99 : vector<1x32x128xf32> to vector<32x128xf32>
    %c1_33 = arith.constant 1 : index
    %c0_34 = arith.constant 0 : index
    %c0_35 = arith.constant 0 : index
    %101 = vector.load %arg7[%c1_33, %c0_34, %c0_35] : memref<2x64x32xf32, #tpu.memory_space<vmem>>, vector<1x64x32xf32>
    %102 = vector.shape_cast %101 : vector<1x64x32xf32> to vector<64x32xf32>
    %c1_36 = arith.constant 1 : index
    %c0_37 = arith.constant 0 : index
    %c0_38 = arith.constant 0 : index
    %103 = vector.load %arg8[%c1_36, %c0_37, %c0_38] : memref<2x8x64xf32, #tpu.memory_space<vmem>>, vector<1x8x64xf32>
    %104 = vector.shape_cast %103 : vector<1x8x64xf32> to vector<8x64xf32>
    %105 = vector.extract_strided_slice %104 {offsets = [0, 0], sizes = [1, 32], strides = [1, 1]} : vector<8x64xf32> to vector<1x32xf32>
    %106 = vector.extract_strided_slice %104 {offsets = [1, 0], sizes = [1, 32], strides = [1, 1]} : vector<8x64xf32> to vector<1x32xf32>
    %107 = vector.extract_strided_slice %104 {offsets = [2, 0], sizes = [1, 32], strides = [1, 1]} : vector<8x64xf32> to vector<1x32xf32>
    %108 = vector.extract_strided_slice %104 {offsets = [3, 0], sizes = [1, 64], strides = [1, 1]} : vector<8x64xf32> to vector<1x64xf32>
    %109 = vector.extract_strided_slice %104 {offsets = [4, 0], sizes = [1, 32], strides = [1, 1]} : vector<8x64xf32> to vector<1x32xf32>
    %110 = vector.extract_strided_slice %104 {offsets = [5, 0], sizes = [1, 32], strides = [1, 1]} : vector<8x64xf32> to vector<1x32xf32>
    %111 = vector.extract_strided_slice %104 {offsets = [6, 0], sizes = [1, 32], strides = [1, 1]} : vector<8x64xf32> to vector<1x32xf32>
    %112 = vector.shape_cast %98 : vector<32x32xf32> to vector<2x16x32xf32>
    %113 = vector.extract_strided_slice %112 {offsets = [0, 0, 0], sizes = [2, 16, 8], strides = [1, 1, 1]} : vector<2x16x32xf32> to vector<2x16x8xf32>
    %114 = vector.extract_strided_slice %112 {offsets = [0, 0, 8], sizes = [2, 16, 8], strides = [1, 1, 1]} : vector<2x16x32xf32> to vector<2x16x8xf32>
    %115 = vector.extract_strided_slice %112 {offsets = [0, 0, 16], sizes = [2, 16, 8], strides = [1, 1, 1]} : vector<2x16x32xf32> to vector<2x16x8xf32>
    %116 = vector.extract_strided_slice %112 {offsets = [0, 0, 24], sizes = [2, 16, 8], strides = [1, 1, 1]} : vector<2x16x32xf32> to vector<2x16x8xf32>
    %117 = tpu.concatenate %113, %114, %115, %116 in 0 : vector<2x16x8xf32>, vector<2x16x8xf32>, vector<2x16x8xf32>, vector<2x16x8xf32> -> vector<8x16x8xf32>
    %118 = vector.extract_strided_slice %100 {offsets = [0, 0], sizes = [32, 32], strides = [1, 1]} : vector<32x128xf32> to vector<32x32xf32>
    %cst_39 = arith.constant 0.176776692 : f32
    %119 = vector.broadcast %cst_39 : f32 to vector<8x16x8xf32>
    %120 = arith.mulf %117, %119 : vector<8x16x8xf32>
    "tpu.trace_start"() <{level = 10 : i32, message = "bqd,bkd->bqk"}> : () -> ()
    %cst_40 = arith.constant dense<0.000000e+00> : vector<8x16x16xf32>
    %121 = tpu.matmul %120, %117, %cst_40 {dimension_numbers = #tpu.dot_dimension_numbers<[2], [2], [1], [1], [0, 0, 0, 1, 1, 1], [0], [0]>} : vector<8x16x8xf32>, vector<8x16x8xf32>, vector<8x16x16xf32> -> vector<8x16x16xf32>
    "tpu.trace_stop"() : () -> ()
    %122 = arith.addf %121, %1 : vector<8x16x16xf32>
    %cst_41 = arith.constant dense<0xFF800000> : vector<8x16xf32>
    %123 = vector.multi_reduction <maximumf>, %122, %cst_41 [2] : vector<8x16x16xf32> to vector<8x16xf32>
    %124 = vector.shape_cast %123 : vector<8x16xf32> to vector<8x16x1xf32>
    %125 = vector.broadcast %124 : vector<8x16x1xf32> to vector<8x16x16xf32>
    %126 = arith.subf %122, %125 : vector<8x16x16xf32>
    %127 = math.exp %126 : vector<8x16x16xf32>
    %cst_42 = arith.constant dense<0.000000e+00> : vector<8x16xf32>
    %128 = vector.multi_reduction <add>, %127, %cst_42 [2] : vector<8x16x16xf32> to vector<8x16xf32>
    %129 = vector.shape_cast %128 : vector<8x16xf32> to vector<8x16x1xf32>
    %130 = vector.broadcast %129 : vector<8x16x1xf32> to vector<8x16x16xf32>
    %131 = arith.divf %127, %130 : vector<8x16x16xf32>
    "tpu.trace_start"() <{level = 10 : i32, message = "bqk,bkd->bqd"}> : () -> ()
    %cst_43 = arith.constant dense<0.000000e+00> : vector<8x16x8xf32>
    %132 = tpu.matmul %131, %117, %cst_43 {dimension_numbers = #tpu.dot_dimension_numbers<[2], [1], [1], [2], [0, 0, 0, 1, 1, 2], [0], [0]>} : vector<8x16x16xf32>, vector<8x16x8xf32>, vector<8x16x8xf32> -> vector<8x16x8xf32>
    "tpu.trace_stop"() : () -> ()
    %133 = vector.extract_strided_slice %132 {offsets = [0, 0, 0], sizes = [2, 16, 8], strides = [1, 1, 1]} : vector<8x16x8xf32> to vector<2x16x8xf32>
    %134 = vector.shape_cast %133 : vector<2x16x8xf32> to vector<32x8xf32>
    %135 = vector.extract_strided_slice %132 {offsets = [2, 0, 0], sizes = [2, 16, 8], strides = [1, 1, 1]} : vector<8x16x8xf32> to vector<2x16x8xf32>
    %136 = vector.shape_cast %135 : vector<2x16x8xf32> to vector<32x8xf32>
    %137 = vector.extract_strided_slice %132 {offsets = [4, 0, 0], sizes = [2, 16, 8], strides = [1, 1, 1]} : vector<8x16x8xf32> to vector<2x16x8xf32>
    %138 = vector.shape_cast %137 : vector<2x16x8xf32> to vector<32x8xf32>
    %139 = vector.extract_strided_slice %132 {offsets = [6, 0, 0], sizes = [2, 16, 8], strides = [1, 1, 1]} : vector<8x16x8xf32> to vector<2x16x8xf32>
    %140 = vector.shape_cast %139 : vector<2x16x8xf32> to vector<32x8xf32>
    %141 = tpu.concatenate %134, %136, %138, %140 in 1 : vector<32x8xf32>, vector<32x8xf32>, vector<32x8xf32>, vector<32x8xf32> -> vector<32x32xf32>
    %cst_44 = arith.constant dense<0.000000e+00> : vector<32x32xf32>
    %142 = tpu.matmul %141, %118, %cst_44 {dimension_numbers = #tpu.dot_dimension_numbers<[1], [0], [0], [1], [0, 0, 1, 1], [], []>} : vector<32x32xf32>, vector<32x32xf32>, vector<32x32xf32> -> vector<32x32xf32>
    %143 = vector.broadcast %105 : vector<1x32xf32> to vector<32x32xf32>
    %144 = arith.addf %142, %143 : vector<32x32xf32>
    %145 = arith.addf %144, %98 : vector<32x32xf32>
    %cst_45 = arith.constant dense<0.000000e+00> : vector<32xf32>
    %146 = vector.multi_reduction <add>, %145, %cst_45 [1] : vector<32x32xf32> to vector<32xf32>
    %147 = vector.shape_cast %146 : vector<32xf32> to vector<32x1xf32>
    %cst_46 = arith.constant 3.200000e+01 : f32
    %148 = vector.broadcast %cst_46 : f32 to vector<32x1xf32>
    %149 = arith.divf %147, %148 : vector<32x1xf32>
    %150 = vector.broadcast %149 : vector<32x1xf32> to vector<32x32xf32>
    %151 = arith.subf %145, %150 : vector<32x32xf32>
    %152 = arith.mulf %151, %151 : vector<32x32xf32>
    %cst_47 = arith.constant dense<0.000000e+00> : vector<32xf32>
    %153 = vector.multi_reduction <add>, %152, %cst_47 [1] : vector<32x32xf32> to vector<32xf32>
    %154 = vector.shape_cast %153 : vector<32xf32> to vector<32x1xf32>
    %cst_48 = arith.constant 3.200000e+01 : f32
    %155 = vector.broadcast %cst_48 : f32 to vector<32x1xf32>
    %156 = arith.divf %154, %155 : vector<32x1xf32>
    %cst_49 = arith.constant 9.99999974E-6 : f32
    %157 = vector.broadcast %cst_49 : f32 to vector<32x1xf32>
    %158 = arith.addf %156, %157 : vector<32x1xf32>
    %159 = math.rsqrt %158 : vector<32x1xf32>
    %160 = vector.broadcast %159 : vector<32x1xf32> to vector<32x32xf32>
    %161 = arith.mulf %151, %160 : vector<32x32xf32>
    %162 = vector.broadcast %106 : vector<1x32xf32> to vector<32x32xf32>
    %163 = arith.mulf %161, %162 : vector<32x32xf32>
    %164 = vector.broadcast %107 : vector<1x32xf32> to vector<32x32xf32>
    %165 = arith.addf %163, %164 : vector<32x32xf32>
    %166 = vector.extract_strided_slice %100 {offsets = [0, 32], sizes = [32, 64], strides = [1, 1]} : vector<32x128xf32> to vector<32x64xf32>
    %cst_50 = arith.constant dense<0.000000e+00> : vector<32x64xf32>
    %167 = tpu.matmul %165, %166, %cst_50 {dimension_numbers = #tpu.dot_dimension_numbers<[1], [0], [0], [1], [0, 0, 1, 1], [], []>} : vector<32x32xf32>, vector<32x64xf32>, vector<32x64xf32> -> vector<32x64xf32>
    %168 = vector.broadcast %108 : vector<1x64xf32> to vector<32x64xf32>
    %169 = arith.addf %167, %168 : vector<32x64xf32>
    %cst_51 = arith.constant 0.000000e+00 : f32
    %170 = vector.broadcast %cst_51 : f32 to vector<32x64xf32>
    %171 = arith.maximumf %169, %170 : vector<32x64xf32>
    %cst_52 = arith.constant dense<0.000000e+00> : vector<32x32xf32>
    %172 = tpu.matmul %171, %102, %cst_52 {dimension_numbers = #tpu.dot_dimension_numbers<[1], [0], [0], [1], [0, 0, 1, 1], [], []>} : vector<32x64xf32>, vector<64x32xf32>, vector<32x32xf32> -> vector<32x32xf32>
    %173 = vector.broadcast %109 : vector<1x32xf32> to vector<32x32xf32>
    %174 = arith.addf %172, %173 : vector<32x32xf32>
    %175 = arith.addf %174, %165 : vector<32x32xf32>
    %cst_53 = arith.constant dense<0.000000e+00> : vector<32xf32>
    %176 = vector.multi_reduction <add>, %175, %cst_53 [1] : vector<32x32xf32> to vector<32xf32>
    %177 = vector.shape_cast %176 : vector<32xf32> to vector<32x1xf32>
    %cst_54 = arith.constant 3.200000e+01 : f32
    %178 = vector.broadcast %cst_54 : f32 to vector<32x1xf32>
    %179 = arith.divf %177, %178 : vector<32x1xf32>
    %180 = vector.broadcast %179 : vector<32x1xf32> to vector<32x32xf32>
    %181 = arith.subf %175, %180 : vector<32x32xf32>
    %182 = arith.mulf %181, %181 : vector<32x32xf32>
    %cst_55 = arith.constant dense<0.000000e+00> : vector<32xf32>
    %183 = vector.multi_reduction <add>, %182, %cst_55 [1] : vector<32x32xf32> to vector<32xf32>
    %184 = vector.shape_cast %183 : vector<32xf32> to vector<32x1xf32>
    %cst_56 = arith.constant 3.200000e+01 : f32
    %185 = vector.broadcast %cst_56 : f32 to vector<32x1xf32>
    %186 = arith.divf %184, %185 : vector<32x1xf32>
    %cst_57 = arith.constant 9.99999974E-6 : f32
    %187 = vector.broadcast %cst_57 : f32 to vector<32x1xf32>
    %188 = arith.addf %186, %187 : vector<32x1xf32>
    %189 = math.rsqrt %188 : vector<32x1xf32>
    %190 = vector.broadcast %189 : vector<32x1xf32> to vector<32x32xf32>
    %191 = arith.mulf %181, %190 : vector<32x32xf32>
    %192 = vector.broadcast %110 : vector<1x32xf32> to vector<32x32xf32>
    %193 = arith.mulf %191, %192 : vector<32x32xf32>
    %194 = vector.broadcast %111 : vector<1x32xf32> to vector<32x32xf32>
    %195 = arith.addf %193, %194 : vector<32x32xf32>
    %196 = vector.shape_cast %195 : vector<32x32xf32> to vector<2x16x32xf32>
    %197 = vector.extract_strided_slice %196 {offsets = [0, 8, 0], sizes = [2, 8, 32], strides = [1, 1, 1]} : vector<2x16x32xf32> to vector<2x8x32xf32>
    %198 = vector.extract_strided_slice %197 {offsets = [0, 0, 0], sizes = [2, 8, 8], strides = [1, 1, 1]} : vector<2x8x32xf32> to vector<2x8x8xf32>
    %199 = vector.extract_strided_slice %197 {offsets = [0, 0, 8], sizes = [2, 8, 8], strides = [1, 1, 1]} : vector<2x8x32xf32> to vector<2x8x8xf32>
    %200 = vector.extract_strided_slice %197 {offsets = [0, 0, 16], sizes = [2, 8, 8], strides = [1, 1, 1]} : vector<2x8x32xf32> to vector<2x8x8xf32>
    %201 = vector.extract_strided_slice %197 {offsets = [0, 0, 24], sizes = [2, 8, 8], strides = [1, 1, 1]} : vector<2x8x32xf32> to vector<2x8x8xf32>
    %202 = tpu.concatenate %198, %199, %200, %201 in 0 : vector<2x8x8xf32>, vector<2x8x8xf32>, vector<2x8x8xf32>, vector<2x8x8xf32> -> vector<8x8x8xf32>
    %c0_58 = arith.constant 0 : index
    %c0_59 = arith.constant 0 : index
    %203 = vector.load %arg2[%c0_58, %c0_59] : memref<16x32xf32, #tpu.memory_space<vmem>>, vector<16x32xf32>
    %c0_60 = arith.constant 0 : index
    %c0_61 = arith.constant 0 : index
    %c0_62 = arith.constant 0 : index
    %204 = vector.load %arg4[%c0_60, %c0_61, %c0_62] : memref<8x8x8xf32, #tpu.memory_space<vmem>>, vector<8x8x8xf32>
    %c0_63 = arith.constant 0 : index
    %c0_64 = arith.constant 0 : index
    %c0_65 = arith.constant 0 : index
    %205 = vector.load %arg5[%c0_63, %c0_64, %c0_65] : memref<8x8x8xf32, #tpu.memory_space<vmem>>, vector<8x8x8xf32>
    %c0_66 = arith.constant 0 : index
    %c0_67 = arith.constant 0 : index
    %c0_68 = arith.constant 0 : index
    %206 = vector.load %arg9[%c0_66, %c0_67, %c0_68] : memref<2x32x128xf32, #tpu.memory_space<vmem>>, vector<1x32x128xf32>
    %207 = vector.shape_cast %206 : vector<1x32x128xf32> to vector<32x128xf32>
    %c0_69 = arith.constant 0 : index
    %c0_70 = arith.constant 0 : index
    %c0_71 = arith.constant 0 : index
    %208 = vector.load %arg10[%c0_69, %c0_70, %c0_71] : memref<2x64x32xf32, #tpu.memory_space<vmem>>, vector<1x64x32xf32>
    %209 = vector.shape_cast %208 : vector<1x64x32xf32> to vector<64x32xf32>
    %c0_72 = arith.constant 0 : index
    %c0_73 = arith.constant 0 : index
    %c0_74 = arith.constant 0 : index
    %210 = vector.load %arg11[%c0_72, %c0_73, %c0_74] : memref<2x16x64xf32, #tpu.memory_space<vmem>>, vector<1x16x64xf32>
    %211 = vector.shape_cast %210 : vector<1x16x64xf32> to vector<16x64xf32>
    %212 = vector.extract_strided_slice %211 {offsets = [0, 0], sizes = [1, 32], strides = [1, 1]} : vector<16x64xf32> to vector<1x32xf32>
    %213 = vector.extract_strided_slice %211 {offsets = [1, 0], sizes = [1, 32], strides = [1, 1]} : vector<16x64xf32> to vector<1x32xf32>
    %214 = vector.extract_strided_slice %211 {offsets = [2, 0], sizes = [1, 32], strides = [1, 1]} : vector<16x64xf32> to vector<1x32xf32>
    %215 = vector.extract_strided_slice %211 {offsets = [3, 0], sizes = [1, 32], strides = [1, 1]} : vector<16x64xf32> to vector<1x32xf32>
    %216 = vector.extract_strided_slice %211 {offsets = [4, 0], sizes = [1, 32], strides = [1, 1]} : vector<16x64xf32> to vector<1x32xf32>
    %217 = vector.extract_strided_slice %211 {offsets = [5, 0], sizes = [1, 32], strides = [1, 1]} : vector<16x64xf32> to vector<1x32xf32>
    %218 = vector.extract_strided_slice %211 {offsets = [6, 0], sizes = [1, 64], strides = [1, 1]} : vector<16x64xf32> to vector<1x64xf32>
    %219 = vector.extract_strided_slice %211 {offsets = [7, 0], sizes = [1, 32], strides = [1, 1]} : vector<16x64xf32> to vector<1x32xf32>
    %220 = vector.extract_strided_slice %211 {offsets = [8, 0], sizes = [1, 32], strides = [1, 1]} : vector<16x64xf32> to vector<1x32xf32>
    %221 = vector.extract_strided_slice %211 {offsets = [9, 0], sizes = [1, 32], strides = [1, 1]} : vector<16x64xf32> to vector<1x32xf32>
    %222 = vector.shape_cast %203 : vector<16x32xf32> to vector<2x8x32xf32>
    %223 = vector.extract_strided_slice %222 {offsets = [0, 0, 0], sizes = [2, 8, 8], strides = [1, 1, 1]} : vector<2x8x32xf32> to vector<2x8x8xf32>
    %224 = vector.extract_strided_slice %222 {offsets = [0, 0, 8], sizes = [2, 8, 8], strides = [1, 1, 1]} : vector<2x8x32xf32> to vector<2x8x8xf32>
    %225 = vector.extract_strided_slice %222 {offsets = [0, 0, 16], sizes = [2, 8, 8], strides = [1, 1, 1]} : vector<2x8x32xf32> to vector<2x8x8xf32>
    %226 = vector.extract_strided_slice %222 {offsets = [0, 0, 24], sizes = [2, 8, 8], strides = [1, 1, 1]} : vector<2x8x32xf32> to vector<2x8x8xf32>
    %227 = tpu.concatenate %223, %224, %225, %226 in 0 : vector<2x8x8xf32>, vector<2x8x8xf32>, vector<2x8x8xf32>, vector<2x8x8xf32> -> vector<8x8x8xf32>
    %228 = vector.extract_strided_slice %207 {offsets = [0, 0], sizes = [32, 32], strides = [1, 1]} : vector<32x128xf32> to vector<32x32xf32>
    %cst_75 = arith.constant 0.176776692 : f32
    %229 = vector.broadcast %cst_75 : f32 to vector<8x8x8xf32>
    %230 = arith.mulf %227, %229 : vector<8x8x8xf32>
    "tpu.trace_start"() <{level = 10 : i32, message = "bqd,bkd->bqk"}> : () -> ()
    %cst_76 = arith.constant dense<0.000000e+00> : vector<8x8x8xf32>
    %231 = tpu.matmul %230, %227, %cst_76 {dimension_numbers = #tpu.dot_dimension_numbers<[2], [2], [1], [1], [0, 0, 0, 1, 1, 1], [0], [0]>} : vector<8x8x8xf32>, vector<8x8x8xf32>, vector<8x8x8xf32> -> vector<8x8x8xf32>
    "tpu.trace_stop"() : () -> ()
    %232 = arith.addf %231, %204 : vector<8x8x8xf32>
    %cst_77 = arith.constant dense<0xFF800000> : vector<8x8xf32>
    %233 = vector.multi_reduction <maximumf>, %232, %cst_77 [2] : vector<8x8x8xf32> to vector<8x8xf32>
    %234 = vector.shape_cast %233 : vector<8x8xf32> to vector<8x8x1xf32>
    %235 = vector.broadcast %234 : vector<8x8x1xf32> to vector<8x8x8xf32>
    %236 = arith.subf %232, %235 : vector<8x8x8xf32>
    %237 = math.exp %236 : vector<8x8x8xf32>
    %cst_78 = arith.constant dense<0.000000e+00> : vector<8x8xf32>
    %238 = vector.multi_reduction <add>, %237, %cst_78 [2] : vector<8x8x8xf32> to vector<8x8xf32>
    %239 = vector.shape_cast %238 : vector<8x8xf32> to vector<8x8x1xf32>
    %240 = vector.broadcast %239 : vector<8x8x1xf32> to vector<8x8x8xf32>
    %241 = arith.divf %237, %240 : vector<8x8x8xf32>
    "tpu.trace_start"() <{level = 10 : i32, message = "bqk,bkd->bqd"}> : () -> ()
    %cst_79 = arith.constant dense<0.000000e+00> : vector<8x8x8xf32>
    %242 = tpu.matmul %241, %227, %cst_79 {dimension_numbers = #tpu.dot_dimension_numbers<[2], [1], [1], [2], [0, 0, 0, 1, 1, 2], [0], [0]>} : vector<8x8x8xf32>, vector<8x8x8xf32>, vector<8x8x8xf32> -> vector<8x8x8xf32>
    "tpu.trace_stop"() : () -> ()
    %243 = vector.extract_strided_slice %242 {offsets = [0, 0, 0], sizes = [2, 8, 8], strides = [1, 1, 1]} : vector<8x8x8xf32> to vector<2x8x8xf32>
    %244 = vector.shape_cast %243 : vector<2x8x8xf32> to vector<16x8xf32>
    %245 = vector.extract_strided_slice %242 {offsets = [2, 0, 0], sizes = [2, 8, 8], strides = [1, 1, 1]} : vector<8x8x8xf32> to vector<2x8x8xf32>
    %246 = vector.shape_cast %245 : vector<2x8x8xf32> to vector<16x8xf32>
    %247 = vector.extract_strided_slice %242 {offsets = [4, 0, 0], sizes = [2, 8, 8], strides = [1, 1, 1]} : vector<8x8x8xf32> to vector<2x8x8xf32>
    %248 = vector.shape_cast %247 : vector<2x8x8xf32> to vector<16x8xf32>
    %249 = vector.extract_strided_slice %242 {offsets = [6, 0, 0], sizes = [2, 8, 8], strides = [1, 1, 1]} : vector<8x8x8xf32> to vector<2x8x8xf32>
    %250 = vector.shape_cast %249 : vector<2x8x8xf32> to vector<16x8xf32>
    %251 = tpu.concatenate %244, %246, %248, %250 in 1 : vector<16x8xf32>, vector<16x8xf32>, vector<16x8xf32>, vector<16x8xf32> -> vector<16x32xf32>
    %cst_80 = arith.constant dense<0.000000e+00> : vector<16x32xf32>
    %252 = tpu.matmul %251, %228, %cst_80 {dimension_numbers = #tpu.dot_dimension_numbers<[1], [0], [0], [1], [0, 0, 1, 1], [], []>} : vector<16x32xf32>, vector<32x32xf32>, vector<16x32xf32> -> vector<16x32xf32>
    %253 = vector.broadcast %212 : vector<1x32xf32> to vector<16x32xf32>
    %254 = arith.addf %252, %253 : vector<16x32xf32>
    %255 = arith.addf %254, %203 : vector<16x32xf32>
    %cst_81 = arith.constant dense<0.000000e+00> : vector<16xf32>
    %256 = vector.multi_reduction <add>, %255, %cst_81 [1] : vector<16x32xf32> to vector<16xf32>
    %257 = vector.shape_cast %256 : vector<16xf32> to vector<16x1xf32>
    %cst_82 = arith.constant 3.200000e+01 : f32
    %258 = vector.broadcast %cst_82 : f32 to vector<16x1xf32>
    %259 = arith.divf %257, %258 : vector<16x1xf32>
    %260 = vector.broadcast %259 : vector<16x1xf32> to vector<16x32xf32>
    %261 = arith.subf %255, %260 : vector<16x32xf32>
    %262 = arith.mulf %261, %261 : vector<16x32xf32>
    %cst_83 = arith.constant dense<0.000000e+00> : vector<16xf32>
    %263 = vector.multi_reduction <add>, %262, %cst_83 [1] : vector<16x32xf32> to vector<16xf32>
    %264 = vector.shape_cast %263 : vector<16xf32> to vector<16x1xf32>
    %cst_84 = arith.constant 3.200000e+01 : f32
    %265 = vector.broadcast %cst_84 : f32 to vector<16x1xf32>
    %266 = arith.divf %264, %265 : vector<16x1xf32>
    %cst_85 = arith.constant 9.99999974E-6 : f32
    %267 = vector.broadcast %cst_85 : f32 to vector<16x1xf32>
    %268 = arith.addf %266, %267 : vector<16x1xf32>
    %269 = math.rsqrt %268 : vector<16x1xf32>
    %270 = vector.broadcast %269 : vector<16x1xf32> to vector<16x32xf32>
    %271 = arith.mulf %261, %270 : vector<16x32xf32>
    %272 = vector.broadcast %213 : vector<1x32xf32> to vector<16x32xf32>
    %273 = arith.mulf %271, %272 : vector<16x32xf32>
    %274 = vector.broadcast %214 : vector<1x32xf32> to vector<16x32xf32>
    %275 = arith.addf %273, %274 : vector<16x32xf32>
    %276 = vector.shape_cast %275 : vector<16x32xf32> to vector<2x8x32xf32>
    %277 = vector.extract_strided_slice %276 {offsets = [0, 0, 0], sizes = [2, 8, 8], strides = [1, 1, 1]} : vector<2x8x32xf32> to vector<2x8x8xf32>
    %278 = vector.extract_strided_slice %276 {offsets = [0, 0, 8], sizes = [2, 8, 8], strides = [1, 1, 1]} : vector<2x8x32xf32> to vector<2x8x8xf32>
    %279 = vector.extract_strided_slice %276 {offsets = [0, 0, 16], sizes = [2, 8, 8], strides = [1, 1, 1]} : vector<2x8x32xf32> to vector<2x8x8xf32>
    %280 = vector.extract_strided_slice %276 {offsets = [0, 0, 24], sizes = [2, 8, 8], strides = [1, 1, 1]} : vector<2x8x32xf32> to vector<2x8x8xf32>
    %281 = tpu.concatenate %277, %278, %279, %280 in 0 : vector<2x8x8xf32>, vector<2x8x8xf32>, vector<2x8x8xf32>, vector<2x8x8xf32> -> vector<8x8x8xf32>
    %282 = vector.extract_strided_slice %207 {offsets = [0, 32], sizes = [32, 32], strides = [1, 1]} : vector<32x128xf32> to vector<32x32xf32>
    %cst_86 = arith.constant 0.176776692 : f32
    %283 = vector.broadcast %cst_86 : f32 to vector<8x8x8xf32>
    %284 = arith.mulf %281, %283 : vector<8x8x8xf32>
    "tpu.trace_start"() <{level = 10 : i32, message = "bqd,bkd->bqk"}> : () -> ()
    %cst_87 = arith.constant dense<0.000000e+00> : vector<8x8x8xf32>
    %285 = tpu.matmul %284, %202, %cst_87 {dimension_numbers = #tpu.dot_dimension_numbers<[2], [2], [1], [1], [0, 0, 0, 1, 1, 1], [0], [0]>} : vector<8x8x8xf32>, vector<8x8x8xf32>, vector<8x8x8xf32> -> vector<8x8x8xf32>
    "tpu.trace_stop"() : () -> ()
    %286 = arith.addf %285, %205 : vector<8x8x8xf32>
    %cst_88 = arith.constant dense<0xFF800000> : vector<8x8xf32>
    %287 = vector.multi_reduction <maximumf>, %286, %cst_88 [2] : vector<8x8x8xf32> to vector<8x8xf32>
    %288 = vector.shape_cast %287 : vector<8x8xf32> to vector<8x8x1xf32>
    %289 = vector.broadcast %288 : vector<8x8x1xf32> to vector<8x8x8xf32>
    %290 = arith.subf %286, %289 : vector<8x8x8xf32>
    %291 = math.exp %290 : vector<8x8x8xf32>
    %cst_89 = arith.constant dense<0.000000e+00> : vector<8x8xf32>
    %292 = vector.multi_reduction <add>, %291, %cst_89 [2] : vector<8x8x8xf32> to vector<8x8xf32>
    %293 = vector.shape_cast %292 : vector<8x8xf32> to vector<8x8x1xf32>
    %294 = vector.broadcast %293 : vector<8x8x1xf32> to vector<8x8x8xf32>
    %295 = arith.divf %291, %294 : vector<8x8x8xf32>
    "tpu.trace_start"() <{level = 10 : i32, message = "bqk,bkd->bqd"}> : () -> ()
    %cst_90 = arith.constant dense<0.000000e+00> : vector<8x8x8xf32>
    %296 = tpu.matmul %295, %202, %cst_90 {dimension_numbers = #tpu.dot_dimension_numbers<[2], [1], [1], [2], [0, 0, 0, 1, 1, 2], [0], [0]>} : vector<8x8x8xf32>, vector<8x8x8xf32>, vector<8x8x8xf32> -> vector<8x8x8xf32>
    "tpu.trace_stop"() : () -> ()
    %297 = vector.extract_strided_slice %296 {offsets = [0, 0, 0], sizes = [2, 8, 8], strides = [1, 1, 1]} : vector<8x8x8xf32> to vector<2x8x8xf32>
    %298 = vector.shape_cast %297 : vector<2x8x8xf32> to vector<16x8xf32>
    %299 = vector.extract_strided_slice %296 {offsets = [2, 0, 0], sizes = [2, 8, 8], strides = [1, 1, 1]} : vector<8x8x8xf32> to vector<2x8x8xf32>
    %300 = vector.shape_cast %299 : vector<2x8x8xf32> to vector<16x8xf32>
    %301 = vector.extract_strided_slice %296 {offsets = [4, 0, 0], sizes = [2, 8, 8], strides = [1, 1, 1]} : vector<8x8x8xf32> to vector<2x8x8xf32>
    %302 = vector.shape_cast %301 : vector<2x8x8xf32> to vector<16x8xf32>
    %303 = vector.extract_strided_slice %296 {offsets = [6, 0, 0], sizes = [2, 8, 8], strides = [1, 1, 1]} : vector<8x8x8xf32> to vector<2x8x8xf32>
    %304 = vector.shape_cast %303 : vector<2x8x8xf32> to vector<16x8xf32>
    %305 = tpu.concatenate %298, %300, %302, %304 in 1 : vector<16x8xf32>, vector<16x8xf32>, vector<16x8xf32>, vector<16x8xf32> -> vector<16x32xf32>
    %cst_91 = arith.constant dense<0.000000e+00> : vector<16x32xf32>
    %306 = tpu.matmul %305, %282, %cst_91 {dimension_numbers = #tpu.dot_dimension_numbers<[1], [0], [0], [1], [0, 0, 1, 1], [], []>} : vector<16x32xf32>, vector<32x32xf32>, vector<16x32xf32> -> vector<16x32xf32>
    %307 = vector.broadcast %215 : vector<1x32xf32> to vector<16x32xf32>
    %308 = arith.addf %306, %307 : vector<16x32xf32>
    %309 = arith.addf %308, %275 : vector<16x32xf32>
    %cst_92 = arith.constant dense<0.000000e+00> : vector<16xf32>
    %310 = vector.multi_reduction <add>, %309, %cst_92 [1] : vector<16x32xf32> to vector<16xf32>
    %311 = vector.shape_cast %310 : vector<16xf32> to vector<16x1xf32>
    %cst_93 = arith.constant 3.200000e+01 : f32
    %312 = vector.broadcast %cst_93 : f32 to vector<16x1xf32>
    %313 = arith.divf %311, %312 : vector<16x1xf32>
    %314 = vector.broadcast %313 : vector<16x1xf32> to vector<16x32xf32>
    %315 = arith.subf %309, %314 : vector<16x32xf32>
    %316 = arith.mulf %315, %315 : vector<16x32xf32>
    %cst_94 = arith.constant dense<0.000000e+00> : vector<16xf32>
    %317 = vector.multi_reduction <add>, %316, %cst_94 [1] : vector<16x32xf32> to vector<16xf32>
    %318 = vector.shape_cast %317 : vector<16xf32> to vector<16x1xf32>
    %cst_95 = arith.constant 3.200000e+01 : f32
    %319 = vector.broadcast %cst_95 : f32 to vector<16x1xf32>
    %320 = arith.divf %318, %319 : vector<16x1xf32>
    %cst_96 = arith.constant 9.99999974E-6 : f32
    %321 = vector.broadcast %cst_96 : f32 to vector<16x1xf32>
    %322 = arith.addf %320, %321 : vector<16x1xf32>
    %323 = math.rsqrt %322 : vector<16x1xf32>
    %324 = vector.broadcast %323 : vector<16x1xf32> to vector<16x32xf32>
    %325 = arith.mulf %315, %324 : vector<16x32xf32>
    %326 = vector.broadcast %216 : vector<1x32xf32> to vector<16x32xf32>
    %327 = arith.mulf %325, %326 : vector<16x32xf32>
    %328 = vector.broadcast %217 : vector<1x32xf32> to vector<16x32xf32>
    %329 = arith.addf %327, %328 : vector<16x32xf32>
    %330 = vector.extract_strided_slice %207 {offsets = [0, 64], sizes = [32, 64], strides = [1, 1]} : vector<32x128xf32> to vector<32x64xf32>
    %cst_97 = arith.constant dense<0.000000e+00> : vector<16x64xf32>
    %331 = tpu.matmul %329, %330, %cst_97 {dimension_numbers = #tpu.dot_dimension_numbers<[1], [0], [0], [1], [0, 0, 1, 1], [], []>} : vector<16x32xf32>, vector<32x64xf32>, vector<16x64xf32> -> vector<16x64xf32>
    %332 = vector.broadcast %218 : vector<1x64xf32> to vector<16x64xf32>
    %333 = arith.addf %331, %332 : vector<16x64xf32>
    %cst_98 = arith.constant 0.000000e+00 : f32
    %334 = vector.broadcast %cst_98 : f32 to vector<16x64xf32>
    %335 = arith.maximumf %333, %334 : vector<16x64xf32>
    %cst_99 = arith.constant dense<0.000000e+00> : vector<16x32xf32>
    %336 = tpu.matmul %335, %209, %cst_99 {dimension_numbers = #tpu.dot_dimension_numbers<[1], [0], [0], [1], [0, 0, 1, 1], [], []>} : vector<16x64xf32>, vector<64x32xf32>, vector<16x32xf32> -> vector<16x32xf32>
    %337 = vector.broadcast %219 : vector<1x32xf32> to vector<16x32xf32>
    %338 = arith.addf %336, %337 : vector<16x32xf32>
    %339 = arith.addf %338, %329 : vector<16x32xf32>
    %cst_100 = arith.constant dense<0.000000e+00> : vector<16xf32>
    %340 = vector.multi_reduction <add>, %339, %cst_100 [1] : vector<16x32xf32> to vector<16xf32>
    %341 = vector.shape_cast %340 : vector<16xf32> to vector<16x1xf32>
    %cst_101 = arith.constant 3.200000e+01 : f32
    %342 = vector.broadcast %cst_101 : f32 to vector<16x1xf32>
    %343 = arith.divf %341, %342 : vector<16x1xf32>
    %344 = vector.broadcast %343 : vector<16x1xf32> to vector<16x32xf32>
    %345 = arith.subf %339, %344 : vector<16x32xf32>
    %346 = arith.mulf %345, %345 : vector<16x32xf32>
    %cst_102 = arith.constant dense<0.000000e+00> : vector<16xf32>
    %347 = vector.multi_reduction <add>, %346, %cst_102 [1] : vector<16x32xf32> to vector<16xf32>
    %348 = vector.shape_cast %347 : vector<16xf32> to vector<16x1xf32>
    %cst_103 = arith.constant 3.200000e+01 : f32
    %349 = vector.broadcast %cst_103 : f32 to vector<16x1xf32>
    %350 = arith.divf %348, %349 : vector<16x1xf32>
    %cst_104 = arith.constant 9.99999974E-6 : f32
    %351 = vector.broadcast %cst_104 : f32 to vector<16x1xf32>
    %352 = arith.addf %350, %351 : vector<16x1xf32>
    %353 = math.rsqrt %352 : vector<16x1xf32>
    %354 = vector.broadcast %353 : vector<16x1xf32> to vector<16x32xf32>
    %355 = arith.mulf %345, %354 : vector<16x32xf32>
    %356 = vector.broadcast %220 : vector<1x32xf32> to vector<16x32xf32>
    %357 = arith.mulf %355, %356 : vector<16x32xf32>
    %358 = vector.broadcast %221 : vector<1x32xf32> to vector<16x32xf32>
    %359 = arith.addf %357, %358 : vector<16x32xf32>
    %c1_105 = arith.constant 1 : index
    %c0_106 = arith.constant 0 : index
    %c0_107 = arith.constant 0 : index
    %360 = vector.load %arg9[%c1_105, %c0_106, %c0_107] : memref<2x32x128xf32, #tpu.memory_space<vmem>>, vector<1x32x128xf32>
    %361 = vector.shape_cast %360 : vector<1x32x128xf32> to vector<32x128xf32>
    %c1_108 = arith.constant 1 : index
    %c0_109 = arith.constant 0 : index
    %c0_110 = arith.constant 0 : index
    %362 = vector.load %arg10[%c1_108, %c0_109, %c0_110] : memref<2x64x32xf32, #tpu.memory_space<vmem>>, vector<1x64x32xf32>
    %363 = vector.shape_cast %362 : vector<1x64x32xf32> to vector<64x32xf32>
    %c1_111 = arith.constant 1 : index
    %c0_112 = arith.constant 0 : index
    %c0_113 = arith.constant 0 : index
    %364 = vector.load %arg11[%c1_111, %c0_112, %c0_113] : memref<2x16x64xf32, #tpu.memory_space<vmem>>, vector<1x16x64xf32>
    %365 = vector.shape_cast %364 : vector<1x16x64xf32> to vector<16x64xf32>
    %366 = vector.extract_strided_slice %365 {offsets = [0, 0], sizes = [1, 32], strides = [1, 1]} : vector<16x64xf32> to vector<1x32xf32>
    %367 = vector.extract_strided_slice %365 {offsets = [1, 0], sizes = [1, 32], strides = [1, 1]} : vector<16x64xf32> to vector<1x32xf32>
    %368 = vector.extract_strided_slice %365 {offsets = [2, 0], sizes = [1, 32], strides = [1, 1]} : vector<16x64xf32> to vector<1x32xf32>
    %369 = vector.extract_strided_slice %365 {offsets = [3, 0], sizes = [1, 32], strides = [1, 1]} : vector<16x64xf32> to vector<1x32xf32>
    %370 = vector.extract_strided_slice %365 {offsets = [4, 0], sizes = [1, 32], strides = [1, 1]} : vector<16x64xf32> to vector<1x32xf32>
    %371 = vector.extract_strided_slice %365 {offsets = [5, 0], sizes = [1, 32], strides = [1, 1]} : vector<16x64xf32> to vector<1x32xf32>
    %372 = vector.extract_strided_slice %365 {offsets = [6, 0], sizes = [1, 64], strides = [1, 1]} : vector<16x64xf32> to vector<1x64xf32>
    %373 = vector.extract_strided_slice %365 {offsets = [7, 0], sizes = [1, 32], strides = [1, 1]} : vector<16x64xf32> to vector<1x32xf32>
    %374 = vector.extract_strided_slice %365 {offsets = [8, 0], sizes = [1, 32], strides = [1, 1]} : vector<16x64xf32> to vector<1x32xf32>
    %375 = vector.extract_strided_slice %365 {offsets = [9, 0], sizes = [1, 32], strides = [1, 1]} : vector<16x64xf32> to vector<1x32xf32>
    %376 = vector.shape_cast %359 : vector<16x32xf32> to vector<2x8x32xf32>
    %377 = vector.extract_strided_slice %376 {offsets = [0, 0, 0], sizes = [2, 8, 8], strides = [1, 1, 1]} : vector<2x8x32xf32> to vector<2x8x8xf32>
    %378 = vector.extract_strided_slice %376 {offsets = [0, 0, 8], sizes = [2, 8, 8], strides = [1, 1, 1]} : vector<2x8x32xf32> to vector<2x8x8xf32>
    %379 = vector.extract_strided_slice %376 {offsets = [0, 0, 16], sizes = [2, 8, 8], strides = [1, 1, 1]} : vector<2x8x32xf32> to vector<2x8x8xf32>
    %380 = vector.extract_strided_slice %376 {offsets = [0, 0, 24], sizes = [2, 8, 8], strides = [1, 1, 1]} : vector<2x8x32xf32> to vector<2x8x8xf32>
    %381 = tpu.concatenate %377, %378, %379, %380 in 0 : vector<2x8x8xf32>, vector<2x8x8xf32>, vector<2x8x8xf32>, vector<2x8x8xf32> -> vector<8x8x8xf32>
    %382 = vector.extract_strided_slice %361 {offsets = [0, 0], sizes = [32, 32], strides = [1, 1]} : vector<32x128xf32> to vector<32x32xf32>
    %cst_114 = arith.constant 0.176776692 : f32
    %383 = vector.broadcast %cst_114 : f32 to vector<8x8x8xf32>
    %384 = arith.mulf %381, %383 : vector<8x8x8xf32>
    "tpu.trace_start"() <{level = 10 : i32, message = "bqd,bkd->bqk"}> : () -> ()
    %cst_115 = arith.constant dense<0.000000e+00> : vector<8x8x8xf32>
    %385 = tpu.matmul %384, %381, %cst_115 {dimension_numbers = #tpu.dot_dimension_numbers<[2], [2], [1], [1], [0, 0, 0, 1, 1, 1], [0], [0]>} : vector<8x8x8xf32>, vector<8x8x8xf32>, vector<8x8x8xf32> -> vector<8x8x8xf32>
    "tpu.trace_stop"() : () -> ()
    %386 = arith.addf %385, %204 : vector<8x8x8xf32>
    %cst_116 = arith.constant dense<0xFF800000> : vector<8x8xf32>
    %387 = vector.multi_reduction <maximumf>, %386, %cst_116 [2] : vector<8x8x8xf32> to vector<8x8xf32>
    %388 = vector.shape_cast %387 : vector<8x8xf32> to vector<8x8x1xf32>
    %389 = vector.broadcast %388 : vector<8x8x1xf32> to vector<8x8x8xf32>
    %390 = arith.subf %386, %389 : vector<8x8x8xf32>
    %391 = math.exp %390 : vector<8x8x8xf32>
    %cst_117 = arith.constant dense<0.000000e+00> : vector<8x8xf32>
    %392 = vector.multi_reduction <add>, %391, %cst_117 [2] : vector<8x8x8xf32> to vector<8x8xf32>
    %393 = vector.shape_cast %392 : vector<8x8xf32> to vector<8x8x1xf32>
    %394 = vector.broadcast %393 : vector<8x8x1xf32> to vector<8x8x8xf32>
    %395 = arith.divf %391, %394 : vector<8x8x8xf32>
    "tpu.trace_start"() <{level = 10 : i32, message = "bqk,bkd->bqd"}> : () -> ()
    %cst_118 = arith.constant dense<0.000000e+00> : vector<8x8x8xf32>
    %396 = tpu.matmul %395, %381, %cst_118 {dimension_numbers = #tpu.dot_dimension_numbers<[2], [1], [1], [2], [0, 0, 0, 1, 1, 2], [0], [0]>} : vector<8x8x8xf32>, vector<8x8x8xf32>, vector<8x8x8xf32> -> vector<8x8x8xf32>
    "tpu.trace_stop"() : () -> ()
    %397 = vector.extract_strided_slice %396 {offsets = [0, 0, 0], sizes = [2, 8, 8], strides = [1, 1, 1]} : vector<8x8x8xf32> to vector<2x8x8xf32>
    %398 = vector.shape_cast %397 : vector<2x8x8xf32> to vector<16x8xf32>
    %399 = vector.extract_strided_slice %396 {offsets = [2, 0, 0], sizes = [2, 8, 8], strides = [1, 1, 1]} : vector<8x8x8xf32> to vector<2x8x8xf32>
    %400 = vector.shape_cast %399 : vector<2x8x8xf32> to vector<16x8xf32>
    %401 = vector.extract_strided_slice %396 {offsets = [4, 0, 0], sizes = [2, 8, 8], strides = [1, 1, 1]} : vector<8x8x8xf32> to vector<2x8x8xf32>
    %402 = vector.shape_cast %401 : vector<2x8x8xf32> to vector<16x8xf32>
    %403 = vector.extract_strided_slice %396 {offsets = [6, 0, 0], sizes = [2, 8, 8], strides = [1, 1, 1]} : vector<8x8x8xf32> to vector<2x8x8xf32>
    %404 = vector.shape_cast %403 : vector<2x8x8xf32> to vector<16x8xf32>
    %405 = tpu.concatenate %398, %400, %402, %404 in 1 : vector<16x8xf32>, vector<16x8xf32>, vector<16x8xf32>, vector<16x8xf32> -> vector<16x32xf32>
    %cst_119 = arith.constant dense<0.000000e+00> : vector<16x32xf32>
    %406 = tpu.matmul %405, %382, %cst_119 {dimension_numbers = #tpu.dot_dimension_numbers<[1], [0], [0], [1], [0, 0, 1, 1], [], []>} : vector<16x32xf32>, vector<32x32xf32>, vector<16x32xf32> -> vector<16x32xf32>
    %407 = vector.broadcast %366 : vector<1x32xf32> to vector<16x32xf32>
    %408 = arith.addf %406, %407 : vector<16x32xf32>
    %409 = arith.addf %408, %359 : vector<16x32xf32>
    %cst_120 = arith.constant dense<0.000000e+00> : vector<16xf32>
    %410 = vector.multi_reduction <add>, %409, %cst_120 [1] : vector<16x32xf32> to vector<16xf32>
    %411 = vector.shape_cast %410 : vector<16xf32> to vector<16x1xf32>
    %cst_121 = arith.constant 3.200000e+01 : f32
    %412 = vector.broadcast %cst_121 : f32 to vector<16x1xf32>
    %413 = arith.divf %411, %412 : vector<16x1xf32>
    %414 = vector.broadcast %413 : vector<16x1xf32> to vector<16x32xf32>
    %415 = arith.subf %409, %414 : vector<16x32xf32>
    %416 = arith.mulf %415, %415 : vector<16x32xf32>
    %cst_122 = arith.constant dense<0.000000e+00> : vector<16xf32>
    %417 = vector.multi_reduction <add>, %416, %cst_122 [1] : vector<16x32xf32> to vector<16xf32>
    %418 = vector.shape_cast %417 : vector<16xf32> to vector<16x1xf32>
    %cst_123 = arith.constant 3.200000e+01 : f32
    %419 = vector.broadcast %cst_123 : f32 to vector<16x1xf32>
    %420 = arith.divf %418, %419 : vector<16x1xf32>
    %cst_124 = arith.constant 9.99999974E-6 : f32
    %421 = vector.broadcast %cst_124 : f32 to vector<16x1xf32>
    %422 = arith.addf %420, %421 : vector<16x1xf32>
    %423 = math.rsqrt %422 : vector<16x1xf32>
    %424 = vector.broadcast %423 : vector<16x1xf32> to vector<16x32xf32>
    %425 = arith.mulf %415, %424 : vector<16x32xf32>
    %426 = vector.broadcast %367 : vector<1x32xf32> to vector<16x32xf32>
    %427 = arith.mulf %425, %426 : vector<16x32xf32>
    %428 = vector.broadcast %368 : vector<1x32xf32> to vector<16x32xf32>
    %429 = arith.addf %427, %428 : vector<16x32xf32>
    %430 = vector.shape_cast %429 : vector<16x32xf32> to vector<2x8x32xf32>
    %431 = vector.extract_strided_slice %430 {offsets = [0, 0, 0], sizes = [2, 8, 8], strides = [1, 1, 1]} : vector<2x8x32xf32> to vector<2x8x8xf32>
    %432 = vector.extract_strided_slice %430 {offsets = [0, 0, 8], sizes = [2, 8, 8], strides = [1, 1, 1]} : vector<2x8x32xf32> to vector<2x8x8xf32>
    %433 = vector.extract_strided_slice %430 {offsets = [0, 0, 16], sizes = [2, 8, 8], strides = [1, 1, 1]} : vector<2x8x32xf32> to vector<2x8x8xf32>
    %434 = vector.extract_strided_slice %430 {offsets = [0, 0, 24], sizes = [2, 8, 8], strides = [1, 1, 1]} : vector<2x8x32xf32> to vector<2x8x8xf32>
    %435 = tpu.concatenate %431, %432, %433, %434 in 0 : vector<2x8x8xf32>, vector<2x8x8xf32>, vector<2x8x8xf32>, vector<2x8x8xf32> -> vector<8x8x8xf32>
    %436 = vector.extract_strided_slice %361 {offsets = [0, 32], sizes = [32, 32], strides = [1, 1]} : vector<32x128xf32> to vector<32x32xf32>
    %cst_125 = arith.constant 0.176776692 : f32
    %437 = vector.broadcast %cst_125 : f32 to vector<8x8x8xf32>
    %438 = arith.mulf %435, %437 : vector<8x8x8xf32>
    "tpu.trace_start"() <{level = 10 : i32, message = "bqd,bkd->bqk"}> : () -> ()
    %cst_126 = arith.constant dense<0.000000e+00> : vector<8x8x8xf32>
    %439 = tpu.matmul %438, %202, %cst_126 {dimension_numbers = #tpu.dot_dimension_numbers<[2], [2], [1], [1], [0, 0, 0, 1, 1, 1], [0], [0]>} : vector<8x8x8xf32>, vector<8x8x8xf32>, vector<8x8x8xf32> -> vector<8x8x8xf32>
    "tpu.trace_stop"() : () -> ()
    %440 = arith.addf %439, %205 : vector<8x8x8xf32>
    %cst_127 = arith.constant dense<0xFF800000> : vector<8x8xf32>
    %441 = vector.multi_reduction <maximumf>, %440, %cst_127 [2] : vector<8x8x8xf32> to vector<8x8xf32>
    %442 = vector.shape_cast %441 : vector<8x8xf32> to vector<8x8x1xf32>
    %443 = vector.broadcast %442 : vector<8x8x1xf32> to vector<8x8x8xf32>
    %444 = arith.subf %440, %443 : vector<8x8x8xf32>
    %445 = math.exp %444 : vector<8x8x8xf32>
    %cst_128 = arith.constant dense<0.000000e+00> : vector<8x8xf32>
    %446 = vector.multi_reduction <add>, %445, %cst_128 [2] : vector<8x8x8xf32> to vector<8x8xf32>
    %447 = vector.shape_cast %446 : vector<8x8xf32> to vector<8x8x1xf32>
    %448 = vector.broadcast %447 : vector<8x8x1xf32> to vector<8x8x8xf32>
    %449 = arith.divf %445, %448 : vector<8x8x8xf32>
    "tpu.trace_start"() <{level = 10 : i32, message = "bqk,bkd->bqd"}> : () -> ()
    %cst_129 = arith.constant dense<0.000000e+00> : vector<8x8x8xf32>
    %450 = tpu.matmul %449, %202, %cst_129 {dimension_numbers = #tpu.dot_dimension_numbers<[2], [1], [1], [2], [0, 0, 0, 1, 1, 2], [0], [0]>} : vector<8x8x8xf32>, vector<8x8x8xf32>, vector<8x8x8xf32> -> vector<8x8x8xf32>
    "tpu.trace_stop"() : () -> ()
    %451 = vector.extract_strided_slice %450 {offsets = [0, 0, 0], sizes = [2, 8, 8], strides = [1, 1, 1]} : vector<8x8x8xf32> to vector<2x8x8xf32>
    %452 = vector.shape_cast %451 : vector<2x8x8xf32> to vector<16x8xf32>
    %453 = vector.extract_strided_slice %450 {offsets = [2, 0, 0], sizes = [2, 8, 8], strides = [1, 1, 1]} : vector<8x8x8xf32> to vector<2x8x8xf32>
    %454 = vector.shape_cast %453 : vector<2x8x8xf32> to vector<16x8xf32>
    %455 = vector.extract_strided_slice %450 {offsets = [4, 0, 0], sizes = [2, 8, 8], strides = [1, 1, 1]} : vector<8x8x8xf32> to vector<2x8x8xf32>
    %456 = vector.shape_cast %455 : vector<2x8x8xf32> to vector<16x8xf32>
    %457 = vector.extract_strided_slice %450 {offsets = [6, 0, 0], sizes = [2, 8, 8], strides = [1, 1, 1]} : vector<8x8x8xf32> to vector<2x8x8xf32>
    %458 = vector.shape_cast %457 : vector<2x8x8xf32> to vector<16x8xf32>
    %459 = tpu.concatenate %452, %454, %456, %458 in 1 : vector<16x8xf32>, vector<16x8xf32>, vector<16x8xf32>, vector<16x8xf32> -> vector<16x32xf32>
    %cst_130 = arith.constant dense<0.000000e+00> : vector<16x32xf32>
    %460 = tpu.matmul %459, %436, %cst_130 {dimension_numbers = #tpu.dot_dimension_numbers<[1], [0], [0], [1], [0, 0, 1, 1], [], []>} : vector<16x32xf32>, vector<32x32xf32>, vector<16x32xf32> -> vector<16x32xf32>
    %461 = vector.broadcast %369 : vector<1x32xf32> to vector<16x32xf32>
    %462 = arith.addf %460, %461 : vector<16x32xf32>
    %463 = arith.addf %462, %429 : vector<16x32xf32>
    %cst_131 = arith.constant dense<0.000000e+00> : vector<16xf32>
    %464 = vector.multi_reduction <add>, %463, %cst_131 [1] : vector<16x32xf32> to vector<16xf32>
    %465 = vector.shape_cast %464 : vector<16xf32> to vector<16x1xf32>
    %cst_132 = arith.constant 3.200000e+01 : f32
    %466 = vector.broadcast %cst_132 : f32 to vector<16x1xf32>
    %467 = arith.divf %465, %466 : vector<16x1xf32>
    %468 = vector.broadcast %467 : vector<16x1xf32> to vector<16x32xf32>
    %469 = arith.subf %463, %468 : vector<16x32xf32>
    %470 = arith.mulf %469, %469 : vector<16x32xf32>
    %cst_133 = arith.constant dense<0.000000e+00> : vector<16xf32>
    %471 = vector.multi_reduction <add>, %470, %cst_133 [1] : vector<16x32xf32> to vector<16xf32>
    %472 = vector.shape_cast %471 : vector<16xf32> to vector<16x1xf32>
    %cst_134 = arith.constant 3.200000e+01 : f32
    %473 = vector.broadcast %cst_134 : f32 to vector<16x1xf32>
    %474 = arith.divf %472, %473 : vector<16x1xf32>
    %cst_135 = arith.constant 9.99999974E-6 : f32
    %475 = vector.broadcast %cst_135 : f32 to vector<16x1xf32>
    %476 = arith.addf %474, %475 : vector<16x1xf32>
    %477 = math.rsqrt %476 : vector<16x1xf32>
    %478 = vector.broadcast %477 : vector<16x1xf32> to vector<16x32xf32>
    %479 = arith.mulf %469, %478 : vector<16x32xf32>
    %480 = vector.broadcast %370 : vector<1x32xf32> to vector<16x32xf32>
    %481 = arith.mulf %479, %480 : vector<16x32xf32>
    %482 = vector.broadcast %371 : vector<1x32xf32> to vector<16x32xf32>
    %483 = arith.addf %481, %482 : vector<16x32xf32>
    %484 = vector.extract_strided_slice %361 {offsets = [0, 64], sizes = [32, 64], strides = [1, 1]} : vector<32x128xf32> to vector<32x64xf32>
    %cst_136 = arith.constant dense<0.000000e+00> : vector<16x64xf32>
    %485 = tpu.matmul %483, %484, %cst_136 {dimension_numbers = #tpu.dot_dimension_numbers<[1], [0], [0], [1], [0, 0, 1, 1], [], []>} : vector<16x32xf32>, vector<32x64xf32>, vector<16x64xf32> -> vector<16x64xf32>
    %486 = vector.broadcast %372 : vector<1x64xf32> to vector<16x64xf32>
    %487 = arith.addf %485, %486 : vector<16x64xf32>
    %cst_137 = arith.constant 0.000000e+00 : f32
    %488 = vector.broadcast %cst_137 : f32 to vector<16x64xf32>
    %489 = arith.maximumf %487, %488 : vector<16x64xf32>
    %cst_138 = arith.constant dense<0.000000e+00> : vector<16x32xf32>
    %490 = tpu.matmul %489, %363, %cst_138 {dimension_numbers = #tpu.dot_dimension_numbers<[1], [0], [0], [1], [0, 0, 1, 1], [], []>} : vector<16x64xf32>, vector<64x32xf32>, vector<16x32xf32> -> vector<16x32xf32>
    %491 = vector.broadcast %373 : vector<1x32xf32> to vector<16x32xf32>
    %492 = arith.addf %490, %491 : vector<16x32xf32>
    %493 = arith.addf %492, %483 : vector<16x32xf32>
    %cst_139 = arith.constant dense<0.000000e+00> : vector<16xf32>
    %494 = vector.multi_reduction <add>, %493, %cst_139 [1] : vector<16x32xf32> to vector<16xf32>
    %495 = vector.shape_cast %494 : vector<16xf32> to vector<16x1xf32>
    %cst_140 = arith.constant 3.200000e+01 : f32
    %496 = vector.broadcast %cst_140 : f32 to vector<16x1xf32>
    %497 = arith.divf %495, %496 : vector<16x1xf32>
    %498 = vector.broadcast %497 : vector<16x1xf32> to vector<16x32xf32>
    %499 = arith.subf %493, %498 : vector<16x32xf32>
    %500 = arith.mulf %499, %499 : vector<16x32xf32>
    %cst_141 = arith.constant dense<0.000000e+00> : vector<16xf32>
    %501 = vector.multi_reduction <add>, %500, %cst_141 [1] : vector<16x32xf32> to vector<16xf32>
    %502 = vector.shape_cast %501 : vector<16xf32> to vector<16x1xf32>
    %cst_142 = arith.constant 3.200000e+01 : f32
    %503 = vector.broadcast %cst_142 : f32 to vector<16x1xf32>
    %504 = arith.divf %502, %503 : vector<16x1xf32>
    %cst_143 = arith.constant 9.99999974E-6 : f32
    %505 = vector.broadcast %cst_143 : f32 to vector<16x1xf32>
    %506 = arith.addf %504, %505 : vector<16x1xf32>
    %507 = math.rsqrt %506 : vector<16x1xf32>
    %508 = vector.broadcast %507 : vector<16x1xf32> to vector<16x32xf32>
    %509 = arith.mulf %499, %508 : vector<16x32xf32>
    %510 = vector.broadcast %374 : vector<1x32xf32> to vector<16x32xf32>
    %511 = arith.mulf %509, %510 : vector<16x32xf32>
    %512 = vector.broadcast %375 : vector<1x32xf32> to vector<16x32xf32>
    %513 = arith.addf %511, %512 : vector<16x32xf32>
    %c0_144 = arith.constant 0 : index
    %c0_145 = arith.constant 0 : index
    %514 = vector.load %arg12[%c0_144, %c0_145] : memref<16x32xf32, #tpu.memory_space<vmem>>, vector<16x32xf32>
    tpu.vector_store %arg12[%c0_144, %c0_145], %513 {strides = array<i32>} : memref<16x32xf32, #tpu.memory_space<vmem>>, vector<16x32xf32>,
    return
  }
  func.func @transform_0(%arg0: i32) -> (i32, i32) {
    %c0_i32 = arith.constant 0 : i32
    %c0_i32_0 = arith.constant 0 : i32
    %c0_i32_1 = arith.constant 0 : i32
    return %c0_i32, %c0_i32_0 : i32, i32
  }
  func.func @transform_1(%arg0: i32) -> (i32, i32) {
    %c0_i32 = arith.constant 0 : i32
    %c0_i32_0 = arith.constant 0 : i32
    %c0_i32_1 = arith.constant 0 : i32
    return %c0_i32, %c0_i32_0 : i32, i32
  }
  func.func @transform_2(%arg0: i32) -> (i32, i32, i32) {
    %c0_i32 = arith.constant 0 : i32
    %c0_i32_0 = arith.constant 0 : i32
    %c0_i32_1 = arith.constant 0 : i32
    %c0_i32_2 = arith.constant 0 : i32
    return %c0_i32, %c0_i32_0, %c0_i32_1 : i32, i32, i32
  }
  func.func @transform_3(%arg0: i32) -> (i32, i32, i32) {
    %c0_i32 = arith.constant 0 : i32
    %c0_i32_0 = arith.constant 0 : i32
    %c0_i32_1 = arith.constant 0 : i32
    %c0_i32_2 = arith.constant 0 : i32
    return %c0_i32, %c0_i32_0, %c0_i32_1 : i32, i32, i32
  }
  func.func @transform_4(%arg0: i32) -> (i32, i32, i32) {
    %c0_i32 = arith.constant 0 : i32
    %c0_i32_0 = arith.constant 0 : i32
    %c0_i32_1 = arith.constant 0 : i32
    %c0_i32_2 = arith.constant 0 : i32
    return %c0_i32, %c0_i32_0, %c0_i32_1 : i32, i32, i32
  }
  func.func @transform_5(%arg0: i32) -> (i32, i32, i32) {
    %c0_i32 = arith.constant 0 : i32
    %c0_i32_0 = arith.constant 0 : i32
    %c0_i32_1 = arith.constant 0 : i32
    %c0_i32_2 = arith.constant 0 : i32
    return %c0_i32, %c0_i32_0, %c0_i32_1 : i32, i32, i32
  }
  func.func @transform_6(%arg0: i32) -> (i32, i32, i32) {
    %c0_i32 = arith.constant 0 : i32
    %c0_i32_0 = arith.constant 0 : i32
    %c0_i32_1 = arith.constant 0 : i32
    %c0_i32_2 = arith.constant 0 : i32
    return %c0_i32, %c0_i32_0, %c0_i32_1 : i32, i32, i32
  }
  func.func @transform_7(%arg0: i32) -> (i32, i32, i32) {
    %c0_i32 = arith.constant 0 : i32
    %c0_i32_0 = arith.constant 0 : i32
    %c0_i32_1 = arith.constant 0 : i32
    %c0_i32_2 = arith.constant 0 : i32
    return %c0_i32, %c0_i32_0, %c0_i32_1 : i32, i32, i32
  }
  func.func @transform_8(%arg0: i32) -> (i32, i32, i32) {
    %c0_i32 = arith.constant 0 : i32
    %c0_i32_0 = arith.constant 0 : i32
    %c0_i32_1 = arith.constant 0 : i32
    %c0_i32_2 = arith.constant 0 : i32
    return %c0_i32, %c0_i32_0, %c0_i32_1 : i32, i32, i32
  }
  func.func @transform_9(%arg0: i32) -> (i32, i32, i32) {
    %c0_i32 = arith.constant 0 : i32
    %c0_i32_0 = arith.constant 0 : i32
    %c0_i32_1 = arith.constant 0 : i32
    %c0_i32_2 = arith.constant 0 : i32
    return %c0_i32, %c0_i32_0, %c0_i32_1 : i32, i32, i32
  }
  func.func @transform_10(%arg0: i32) -> (i32, i32, i32) {
    %c0_i32 = arith.constant 0 : i32
    %c0_i32_0 = arith.constant 0 : i32
    %c0_i32_1 = arith.constant 0 : i32
    %c0_i32_2 = arith.constant 0 : i32
    return %c0_i32, %c0_i32_0, %c0_i32_1 : i32, i32, i32
  }
  func.func @transform_11(%arg0: i32) -> (i32, i32) {
    %c0_i32 = arith.constant 0 : i32
    %c0_i32_0 = arith.constant 0 : i32
    %c0_i32_1 = arith.constant 0 : i32
    return %c0_i32, %c0_i32_0 : i32, i32
  }
}

</mosaic_0001>

<bundles_post_ra>
// kernel: transformer_forward.1
= control target key start
LH: loop header
LB: loop body
LE: loop exit
PB: predicated region body
PF: predicated region fallthrough
CT: control target
= control target key end

     0   :  { %vm128_vm0 = vcmask 64512   ;;  %s6665_s21 = smov 120   ;;  %s9136_s0 = inlined_call_operand.vmem [shape: f32[32,32], index: 0, kind: input, shape index: {}]   ;;  %s9137_s1 = inlined_call_operand.vmem [shape: f32[16,32], index: 1, kind: input, shape index: {}]   ;;  %s9138_s2 = inlined_call_operand.vmem [shape: f32[8,16,16], index: 2, kind: input, shape index: {}]   ;;  %s9139_s3 = inlined_call_operand.vmem [shape: f32[8,8,8], index: 3, kind: input, shape index: {}]   ;;  %s9140_s4 = inlined_call_operand.vmem [shape: f32[8,8,8], index: 4, kind: input, shape index: {}]   ;;  %s9141_s5 = inlined_call_operand.vmem [shape: f32[2,32,128], index: 5, kind: input, shape index: {}]   ;;  %s9142_s6 = inlined_call_operand.vmem [shape: f32[2,64,32], index: 6, kind: input, shape index: {}]   ;;  %s9143_s7 = inlined_call_operand.vmem [shape: f32[2,8,64], index: 7, kind: input, shape index: {}]   ;;  %s9144_s8 = inlined_call_operand.vmem [shape: f32[2,32,128], index: 8, kind: input, shape index: {}]   ;;  %s9145_s9 = inlined_call_operand.vmem [shape: f32[2,64,32], index: 9, kind: input, shape index: {}]   ;;  %s9146_s10 = inlined_call_operand.vmem [shape: f32[2,16,64], index: 10, kind: input, shape index: {}]   ;;  %s9147_s11 = inlined_call_operand.hbm [shape: f32[16,32], index: 11, kind: output, shape index: {}]  }
   0x1   :  { %v6739_v0 = vld [vmem:[%s9136_s0 + $0x18] sm:$0xff]  ;;  %v6744_v1 = vld [vmem:[%s9136_s0 + $0x8] sm:$0xff]  ;;  %v6753_v2 = vld [vmem:[%s9136_s0 + $0x10] sm:$0xff] }
   0x2   :  { %82 = vrot.lane.b32.xlu1 %v6739_v0, %s6665_s21  ;;  %78 = vrot.lane.b32.xlu0 %v6744_v1, %s6665_s21  ;;  %v6760_v3 = vld [vmem:[%s9136_s0] sm:$0xff] }
   0x3   :  { %5961 = vmatpush.xpose.msk.msra.mxu0 %vm128_vm0, %v6744_v1  ;;  %80 = vrot.lane.b32.xlu2 %v6753_v2, %s6665_s21 }
   0x4   :  { %16 = vsyncpa [#allocation3], 0  ;;  %5965 = vmatpush.xpose.msk.msra.mxu2 %vm128_vm0, %v6739_v0  ;;  %v112_v4 = vmul.f32 0.17677669, %v6760_v3  ;;  %v114_v5 = vmul.f32 0.17677669, %v6753_v2 }
   0x5   :  { %s6666_s26 = smov 104   ;;  %v113_v6 = vmul.f32 0.17677669, %v6744_v1  ;;  %s6667_s27 = smov 112   ;;  %v115_v7 = vmul.f32 0.17677669, %v6739_v0 }
   0x6   :  { %v43_v19 = vld [vmem:[%s9138_s2] sm:$0xff]  ;;  %vm393_vm1 = vcmask 130048   ;;  %v44_v28 = vld [vmem:[%s9138_s2 + $0x8] sm:$0xff]  ;;  %v49_v45 = vld [vmem:[%s9138_s2 + $0x30] sm:$0xff]  ;;  %s6668_s28 = smov 8   ;;  %s6669_s29 = smov 16  }
   0x7   :  { %5962 = vmatpush.xpose.msk.msra.mxu0 %vm128_vm0, %v6760_v3  ;;  %v47_v42 = vld [vmem:[%s9138_s2 + $0x20] sm:$0xff]  ;;  %v48_v49 = vld [vmem:[%s9138_s2 + $0x28] sm:$0xff]  ;;  %v45_v55 = vld [vmem:[%s9138_s2 + $0x10] sm:$0xff]  ;;  %s6670_s30 = smov 24   ;;  %s6673_s18 = smov 64  }
   0x8   :  { %5966 = vmatpush.xpose.msk.msra.mxu2 %vm128_vm0, %v6753_v2  ;;  %v51_v53 = vld [vmem:[%s9138_s2 + $0x40] sm:$0xff]  ;;  %s6674_s16 = smov [#allocation2]   ;;  %s6675_s19 = smov 128  }
   0x9   :  { %v55_v58 = vld [vmem:[%s9138_s2 + $0x60] sm:$0xff]  ;;  %s5947_s17 = sshll.u32 %s6674_s16, 4  ;;  %s5948_s17 = int_to_ptr.vmem [resolvable:$true] %s5947_s17 }
   0xa   :  { %5963 = vmatmul.msk.f32.vlgmr.msra.gmra.mxu0 %vm128_vm0, %v112_v4  ;;  %76 = vrot.lane.b32.xlu0 %v6760_v3, %s6665_s21  ;;  %v56_v4 = vld [vmem:[%s9138_s2 + $0x68] sm:$0xff] }
   0xb   :  { %102 = vrot.lane.b32.xlu1 %v6744_v1, %s6666_s26  ;;  %100 = vrot.lane.b32.xlu2 %v6760_v3, %s6666_s26 }
   0xc   :  { %5967 = vmatmul.msk.f32.vlgmr.msra.gmra.mxu2 %vm128_vm0, %v114_v5 }
  0x12   :  { %5964 = vmatmul.msk.f32.gmra.mxu0 %vm128_vm0, %v113_v6  ;;  %90 = vrot.lane.b32.xlu0 %v6744_v1, %s6667_s27 }
  0x13   :  { %88 = vrot.lane.b32.xlu1 %v6760_v3, %s6667_s27  ;;  %106 = vrot.lane.b32.xlu2 %v6739_v0, %s6666_s26 }
  0x14   :  { %5968 = vmatmul.msk.f32.gmra.mxu2 %vm128_vm0, %v115_v7 }
  0x1a   :  { %104 = vrot.lane.b32.xlu0 %v6753_v2, %s6666_s26 }
  0x1b   :  { %94 = vrot.lane.b32.xlu1 %v6739_v0, %s6667_s27  ;;  %92 = vrot.lane.b32.xlu2 %v6753_v2, %s6667_s27 }
  0x5d   :  { %v81_v8 = vpop.permute.xlu2 %80 }
  0x5e   :  { %v118_v13 = vmul.f32 0.17677669, %v81_v8 }
  0x65   :  { %v101_v9 = vpop.permute.xlu2 %100 }
  0x66   :  { %v124_v26 = vmul.f32 0.17677669, %v101_v9 }
  0x6d   :  { %v107_v12 = vpop.permute.xlu2 %106 }
  0x6e   :  { %v127_v38 = vmul.f32 0.17677669, %v107_v12 }
  0x74   :  { %v83_v10 = vpop.permute.xlu1 %82  ;;  %v79_v11 = vpop.permute.xlu0 %78 }
  0x75   :  { %5969 = vmatpush.xpose.msk.msrb.mxu2 %vm128_vm0, %v79_v11  ;;  %5973 = vmatpush.xpose.msk.msra.mxu3 %vm128_vm0, %v83_v10  ;;  %v119_v17 = vmul.f32 0.17677669, %v83_v10  ;;  %v117_v21 = vmul.f32 0.17677669, %v79_v11  ;;  %v93_v34 = vpop.permute.xlu2 %92 }
  0x76   :  { %v122_v36 = vmul.f32 0.17677669, %v93_v34 }
  0x79   :  { %5974 = vmatpush.xpose.msk.msra.mxu3 %vm128_vm0, %v81_v8 }
  0x7c   :  { %5975 = vmatmul.msk.f32.vlgmr.msra.gmra.mxu3 %vm128_vm0, %v118_v13  ;;  %v77_v14 = vpop.permute.xlu0 %76 }
  0x7d   :  { %5989 = vmatpush.xpose.msk.msrb.mxu3 %vm128_vm0, %v107_v12  ;;  %v116_v15 = vmul.f32 0.17677669, %v77_v14  ;;  %v103_v16 = vpop.permute.xlu1 %102  ;;  %5970 = vmatpush.xpose.msk.msrb.mxu2 %vm128_vm0, %v77_v14 }
  0x7e   :  { %v125_v37 = vmul.f32 0.17677669, %v103_v16 }
  0x80   :  { %5971 = vmatmul.msk.f32.vlgmr.msrb.gmra.mxu2 %vm128_vm0, %v116_v15 }
  0x81   :  { %5985 = vmatpush.xpose.msk.msra.mxu2 %vm128_vm0, %v103_v16 }
  0x84   :  { %5976 = vmatmul.msk.f32.gmra.mxu3 %vm128_vm0, %v119_v17  ;;  %v91_v18 = vpop.permute.xlu0 %90 }
  0x85   :  { %5986 = vmatpush.xpose.msk.msra.mxu2 %vm128_vm0, %v101_v9  ;;  %5977 = vmatpush.xpose.msk.msrb.mxu0 %vm128_vm0, %v91_v18  ;;  %v89_v20 = vpop.permute.xlu1 %88  ;;  %v121_v33 = vmul.f32 0.17677669, %v91_v18 }
  0x86   :  { %v120_v24 = vmul.f32 0.17677669, %v89_v20 }
  0x87   :  { %v156_v22 = vpop.f32.mrf.mxu0 }
  0x88   :  { %v6810_v23 = vadd.f32 %v156_v22, %v43_v19  ;;  %5972 = vmatmul.msk.f32.gmra.mxu2 %vm128_vm0, %v117_v21 }
  0x89   :  { %856 = vmatpush.msrb.mxu2 %v79_v11  ;;  %5978 = vmatpush.xpose.msk.msrb.mxu0 %vm128_vm0, %v89_v20  ;;  %v57_v11 = vld [vmem:[%s9138_s2 + $0x70] sm:$0xff] }
  0x8a   :  { %v394_v25 = vsel %vm393_vm1, %v6810_v23, -inf }
  0x8b   :  { %857 = vmatpush.msrb.mxu2 %v77_v14  ;;  %395 = vmax.xlane.f32.xlu1 %v394_v25 }
  0x8c   :  { %v105_v27 = vpop.permute.xlu0 %104  ;;  %5979 = vmatmul.msk.f32.vlgmr.msrb.gmra.mxu0 %vm128_vm0, %v120_v24 }
  0x8d   :  { %798 = vmatpush.msra.mxu0 %v6744_v1  ;;  %5990 = vmatpush.xpose.msk.msrb.mxu3 %vm128_vm0, %v105_v27  ;;  %v95_v29 = vpop.permute.xlu1 %94  ;;  %v126_v30 = vmul.f32 0.17677669, %v105_v27 }
  0x8e   :  { %5981 = vmatpush.xpose.msk.msra.mxu1 %vm128_vm0, %v95_v29  ;;  %v123_v39 = vmul.f32 0.17677669, %v95_v29 }
  0x8f   :  { %799 = vmatpush.msra.mxu0 %v6760_v3  ;;  %v159_v31 = vpop.f32.mrf.mxu0  ;;  %v189_v40 = vpop.f32.mrf.mxu2  ;;  %v50_v3 = vld [vmem:[%s9138_s2 + $0x38] sm:$0xff] }
  0x90   :  { %v6824_v32 = vadd.f32 %v159_v31, %v44_v28  ;;  %5987 = vmatmul.msk.f32.vlgmr.msra.gmra.mxu2 %vm128_vm0, %v124_v26  ;;  %5991 = vmatmul.msk.f32.vlgmr.msrb.gmra.mxu3 %vm128_vm0, %v126_v30  ;;  %v6870_v59 = vadd.f32 %v189_v40, %v45_v55  ;;  %v54_v26 = vld [vmem:[%s9138_s2 + $0x58] sm:$0xff] }
  0x91   :  { %885 = vmatpush.msra.mxu3 %v83_v10  ;;  %914 = vmatpush.msrb.mxu0 %v91_v18 }
  0x92   :  { %972 = vmatpush.msra.mxu2 %v103_v16  ;;  %v397_v35 = vsel %vm393_vm1, %v6824_v32, -inf  ;;  %5982 = vmatpush.xpose.msk.msra.mxu1 %vm128_vm0, %v93_v34  ;;  %v52_v16 = vld [vmem:[%s9138_s2 + $0x48] sm:$0xff] }
  0x93   :  { %886 = vmatpush.msra.mxu3 %v81_v8  ;;  %915 = vmatpush.msrb.mxu0 %v89_v20 }
  0x94   :  { %973 = vmatpush.msra.mxu2 %v101_v9  ;;  %398 = vmax.xlane.f32.xlu2 %v397_v35  ;;  %v53_v9 = vld [vmem:[%s9138_s2 + $0x50] sm:$0xff] }
  0x95   :  { %5980 = vmatmul.msk.f32.gmra.mxu0 %vm128_vm0, %v121_v33  ;;  %1001 = vmatpush.msrb.mxu3 %v107_v12 }
  0x96   :  { %827 = vmatpush.msrb.mxu1 %v6739_v0  ;;  %v400_v0 = vsel %vm393_vm1, %v6870_v59, -inf }
  0x97   :  { %5983 = vmatmul.msk.f32.vlgmr.msra.gmra.mxu1 %vm128_vm0, %v122_v36  ;;  %1002 = vmatpush.msrb.mxu3 %v105_v27  ;;  %v192_v41 = vpop.f32.mrf.mxu2 }
  0x98   :  { %5988 = vmatmul.msk.f32.gmra.mxu2 %vm128_vm0, %v125_v37  ;;  %828 = vmatpush.msrb.mxu1 %v6753_v2  ;;  %v46_v2 = vld [vmem:[%s9138_s2 + $0x18] sm:$0xff] }
  0x99   :  { %5992 = vmatmul.msk.f32.gmra.mxu3 %vm128_vm0, %v127_v38  ;;  %v6889_v5 = vadd.f32 %v192_v41, %v46_v2 }
  0x9a   :  { %943 = vmatpush.msra.mxu1 %v95_v29  ;;  %v58_v29 = vld [vmem:[%s9138_s2 + $0x78] sm:$0xff] }
  0x9b   :  { %v403_v12 = vsel %vm393_vm1, %v6889_v5, -inf }
  0x9c   :  { %944 = vmatpush.msra.mxu1 %v93_v34 }
  0x9f   :  { %5984 = vmatmul.msk.f32.gmra.mxu1 %vm128_vm0, %v123_v39 }
  0xfe   :  { %v396_v20 = vpop.xlane.xlu1 %395 }
  0xff   :  { %v255_v47 = vpop.f32.mrf.mxu3  ;;  %v442_v25 = vsub.f32 %v6810_v23, %v396_v20 }
 0x100   :  { %v6848_v48 = vadd.f32 %v255_v47, %v49_v45 }
 0x101   :  { %v458_v31 = vmul.f32 1.442695, %v442_v25 }
 0x102   :  { %v412_v52 = vsel %vm393_vm1, %v6848_v48, -inf }
 0x103   :  { %v222_v43 = vpop.f32.mrf.mxu2  ;;  %6291 = vpow2.f32 %v458_v31 }
 0x104   :  { %v6841_v44 = vadd.f32 %v222_v43, %v47_v42 }
 0x106   :  { %v406_v46 = vsel %vm393_vm1, %v6841_v44, -inf }
 0x107   :  { %407 = vmax.xlane.f32.xlu0 %v406_v46  ;;  %v258_v63 = vpop.f32.mrf.mxu3  ;;  %v399_v38 = vpop.xlane.xlu2 %398 }
 0x108   :  { %v6891_v6 = vadd.f32 %v258_v63, %v50_v3  ;;  %v443_v41 = vsub.f32 %v6824_v32, %v399_v38 }
 0x109   :  { %v288_v56 = vpop.f32.mrf.mxu0  ;;  %v6937_v36 = vpop.eup %6291 }
 0x10a   :  { %v6865_v57 = vadd.f32 %v288_v56, %v51_v53  ;;  %v415_v15 = vsel %vm393_vm1, %v6891_v6, -inf  ;;  %v490_v37 = vsel %vm393_vm1, %v6937_v36, 0.0  ;;  %v460_v43 = vmul.f32 1.442695, %v443_v41 }
 0x10b   :  { %v225_v50 = vpop.f32.mrf.mxu2 }
 0x10c   :  { %v6853_v51 = vadd.f32 %v225_v50, %v48_v49  ;;  %v418_v62 = vsel %vm393_vm1, %v6865_v57, -inf }
 0x10e   :  { %v409_v54 = vsel %vm393_vm1, %v6853_v51, -inf }
 0x10f   :  { %413 = vmax.xlane.f32.xlu0 %v412_v52  ;;  %410 = vmax.xlane.f32.xlu2 %v409_v54 }
 0x112   :  { %v291_v17 = vpop.f32.mrf.mxu0 }
 0x113   :  { %v354_v60 = vpop.f32.mrf.mxu2  ;;  %v387_v14 = vpop.f32.mrf.mxu3  ;;  %v6914_v21 = vadd.f32 %v291_v17, %v52_v16 }
 0x114   :  { %v6872_v61 = vadd.f32 %v354_v60, %v55_v58  ;;  %v321_v10 = vpop.f32.mrf.mxu1  ;;  %v6912_v19 = vadd.f32 %v387_v14, %v57_v11 }
 0x115   :  { %v6910_v18 = vadd.f32 %v321_v10, %v53_v9  ;;  %v421_v28 = vsel %vm393_vm1, %v6914_v21, -inf }
 0x116   :  { %v430_v1 = vsel %vm393_vm1, %v6872_v61, -inf  ;;  %v436_v24 = vsel %vm393_vm1, %v6912_v19, -inf }
 0x117   :  { %419 = vmax.xlane.f32.xlu0 %v418_v62  ;;  %401 = vmax.xlane.f32.xlu2 %v400_v0  ;;  %v424_v22 = vsel %vm393_vm1, %v6910_v18, -inf }
 0x118   :  { %431 = vmax.xlane.f32.xlu1 %v430_v1 }
 0x11b   :  { %v357_v7 = vpop.f32.mrf.mxu2 }
 0x11c   :  { %v6893_v8 = vadd.f32 %v357_v7, %v56_v4  ;;  %v324_v27 = vpop.f32.mrf.mxu1  ;;  %v390_v30 = vpop.f32.mrf.mxu3 }
 0x11d   :  { %v6929_v33 = vadd.f32 %v324_v27, %v54_v26  ;;  %v6931_v23 = vadd.f32 %v390_v30, %v58_v29 }
 0x11e   :  { %v433_v13 = vsel %vm393_vm1, %v6893_v8, -inf }
 0x11f   :  { %404 = vmax.xlane.f32.xlu0 %v403_v12  ;;  %434 = vmax.xlane.f32.xlu2 %v433_v13  ;;  %v427_v34 = vsel %vm393_vm1, %v6929_v33, -inf  ;;  %v439_v35 = vsel %vm393_vm1, %v6931_v23, -inf }
 0x120   :  { %416 = vmax.xlane.f32.xlu1 %v415_v15 }
 0x127   :  { %425 = vmax.xlane.f32.xlu0 %v424_v22  ;;  %437 = vmax.xlane.f32.xlu2 %v436_v24 }
 0x128   :  { %422 = vmax.xlane.f32.xlu1 %v421_v28 }
 0x12f   :  { %428 = vmax.xlane.f32.xlu2 %v427_v34 }
 0x130   :  { %440 = vmax.xlane.f32.xlu1 %v439_v35 }
 0x138   :  { %491 = vadd.xlane.f32.xlu1 %v490_v37 }
 0x17a   :  { %v408_v39 = vpop.xlane.xlu0 %407 }
 0x17b   :  { %v446_v40 = vsub.f32 %v6841_v44, %v408_v39 }
 0x17d   :  { %v466_v42 = vmul.f32 1.442695, %v446_v40 }
 0x17f   :  { %6293 = vpow2.f32 %v466_v42 }
 0x180   :  { %6295 = vpow2.f32 %v460_v43 }
 0x182   :  { %v414_v45 = vpop.xlane.xlu0 %413  ;;  %v411_v46 = vpop.xlane.xlu2 %410 }
 0x183   :  { %v448_v47 = vsub.f32 %v6848_v48, %v414_v45  ;;  %v447_v49 = vsub.f32 %v6853_v51, %v411_v46 }
 0x185   :  { %v6945_v50 = vpop.eup %6293  ;;  %v470_v52 = vmul.f32 1.442695, %v448_v47  ;;  %v468_v53 = vmul.f32 1.442695, %v447_v49 }
 0x186   :  { %v502_v54 = vsel %vm393_vm1, %v6945_v50, 0.0  ;;  %v6949_v55 = vpop.eup %6295 }
 0x187   :  { %6297 = vpow2.f32 %v470_v52  ;;  %503 = vadd.xlane.f32.xlu0 %v502_v54  ;;  %v493_v2 = vsel %vm393_vm1, %v6949_v55, 0.0 }
 0x188   :  { %6299 = vpow2.f32 %v468_v53 }
 0x18a   :  { %v420_v32 = vpop.xlane.xlu0 %419  ;;  %v402_v44 = vpop.xlane.xlu2 %401 }
 0x18b   :  { %v450_v56 = vsub.f32 %v6865_v57, %v420_v32  ;;  %v444_v48 = vsub.f32 %v6870_v59, %v402_v44  ;;  %v432_v51 = vpop.xlane.xlu1 %431 }
 0x18c   :  { %v454_v58 = vsub.f32 %v6872_v61, %v432_v51 }
 0x18d   :  { %v6954_v60 = vpop.eup %6297  ;;  %v474_v62 = vmul.f32 1.442695, %v450_v56  ;;  %v462_v63 = vmul.f32 1.442695, %v444_v48 }
 0x18e   :  { %v6956_v0 = vpop.eup %6299  ;;  %v482_v1 = vmul.f32 1.442695, %v454_v58  ;;  %v508_v3 = vsel %vm393_vm1, %v6954_v60, 0.0 }
 0x18f   :  { %6301 = vpow2.f32 %v474_v62  ;;  %494 = vadd.xlane.f32.xlu0 %v493_v2  ;;  %v505_v57 = vsel %vm393_vm1, %v6956_v0, 0.0  ;;  %509 = vadd.xlane.f32.xlu1 %v508_v3 }
 0x190   :  { %6303 = vpow2.f32 %v462_v63  ;;  %506 = vadd.xlane.f32.xlu2 %v505_v57 }
 0x191   :  { %6305 = vpow2.f32 %v482_v1 }
 0x192   :  { %v405_v59 = vpop.xlane.xlu0 %404  ;;  %v435_v61 = vpop.xlane.xlu2 %434 }
 0x193   :  { %v445_v4 = vsub.f32 %v6889_v5, %v405_v59  ;;  %v455_v7 = vsub.f32 %v6893_v8, %v435_v61  ;;  %v417_v9 = vpop.xlane.xlu1 %416 }
 0x194   :  { %v449_v10 = vsub.f32 %v6891_v6, %v417_v9 }
 0x195   :  { %v6967_v11 = vpop.eup %6301  ;;  %v464_v12 = vmul.f32 1.442695, %v445_v4  ;;  %v484_v13 = vmul.f32 1.442695, %v455_v7 }
 0x196   :  { %v6969_v14 = vpop.eup %6303  ;;  %v472_v15 = vmul.f32 1.442695, %v449_v10  ;;  %v514_v16 = vsel %vm393_vm1, %v6967_v11, 0.0 }
 0x197   :  { %v6973_v17 = vpop.eup %6305  ;;  %6307 = vpow2.f32 %v464_v12  ;;  %v496_v5 = vsel %vm393_vm1, %v6969_v14, 0.0  ;;  %515 = vadd.xlane.f32.xlu1 %v514_v16 }
 0x198   :  { %6309 = vpow2.f32 %v484_v13  ;;  %497 = vadd.xlane.f32.xlu0 %v496_v5  ;;  %v526_v6 = vsel %vm393_vm1, %v6973_v17, 0.0 }
 0x199   :  { %6311 = vpow2.f32 %v472_v15  ;;  %527 = vadd.xlane.f32.xlu2 %v526_v6 }
 0x19a   :  { %v426_v8 = vpop.xlane.xlu0 %425  ;;  %v438_v20 = vpop.xlane.xlu2 %437 }
 0x19b   :  { %v452_v22 = vsub.f32 %v6910_v18, %v426_v8  ;;  %v456_v24 = vsub.f32 %v6912_v19, %v438_v20  ;;  %v423_v25 = vpop.xlane.xlu1 %422 }
 0x19c   :  { %v451_v26 = vsub.f32 %v6914_v21, %v423_v25 }
 0x19d   :  { %v6982_v27 = vpop.eup %6307  ;;  %v478_v28 = vmul.f32 1.442695, %v452_v22  ;;  %v486_v29 = vmul.f32 1.442695, %v456_v24 }
 0x19e   :  { %v6984_v30 = vpop.eup %6309  ;;  %v476_v31 = vmul.f32 1.442695, %v451_v26  ;;  %v499_v34 = vsel %vm393_vm1, %v6982_v27, 0.0 }
 0x19f   :  { %v6988_v35 = vpop.eup %6311  ;;  %6313 = vpow2.f32 %v478_v28  ;;  %v529_v18 = vsel %vm393_vm1, %v6984_v30, 0.0  ;;  %500 = vadd.xlane.f32.xlu1 %v499_v34 }
 0x1a0   :  { %6315 = vpow2.f32 %v486_v29  ;;  %530 = vadd.xlane.f32.xlu0 %v529_v18  ;;  %v511_v19 = vsel %vm393_vm1, %v6988_v35, 0.0 }
 0x1a1   :  { %6317 = vpow2.f32 %v476_v31  ;;  %512 = vadd.xlane.f32.xlu2 %v511_v19 }
 0x1a2   :  { %v429_v21 = vpop.xlane.xlu2 %428 }
 0x1a3   :  { %v453_v37 = vsub.f32 %v6929_v33, %v429_v21  ;;  %v441_v38 = vpop.xlane.xlu1 %440 }
 0x1a4   :  { %v457_v39 = vsub.f32 %v6931_v23, %v441_v38 }
 0x1a5   :  { %v6996_v40 = vpop.eup %6313  ;;  %v480_v41 = vmul.f32 1.442695, %v453_v37 }
 0x1a6   :  { %v6998_v42 = vpop.eup %6315  ;;  %v488_v43 = vmul.f32 1.442695, %v457_v39  ;;  %v520_v45 = vsel %vm393_vm1, %v6996_v40, 0.0 }
 0x1a7   :  { %v7002_v46 = vpop.eup %6317  ;;  %6319 = vpow2.f32 %v480_v41  ;;  %v532_v47 = vsel %vm393_vm1, %v6998_v42, 0.0  ;;  %521 = vadd.xlane.f32.xlu1 %v520_v45 }
 0x1a8   :  { %6321 = vpow2.f32 %v488_v43  ;;  %533 = vadd.xlane.f32.xlu0 %v532_v47  ;;  %v517_v33 = vsel %vm393_vm1, %v7002_v46, 0.0 }
 0x1a9   :  { %518 = vadd.xlane.f32.xlu2 %v517_v33 }
 0x1ab   :  { %v492_v23 = vpop.xlane.xlu1 %491 }
 0x1ac   :  { %6323 = vrcp.f32 %v492_v23  ;;  %v549_v48 = vand.u32 2147483648, %v492_v23  ;;  %v547_v58 = vand.u32 2147483647, %v492_v23  ;;  %vm543_vm3 = vweird.f32 %v492_v23 }
 0x1ad   :  { %v7008_v49 = vpop.eup %6319 }
 0x1ae   :  { %v7010_v52 = vpop.eup %6321  ;;  %v523_v53 = vsel %vm393_vm1, %v7008_v49, 0.0  ;;  %v550_v63 = vor.u32 1.1754944e-38, %v549_v48  ;;  %vm548_vm5 = vcmp.eq.f32.partialorder %v547_v58, 8.507059e+37 }
 0x1af   :  { %v535_v54 = vsel %vm393_vm1, %v7010_v52, 0.0 }
 0x1b0   :  { %524 = vadd.xlane.f32.xlu0 %v523_v53 }
 0x1b1   :  { %536 = vadd.xlane.f32.xlu2 %v535_v54 }
 0x1b2   :  { %v6324_v32 = vpop.eup %6323 }
 0x1b3   :  { %v539_v44 = vmul.f32 %v6324_v32, %v492_v23  ;;  %vm544_vm2 = vweird.f32 %v6324_v32 }
 0x1b4   :  { %vm545_vm4 = vmor %vm543_vm3, %vm544_vm2 }
 0x1b5   :  { %v540_v56 = vsub.f32 1.0, %v539_v44 }
 0x1b7   :  { %v541_v51 = vmul.f32 %v6324_v32, %v540_v56 }
 0x1b9   :  { %v542_v62 = vadd.f32 %v6324_v32, %v541_v51 }
 0x1bb   :  { %v546_v1 = vsel %vm545_vm4, %v6324_v32, %v542_v62 }
 0x1bc   :  { %v551_v2 = vsel %vm548_vm5, %v550_v63, %v546_v1 }
 0x1bd   :  { %v552_v3 = vmul.f32 %v6937_v36, %v551_v2 }
 0x1bf   :  { %5993 = vmatmul.msk.f32.vlgmr.msra.gmra.mxu0 %vm393_vm1, %v552_v3 }
 0x1fa   :  { %v504_v57 = vpop.xlane.xlu0 %503 }
 0x1fb   :  { %6325 = vrcp.f32 %v504_v57  ;;  %v607_v12 = vand.u32 2147483647, %v504_v57  ;;  %v609_v13 = vand.u32 2147483648, %v504_v57  ;;  %vm603_vm7 = vweird.f32 %v504_v57 }
 0x1fd   :  { %vm7030_vm8 = vcmp.eq.f32.partialorder %v607_v12, 8.507059e+37  ;;  %v610_v8 = vor.u32 1.1754944e-38, %v609_v13 }
 0x201   :  { %v6326_v59 = vpop.eup %6325 }
 0x202   :  { %v599_v61 = vmul.f32 %v6326_v59, %v504_v57  ;;  %v7018_v4 = vpop.xlane.xlu0 %494  ;;  %v7020_v7 = vpop.xlane.xlu1 %509  ;;  %vm604_vm6 = vweird.f32 %v6326_v59 }
 0x203   :  { %6327 = vrcp.f32 %v7018_v4  ;;  %v7023_v9 = vpop.xlane.xlu2 %506  ;;  %v639_v16 = vand.u32 2147483648, %v7020_v7  ;;  %vm633_vm9 = vweird.f32 %v7020_v7  ;;  %v637_v24 = vand.u32 2147483647, %v7020_v7  ;;  %vm7046_vm10 = vmor %vm603_vm7, %vm604_vm6 }
 0x204   :  { %v600_v10 = vsub.f32 1.0, %v599_v61  ;;  %6329 = vrcp.f32 %v7023_v9  ;;  %v562_v26 = vand.u32 2147483647, %v7018_v4  ;;  %v564_v28 = vand.u32 2147483648, %v7018_v4 }
 0x205   :  { %6331 = vrcp.f32 %v7020_v7  ;;  %vm558_vm11 = vweird.f32 %v7018_v4  ;;  %v622_v19 = vand.u32 2147483647, %v7023_v9  ;;  %v624_v21 = vand.u32 2147483648, %v7023_v9 }
 0x206   :  { %v601_v36 = vmul.f32 %v6326_v59, %v600_v10  ;;  %v7062_v39 = vor.u32 1.1754944e-38, %v639_v16  ;;  %vm7069_vm12 = vcmp.eq.f32.partialorder %v637_v24, 8.507059e+37  ;;  %vm7073_vm13 = vcmp.eq.f32.partialorder %v562_v26, 8.507059e+37 }
 0x207   :  { %v565_v54 = vor.u32 1.1754944e-38, %v564_v28  ;;  %vm618_vm14 = vweird.f32 %v7023_v9  ;;  %vm7082_vm2 = vcmp.eq.f32.partialorder %v622_v19, 8.507059e+37  ;;  %v625_v48 = vor.u32 1.1754944e-38, %v624_v21 }
 0x208   :  { %v602_v15 = vadd.f32 %v6326_v59, %v601_v36 }
 0x209   :  { %v7028_v5 = vpop.eup %6327 }
 0x20a   :  { %v7034_v20 = vpop.eup %6329  ;;  %v554_v22 = vmul.f32 %v7028_v5, %v7018_v4  ;;  %v7040_v25 = vpop.xlane.xlu1 %515  ;;  %v606_v37 = vsel %vm7046_vm10, %v6326_v59, %v602_v15  ;;  %vm559_vm15 = vweird.f32 %v7028_v5 }
 0x20b   :  { %v7044_v29 = vpop.eup %6331  ;;  %v614_v34 = vmul.f32 %v7034_v20, %v7023_v9  ;;  %v7052_v18 = vpop.xlane.xlu0 %497  ;;  %6333 = vrcp.f32 %v7040_v25  ;;  %v667_v32 = vand.u32 2147483647, %v7040_v25  ;;  %v611_v44 = vsel %vm7030_vm8, %v610_v8, %v606_v37 }
 0x20c   :  { %v629_v38 = vmul.f32 %v7044_v29, %v7020_v7  ;;  %6335 = vrcp.f32 %v7052_v18  ;;  %v7065_v41 = vpop.xlane.xlu2 %527  ;;  %v555_v43 = vsub.f32 1.0, %v554_v22  ;;  %v579_v47 = vand.u32 2147483648, %v7052_v18 }
 0x20d   :  { %v615_v45 = vsub.f32 1.0, %v614_v34  ;;  %6337 = vrcp.f32 %v7065_v41  ;;  %vm634_vm3 = vweird.f32 %v7044_v29  ;;  %v727_v58 = vand.u32 2147483647, %v7065_v41 }
 0x20e   :  { %v630_v33 = vsub.f32 1.0, %v629_v38  ;;  %v612_v62 = vmul.f32 %v6945_v50, %v611_v44  ;;  %v7092_v1 = vor.u32 1.1754944e-38, %v579_v47  ;;  %v729_v2 = vand.u32 2147483648, %v7065_v41  ;;  %vm7114_vm6 = vmor %vm633_vm9, %vm634_vm3 }
 0x20f   :  { %v556_v3 = vmul.f32 %v7028_v5, %v555_v43  ;;  %v616_v57 = vmul.f32 %v7034_v20, %v615_v45  ;;  %vm663_vm4 = vweird.f32 %v7040_v25  ;;  %v669_v50 = vand.u32 2147483648, %v7040_v25  ;;  %vm560_vm9 = vmor %vm558_vm11, %vm559_vm15 }
 0x210   :  { %v631_v51 = vmul.f32 %v7044_v29, %v630_v33  ;;  %5997 = vmatmul.msk.f32.vlgmr.msrb.gmra.mxu2 %vm393_vm1, %v612_v62  ;;  %vm619_vm5 = vweird.f32 %v7034_v20  ;;  %vm723_vm7 = vweird.f32 %v7065_v41  ;;  %v577_v26 = vand.u32 2147483647, %v7052_v18 }
 0x211   :  { %v7090_v63 = vpop.eup %6333  ;;  %v557_v6 = vadd.f32 %v7028_v5, %v556_v3  ;;  %vm573_vm10 = vweird.f32 %v7052_v18  ;;  %v617_v31 = vadd.f32 %v7034_v20, %v616_v57  ;;  %vm620_vm11 = vmor %vm618_vm14, %vm619_vm5  ;;  %vm7151_vm15 = vcmp.eq.f32.partialorder %v727_v58, 8.507059e+37 }
 0x212   :  { %v7097_v59 = vpop.eup %6335  ;;  %v632_v61 = vadd.f32 %v7044_v29, %v631_v51  ;;  %v659_v10 = vmul.f32 %v7090_v63, %v7040_v25  ;;  %v7105_v12 = vpop.xlane.xlu1 %500  ;;  %vm664_vm8 = vweird.f32 %v7090_v63  ;;  %vm7155_vm3 = vcmp.eq.f32.partialorder %v667_v32, 8.507059e+37 }
 0x213   :  { %v7108_v13 = vpop.eup %6337  ;;  %v569_v15 = vmul.f32 %v7097_v59, %v7052_v18  ;;  %v7122_v16 = vpop.xlane.xlu0 %530  ;;  %6339 = vrcp.f32 %v7105_v12  ;;  %v621_v43 = vsel %vm620_vm11, %v7034_v20, %v617_v31  ;;  %v670_v32 = vor.u32 1.1754944e-38, %v669_v50  ;;  %vm7188_vm14 = vmor %vm663_vm4, %vm664_vm8 }
 0x214   :  { %v636_v7 = vsel %vm7114_vm6, %v7044_v29, %v632_v61  ;;  %v719_v8 = vmul.f32 %v7108_v13, %v7065_v41  ;;  %v660_v22 = vsub.f32 1.0, %v659_v10  ;;  %v7131_v24 = vpop.xlane.xlu2 %512  ;;  %6341 = vrcp.f32 %v7122_v16 }
 0x215   :  { %v570_v28 = vsub.f32 1.0, %v569_v15  ;;  %v561_v29 = vsel %vm560_vm9, %v7028_v5, %v557_v6  ;;  %6343 = vrcp.f32 %v7131_v24  ;;  %v641_v45 = vsel %vm7069_vm12, %v7062_v39, %v636_v7 }
 0x216   :  { %v720_v34 = vsub.f32 1.0, %v719_v8  ;;  %v661_v19 = vmul.f32 %v7090_v63, %v660_v22  ;;  %v566_v4 = vsel %vm7073_vm13, %v565_v54, %v561_v29  ;;  %v626_v33 = vsel %vm7082_vm2, %v625_v48, %v621_v43 }
 0x217   :  { %v571_v21 = vmul.f32 %v7097_v59, %v570_v28  ;;  %v567_v38 = vmul.f32 %v6949_v55, %v566_v4  ;;  %v642_v53 = vmul.f32 %v6954_v60, %v641_v45  ;;  %vm724_vm13 = vweird.f32 %v7108_v13 }
 0x218   :  { %v721_v9 = vmul.f32 %v7108_v13, %v720_v34  ;;  %v662_v47 = vadd.f32 %v7090_v63, %v661_v19  ;;  %v730_v55 = vor.u32 1.1754944e-38, %v729_v2  ;;  %v627_v20 = vmul.f32 %v6956_v0, %v626_v33  ;;  %vm7208_vm4 = vmor %vm723_vm7, %vm724_vm13 }
 0x219   :  { %v7169_v54 = vpop.eup %6339  ;;  %5994 = vmatmul.msk.f32.gmra.mxu0 %vm393_vm1, %v567_v38  ;;  %vm574_vm12 = vweird.f32 %v7097_v59  ;;  %5999 = vmatmul.msk.f32.vlgmr.msra.gmra.mxu3 %vm393_vm1, %v642_v53  ;;  %v572_v44 = vadd.f32 %v7097_v59, %v571_v21  ;;  %vm7197_vm2 = vcmp.eq.f32.partialorder %v577_v26, 8.507059e+37  ;;  %vm588_vm5 = vweird.f32 %v7105_v12 }
 0x21a   :  { %v722_v39 = vadd.f32 %v7108_v13, %v721_v9  ;;  %v584_v23 = vmul.f32 %v7169_v54, %v7105_v12  ;;  %v7179_v60 = vpop.xlane.xlu1 %521  ;;  %v7182_v56 = vpop.eup %6341  ;;  %5998 = vmatmul.msk.f32.gmra.mxu2 %vm393_vm1, %v627_v20  ;;  %v666_v2 = vsel %vm7188_vm14, %v7090_v63, %v662_v47  ;;  %vm589_vm6 = vweird.f32 %v7169_v54  ;;  %vm575_vm7 = vmor %vm573_vm10, %vm574_vm12 }
 0x21b   :  { %v7193_v48 = vpop.xlane.xlu0 %533  ;;  %6345 = vrcp.f32 %v7179_v60  ;;  %v699_v51 = vand.u32 2147483648, %v7179_v60  ;;  %v7202_v62 = vpop.eup %6343  ;;  %v7217_v3 = vmul.f32 %v7182_v56, %v7122_v16  ;;  %v576_v8 = vsel %vm575_vm7, %v7097_v59, %v572_v44 }
 0x21c   :  { %v585_v57 = vsub.f32 1.0, %v584_v23  ;;  %6347 = vrcp.f32 %v7193_v48  ;;  %v7220_v61 = vpop.xlane.xlu2 %518  ;;  %v726_v41 = vsel %vm7208_vm4, %v7108_v13, %v722_v39  ;;  %v644_v10 = vmul.f32 %v7202_v62, %v7131_v24 }
 0x21d   :  { %v759_v50 = vand.u32 2147483648, %v7193_v48  ;;  %v735_v63 = vsub.f32 1.0, %v7217_v3  ;;  %v757_v36 = vand.u32 2147483647, %v7193_v48  ;;  %6349 = vrcp.f32 %v7220_v61 }
 0x21e   :  { %v697_v13 = vand.u32 2147483647, %v7179_v60  ;;  %v645_v15 = vsub.f32 1.0, %v644_v10  ;;  %v7239_v7 = vor.u32 1.1754944e-38, %v699_v51  ;;  %vm693_vm8 = vweird.f32 %v7179_v60 }
 0x21f   :  { %v7237_v6 = vor.u32 1.1754944e-38, %v759_v50  ;;  %v581_v18 = vsel %vm7197_vm2, %v7092_v1, %v576_v8  ;;  %v671_v22 = vsel %vm7155_vm3, %v670_v32, %v666_v2  ;;  %v731_v26 = vsel %vm7151_vm15, %v730_v55, %v726_v41  ;;  %vm7276_vm15 = vmor %vm588_vm5, %vm589_vm6 }
 0x220   :  { %v586_v28 = vmul.f32 %v7169_v54, %v585_v57  ;;  %vm753_vm9 = vweird.f32 %v7193_v48  ;;  %v582_v59 = vmul.f32 %v6969_v14, %v581_v18  ;;  %v672_v31 = vmul.f32 %v6967_v11, %v671_v22 }
 0x221   :  { %v7251_v29 = vpop.eup %6345  ;;  %v732_v34 = vmul.f32 %v6973_v17, %v731_v26  ;;  %v592_v1 = vand.u32 2147483647, %v7105_v12  ;;  %v594_v37 = vand.u32 2147483648, %v7105_v12  ;;  %v646_v38 = vmul.f32 %v7202_v62, %v645_v15 }
 0x222   :  { %v7258_v19 = vpop.eup %6347  ;;  %v689_v4 = vmul.f32 %v7251_v29, %v7179_v60  ;;  %vm694_vm10 = vweird.f32 %v7251_v29  ;;  %v587_v21 = vadd.f32 %v7169_v54, %v586_v28  ;;  %5995 = vmatmul.msk.f32.vlgmr.msrb.gmra.mxu1 %vm393_vm1, %v582_v59  ;;  %6001 = vmatmul.msk.f32.vlgmr.msrb.gmra.mxu0 %vm393_vm1, %v672_v31  ;;  %vm7298_vm13 = vcmp.eq.f32.partialorder %v757_v36, 8.507059e+37 }
 0x223   :  { %v749_v14 = vmul.f32 %v7258_v19, %v7193_v48  ;;  %vm754_vm11 = vweird.f32 %v7258_v19  ;;  %v7270_v11 = vpop.xlane.xlu0 %524  ;;  %vm7280_vm3 = vcmp.eq.f32.partialorder %v592_v1, 8.507059e+37  ;;  %v7285_v43 = vpop.eup %6349  ;;  %6005 = vmatmul.msk.f32.vlgmr.msra.gmra.mxu2 %vm393_vm1, %v732_v34  ;;  %v595_v47 = vor.u32 1.1754944e-38, %v594_v37  ;;  %vm7329_vm4 = vmor %vm693_vm8, %vm694_vm10 }
 0x224   :  { %v690_v45 = vsub.f32 1.0, %v689_v4  ;;  %6351 = vrcp.f32 %v7270_v11  ;;  %v7289_v9 = vpop.xlane.xlu2 %536  ;;  %v591_v12 = vsel %vm7276_vm15, %v7169_v54, %v587_v21  ;;  %v674_v53 = vmul.f32 %v7285_v43, %v7220_v61 }
 0x225   :  { %v750_v33 = vsub.f32 1.0, %v749_v14  ;;  %6353 = vrcp.f32 %v7289_v9  ;;  %v647_v55 = vadd.f32 %v7202_v62, %v646_v38  ;;  %vm7303_vm12 = vcmp.eq.f32.partialorder %v697_v13, 8.507059e+37 }
 0x226   :  { %v691_v20 = vmul.f32 %v7251_v29, %v690_v45  ;;  %v596_v54 = vsel %vm7280_vm3, %v595_v47, %v591_v12  ;;  %vm648_vm14 = vweird.f32 %v7131_v24  ;;  %vm649_vm2 = vweird.f32 %v7202_v62  ;;  %vm7343_vm3 = vmor %vm753_vm9, %vm754_vm11 }
 0x227   :  { %v751_v23 = vmul.f32 %v7258_v19, %v750_v33  ;;  %v675_v44 = vsub.f32 1.0, %v674_v53  ;;  %v597_v0 = vmul.f32 %v6982_v27, %v596_v54  ;;  %vm7313_vm5 = vmor %vm648_vm14, %vm649_vm2  ;;  %v652_v58 = vand.u32 2147483647, %v7131_v24 }
 0x228   :  { %v692_v25 = vadd.f32 %v7251_v29, %v691_v20  ;;  %v651_v2 = vsel %vm7313_vm5, %v7202_v62, %v647_v55  ;;  %v654_v3 = vand.u32 2147483648, %v7131_v24  ;;  %v736_v57 = vmul.f32 %v7182_v56, %v735_v63  ;;  %v7422_v62 = vld [vmem:[%s9141_s5 + $0x18] sm:$0xff] }
 0x229   :  { %v752_v41 = vadd.f32 %v7258_v19, %v751_v23  ;;  %vm7333_vm6 = vcmp.eq.f32.partialorder %v652_v58, 8.507059e+37  ;;  %vm738_vm7 = vweird.f32 %v7122_v16  ;;  %vm739_vm15 = vweird.f32 %v7182_v56  ;;  %1097 = vmatpush.msra.mxu0 %v7422_v62 }
 0x22a   :  { %v6352_v24 = vpop.eup %6351  ;;  %v696_v60 = vsel %vm7329_vm4, %v7251_v29, %v692_v25  ;;  %v655_v50 = vor.u32 1.1754944e-38, %v654_v3  ;;  %v737_v63 = vadd.f32 %v7182_v56, %v736_v57  ;;  %v742_v36 = vand.u32 2147483647, %v7122_v16  ;;  %5996 = vmatmul.msk.f32.gmra.mxu1 %vm393_vm1, %v597_v0  ;;  %vm7357_vm8 = vmor %vm738_vm7, %vm739_vm15 }
 0x22b   :  { %v6354_v13 = vpop.eup %6353  ;;  %v756_v15 = vsel %vm7343_vm3, %v7258_v19, %v752_v41  ;;  %v704_v48 = vmul.f32 %v6352_v24, %v7270_v11  ;;  %v744_v18 = vand.u32 2147483648, %v7122_v16  ;;  %v676_v22 = vmul.f32 %v7285_v43, %v675_v44 }
 0x22c   :  { %v764_v26 = vmul.f32 %v6354_v13, %v7289_v9  ;;  %v656_v28 = vsel %vm7333_vm6, %v655_v50, %v651_v2  ;;  %v741_v29 = vsel %vm7357_vm8, %v7182_v56, %v737_v63  ;;  %vm743_vm9 = vcmp.eq.f32.partialorder %v742_v36, 8.507059e+37  ;;  %v7435_v63 = vld [vmem:[%s9141_s5 + $0x8] sm:$0xff]  ;;  %v7442_v36 = vld [vmem:[%s9141_s5] sm:$0xff] }
 0x22d   :  { %v705_v59 = vsub.f32 1.0, %v704_v48  ;;  %v657_v31 = vmul.f32 %v6988_v35, %v656_v28  ;;  %v745_v34 = vor.u32 1.1754944e-38, %v744_v18  ;;  %v677_v1 = vadd.f32 %v7285_v43, %v676_v22 }
 0x22e   :  { %v765_v19 = vsub.f32 1.0, %v764_v26  ;;  %vm678_vm10 = vweird.f32 %v7220_v61  ;;  %vm679_vm11 = vweird.f32 %v7285_v43  ;;  %v682_v16 = vand.u32 2147483647, %v7220_v61 }
 0x22f   :  { %6000 = vmatmul.msk.f32.gmra.mxu3 %vm393_vm1, %v657_v31  ;;  %v746_v4 = vsel %vm743_vm9, %v745_v34, %v741_v29  ;;  %vm7375_vm14 = vmor %vm678_vm10, %vm679_vm11  ;;  %v684_v56 = vand.u32 2147483648, %v7220_v61  ;;  %v701_v35 = vsel %vm7303_vm12, %v7239_v7, %v696_v60  ;;  %v761_v37 = vsel %vm7298_vm13, %v7237_v6, %v756_v15  ;;  %v7427_v60 = vld [vmem:[%s9141_s5 + $0x10] sm:$0xff] }
 0x230   :  { %v747_v14 = vmul.f32 %v6984_v30, %v746_v4  ;;  %v681_v17 = vsel %vm7375_vm14, %v7285_v43, %v677_v1  ;;  %v702_v5 = vmul.f32 %v6996_v40, %v701_v35  ;;  %vm683_vm2 = vcmp.eq.f32.partialorder %v682_v16, 8.507059e+37  ;;  %1098 = vmatpush.msra.mxu0 %v7427_v60 }
 0x231   :  { %v685_v38 = vor.u32 1.1754944e-38, %v684_v56  ;;  %v762_v61 = vmul.f32 %v6998_v42, %v761_v37  ;;  %v706_v45 = vmul.f32 %v6352_v24, %v705_v59  ;;  %vm709_vm12 = vweird.f32 %v6352_v24 }
 0x232   :  { %6006 = vmatmul.msk.f32.gmra.mxu2 %vm393_vm1, %v747_v14  ;;  %v712_v7 = vand.u32 2147483647, %v7270_v11  ;;  %v714_v6 = vand.u32 2147483648, %v7270_v11  ;;  %v766_v12 = vmul.f32 %v6354_v13, %v765_v19  ;;  %6003 = vmatmul.msk.f32.vlgmr.msra.gmra.mxu1 %vm393_vm1, %v702_v5  ;;  %vm708_vm13 = vweird.f32 %v7270_v11 }
 0x233   :  { %v686_v30 = vsel %vm683_vm2, %v685_v38, %v681_v17  ;;  %v707_v47 = vadd.f32 %v6352_v24, %v706_v45  ;;  %vm769_vm5 = vweird.f32 %v6354_v13  ;;  %vm710_vm4 = vmor %vm708_vm13, %vm709_vm12  ;;  %vm768_vm6 = vweird.f32 %v7289_v9  ;;  %1099 = vmatpush.msra.mxu0 %v7435_v63  ;;  %v7466_v45 = vld [vmem:[%s9143_s7] sm:$0xff] }
 0x234   :  { %v687_v40 = vmul.f32 %v7002_v46, %v686_v30  ;;  %v715_v42 = vor.u32 1.1754944e-38, %v714_v6  ;;  %v767_v43 = vadd.f32 %v6354_v13, %v766_v12  ;;  %vm713_vm7 = vcmp.eq.f32.partialorder %v712_v7, 8.507059e+37  ;;  %vm770_vm15 = vmor %vm768_vm6, %vm769_vm5  ;;  %v6601_v30 = vld [vmem:[%s9136_s0] sm:$0xff] }
 0x235   :  { %v711_v33 = vsel %vm710_vm4, %v6352_v24, %v707_v47  ;;  %v772_v53 = vand.u32 2147483647, %v7289_v9  ;;  %v774_v55 = vand.u32 2147483648, %v7289_v9  ;;  %v6231_v50 = vpack.i.bf16 %v7427_v60, %v7422_v62  ;;  %1100 = vmatpush.msra.mxu0 %v7442_v36 }
 0x236   :  { %6002 = vmatmul.msk.f32.gmra.mxu0 %vm393_vm1, %v687_v40  ;;  %v716_v32 = vsel %vm713_vm7, %v715_v42, %v711_v33  ;;  %v771_v20 = vsel %vm770_vm15, %v6354_v13, %v767_v43  ;;  %v6236_v13 = vpack.i.bf16 %v7442_v36, %v7435_v63  ;;  %vm1066_vm8 = vcmask 195584   ;;  %v6602_v33 = vld [vmem:[%s9136_s0 + $0x8] sm:$0xff] }
 0x237   :  { %6007 = vmatmul.msk.f32.vlgmr.msrb.gmra.mxu3 %vm393_vm1, %v762_v61  ;;  %v717_v46 = vmul.f32 %v7008_v49, %v716_v32  ;;  %v775_v11 = vor.u32 1.1754944e-38, %v774_v55  ;;  %vm773_vm3 = vcmp.eq.f32.partialorder %v772_v53, 8.507059e+37  ;;  %vm1072_vm9 = vcmask 261120  }
 0x238   :  { %v1071_v7 = vperm.slane %v7466_v45, 0 }
 0x239   :  { %v776_v39 = vsel %vm773_vm3, %v775_v11, %v771_v20 }
 0x23a   :  { %6004 = vmatmul.msk.f32.gmra.mxu1 %vm393_vm1, %v717_v46  ;;  %v777_v54 = vmul.f32 %v7010_v52, %v776_v39  ;;  %v6603_v46 = vld [vmem:[%s9136_s0 + $0x10] sm:$0xff] }
 0x23c   :  { %v801_v23 = vpop.f32.mrf.mxu0 }
 0x23f   :  { %6008 = vmatmul.msk.f32.gmra.mxu3 %vm393_vm1, %v777_v54 }
 0x293   :  { %v859_v44 = vpop.f32.mrf.mxu2 }
 0x294   :  { %1014 = vrot.lane.b32.xlu1 %v859_v44, %s6668_s28  ;;  %v6604_v44 = vld [vmem:[%s9136_s0 + $0x18] sm:$0xff]  ;;  %s6672_s0 = smov 96  }
 0x296   :  { %v804_v9 = vpop.f32.mrf.mxu0 }
 0x29c   :  { %v888_v58 = vpop.f32.mrf.mxu3 }
 0x29d   :  { %v862_v0 = vpop.f32.mrf.mxu2 }
 0x29e   :  { %1016 = vrot.lane.b32.xlu1 %v862_v0, %s6668_s28 }
 0x29f   :  { %v917_v51 = vpop.f32.mrf.mxu0  ;;  %v830_v49 = vpop.f32.mrf.mxu1 }
 0x2a0   :  { %1030 = vrot.lane.b32.xlu2 %v917_v51, %s6669_s29  ;;  %v6671_v51 = vmov 32.0  }
 0x2a1   :  { %6355 = vrcp.f32 %v6671_v51  ;;  %v70_v51 = vld [vmem:[%s9142_s6 + $0x38] sm:$0xff] }
 0x2a2   :  { %1307 = vmatpush.msrb.mxu2 %v70_v51 }
 0x2a6   :  { %v975_v25 = vpop.f32.mrf.mxu2  ;;  %1018 = vrot.lane.b32.xlu1 %v888_v58, %s6668_s28 }
 0x2a7   :  { %1046 = vrot.lane.b32.xlu0 %v975_v25, %s6670_s30  ;;  %v833_v52 = vpop.f32.mrf.mxu1 }
 0x2af   :  { %v946_v41 = vpop.f32.mrf.mxu1 }
 0x2b2   :  { %v891_v2 = vpop.f32.mrf.mxu3 }
 0x2b3   :  { %1020 = vrot.lane.b32.xlu1 %v891_v2, %s6668_s28  ;;  %v920_v3 = vpop.f32.mrf.mxu0 }
 0x2b4   :  { %1032 = vrot.lane.b32.xlu0 %v920_v3, %s6669_s29 }
 0x2b5   :  { %v978_v57 = vpop.f32.mrf.mxu2 }
 0x2b6   :  { %1048 = vrot.lane.b32.xlu2 %v978_v57, %s6670_s30 }
 0x2b7   :  { %v949_v10 = vpop.f32.mrf.mxu1 }
 0x2ba   :  { %v1004_v27 = vpop.f32.mrf.mxu3 }
 0x2bc   :  { %1034 = vrot.lane.b32.xlu0 %v946_v41, %s6669_s29 }
 0x2be   :  { %1050 = vrot.lane.b32.xlu2 %v1004_v27, %s6670_s30 }
 0x2c2   :  { %v1007_v24 = vpop.f32.mrf.mxu3 }
 0x2c4   :  { %1036 = vrot.lane.b32.xlu0 %v949_v10, %s6669_s29 }
 0x2c6   :  { %1052 = vrot.lane.b32.xlu2 %v1007_v24, %s6670_s30 }
 0x2fa   :  { %v1031_v8 = vpop.permute.xlu2 %1030 }
 0x306   :  { %v1015_v15 = vpop.permute.xlu1 %1014 }
 0x307   :  { %v1058_v48 = vsel %vm128_vm0, %v801_v23, %v1015_v15 }
 0x308   :  { %v1062_v22 = vsel %vm393_vm1, %v1058_v48, %v1031_v8 }
 0x310   :  { %v1017_v28 = vpop.permute.xlu1 %1016  ;;  %v1049_v29 = vpop.permute.xlu2 %1048 }
 0x311   :  { %v1059_v59 = vsel %vm128_vm0, %v804_v9, %v1017_v28 }
 0x318   :  { %v1019_v19 = vpop.permute.xlu1 %1018  ;;  %v1051_v16 = vpop.permute.xlu2 %1050 }
 0x319   :  { %v1047_v18 = vpop.permute.xlu0 %1046  ;;  %v1060_v4 = vsel %vm128_vm0, %v830_v49, %v1019_v19  ;;  %v6356_v49 = vpop.eup %6355 }
 0x31a   :  { %v1067_v26 = vsel %vm1066_vm8, %v1062_v22, %v1047_v18  ;;  %v1131_v58 = vmul.f32 32.0, %v6356_v49  ;;  %vm1135_vm10 = vweird.f32 %v6356_v49 }
 0x31b   :  { %6009 = vmatmul.msk.f32.vlgmr.msra.gmra.mxu0 %vm1072_vm9, %v1067_v26 }
 0x31c   :  { %v1132_v25 = vsub.f32 1.0, %v1131_v58 }
 0x320   :  { %v1053_v5 = vpop.permute.xlu2 %1052 }
 0x325   :  { %v1021_v37 = vpop.permute.xlu1 %1020 }
 0x326   :  { %v1033_v31 = vpop.permute.xlu0 %1032  ;;  %v1061_v14 = vsel %vm128_vm0, %v833_v52, %v1021_v37  ;;  %v1133_v52 = vmul.f32 %v6356_v49, %v1132_v25 }
 0x327   :  { %v1063_v34 = vsel %vm393_vm1, %v1059_v59, %v1033_v31 }
 0x328   :  { %v1068_v1 = vsel %vm1066_vm8, %v1063_v34, %v1049_v29  ;;  %v1134_v2 = vadd.f32 %v6356_v49, %v1133_v52  ;;  %v1218_v52 = vperm.slane %v7466_v45, 2 }
 0x329   :  { %6010 = vmatmul.msk.f32.gmra.mxu0 %vm1072_vm9, %v1068_v1 }
 0x32a   :  { %v7485_v3 = vsel %vm1135_vm10, %v6356_v49, %v1134_v2  ;;  %v69_v49 = vld [vmem:[%s9142_s6 + $0x30] sm:$0xff]  ;;  %v68_v2 = vld [vmem:[%s9142_s6 + $0x28] sm:$0xff] }
 0x32b   :  { %1308 = vmatpush.msrb.mxu2 %v69_v49 }
 0x32d   :  { %1309 = vmatpush.msrb.mxu2 %v68_v2 }
 0x32e   :  { %v1035_v21 = vpop.permute.xlu0 %1034 }
 0x32f   :  { %v1064_v56 = vsel %vm393_vm1, %v1060_v4, %v1035_v21 }
 0x330   :  { %v1069_v35 = vsel %vm1066_vm8, %v1064_v56, %v1051_v16 }
 0x331   :  { %6011 = vmatmul.msk.f32.gmra.mxu0 %vm1072_vm9, %v1069_v35 }
 0x336   :  { %v1037_v17 = vpop.permute.xlu0 %1036 }
 0x337   :  { %v1065_v38 = vsel %vm393_vm1, %v1061_v14, %v1037_v17 }
 0x338   :  { %v1070_v61 = vsel %vm1066_vm8, %v1065_v38, %v1053_v5 }
 0x339   :  { %6012 = vmatmul.msk.f32.gmra.mxu0 %vm1072_vm9, %v1070_v61 }
 0x398   :  { %v1102_v6 = vpop.f32.mrf.mxu0 }
 0x399   :  { %v1103_v12 = vadd.f32 %v1102_v6, %v1071_v7 }
 0x39b   :  { %v1114_v47 = vadd.f32 %v6601_v30, %v1103_v12 }
 0x39d   :  { %v1118_v40 = vsel %vm1072_vm9, %v1114_v47, 0.0 }
 0x39e   :  { %1119 = vadd.xlane.f32.xlu1 %v1118_v40 }
 0x3a6   :  { %v1105_v42 = vpop.f32.mrf.mxu0 }
 0x3a7   :  { %v1106_v43 = vadd.f32 %v1105_v42, %v1071_v7 }
 0x3a9   :  { %v1115_v53 = vadd.f32 %v6602_v33, %v1106_v43 }
 0x3ab   :  { %v1121_v55 = vsel %vm1072_vm9, %v1115_v53, 0.0 }
 0x3ac   :  { %1122 = vadd.xlane.f32.xlu0 %v1121_v55 }
 0x3ae   :  { %v1108_v32 = vpop.f32.mrf.mxu0 }
 0x3af   :  { %v1109_v20 = vadd.f32 %v1108_v32, %v1071_v7 }
 0x3b1   :  { %v1116_v11 = vadd.f32 %v6603_v46, %v1109_v20 }
 0x3b3   :  { %v1124_v39 = vsel %vm1072_vm9, %v1116_v11, 0.0 }
 0x3b4   :  { %1125 = vadd.xlane.f32.xlu2 %v1124_v39 }
 0x3b6   :  { %v1111_v54 = vpop.f32.mrf.mxu0 }
 0x3b7   :  { %v1112_v23 = vadd.f32 %v1111_v54, %v1071_v7  ;;  %v1213_v54 = vperm.slane %v7466_v45, 1 }
 0x3b9   :  { %v1117_v9 = vadd.f32 %v6604_v44, %v1112_v23 }
 0x3bb   :  { %v1127_v0 = vsel %vm1072_vm9, %v1117_v9, 0.0 }
 0x3bc   :  { %1128 = vadd.xlane.f32.xlu1 %v1127_v0 }
 0x411   :  { %v1120_v57 = vpop.xlane.xlu1 %1119 }
 0x412   :  { %v1137_v41 = vmul.f32 %v7485_v3, %v1120_v57 }
 0x414   :  { %v7488_v27 = vsub.f32 %v1114_v47, %v1137_v41 }
 0x416   :  { %v1145_v10 = vmul.f32 %v7488_v27, %v7488_v27 }
 0x418   :  { %v1149_v24 = vsel %vm1072_vm9, %v1145_v10, 0.0 }
 0x419   :  { %1150 = vadd.xlane.f32.xlu0 %v1149_v24  ;;  %v67_v24 = vld [vmem:[%s9142_s6 + $0x20] sm:$0xff] }
 0x41a   :  { %1310 = vmatpush.msrb.mxu2 %v67_v24 }
 0x41f   :  { %v1123_v15 = vpop.xlane.xlu0 %1122 }
 0x420   :  { %v1138_v48 = vmul.f32 %v7485_v3, %v1123_v15 }
 0x422   :  { %v7494_v8 = vsub.f32 %v1115_v53, %v1138_v48 }
 0x424   :  { %v1146_v18 = vmul.f32 %v7494_v8, %v7494_v8 }
 0x426   :  { %v1152_v22 = vsel %vm1072_vm9, %v1146_v18, 0.0 }
 0x427   :  { %1153 = vadd.xlane.f32.xlu2 %v1152_v22  ;;  %v1126_v26 = vpop.xlane.xlu2 %1125  ;;  %v66_v22 = vld [vmem:[%s9142_s6 + $0x18] sm:$0xff] }
 0x428   :  { %v1139_v28 = vmul.f32 %v7485_v3, %v1126_v26  ;;  %1311 = vmatpush.msrb.mxu2 %v66_v22 }
 0x42a   :  { %v7500_v29 = vsub.f32 %v1116_v11, %v1139_v28 }
 0x42c   :  { %v1147_v59 = vmul.f32 %v7500_v29, %v7500_v29 }
 0x42d   :  { %6232 = vrot.lane.b32.xlu0 %v6231_v50, %s6672_s0 }
 0x42e   :  { %v1155_v31 = vsel %vm1072_vm9, %v1147_v59, 0.0 }
 0x42f   :  { %1156 = vadd.xlane.f32.xlu1 %v1155_v31  ;;  %v1129_v34 = vpop.xlane.xlu1 %1128 }
 0x430   :  { %v1140_v1 = vmul.f32 %v7485_v3, %v1129_v34 }
 0x432   :  { %v7510_v19 = vsub.f32 %v1117_v9, %v1140_v1 }
 0x434   :  { %v1148_v16 = vmul.f32 %v7510_v19, %v7510_v19 }
 0x436   :  { %v1158_v4 = vsel %vm1072_vm9, %v1148_v16, 0.0 }
 0x437   :  { %1159 = vadd.xlane.f32.xlu2 %v1158_v4 }
 0x448   :  { %6237 = vrot.lane.b32.xlu1 %v6236_v13, %s6672_s0 }
 0x48c   :  { %v1151_v21 = vpop.xlane.xlu0 %1150 }
 0x48d   :  { %v1161_v62 = vmul.f32 %v1151_v21, %v7485_v3 }
 0x48f   :  { %v1165_v60 = vadd.f32 1e-05, %v1161_v62 }
 0x491   :  { %6357 = vrsqrt.f32 %v1165_v60  ;;  %vm1175_vm14 = vweird.f32 %v1165_v60 }
 0x497   :  { %v6358_v35 = vpop.eup %6357 }
 0x498   :  { %v1170_v14 = vmul.f32 %v6358_v35, %v1165_v60  ;;  %vm1176_vm11 = vweird.f32 %v6358_v35 }
 0x499   :  { %vm1177_vm2 = vmor %vm1175_vm14, %vm1176_vm11  ;;  %vm1286_vm11 = vcmask 523264  }
 0x49a   :  { %v1154_v50 = vpop.xlane.xlu2 %1153  ;;  %v1171_v7 = vmul.f32 %v6358_v35, %v1170_v14 }
 0x49b   :  { %v1162_v56 = vmul.f32 %v1154_v50, %v7485_v3 }
 0x49c   :  { %v1172_v6 = vmul.f32 0.5, %v1171_v7 }
 0x49d   :  { %v1166_v37 = vadd.f32 1e-05, %v1162_v56 }
 0x49e   :  { %v1173_v47 = vsub.f32 1.5, %v1172_v6 }
 0x49f   :  { %6359 = vrsqrt.f32 %v1166_v37  ;;  %v6233_v17 = vpop.permute.xlu0 %6232  ;;  %vm1185_vm13 = vweird.f32 %v1166_v37 }
 0x4a0   :  { %v6235_v5 = vunpack.i.h.bf16 %v6233_v17  ;;  %v6234_v38 = vunpack.i.l.bf16 %v6233_v17  ;;  %v1174_v53 = vmul.f32 %v6358_v35, %v1173_v47 }
 0x4a2   :  { %v1157_v61 = vpop.xlane.xlu1 %1156  ;;  %1264 = vmatpush.msrb.mxu1 %v6234_v38  ;;  %v1178_v20 = vsel %vm1177_vm2, %v6358_v35, %v1174_v53  ;;  %v64_v35 = vld [vmem:[%s9142_s6 + $0x8] sm:$0xff] }
 0x4a3   :  { %v1163_v63 = vmul.f32 %v1157_v61, %v7485_v3  ;;  %v1209_v23 = vmul.f32 %v1178_v20, %v7488_v27 }
 0x4a4   :  { %1265 = vmatpush.msrb.mxu1 %v6235_v5 }
 0x4a5   :  { %v6360_v36 = vpop.eup %6359  ;;  %v1167_v13 = vadd.f32 1e-05, %v1163_v63  ;;  %v1214_v58 = vmul.f32 %v1213_v54, %v1209_v23 }
 0x4a6   :  { %v1180_v12 = vmul.f32 %v6360_v36, %v1166_v37  ;;  %vm1186_vm12 = vweird.f32 %v6360_v36  ;;  %v63_v37 = vld [vmem:[%s9142_s6] sm:$0xff] }
 0x4a7   :  { %6361 = vrsqrt.f32 %v1167_v13  ;;  %vm1187_vm5 = vmor %vm1185_vm13, %vm1186_vm12  ;;  %v7538_v48 = vadd.f32 %v1218_v52, %v1214_v58  ;;  %vm1195_vm6 = vweird.f32 %v1167_v13 }
 0x4a8   :  { %v1181_v40 = vmul.f32 %v6360_v36, %v1180_v12 }
 0x4aa   :  { %v1160_v30 = vpop.xlane.xlu2 %1159  ;;  %v1182_v55 = vmul.f32 0.5, %v1181_v40  ;;  %v1285_v40 = vperm.slane %v7466_v45, 4 }
 0x4ab   :  { %v1164_v42 = vmul.f32 %v1160_v30, %v7485_v3 }
 0x4ac   :  { %v1183_v46 = vsub.f32 1.5, %v1182_v55 }
 0x4ad   :  { %v6362_v43 = vpop.eup %6361  ;;  %v1168_v33 = vadd.f32 1e-05, %v1164_v42 }
 0x4ae   :  { %v1190_v32 = vmul.f32 %v6362_v43, %v1167_v13  ;;  %v1184_v44 = vmul.f32 %v6360_v36, %v1183_v46  ;;  %vm1196_vm4 = vweird.f32 %v6362_v43 }
 0x4af   :  { %6363 = vrsqrt.f32 %v1168_v33  ;;  %vm1197_vm7 = vmor %vm1195_vm6, %vm1196_vm4  ;;  %vm1205_vm3 = vweird.f32 %v1168_v33 }
 0x4b0   :  { %v1191_v11 = vmul.f32 %v6362_v43, %v1190_v32  ;;  %v1188_v10 = vsel %vm1187_vm5, %v6360_v36, %v1184_v44 }
 0x4b1   :  { %v1210_v18 = vmul.f32 %v1188_v10, %v7494_v8 }
 0x4b2   :  { %v1192_v9 = vmul.f32 0.5, %v1191_v11 }
 0x4b3   :  { %v1215_v59 = vmul.f32 %v1213_v54, %v1210_v18 }
 0x4b4   :  { %v1193_v57 = vsub.f32 1.5, %v1192_v9 }
 0x4b5   :  { %v6364_v39 = vpop.eup %6363  ;;  %v1220_v1 = vadd.f32 %v1218_v52, %v1215_v59 }
 0x4b6   :  { %v1200_v0 = vmul.f32 %v6364_v39, %v1168_v33  ;;  %v1194_v26 = vmul.f32 %v6362_v43, %v1193_v57  ;;  %vm1206_vm15 = vweird.f32 %v6364_v39 }
 0x4b7   :  { %vm1207_vm10 = vmor %vm1205_vm3, %vm1206_vm15 }
 0x4b8   :  { %v1201_v41 = vmul.f32 %v6364_v39, %v1200_v0  ;;  %v1198_v34 = vsel %vm1197_vm7, %v6362_v43, %v1194_v26 }
 0x4b9   :  { %v1211_v8 = vmul.f32 %v1198_v34, %v7500_v29  ;;  %v65_v29 = vld [vmem:[%s9142_s6 + $0x10] sm:$0xff] }
 0x4ba   :  { %v6238_v25 = vpop.permute.xlu1 %6237  ;;  %v1202_v28 = vmul.f32 0.5, %v1201_v41  ;;  %1312 = vmatpush.msrb.mxu2 %v65_v29 }
 0x4bb   :  { %v6239_v27 = vunpack.i.l.bf16 %v6238_v25  ;;  %v6240_v15 = vunpack.i.h.bf16 %v6238_v25  ;;  %v1216_v4 = vmul.f32 %v1213_v54, %v1211_v8 }
 0x4bc   :  { %v1203_v31 = vsub.f32 1.5, %v1202_v28  ;;  %1313 = vmatpush.msrb.mxu2 %v64_v35 }
 0x4bd   :  { %1266 = vmatpush.msrb.mxu1 %v6239_v27  ;;  %v1221_v62 = vadd.f32 %v1218_v52, %v1216_v4 }
 0x4be   :  { %v1204_v16 = vmul.f32 %v6364_v39, %v1203_v31  ;;  %1314 = vmatpush.msrb.mxu2 %v63_v37 }
 0x4bf   :  { %1267 = vmatpush.msrb.mxu1 %v6240_v15 }
 0x4c0   :  { %6013 = vmatmul.msk.f32.vlgmr.msrb.gmra.mxu1 %vm1072_vm9, %v7538_v48  ;;  %v1208_v21 = vsel %vm1207_vm10, %v6364_v39, %v1204_v16 }
 0x4c1   :  { %v1212_v60 = vmul.f32 %v1208_v21, %v7510_v19  ;;  %v1223_v19 = vperm.slane %v7466_v45, 3 }
 0x4c3   :  { %v1217_v50 = vmul.f32 %v1213_v54, %v1212_v60 }
 0x4c5   :  { %v1222_v56 = vadd.f32 %v1218_v52, %v1217_v50 }
 0x4c8   :  { %6014 = vmatmul.msk.f32.gmra.mxu1 %vm1072_vm9, %v1220_v1 }
 0x4d0   :  { %6015 = vmatmul.msk.f32.gmra.mxu1 %vm1072_vm9, %v1221_v62 }
 0x4d8   :  { %6016 = vmatmul.msk.f32.gmra.mxu1 %vm1072_vm9, %v1222_v56 }
 0x53d   :  { %v1269_v14 = vpop.f32.mrf.mxu1 }
 0x53e   :  { %v1270_v17 = vadd.f32 %v1269_v14, %v1223_v19 }
 0x540   :  { %v1281_v5 = vmax.f32 %v1270_v17, 0.0 }
 0x542   :  { %6017 = vmatmul.msk.f32.vlgmr.msrb.gmra.mxu2 %vm1286_vm11, %v1281_v5 }
 0x545   :  { %v1272_v38 = vpop.f32.mrf.mxu1 }
 0x546   :  { %v1273_v61 = vadd.f32 %v1272_v38, %v1223_v19 }
 0x548   :  { %v1282_v7 = vmax.f32 %v1273_v61, 0.0  ;;  %v1420_v61 = vperm.slane %v7466_v45, 5 }
 0x54a   :  { %6018 = vmatmul.msk.f32.gmra.mxu2 %vm1286_vm11, %v1282_v7 }
 0x54d   :  { %v1275_v63 = vpop.f32.mrf.mxu1 }
 0x54e   :  { %v1276_v36 = vadd.f32 %v1275_v63, %v1223_v19 }
 0x550   :  { %v1283_v13 = vmax.f32 %v1276_v36, 0.0  ;;  %v1425_v36 = vperm.slane %v7466_v45, 6 }
 0x552   :  { %6019 = vmatmul.msk.f32.gmra.mxu2 %vm1286_vm11, %v1283_v13 }
 0x555   :  { %v1278_v6 = vpop.f32.mrf.mxu1 }
 0x556   :  { %v1279_v12 = vadd.f32 %v1278_v6, %v1223_v19 }
 0x558   :  { %v1284_v30 = vmax.f32 %v1279_v12, 0.0 }
 0x55a   :  { %6020 = vmatmul.msk.f32.gmra.mxu2 %vm1286_vm11, %v1284_v30 }
 0x5c5   :  { %v1316_v47 = vpop.f32.mrf.mxu2 }
 0x5c6   :  { %v1317_v53 = vadd.f32 %v1316_v47, %v1285_v40 }
 0x5c8   :  { %v1328_v20 = vadd.f32 %v1317_v53, %v7538_v48 }
 0x5ca   :  { %v1332_v11 = vsel %vm1072_vm9, %v1328_v20, 0.0 }
 0x5cd   :  { %v1319_v42 = vpop.f32.mrf.mxu2 }
 0x5ce   :  { %v1320_v43 = vadd.f32 %v1319_v42, %v1285_v40 }
 0x5d0   :  { %v1329_v33 = vadd.f32 %v1320_v43, %v1220_v1 }
 0x5d2   :  { %v1335_v55 = vsel %vm1072_vm9, %v1329_v33, 0.0 }
 0x5d3   :  { %1336 = vadd.xlane.f32.xlu2 %v1335_v55 }
 0x5d5   :  { %v1322_v32 = vpop.f32.mrf.mxu2 }
 0x5d6   :  { %v1323_v46 = vadd.f32 %v1322_v32, %v1285_v40 }
 0x5d8   :  { %v1330_v23 = vadd.f32 %v1323_v46, %v1221_v62 }
 0x5da   :  { %v1338_v0 = vsel %vm1072_vm9, %v1330_v23, 0.0 }
 0x5db   :  { %1333 = vadd.xlane.f32.xlu2 %v1332_v11 }
 0x5dd   :  { %v1325_v39 = vpop.f32.mrf.mxu2 }
 0x5de   :  { %v1326_v54 = vadd.f32 %v1325_v39, %v1285_v40 }
 0x5e0   :  { %v1331_v44 = vadd.f32 %v1326_v54, %v1222_v56 }
 0x5e2   :  { %v1341_v9 = vsel %vm1072_vm9, %v1331_v44, 0.0 }
 0x5e3   :  { %1342 = vadd.xlane.f32.xlu0 %v1341_v9  ;;  %1339 = vadd.xlane.f32.xlu2 %v1338_v0 }
 0x646   :  { %v1337_v51 = vpop.xlane.xlu2 %1336 }
 0x647   :  { %v1345_v49 = vmul.f32 %v1337_v51, %v7485_v3 }
 0x649   :  { %v1349_v58 = vsub.f32 %v1329_v33, %v1345_v49 }
 0x64b   :  { %v1353_v25 = vmul.f32 %v1349_v58, %v1349_v58 }
 0x64d   :  { %v1359_v52 = vsel %vm1072_vm9, %v1353_v25, 0.0 }
 0x64e   :  { %1360 = vadd.xlane.f32.xlu1 %v1359_v52  ;;  %v1334_v2 = vpop.xlane.xlu2 %1333 }
 0x64f   :  { %v1344_v57 = vmul.f32 %v1334_v2, %v7485_v3 }
 0x651   :  { %v7574_v41 = vsub.f32 %v1328_v20, %v1344_v57 }
 0x653   :  { %v1352_v27 = vmul.f32 %v7574_v41, %v7574_v41 }
 0x655   :  { %v1356_v10 = vsel %vm1072_vm9, %v1352_v27, 0.0 }
 0x656   :  { %v1343_v24 = vpop.xlane.xlu0 %1342  ;;  %1357 = vadd.xlane.f32.xlu2 %v1356_v10  ;;  %v1340_v15 = vpop.xlane.xlu2 %1339 }
 0x657   :  { %v1347_v48 = vmul.f32 %v1343_v24, %v7485_v3  ;;  %v1346_v22 = vmul.f32 %v1340_v15, %v7485_v3 }
 0x659   :  { %v7580_v18 = vsub.f32 %v1331_v44, %v1347_v48  ;;  %v7585_v28 = vsub.f32 %v1330_v23, %v1346_v22 }
 0x65b   :  { %v1355_v26 = vmul.f32 %v7580_v18, %v7580_v18  ;;  %v1354_v31 = vmul.f32 %v7585_v28, %v7585_v28 }
 0x65d   :  { %v1365_v59 = vsel %vm1072_vm9, %v1355_v26, 0.0  ;;  %v1362_v34 = vsel %vm1072_vm9, %v1354_v31, 0.0 }
 0x65e   :  { %1366 = vadd.xlane.f32.xlu2 %v1365_v59 }
 0x666   :  { %1363 = vadd.xlane.f32.xlu2 %v1362_v34 }
 0x6c1   :  { %v1361_v1 = vpop.xlane.xlu1 %1360 }
 0x6c2   :  { %v1369_v8 = vmul.f32 %v1361_v1, %v7485_v3 }
 0x6c4   :  { %v1373_v16 = vadd.f32 1e-05, %v1369_v8 }
 0x6c6   :  { %6365 = vrsqrt.f32 %v1373_v16  ;;  %vm1392_vm2 = vweird.f32 %v1373_v16 }
 0x6c9   :  { %v1358_v4 = vpop.xlane.xlu2 %1357 }
 0x6ca   :  { %v1368_v21 = vmul.f32 %v1358_v4, %v7485_v3 }
 0x6cc   :  { %v6366_v62 = vpop.eup %6365  ;;  %v1372_v60 = vadd.f32 1e-05, %v1368_v21 }
 0x6cd   :  { %v1387_v50 = vmul.f32 %v6366_v62, %v1373_v16  ;;  %vm1393_vm14 = vweird.f32 %v6366_v62 }
 0x6ce   :  { %6367 = vrsqrt.f32 %v1372_v60  ;;  %vm1394_vm12 = vmor %vm1392_vm2, %vm1393_vm14  ;;  %vm1382_vm5 = vweird.f32 %v1372_v60 }
 0x6cf   :  { %v1388_v56 = vmul.f32 %v6366_v62, %v1387_v50 }
 0x6d1   :  { %v1389_v29 = vmul.f32 0.5, %v1388_v56  ;;  %v1367_v35 = vpop.xlane.xlu2 %1366 }
 0x6d2   :  { %v1371_v37 = vmul.f32 %v1367_v35, %v7485_v3 }
 0x6d3   :  { %v1390_v19 = vsub.f32 1.5, %v1389_v29 }
 0x6d4   :  { %v6368_v14 = vpop.eup %6367  ;;  %v1375_v17 = vadd.f32 1e-05, %v1371_v37 }
 0x6d5   :  { %v1391_v5 = vmul.f32 %v6366_v62, %v1390_v19  ;;  %v1377_v38 = vmul.f32 %v6368_v14, %v1372_v60  ;;  %vm1383_vm13 = vweird.f32 %v6368_v14 }
 0x6d6   :  { %6369 = vrsqrt.f32 %v1375_v17  ;;  %vm1384_vm4 = vmor %vm1382_vm5, %vm1383_vm13  ;;  %vm1412_vm7 = vweird.f32 %v1375_v17 }
 0x6d7   :  { %v1395_v7 = vsel %vm1394_vm12, %v6366_v62, %v1391_v5  ;;  %v1378_v63 = vmul.f32 %v6368_v14, %v1377_v38 }
 0x6d8   :  { %v1417_v13 = vmul.f32 %v1395_v7, %v1349_v58 }
 0x6d9   :  { %v1379_v6 = vmul.f32 0.5, %v1378_v63  ;;  %v1364_v12 = vpop.xlane.xlu2 %1363 }
 0x6da   :  { %v1422_v30 = vmul.f32 %v1420_v61, %v1417_v13  ;;  %v1370_v47 = vmul.f32 %v1364_v12, %v7485_v3 }
 0x6db   :  { %v1380_v40 = vsub.f32 1.5, %v1379_v6  ;;  %v6606_v6 = vld [vmem:[%s9138_s2 + $0x8] sm:$0xff] }
 0x6dc   :  { %v6370_v42 = vpop.eup %6369  ;;  %v7597_v43 = vadd.f32 %v1425_v36, %v1422_v30  ;;  %v1374_v33 = vadd.f32 1e-05, %v1370_v47 }
 0x6dd   :  { %v1381_v53 = vmul.f32 %v6368_v14, %v1380_v40  ;;  %v1407_v55 = vmul.f32 %v6370_v42, %v1375_v17  ;;  %vm1413_vm6 = vweird.f32 %v6370_v42  ;;  %v6605_v17 = vld [vmem:[%s9138_s2] sm:$0xff] }
 0x6de   :  { %6371 = vrsqrt.f32 %v1374_v33  ;;  %1464 = vrot.lane.b32.xlu0 %v7597_v43, %s6667_s27  ;;  %6034 = vmatpush.xpose.msk.msra.mxu3 %vm128_vm0, %v7597_v43  ;;  %vm1414_vm15 = vmor %vm1412_vm7, %vm1413_vm6  ;;  %vm1402_vm10 = vweird.f32 %v1374_v33  ;;  %v1487_v24 = vmul.f32 0.17677669, %v7597_v43 }
 0x6df   :  { %v1385_v45 = vsel %vm1384_vm4, %v6368_v14, %v1381_v53  ;;  %v1408_v32 = vmul.f32 %v6370_v42, %v1407_v55  ;;  %1452 = vrot.lane.b32.xlu2 %v7597_v43, %s6665_s21 }
 0x6e0   :  { %v1416_v20 = vmul.f32 %v1385_v45, %v7574_v41 }
 0x6e1   :  { %v1409_v46 = vmul.f32 0.5, %v1408_v32 }
 0x6e2   :  { %v1421_v11 = vmul.f32 %v1420_v61, %v1416_v20  ;;  %v6608_v20 = vld [vmem:[%s9138_s2 + $0x10] sm:$0xff] }
 0x6e3   :  { %v1410_v39 = vsub.f32 1.5, %v1409_v46 }
 0x6e4   :  { %v6372_v54 = vpop.eup %6371  ;;  %v7606_v23 = vadd.f32 %v1425_v36, %v1421_v11  ;;  %v6609_v11 = vld [vmem:[%s9138_s2 + $0x40] sm:$0xff] }
 0x6e5   :  { %v1411_v44 = vmul.f32 %v6370_v42, %v1410_v39  ;;  %v1397_v9 = vmul.f32 %v6372_v54, %v1374_v33  ;;  %vm1403_vm3 = vweird.f32 %v6372_v54  ;;  %v6607_v33 = vld [vmem:[%s9138_s2 + $0x20] sm:$0xff] }
 0x6e6   :  { %1462 = vrot.lane.b32.xlu0 %v7606_v23, %s6667_s27  ;;  %1450 = vrot.lane.b32.xlu1 %v7606_v23, %s6665_s21  ;;  %v1486_v0 = vmul.f32 0.17677669, %v7606_v23  ;;  %vm1404_vm14 = vmor %vm1402_vm10, %vm1403_vm3 }
 0x6e7   :  { %v1415_v51 = vsel %vm1414_vm15, %v6370_v42, %v1411_v44  ;;  %v1398_v49 = vmul.f32 %v6372_v54, %v1397_v9  ;;  %6035 = vmatpush.xpose.msk.msra.mxu3 %vm128_vm0, %v7606_v23 }
 0x6e8   :  { %v1419_v58 = vmul.f32 %v1415_v51, %v7580_v18 }
 0x6e9   :  { %v1399_v25 = vmul.f32 0.5, %v1398_v49 }
 0x6ea   :  { %v1424_v52 = vmul.f32 %v1420_v61, %v1419_v58  ;;  %6036 = vmatmul.msk.f32.vlgmr.msra.gmra.mxu3 %vm128_vm0, %v1486_v0  ;;  %v6610_v0 = vld [vmem:[%s9138_s2 + $0x28] sm:$0xff] }
 0x6eb   :  { %v1400_v2 = vsub.f32 1.5, %v1399_v25 }
 0x6ec   :  { %v7617_v57 = vadd.f32 %v1425_v36, %v1424_v52  ;;  %v6611_v52 = vld [vmem:[%s9138_s2 + $0x60] sm:$0xff] }
 0x6ed   :  { %v1401_v41 = vmul.f32 %v6372_v54, %v1400_v2 }
 0x6ee   :  { %1476 = vrot.lane.b32.xlu0 %v7597_v43, %s6666_s26  ;;  %1456 = vrot.lane.b32.xlu2 %v7617_v57, %s6665_s21  ;;  %v1489_v22 = vmul.f32 0.17677669, %v7617_v57 }
 0x6ef   :  { %v1405_v27 = vsel %vm1404_vm14, %v6372_v54, %v1401_v41  ;;  %6038 = vmatpush.xpose.msk.msrb.mxu3 %vm128_vm0, %v7617_v57 }
 0x6f0   :  { %v1418_v10 = vmul.f32 %v1405_v27, %v7585_v28  ;;  %v6612_v27 = vld [vmem:[%s9138_s2 + $0x30] sm:$0xff] }
 0x6f2   :  { %v1423_v15 = vmul.f32 %v1420_v61, %v1418_v10  ;;  %6037 = vmatmul.msk.f32.gmra.mxu3 %vm128_vm0, %v1487_v24 }
 0x6f4   :  { %v7628_v48 = vadd.f32 %v1425_v36, %v1423_v15 }
 0x6f6   :  { %1474 = vrot.lane.b32.xlu0 %v7606_v23, %s6666_s26  ;;  %1468 = vrot.lane.b32.xlu2 %v7617_v57, %s6667_s27  ;;  %v1488_v18 = vmul.f32 0.17677669, %v7628_v48 }
 0x6f7   :  { %1454 = vrot.lane.b32.xlu1 %v7628_v48, %s6665_s21  ;;  %6039 = vmatpush.xpose.msk.msrb.mxu3 %vm128_vm0, %v7628_v48 }
 0x6fa   :  { %6040 = vmatmul.msk.f32.vlgmr.msrb.gmra.mxu3 %vm128_vm0, %v1488_v18  ;;  %v6613_v18 = vld [vmem:[%s9138_s2 + $0x18] sm:$0xff] }
 0x6fe   :  { %1478 = vrot.lane.b32.xlu0 %v7628_v48, %s6666_s26  ;;  %1466 = vrot.lane.b32.xlu2 %v7628_v48, %s6667_s27 }
 0x6ff   :  { %1480 = vrot.lane.b32.xlu1 %v7617_v57, %s6666_s26 }
 0x702   :  { %6041 = vmatmul.msk.f32.gmra.mxu3 %vm128_vm0, %v1489_v22 }
 0x739   :  { %v1453_v26 = vpop.permute.xlu2 %1452 }
 0x73a   :  { %6042 = vmatpush.xpose.msk.msrb.mxu0 %vm128_vm0, %v1453_v26  ;;  %v1491_v60 = vmul.f32 0.17677669, %v1453_v26 }
 0x748   :  { %v1457_v28 = vpop.permute.xlu2 %1456 }
 0x749   :  { %6046 = vmatpush.xpose.msk.msra.mxu1 %vm128_vm0, %v1457_v28  ;;  %v1493_v63 = vmul.f32 0.17677669, %v1457_v28 }
 0x750   :  { %v1465_v59 = vpop.permute.xlu0 %1464  ;;  %v1469_v31 = vpop.permute.xlu2 %1468 }
 0x751   :  { %6050 = vmatpush.xpose.msk.msra.mxu2 %vm128_vm0, %v1465_v59  ;;  %6054 = vmatpush.xpose.msk.msra.mxu3 %vm128_vm0, %v1469_v31  ;;  %v1495_v50 = vmul.f32 0.17677669, %v1465_v59  ;;  %v1497_v56 = vmul.f32 0.17677669, %v1469_v31 }
 0x758   :  { %v1463_v34 = vpop.permute.xlu0 %1462  ;;  %v1451_v1 = vpop.permute.xlu1 %1450 }
 0x759   :  { %v1494_v8 = vmul.f32 0.17677669, %v1463_v34  ;;  %v1490_v16 = vmul.f32 0.17677669, %v1451_v1  ;;  %v1467_v4 = vpop.permute.xlu2 %1466  ;;  %6043 = vmatpush.xpose.msk.msrb.mxu0 %vm128_vm0, %v1451_v1  ;;  %6051 = vmatpush.xpose.msk.msra.mxu2 %vm128_vm0, %v1463_v34 }
 0x75a   :  { %v1496_v21 = vmul.f32 0.17677669, %v1467_v4  ;;  %6055 = vmatpush.xpose.msk.msra.mxu3 %vm128_vm0, %v1467_v4 }
 0x75c   :  { %6044 = vmatmul.msk.f32.vlgmr.msrb.gmra.mxu0 %vm128_vm0, %v1490_v16  ;;  %6052 = vmatmul.msk.f32.vlgmr.msra.gmra.mxu2 %vm128_vm0, %v1494_v8  ;;  %v6615_v16 = vld [vmem:[%s9138_s2 + $0x38] sm:$0xff] }
 0x75d   :  { %2170 = vmatpush.msrb.mxu2 %v7597_v43  ;;  %6056 = vmatmul.msk.f32.vlgmr.msra.gmra.mxu3 %vm128_vm0, %v1496_v21 }
 0x75e   :  { %2199 = vmatpush.msrb.mxu3 %v7617_v57 }
 0x75f   :  { %2171 = vmatpush.msrb.mxu2 %v7606_v23 }
 0x760   :  { %2200 = vmatpush.msrb.mxu3 %v7628_v48  ;;  %v1477_v62 = vpop.permute.xlu0 %1476 }
 0x761   :  { %2286 = vmatpush.msra.mxu2 %v1465_v59  ;;  %6058 = vmatpush.xpose.msk.msra.mxu0 %vm128_vm0, %v1477_v62  ;;  %v1499_v7 = vmul.f32 0.17677669, %v1477_v62 }
 0x762   :  { %2315 = vmatpush.msra.mxu3 %v1469_v31  ;;  %v6614_v31 = vld [vmem:[%s9138_s2 + $0x48] sm:$0xff] }
 0x763   :  { %2287 = vmatpush.msra.mxu2 %v1463_v34 }
 0x764   :  { %2316 = vmatpush.msra.mxu3 %v1467_v4  ;;  %6045 = vmatmul.msk.f32.gmra.mxu0 %vm128_vm0, %v1491_v60 }
 0x765   :  { %6053 = vmatmul.msk.f32.gmra.mxu2 %vm128_vm0, %v1495_v50  ;;  %6057 = vmatmul.msk.f32.gmra.mxu3 %vm128_vm0, %v1497_v56  ;;  %v6616_v56 = vld [vmem:[%s9138_s2 + $0x68] sm:$0xff] }
 0x768   :  { %v1475_v29 = vpop.permute.xlu0 %1474 }
 0x769   :  { %v1498_v35 = vmul.f32 0.17677669, %v1475_v29  ;;  %v1455_v37 = vpop.permute.xlu1 %1454  ;;  %6059 = vmatpush.xpose.msk.msra.mxu0 %vm128_vm0, %v1475_v29 }
 0x76a   :  { %v1492_v19 = vmul.f32 0.17677669, %v1455_v37  ;;  %6047 = vmatpush.xpose.msk.msra.mxu1 %vm128_vm0, %v1455_v37 }
 0x76c   :  { %6060 = vmatmul.msk.f32.vlgmr.msra.gmra.mxu0 %vm128_vm0, %v1498_v35 }
 0x76d   :  { %2228 = vmatpush.msrb.mxu0 %v1453_v26  ;;  %v1529_v14 = vpop.f32.mrf.mxu3  ;;  %6048 = vmatmul.msk.f32.vlgmr.msra.gmra.mxu1 %vm128_vm0, %v1492_v19 }
 0x76e   :  { %v7673_v5 = vadd.f32 %v6605_v17, %v1529_v14 }
 0x76f   :  { %2229 = vmatpush.msrb.mxu0 %v1451_v1 }
 0x770   :  { %v1766_v38 = vsel %vm393_vm1, %v7673_v5, -inf  ;;  %v1479_v36 = vpop.permute.xlu0 %1478 }
 0x771   :  { %2344 = vmatpush.msra.mxu0 %v1477_v62  ;;  %1767 = vmax.xlane.f32.xlu2 %v1766_v38  ;;  %v1481_v61 = vpop.permute.xlu1 %1480  ;;  %v1500_v47 = vmul.f32 0.17677669, %v1479_v36 }
 0x772   :  { %6062 = vmatpush.xpose.msk.msrb.mxu1 %vm128_vm0, %v1481_v61  ;;  %v1501_v40 = vmul.f32 0.17677669, %v1481_v61 }
 0x773   :  { %2345 = vmatpush.msra.mxu0 %v1475_v29 }
 0x774   :  { %6061 = vmatmul.msk.f32.gmra.mxu0 %vm128_vm0, %v1499_v7 }
 0x775   :  { %v1532_v13 = vpop.f32.mrf.mxu3  ;;  %6049 = vmatmul.msk.f32.gmra.mxu1 %vm128_vm0, %v1493_v63 }
 0x776   :  { %v7683_v12 = vadd.f32 %v6606_v6, %v1532_v13  ;;  %6063 = vmatpush.xpose.msk.msrb.mxu1 %vm128_vm0, %v1479_v36  ;;  %v6619_v6 = vld [vmem:[%s9138_s2 + $0x58] sm:$0xff] }
 0x778   :  { %v1769_v30 = vsel %vm393_vm1, %v7683_v12, -inf }
 0x779   :  { %1770 = vmax.xlane.f32.xlu0 %v1769_v30 }
 0x77a   :  { %2257 = vmatpush.msra.mxu1 %v1457_v28 }
 0x77c   :  { %2258 = vmatpush.msra.mxu1 %v1455_v37  ;;  %v6617_v37 = vld [vmem:[%s9138_s2 + $0x50] sm:$0xff] }
 0x77d   :  { %6064 = vmatmul.msk.f32.vlgmr.msrb.gmra.mxu1 %vm128_vm0, %v1500_v47  ;;  %v1562_v45 = vpop.f32.mrf.mxu3 }
 0x77e   :  { %2373 = vmatpush.msrb.mxu1 %v1481_v61  ;;  %v7700_v46 = vadd.f32 %v6608_v20, %v1562_v45  ;;  %v6618_v61 = vld [vmem:[%s9138_s2 + $0x70] sm:$0xff] }
 0x780   :  { %2374 = vmatpush.msrb.mxu1 %v1479_v36  ;;  %v1772_v9 = vsel %vm393_vm1, %v7700_v46, -inf }
 0x785   :  { %6065 = vmatmul.msk.f32.gmra.mxu1 %vm128_vm0, %v1501_v40  ;;  %v1565_v49 = vpop.f32.mrf.mxu3 }
 0x786   :  { %v7735_v22 = vadd.f32 %v6613_v18, %v1565_v49 }
 0x788   :  { %v1775_v8 = vsel %vm393_vm1, %v7735_v22, -inf }
 0x7d9   :  { %v1595_v42 = vpop.f32.mrf.mxu0 }
 0x7da   :  { %v7693_v53 = vadd.f32 %v6607_v33, %v1595_v42  ;;  %v6620_v33 = vld [vmem:[%s9138_s2 + $0x78] sm:$0xff] }
 0x7dc   :  { %v1778_v55 = vsel %vm393_vm1, %v7693_v53, -inf }
 0x7dd   :  { %1779 = vmax.xlane.f32.xlu1 %v1778_v55 }
 0x7df   :  { %v1661_v32 = vpop.f32.mrf.mxu2 }
 0x7e0   :  { %v7705_v39 = vadd.f32 %v6609_v11, %v1661_v32  ;;  %v1694_v28 = vpop.f32.mrf.mxu3 }
 0x7e1   :  { %v1598_v54 = vpop.f32.mrf.mxu0  ;;  %v7762_v19 = vadd.f32 %v6617_v37, %v1694_v28 }
 0x7e2   :  { %v1790_v44 = vsel %vm393_vm1, %v7705_v39, -inf  ;;  %v7714_v51 = vadd.f32 %v6610_v0, %v1598_v54 }
 0x7e3   :  { %1791 = vmax.xlane.f32.xlu2 %v1790_v44  ;;  %v1796_v13 = vsel %vm393_vm1, %v7762_v19, -inf }
 0x7e4   :  { %v1781_v41 = vsel %vm393_vm1, %v7714_v51, -inf  ;;  %v1768_v59 = vpop.xlane.xlu2 %1767 }
 0x7e5   :  { %1773 = vmax.xlane.f32.xlu1 %v1772_v9  ;;  %v1814_v62 = vsub.f32 %v7673_v5, %v1768_v59 }
 0x7e7   :  { %v1830_v35 = vmul.f32 1.442695, %v1814_v62 }
 0x7e8   :  { %v1664_v26 = vpop.f32.mrf.mxu2  ;;  %v1697_v38 = vpop.f32.mrf.mxu3 }
 0x7e9   :  { %v1727_v58 = vpop.f32.mrf.mxu0  ;;  %v7740_v34 = vadd.f32 %v6614_v31, %v1664_v26  ;;  %6373 = vpow2.f32 %v1830_v35  ;;  %v7779_v30 = vadd.f32 %v6619_v6, %v1697_v38 }
 0x7ea   :  { %v1628_v25 = vpop.f32.mrf.mxu1  ;;  %v7719_v2 = vadd.f32 %v6611_v52, %v1727_v58 }
 0x7eb   :  { %v7726_v10 = vadd.f32 %v6612_v27, %v1628_v25  ;;  %1782 = vmax.xlane.f32.xlu2 %v1781_v41  ;;  %v1793_v60 = vsel %vm393_vm1, %v7740_v34, -inf }
 0x7ec   :  { %v1802_v24 = vsel %vm393_vm1, %v7719_v2, -inf  ;;  %v1771_v14 = vpop.xlane.xlu0 %1770 }
 0x7ed   :  { %1803 = vmax.xlane.f32.xlu1 %v1802_v24  ;;  %v1784_v15 = vsel %vm393_vm1, %v7726_v10, -inf  ;;  %v1815_v63 = vsub.f32 %v7683_v12, %v1771_v14  ;;  %v1799_v12 = vsel %vm393_vm1, %v7779_v30, -inf }
 0x7ee   :  { %1785 = vmax.xlane.f32.xlu0 %v1784_v15 }
 0x7ef   :  { %v1832_v47 = vmul.f32 1.442695, %v1815_v63  ;;  %v7781_v40 = vpop.eup %6373 }
 0x7f0   :  { %v1862_v32 = vsel %vm393_vm1, %v7781_v40, 0.0 }
 0x7f1   :  { %v1730_v21 = vpop.f32.mrf.mxu0  ;;  %6375 = vpow2.f32 %v1832_v47 }
 0x7f2   :  { %v1631_v1 = vpop.f32.mrf.mxu1  ;;  %v7757_v29 = vadd.f32 %v6616_v56, %v1730_v21 }
 0x7f3   :  { %v7747_v4 = vadd.f32 %v6615_v16, %v1631_v1  ;;  %1776 = vmax.xlane.f32.xlu2 %v1775_v8 }
 0x7f4   :  { %v1805_v5 = vsel %vm393_vm1, %v7757_v29, -inf }
 0x7f5   :  { %v1787_v50 = vsel %vm393_vm1, %v7747_v4, -inf }
 0x7f6   :  { %1794 = vmax.xlane.f32.xlu0 %v1793_v60  ;;  %1788 = vmax.xlane.f32.xlu1 %v1787_v50 }
 0x7f7   :  { %v7794_v20 = vpop.eup %6375 }
 0x7f8   :  { %v1865_v11 = vsel %vm393_vm1, %v7794_v20, 0.0 }
 0x7fa   :  { %v1760_v17 = vpop.f32.mrf.mxu1 }
 0x7fb   :  { %v7769_v7 = vadd.f32 %v6618_v61, %v1760_v17  ;;  %1806 = vmax.xlane.f32.xlu2 %v1805_v5 }
 0x7fd   :  { %v1808_v36 = vsel %vm393_vm1, %v7769_v7, -inf }
 0x7fe   :  { %1809 = vmax.xlane.f32.xlu1 %v1808_v36  ;;  %1797 = vmax.xlane.f32.xlu0 %v1796_v13 }
 0x802   :  { %v1763_v42 = vpop.f32.mrf.mxu1 }
 0x803   :  { %v7788_v55 = vadd.f32 %v6620_v33, %v1763_v42  ;;  %1800 = vmax.xlane.f32.xlu2 %v1799_v12 }
 0x805   :  { %v1811_v45 = vsel %vm393_vm1, %v7788_v55, -inf }
 0x806   :  { %1812 = vmax.xlane.f32.xlu0 %v1811_v45  ;;  %1863 = vadd.xlane.f32.xlu1 %v1862_v32 }
 0x80e   :  { %1866 = vadd.xlane.f32.xlu0 %v1865_v11 }
 0x850   :  { %v1780_v54 = vpop.xlane.xlu1 %1779 }
 0x851   :  { %v1818_v44 = vsub.f32 %v7693_v53, %v1780_v54 }
 0x853   :  { %v1838_v9 = vmul.f32 1.442695, %v1818_v44 }
 0x855   :  { %6377 = vpow2.f32 %v1838_v9 }
 0x856   :  { %v1792_v0 = vpop.xlane.xlu2 %1791 }
 0x857   :  { %v1822_v49 = vsub.f32 %v7705_v39, %v1792_v0 }
 0x858   :  { %v1774_v58 = vpop.xlane.xlu1 %1773 }
 0x859   :  { %v1846_v25 = vmul.f32 1.442695, %v1822_v49  ;;  %v1816_v52 = vsub.f32 %v7700_v46, %v1774_v58 }
 0x85b   :  { %v7801_v41 = vpop.eup %6377  ;;  %6379 = vpow2.f32 %v1846_v25  ;;  %v1834_v27 = vmul.f32 1.442695, %v1816_v52 }
 0x85c   :  { %v1874_v24 = vsel %vm393_vm1, %v7801_v41, 0.0 }
 0x85d   :  { %6381 = vpow2.f32 %v1834_v27  ;;  %1875 = vadd.xlane.f32.xlu2 %v1874_v24 }
 0x85e   :  { %v1783_v15 = vpop.xlane.xlu2 %1782 }
 0x85f   :  { %v1819_v53 = vsub.f32 %v7714_v51, %v1783_v15 }
 0x860   :  { %v1804_v18 = vpop.xlane.xlu1 %1803 }
 0x861   :  { %v7806_v26 = vpop.eup %6379  ;;  %v1840_v39 = vmul.f32 1.442695, %v1819_v53  ;;  %v1826_v28 = vsub.f32 %v7719_v2, %v1804_v18  ;;  %v1786_v59 = vpop.xlane.xlu0 %1785 }
 0x862   :  { %v1820_v46 = vsub.f32 %v7726_v10, %v1786_v59  ;;  %v1886_v31 = vsel %vm393_vm1, %v7806_v26, 0.0 }
 0x863   :  { %v7812_v1 = vpop.eup %6381  ;;  %6383 = vpow2.f32 %v1840_v39  ;;  %v1854_v8 = vmul.f32 1.442695, %v1826_v28  ;;  %1887 = vadd.xlane.f32.xlu0 %v1886_v31 }
 0x864   :  { %v1868_v51 = vsel %vm393_vm1, %v7812_v1, 0.0  ;;  %v1842_v16 = vmul.f32 1.442695, %v1820_v46 }
 0x865   :  { %6385 = vpow2.f32 %v1854_v8  ;;  %1869 = vadd.xlane.f32.xlu2 %v1868_v51 }
 0x866   :  { %v1777_v21 = vpop.xlane.xlu2 %1776  ;;  %6387 = vpow2.f32 %v1842_v16 }
 0x867   :  { %v1817_v2 = vsub.f32 %v7735_v22, %v1777_v21 }
 0x869   :  { %v7817_v62 = vpop.eup %6383  ;;  %v1836_v10 = vmul.f32 1.442695, %v1817_v2  ;;  %v1795_v60 = vpop.xlane.xlu0 %1794 }
 0x86a   :  { %v1789_v50 = vpop.xlane.xlu1 %1788  ;;  %v1823_v56 = vsub.f32 %v7740_v34, %v1795_v60  ;;  %v1877_v37 = vsel %vm393_vm1, %v7817_v62, 0.0 }
 0x86b   :  { %v1821_v35 = vsub.f32 %v7747_v4, %v1789_v50  ;;  %v7823_v14 = vpop.eup %6385  ;;  %6389 = vpow2.f32 %v1836_v10  ;;  %1878 = vadd.xlane.f32.xlu1 %v1877_v37 }
 0x86c   :  { %v1898_v22 = vsel %vm393_vm1, %v7823_v14, 0.0  ;;  %v1848_v5 = vmul.f32 1.442695, %v1823_v56  ;;  %v7827_v61 = vpop.eup %6387 }
 0x86d   :  { %v1844_v17 = vmul.f32 1.442695, %v1821_v35  ;;  %1899 = vadd.xlane.f32.xlu2 %v1898_v22  ;;  %v1880_v42 = vsel %vm393_vm1, %v7827_v61, 0.0 }
 0x86e   :  { %v1807_v38 = vpop.xlane.xlu2 %1806 }
 0x86f   :  { %6391 = vpow2.f32 %v1844_v17  ;;  %v1827_v34 = vsub.f32 %v7757_v29, %v1807_v38 }
 0x870   :  { %6393 = vpow2.f32 %v1848_v5 }
 0x871   :  { %v7830_v4 = vpop.eup %6389  ;;  %v1856_v63 = vmul.f32 1.442695, %v1827_v34  ;;  %v1798_v13 = vpop.xlane.xlu0 %1797 }
 0x872   :  { %v1810_v36 = vpop.xlane.xlu1 %1809  ;;  %v1824_v47 = vsub.f32 %v7762_v19, %v1798_v13  ;;  %v1871_v12 = vsel %vm393_vm1, %v7830_v4, 0.0 }
 0x873   :  { %v1828_v6 = vsub.f32 %v7769_v7, %v1810_v36  ;;  %6395 = vpow2.f32 %v1856_v63  ;;  %1881 = vadd.xlane.f32.xlu1 %v1880_v42  ;;  %1872 = vadd.xlane.f32.xlu0 %v1871_v12 }
 0x874   :  { %v1850_v45 = vmul.f32 1.442695, %v1824_v47 }
 0x875   :  { %v1858_v29 = vmul.f32 1.442695, %v1828_v6  ;;  %v7838_v33 = vpop.eup %6391 }
 0x876   :  { %v1883_v32 = vsel %vm393_vm1, %v7838_v33, 0.0  ;;  %v1801_v7 = vpop.xlane.xlu2 %1800  ;;  %v7842_v11 = vpop.eup %6393 }
 0x877   :  { %6397 = vpow2.f32 %v1858_v29  ;;  %1884 = vadd.xlane.f32.xlu2 %v1883_v32  ;;  %v1825_v19 = vsub.f32 %v7779_v30, %v1801_v7  ;;  %v1889_v58 = vsel %vm393_vm1, %v7842_v11, 0.0 }
 0x878   :  { %6399 = vpow2.f32 %v1850_v45 }
 0x879   :  { %v7845_v54 = vpop.eup %6395  ;;  %v1852_v44 = vmul.f32 1.442695, %v1825_v19  ;;  %v1813_v9 = vpop.xlane.xlu0 %1812 }
 0x87a   :  { %v1864_v0 = vpop.xlane.xlu1 %1863  ;;  %v1829_v49 = vsub.f32 %v7788_v55, %v1813_v9  ;;  %v1901_v25 = vsel %vm393_vm1, %v7845_v54, 0.0 }
 0x87b   :  { %6401 = vrcp.f32 %v1864_v0  ;;  %1890 = vadd.xlane.f32.xlu1 %v1889_v58  ;;  %1902 = vadd.xlane.f32.xlu0 %v1901_v25  ;;  %v1921_v46 = vand.u32 2147483648, %v1864_v0  ;;  %v1919_v8 = vand.u32 2147483647, %v1864_v0  ;;  %vm1915_vm12 = vweird.f32 %v1864_v0 }
 0x87c   :  { %6403 = vpow2.f32 %v1852_v44  ;;  %v1860_v30 = vmul.f32 1.442695, %v1829_v49 }
 0x87d   :  { %v7852_v52 = vpop.eup %6397  ;;  %v1922_v2 = vor.u32 1.1754944e-38, %v1921_v46  ;;  %vm1920_vm5 = vcmp.eq.f32.partialorder %v1919_v8, 8.507059e+37 }
 0x87e   :  { %v1904_v27 = vsel %vm393_vm1, %v7852_v52, 0.0  ;;  %v7856_v24 = vpop.eup %6399  ;;  %6405 = vpow2.f32 %v1860_v30 }
 0x87f   :  { %1905 = vadd.xlane.f32.xlu2 %v1904_v27  ;;  %v1892_v39 = vsel %vm393_vm1, %v7856_v24, 0.0 }
 0x881   :  { %v6402_v55 = vpop.eup %6401  ;;  %v1867_v18 = vpop.xlane.xlu0 %1866 }
 0x882   :  { %v7858_v15 = vpop.eup %6403  ;;  %v1911_v53 = vmul.f32 %v6402_v55, %v1864_v0  ;;  %6407 = vrcp.f32 %v1867_v18  ;;  %vm1916_vm2 = vweird.f32 %v6402_v55  ;;  %v1936_v17 = vand.u32 2147483648, %v1867_v18 }
 0x883   :  { %v1895_v28 = vsel %vm393_vm1, %v7858_v15, 0.0  ;;  %1893 = vadd.xlane.f32.xlu1 %v1892_v39  ;;  %vm1917_vm13 = vmor %vm1915_vm12, %vm1916_vm2  ;;  %v1934_v5 = vand.u32 2147483647, %v1867_v18  ;;  %vm1930_vm6 = vweird.f32 %v1867_v18 }
 0x884   :  { %v1912_v59 = vsub.f32 1.0, %v1911_v53  ;;  %1896 = vadd.xlane.f32.xlu0 %v1895_v28  ;;  %v7864_v51 = vpop.eup %6405  ;;  %v1937_v34 = vor.u32 1.1754944e-38, %v1936_v17 }
 0x885   :  { %v1907_v50 = vsel %vm393_vm1, %v7864_v51, 0.0  ;;  %vm1935_vm15 = vcmp.eq.f32.partialorder %v1934_v5, 8.507059e+37 }
 0x886   :  { %v1913_v31 = vmul.f32 %v6402_v55, %v1912_v59 }
 0x888   :  { %v1914_v16 = vadd.f32 %v6402_v55, %v1913_v31  ;;  %v6408_v21 = vpop.eup %6407 }
 0x889   :  { %v1926_v60 = vmul.f32 %v6408_v21, %v1867_v18  ;;  %vm1931_vm4 = vweird.f32 %v6408_v21 }
 0x88a   :  { %v1918_v10 = vsel %vm1917_vm13, %v6402_v55, %v1914_v16  ;;  %vm1932_vm7 = vmor %vm1930_vm6, %vm1931_vm4 }
 0x88b   :  { %v1923_v56 = vsel %vm1920_vm5, %v1922_v2, %v1918_v10  ;;  %v1927_v35 = vsub.f32 1.0, %v1926_v60  ;;  %1908 = vadd.xlane.f32.xlu1 %v1907_v50 }
 0x88c   :  { %v1924_v37 = vmul.f32 %v7781_v40, %v1923_v56 }
 0x88d   :  { %v1928_v22 = vmul.f32 %v6408_v21, %v1927_v35 }
 0x88e   :  { %6066 = vmatmul.msk.f32.vlgmr.msrb.gmra.mxu2 %vm393_vm1, %v1924_v37 }
 0x88f   :  { %v1929_v38 = vadd.f32 %v6408_v21, %v1928_v22 }
 0x891   :  { %v1933_v63 = vsel %vm1932_vm7, %v6408_v21, %v1929_v38 }
 0x892   :  { %v1938_v36 = vsel %vm1935_vm15, %v1937_v34, %v1933_v63 }
 0x893   :  { %v1939_v13 = vmul.f32 %v7794_v20, %v1938_v36 }
 0x896   :  { %6067 = vmatmul.msk.f32.gmra.mxu2 %vm393_vm1, %v1939_v13 }
 0x8d0   :  { %v1876_v6 = vpop.xlane.xlu2 %1875 }
 0x8d1   :  { %6409 = vrcp.f32 %v1876_v6  ;;  %v1979_v45 = vand.u32 2147483647, %v1876_v6  ;;  %v1981_v32 = vand.u32 2147483648, %v1876_v6  ;;  %vm1975_vm10 = vweird.f32 %v1876_v6 }
 0x8d3   :  { %vm1980_vm2 = vcmp.eq.f32.partialorder %v1979_v45, 8.507059e+37  ;;  %v1982_v58 = vor.u32 1.1754944e-38, %v1981_v32 }
 0x8d6   :  { %v1888_v40 = vpop.xlane.xlu0 %1887 }
 0x8d7   :  { %v6410_v47 = vpop.eup %6409  ;;  %6411 = vrcp.f32 %v1888_v40  ;;  %v2039_v27 = vand.u32 2147483647, %v1888_v40  ;;  %v2041_v18 = vand.u32 2147483648, %v1888_v40  ;;  %vm2035_vm13 = vweird.f32 %v1888_v40 }
 0x8d8   :  { %v1971_v42 = vmul.f32 %v6410_v47, %v1876_v6  ;;  %v1870_v12 = vpop.xlane.xlu2 %1869  ;;  %vm1976_vm3 = vweird.f32 %v6410_v47 }
 0x8d9   :  { %6413 = vrcp.f32 %v1870_v12  ;;  %vm7874_vm14 = vmor %vm1975_vm10, %vm1976_vm3  ;;  %v1949_v39 = vand.u32 2147483647, %v1870_v12  ;;  %v1951_v28 = vand.u32 2147483648, %v1870_v12  ;;  %vm7889_vm6 = vcmp.eq.f32.partialorder %v2039_v27, 8.507059e+37 }
 0x8da   :  { %v1972_v29 = vsub.f32 1.0, %v1971_v42  ;;  %v2042_v50 = vor.u32 1.1754944e-38, %v2041_v18  ;;  %vm1945_vm7 = vweird.f32 %v1870_v12 }
 0x8db   :  { %vm7893_vm15 = vcmp.eq.f32.partialorder %v1949_v39, 8.507059e+37  ;;  %v1952_v37 = vor.u32 1.1754944e-38, %v1951_v28 }
 0x8dc   :  { %v1973_v7 = vmul.f32 %v6410_v47, %v1972_v29 }
 0x8dd   :  { %v6412_v19 = vpop.eup %6411 }
 0x8de   :  { %v1974_v44 = vadd.f32 %v6410_v47, %v1973_v7  ;;  %v2031_v9 = vmul.f32 %v6412_v19, %v1888_v40  ;;  %v7872_v20 = vpop.xlane.xlu1 %1878  ;;  %vm2036_vm12 = vweird.f32 %v6412_v19 }
 0x8df   :  { %v6414_v0 = vpop.eup %6413  ;;  %6415 = vrcp.f32 %v7872_v20  ;;  %vm7885_vm4 = vmor %vm2035_vm13, %vm2036_vm12  ;;  %vm1990_vm10 = vweird.f32 %v7872_v20  ;;  %v1994_v63 = vand.u32 2147483647, %v7872_v20  ;;  %v1996_v36 = vand.u32 2147483648, %v7872_v20 }
 0x8e0   :  { %v1978_v25 = vsel %vm7874_vm14, %v6410_v47, %v1974_v44  ;;  %v2032_v30 = vsub.f32 1.0, %v2031_v9  ;;  %v1941_v55 = vmul.f32 %v6414_v0, %v1870_v12  ;;  %v7881_v53 = vpop.xlane.xlu2 %1899  ;;  %vm1946_vm5 = vweird.f32 %v6414_v0 }
 0x8e1   :  { %6417 = vrcp.f32 %v7881_v53  ;;  %v1983_v31 = vsel %vm1980_vm2, %v1982_v58, %v1978_v25  ;;  %vm7908_vm3 = vmor %vm1945_vm7, %vm1946_vm5  ;;  %v2099_v47 = vand.u32 2147483647, %v7881_v53  ;;  %v2101_v42 = vand.u32 2147483648, %v7881_v53 }
 0x8e2   :  { %v2033_v59 = vmul.f32 %v6412_v19, %v2032_v30  ;;  %v1942_v46 = vsub.f32 1.0, %v1941_v55  ;;  %v1984_v8 = vmul.f32 %v7801_v41, %v1983_v31  ;;  %vm2095_vm2 = vweird.f32 %v7881_v53 }
 0x8e3   :  { %vm7940_vm13 = vcmp.eq.f32.partialorder %v2099_v47, 8.507059e+37  ;;  %v2102_v30 = vor.u32 1.1754944e-38, %v2101_v42 }
 0x8e4   :  { %v2034_v16 = vadd.f32 %v6412_v19, %v2033_v59  ;;  %v1943_v21 = vmul.f32 %v6414_v0, %v1942_v46  ;;  %6070 = vmatmul.msk.f32.vlgmr.msrb.gmra.mxu0 %vm393_vm1, %v1984_v8 }
 0x8e5   :  { %v6416_v2 = vpop.eup %6415 }
 0x8e6   :  { %v2038_v41 = vsel %vm7885_vm4, %v6412_v19, %v2034_v16  ;;  %v1944_v35 = vadd.f32 %v6414_v0, %v1943_v21  ;;  %v1986_v17 = vmul.f32 %v6416_v2, %v7872_v20  ;;  %v7901_v22 = vpop.xlane.xlu1 %1881  ;;  %v7903_v5 = vpop.xlane.xlu0 %1872  ;;  %vm1991_vm14 = vweird.f32 %v6416_v2 }
 0x8e7   :  { %v7905_v38 = vpop.eup %6417  ;;  %6419 = vrcp.f32 %v7901_v22  ;;  %v2043_v12 = vsel %vm7889_vm6, %v2042_v50, %v2038_v41  ;;  %v2011_v44 = vand.u32 2147483648, %v7901_v22  ;;  %v2009_v49 = vand.u32 2147483647, %v7901_v22  ;;  %vm1992_vm5 = vmor %vm1990_vm10, %vm1991_vm14 }
 0x8e8   :  { %v1948_v13 = vsel %vm7908_vm3, %v6414_v0, %v1944_v35  ;;  %v1987_v6 = vsub.f32 1.0, %v1986_v17  ;;  %v2091_v40 = vmul.f32 %v7905_v38, %v7881_v53  ;;  %6421 = vrcp.f32 %v7903_v5 }
 0x8e9   :  { %v2044_v32 = vmul.f32 %v7806_v26, %v2043_v12  ;;  %v1953_v7 = vsel %vm7893_vm15, %v1952_v37, %v1948_v13  ;;  %vm2096_vm12 = vweird.f32 %v7905_v38  ;;  %vm1995_vm4 = vcmp.eq.f32.partialorder %v1994_v63, 8.507059e+37 }
 0x8ea   :  { %v2092_v29 = vsub.f32 1.0, %v2091_v40  ;;  %v7925_v45 = vpop.xlane.xlu2 %1884  ;;  %v1988_v19 = vmul.f32 %v6416_v2, %v1987_v6  ;;  %v1954_v9 = vmul.f32 %v7812_v1, %v1953_v7  ;;  %v1997_v1 = vor.u32 1.1754944e-38, %v1996_v36  ;;  %vm7958_vm7 = vmor %vm2095_vm2, %vm2096_vm12 }
 0x8eb   :  { %6423 = vrcp.f32 %v7925_v45  ;;  %6074 = vmatmul.msk.f32.vlgmr.msra.gmra.mxu2 %vm393_vm1, %v2044_v32  ;;  %vm2005_vm6 = vweird.f32 %v7901_v22  ;;  %v2012_v59 = vor.u32 1.1754944e-38, %v2011_v44  ;;  %vm1960_vm15 = vweird.f32 %v7903_v5 }
 0x8ec   :  { %v2093_v0 = vmul.f32 %v7905_v38, %v2092_v29  ;;  %v1989_v26 = vadd.f32 %v6416_v2, %v1988_v19  ;;  %6068 = vmatmul.msk.f32.vlgmr.msrb.gmra.mxu3 %vm393_vm1, %v1954_v9  ;;  %vm7969_vm3 = vcmp.eq.f32.partialorder %v2009_v49, 8.507059e+37  ;;  %v1964_v60 = vand.u32 2147483647, %v7903_v5 }
 0x8ed   :  { %v7938_v58 = vpop.eup %6419  ;;  %v1966_v50 = vand.u32 2147483648, %v7903_v5  ;;  %v2026_v56 = vand.u32 2147483648, %v7925_v45  ;;  %vm2020_vm14 = vweird.f32 %v7925_v45 }
 0x8ee   :  { %v2094_v27 = vadd.f32 %v7905_v38, %v2093_v0  ;;  %v2001_v55 = vmul.f32 %v7938_v58, %v7901_v22  ;;  %v7952_v18 = vpop.xlane.xlu1 %1890  ;;  %v1993_v39 = vsel %vm1992_vm5, %v6416_v2, %v1989_v26  ;;  %v6422_v28 = vpop.eup %6421  ;;  %vm2006_vm10 = vweird.f32 %v7938_v58 }
 0x8ef   :  { %6425 = vrcp.f32 %v7952_v18  ;;  %v7963_v46 = vpop.xlane.xlu0 %1902  ;;  %v1998_v31 = vsel %vm1995_vm4, %v1997_v1, %v1993_v39  ;;  %v1956_v53 = vmul.f32 %v6422_v28, %v7903_v5  ;;  %vm1961_vm2 = vweird.f32 %v6422_v28  ;;  %vm7998_vm12 = vmor %vm2005_vm6, %vm2006_vm10 }
 0x8f0   :  { %v2098_v8 = vsel %vm7958_vm7, %v7905_v38, %v2094_v27  ;;  %v2002_v16 = vsub.f32 1.0, %v2001_v55  ;;  %6427 = vrcp.f32 %v7963_v46  ;;  %v1999_v10 = vmul.f32 %v7817_v62, %v1998_v31  ;;  %vm1962_vm5 = vmor %vm1960_vm15, %vm1961_vm2 }
 0x8f1   :  { %v7975_v2 = vpop.eup %6423  ;;  %v1957_v35 = vsub.f32 1.0, %v1956_v53  ;;  %v2103_v62 = vsel %vm7940_vm13, %v2102_v30, %v2098_v8  ;;  %v2024_v38 = vand.u32 2147483647, %v7925_v45  ;;  %vm8003_vm13 = vcmp.eq.f32.partialorder %v1964_v60, 8.507059e+37 }
 0x8f2   :  { %v2003_v41 = vmul.f32 %v7938_v58, %v2002_v16  ;;  %v2016_v37 = vmul.f32 %v7975_v2, %v7925_v45  ;;  %v7985_v17 = vpop.xlane.xlu2 %1905  ;;  %6071 = vmatmul.msk.f32.gmra.mxu0 %vm393_vm1, %v1999_v10  ;;  %v1967_v42 = vor.u32 1.1754944e-38, %v1966_v50  ;;  %v2027_v12 = vor.u32 1.1754944e-38, %v2026_v56 }
 0x8f3   :  { %6429 = vrcp.f32 %v7985_v17  ;;  %v1958_v36 = vmul.f32 %v6422_v28, %v1957_v35  ;;  %v2131_v40 = vand.u32 2147483648, %v7985_v17  ;;  %v2104_v44 = vmul.f32 %v7823_v14, %v2103_v62 }
 0x8f4   :  { %v2004_v34 = vadd.f32 %v7938_v58, %v2003_v41  ;;  %v2017_v63 = vsub.f32 1.0, %v2016_v37  ;;  %v2129_v0 = vand.u32 2147483647, %v7985_v17  ;;  %vm8027_vm4 = vcmp.eq.f32.partialorder %v2024_v38, 8.507059e+37 }
 0x8f5   :  { %v7994_v13 = vpop.eup %6425  ;;  %v1959_v19 = vadd.f32 %v6422_v28, %v1958_v36  ;;  %vm2021_vm6 = vweird.f32 %v7975_v2  ;;  %v8035_v27 = vor.u32 1.1754944e-38, %v2131_v40  ;;  %vm2050_vm7 = vweird.f32 %v7952_v18 }
 0x8f6   :  { %v8007_v29 = vpop.eup %6427  ;;  %v2008_v32 = vsel %vm7998_vm12, %v7938_v58, %v2004_v34  ;;  %v2046_v22 = vmul.f32 %v7994_v13, %v7952_v18  ;;  %v8014_v7 = vpop.xlane.xlu1 %1893  ;;  %v2018_v26 = vmul.f32 %v7975_v2, %v2017_v63  ;;  %vm2125_vm15 = vweird.f32 %v7985_v17  ;;  %vm8058_vm10 = vmor %vm2020_vm14, %vm2021_vm6 }
 0x8f7   :  { %v2106_v9 = vmul.f32 %v8007_v29, %v7963_v46  ;;  %6431 = vrcp.f32 %v8014_v7  ;;  %v8021_v49 = vpop.xlane.xlu0 %1896  ;;  %v1963_v25 = vsel %vm1962_vm5, %v6422_v28, %v1959_v19  ;;  %v2013_v55 = vsel %vm7969_vm3, %v2012_v59, %v2008_v32 }
 0x8f8   :  { %v2047_v14 = vsub.f32 1.0, %v2046_v22  ;;  %6433 = vrcp.f32 %v8021_v49  ;;  %v1968_v5 = vsel %vm8003_vm13, %v1967_v42, %v1963_v25  ;;  %v2054_v28 = vand.u32 2147483647, %v7952_v18  ;;  %v6022_v42 = vld [vmem:[%s9141_s5 + $0x28] sm:$0xff] }
 0x8f9   :  { %v8033_v30 = vpop.eup %6429  ;;  %v2107_v1 = vsub.f32 1.0, %v2106_v9  ;;  %v1969_v20 = vmul.f32 %v7830_v4, %v1968_v5  ;;  %v2014_v31 = vmul.f32 %v7827_v61, %v2013_v55  ;;  %v2019_v8 = vadd.f32 %v7975_v2, %v2018_v26 }
 0x8fa   :  { %v2121_v39 = vmul.f32 %v8033_v30, %v7985_v17  ;;  %6078 = vmatmul.msk.f32.vlgmr.msra.gmra.mxu0 %vm393_vm1, %v2104_v44  ;;  %v2048_v16 = vmul.f32 %v7994_v13, %v2047_v14  ;;  %vm2051_vm3 = vweird.f32 %v7994_v13  ;;  %v2069_v21 = vand.u32 2147483647, %v8014_v7 }
 0x8fb   :  { %6069 = vmatmul.msk.f32.gmra.mxu3 %vm393_vm1, %v1969_v20  ;;  %v2056_v61 = vand.u32 2147483648, %v7952_v18  ;;  %v2108_v53 = vmul.f32 %v8007_v29, %v2107_v1  ;;  %vm2126_vm2 = vweird.f32 %v8033_v30  ;;  %v2071_v60 = vand.u32 2147483648, %v8014_v7  ;;  %6072 = vmatmul.msk.f32.vlgmr.msra.gmra.mxu1 %vm393_vm1, %v2014_v31  ;;  %vm8081_vm14 = vmor %vm2050_vm7, %vm2051_vm3 }
 0x8fc   :  { %v2122_v59 = vsub.f32 1.0, %v2121_v39  ;;  %v2023_v50 = vsel %vm8058_vm10, %v7975_v2, %v2019_v8  ;;  %v2049_v45 = vadd.f32 %v7994_v13, %v2048_v16  ;;  %vm8085_vm12 = vcmp.eq.f32.partialorder %v2054_v28, 8.507059e+37  ;;  %vm8119_vm3 = vmor %vm2125_vm15, %vm2126_vm2 }
 0x8fd   :  { %v6432_v10 = vpop.eup %6431  ;;  %vm2111_vm13 = vweird.f32 %v8007_v29  ;;  %vm2110_vm5 = vweird.f32 %v7963_v46  ;;  %v2028_v63 = vsel %vm8027_vm4, %v2027_v12, %v2023_v50  ;;  %v2057_v36 = vor.u32 1.1754944e-38, %v2056_v61 }
 0x8fe   :  { %v8071_v56 = vpop.eup %6433  ;;  %v2123_v41 = vmul.f32 %v8033_v30, %v2122_v59  ;;  %v2061_v35 = vmul.f32 %v6432_v10, %v8014_v7  ;;  %v8075_v37 = vpop.xlane.xlu1 %1908  ;;  %v2053_v34 = vsel %vm8081_vm14, %v7994_v13, %v2049_v45  ;;  %v2109_v6 = vadd.f32 %v8007_v29, %v2108_v53  ;;  %vm8101_vm6 = vmor %vm2110_vm5, %vm2111_vm13 }
 0x8ff   :  { %v2076_v38 = vmul.f32 %v8071_v56, %v8021_v49  ;;  %6435 = vrcp.f32 %v8075_v37  ;;  %v2114_v32 = vand.u32 2147483647, %v7963_v46  ;;  %v2116_v13 = vand.u32 2147483648, %v7963_v46 }
 0x900   :  { %v2062_v18 = vsub.f32 1.0, %v2061_v35  ;;  %v2124_v40 = vadd.f32 %v8033_v30, %v2123_v41  ;;  %vm2066_vm7 = vweird.f32 %v6432_v10  ;;  %v2058_v19 = vsel %vm8085_vm12, %v2057_v36, %v2053_v34 }
 0x901   :  { %v2077_v47 = vsub.f32 1.0, %v2076_v38  ;;  %v2113_v12 = vsel %vm8101_vm6, %v8007_v29, %v2109_v6  ;;  %vm2065_vm4 = vweird.f32 %v8014_v7  ;;  %v2029_v44 = vmul.f32 %v7838_v33, %v2028_v63  ;;  %v8173_v6 = vld [vmem:[%s9141_s5 + $0x38] sm:$0xff] }
 0x902   :  { %v2063_v22 = vmul.f32 %v6432_v10, %v2062_v18  ;;  %v2059_v9 = vmul.f32 %v7842_v11, %v2058_v19  ;;  %v2117_v26 = vor.u32 1.1754944e-38, %v2116_v13  ;;  %vm8123_vm10 = vcmp.eq.f32.partialorder %v2069_v21, 8.507059e+37  ;;  %vm2067_vm12 = vmor %vm2065_vm4, %vm2066_vm7  ;;  %2467 = vmatpush.msrb.mxu2 %v8173_v6 }
 0x903   :  { %vm2115_vm14 = vcmp.eq.f32.partialorder %v2114_v32, 8.507059e+37  ;;  %v2078_v29 = vmul.f32 %v8071_v56, %v2077_v47  ;;  %v2128_v11 = vsel %vm8119_vm3, %v8033_v30, %v2124_v40  ;;  %v2072_v7 = vor.u32 1.1754944e-38, %v2071_v60  ;;  %6073 = vmatmul.msk.f32.gmra.mxu1 %vm393_vm1, %v2029_v44  ;;  %v8178_v40 = vld [vmem:[%s9141_s5 + $0x30] sm:$0xff]  ;;  %v6021_v32 = vld [vmem:[%s9141_s5 + $0x20] sm:$0xff] }
 0x904   :  { %v2064_v58 = vadd.f32 %v6432_v10, %v2063_v22  ;;  %6075 = vmatmul.msk.f32.gmra.mxu2 %vm393_vm1, %v2059_v9  ;;  %v2118_v25 = vsel %vm2115_vm14, %v2117_v26, %v2113_v12  ;;  %vm2081_vm15 = vweird.f32 %v8071_v56  ;;  %vm2130_vm2 = vcmp.eq.f32.partialorder %v2129_v0, 8.507059e+37 }
 0x905   :  { %v6436_v33 = vpop.eup %6435  ;;  %v2119_v55 = vmul.f32 %v7845_v54, %v2118_v25  ;;  %v2079_v39 = vadd.f32 %v8071_v56, %v2078_v29  ;;  %vm2080_vm13 = vweird.f32 %v8021_v49  ;;  %v2086_v20 = vand.u32 2147483648, %v8021_v49  ;;  %2468 = vmatpush.msrb.mxu2 %v8178_v40 }
 0x906   :  { %v2068_v1 = vsel %vm2067_vm12, %v6432_v10, %v2064_v58  ;;  %v2136_v5 = vmul.f32 %v6436_v33, %v8075_v37  ;;  %v2133_v8 = vsel %vm2130_vm2, %v8035_v27, %v2128_v11  ;;  %v2084_v54 = vand.u32 2147483647, %v8021_v49  ;;  %vm2082_vm5 = vmor %vm2080_vm13, %vm2081_vm15 }
 0x907   :  { %v2073_v30 = vsel %vm8123_vm10, %v2072_v7, %v2068_v1  ;;  %6079 = vmatmul.msk.f32.gmra.mxu0 %vm393_vm1, %v2119_v55  ;;  %v2146_v17 = vand.u32 2147483648, %v8075_v37  ;;  %v2083_v0 = vsel %vm2082_vm5, %v8071_v56, %v2079_v39  ;;  %vm2141_vm6 = vweird.f32 %v6436_v33  ;;  %2469 = vmatpush.msrb.mxu2 %v6022_v42 }
 0x908   :  { %v2137_v28 = vsub.f32 1.0, %v2136_v5  ;;  %v2074_v31 = vmul.f32 %v7856_v24, %v2073_v30  ;;  %v2144_v59 = vand.u32 2147483647, %v8075_v37  ;;  %v2134_v21 = vmul.f32 %v7852_v52, %v2133_v8 }
 0x909   :  { %v2087_v4 = vor.u32 1.1754944e-38, %v2086_v20  ;;  %vm2085_vm7 = vcmp.eq.f32.partialorder %v2084_v54, 8.507059e+37  ;;  %vm2140_vm4 = vweird.f32 %v8075_v37  ;;  %v2147_v27 = vor.u32 1.1754944e-38, %v2146_v17  ;;  %2470 = vmatpush.msrb.mxu2 %v6021_v32  ;;  %v8209_v17 = vld [vmem:[%s9143_s7 + $0x8] sm:$0xff] }
 0x90a   :  { %6076 = vmatmul.msk.f32.vlgmr.msra.gmra.mxu3 %vm393_vm1, %v2074_v31  ;;  %v2138_v16 = vmul.f32 %v6436_v33, %v2137_v28  ;;  %vm2142_vm3 = vmor %vm2140_vm4, %vm2141_vm6  ;;  %vm2145_vm10 = vcmp.eq.f32.partialorder %v2144_v59, 8.507059e+37  ;;  %v6241_v47 = vpack.i.bf16 %v8178_v40, %v8173_v6  ;;  %v6246_v13 = vpack.i.bf16 %v6021_v32, %v6022_v42 }
 0x90b   :  { %6080 = vmatmul.msk.f32.vlgmr.msrb.gmra.mxu1 %vm393_vm1, %v2134_v21  ;;  %v2088_v49 = vsel %vm2085_vm7, %v2087_v4, %v2083_v0  ;;  %v2442_v0 = vperm.slane %v8209_v17, 0 }
 0x90c   :  { %v2139_v24 = vadd.f32 %v6436_v33, %v2138_v16  ;;  %v2089_v10 = vmul.f32 %v7858_v15, %v2088_v49 }
 0x90e   :  { %v2143_v61 = vsel %vm2142_vm3, %v6436_v33, %v2139_v24 }
 0x90f   :  { %v2148_v53 = vsel %vm2145_vm10, %v2147_v27, %v2143_v61 }
 0x910   :  { %v2149_v60 = vmul.f32 %v7864_v51, %v2148_v53 }
 0x911   :  { %v2173_v52 = vpop.f32.mrf.mxu2 }
 0x912   :  { %6077 = vmatmul.msk.f32.gmra.mxu3 %vm393_vm1, %v2089_v10 }
 0x913   :  { %6081 = vmatmul.msk.f32.gmra.mxu1 %vm393_vm1, %v2149_v60 }
 0x919   :  { %v2176_v45 = vpop.f32.mrf.mxu2 }
 0x961   :  { %v2231_v50 = vpop.f32.mrf.mxu0 }
 0x962   :  { %2386 = vrot.lane.b32.xlu2 %v2231_v50, %s6668_s28 }
 0x96e   :  { %v2289_v56 = vpop.f32.mrf.mxu2 }
 0x96f   :  { %2402 = vrot.lane.b32.xlu0 %v2289_v56, %s6669_s29  ;;  %v2234_v41 = vpop.f32.mrf.mxu0  ;;  %v2202_v51 = vpop.f32.mrf.mxu3 }
 0x977   :  { %2388 = vrot.lane.b32.xlu0 %v2234_v41, %s6668_s28  ;;  %v2347_v35 = vpop.f32.mrf.mxu0 }
 0x978   :  { %2418 = vrot.lane.b32.xlu1 %v2347_v35, %s6670_s30  ;;  %v2260_v15 = vpop.f32.mrf.mxu1 }
 0x97e   :  { %v2205_v62 = vpop.f32.mrf.mxu3 }
 0x980   :  { %v2263_v37 = vpop.f32.mrf.mxu1 }
 0x984   :  { %v2350_v2 = vpop.f32.mrf.mxu0 }
 0x985   :  { %2420 = vrot.lane.b32.xlu0 %v2350_v2, %s6670_s30 }
 0x987   :  { %v2292_v38 = vpop.f32.mrf.mxu2 }
 0x988   :  { %2404 = vrot.lane.b32.xlu2 %v2292_v38, %s6669_s29  ;;  %v2376_v34 = vpop.f32.mrf.mxu1 }
 0x98d   :  { %v2318_v18 = vpop.f32.mrf.mxu3  ;;  %2422 = vrot.lane.b32.xlu0 %v2376_v34, %s6670_s30 }
 0x98e   :  { %2406 = vrot.lane.b32.xlu1 %v2318_v18, %s6669_s29 }
 0x990   :  { %2390 = vrot.lane.b32.xlu2 %v2260_v15, %s6668_s28  ;;  %v2379_v63 = vpop.f32.mrf.mxu1  ;;  %v8236_v15 = vld [vmem:[%s9137_s1] sm:$0xff] }
 0x991   :  { %6094 = vmatpush.xpose.msk.msra.mxu1 %vm128_vm0, %v8236_v15  ;;  %v2812_v42 = vmul.f32 0.17677669, %v8236_v15 }
 0x994   :  { %6095 = vmatmul.msk.f32.vlgmr.msra.gmra.mxu1 %vm128_vm0, %v2812_v42 }
 0x995   :  { %v2321_v36 = vpop.f32.mrf.mxu3  ;;  %2424 = vrot.lane.b32.xlu0 %v2379_v63, %s6670_s30 }
 0x996   :  { %2408 = vrot.lane.b32.xlu1 %v2321_v36, %s6669_s29 }
 0x998   :  { %2392 = vrot.lane.b32.xlu2 %v2263_v37, %s6668_s28 }
 0x9bc   :  { %v2387_v19 = vpop.permute.xlu2 %2386 }
 0x9bd   :  { %v2430_v12 = vsel %vm128_vm0, %v2173_v52, %v2387_v19 }
 0x9e1   :  { %v2403_v22 = vpop.permute.xlu0 %2402 }
 0x9e2   :  { %v2434_v44 = vsel %vm393_vm1, %v2430_v12, %v2403_v22  ;;  %v2405_v58 = vpop.permute.xlu2 %2404 }
 0x9e9   :  { %v2389_v46 = vpop.permute.xlu0 %2388 }
 0x9ea   :  { %v2419_v9 = vpop.permute.xlu1 %2418  ;;  %v2431_v14 = vsel %vm128_vm0, %v2176_v45, %v2389_v46  ;;  %v2391_v7 = vpop.permute.xlu2 %2390 }
 0x9eb   :  { %v2438_v26 = vsel %vm1066_vm8, %v2434_v44, %v2419_v9  ;;  %v2435_v33 = vsel %vm393_vm1, %v2431_v14, %v2405_v58  ;;  %v2432_v25 = vsel %vm128_vm0, %v2202_v51, %v2391_v7 }
 0x9ec   :  { %6082 = vmatmul.msk.f32.vlgmr.msrb.gmra.mxu2 %vm1072_vm9, %v2438_v26 }
 0x9f2   :  { %v2393_v30 = vpop.permute.xlu2 %2392 }
 0x9f3   :  { %v2433_v20 = vsel %vm128_vm0, %v2205_v62, %v2393_v30 }
 0x9f7   :  { %v2421_v29 = vpop.permute.xlu0 %2420 }
 0x9f8   :  { %v2439_v11 = vsel %vm1066_vm8, %v2435_v33, %v2421_v29 }
 0x9f9   :  { %6083 = vmatmul.msk.f32.gmra.mxu2 %vm1072_vm9, %v2439_v11 }
 0x9ff   :  { %v2423_v1 = vpop.permute.xlu0 %2422 }
 0xa00   :  { %v2407_v5 = vpop.permute.xlu1 %2406 }
 0xa01   :  { %v2436_v55 = vsel %vm393_vm1, %v2432_v25, %v2407_v5 }
 0xa02   :  { %v2440_v39 = vsel %vm1066_vm8, %v2436_v55, %v2423_v1 }
 0xa03   :  { %6084 = vmatmul.msk.f32.gmra.mxu2 %vm1072_vm9, %v2440_v39 }
 0xa07   :  { %v2425_v31 = vpop.permute.xlu0 %2424 }
 0xa08   :  { %v2409_v28 = vpop.permute.xlu1 %2408 }
 0xa09   :  { %v2437_v8 = vsel %vm393_vm1, %v2433_v20, %v2409_v28 }
 0xa0a   :  { %v2441_v54 = vsel %vm1066_vm8, %v2437_v8, %v2425_v31 }
 0xa0b   :  { %6085 = vmatmul.msk.f32.gmra.mxu2 %vm1072_vm9, %v2441_v54  ;;  %v8289_v54 = vperm.slane %v8209_v17, 1 }
 0xa6f   :  { %v2472_v16 = vpop.f32.mrf.mxu2 }
 0xa70   :  { %v2473_v59 = vadd.f32 %v2472_v16, %v2442_v0 }
 0xa72   :  { %v2484_v21 = vadd.f32 %v2473_v59, %v7606_v23 }
 0xa74   :  { %v2488_v4 = vsel %vm1072_vm9, %v2484_v21, 0.0 }
 0xa75   :  { %2489 = vadd.xlane.f32.xlu2 %v2488_v4 }
 0xa7c   :  { %v2475_v24 = vpop.f32.mrf.mxu2 }
 0xa7d   :  { %v2476_v49 = vadd.f32 %v2475_v24, %v2442_v0 }
 0xa7f   :  { %v2485_v27 = vadd.f32 %v2476_v49, %v7597_v43  ;;  %v8223_v43 = vld [vmem:[%s9137_s1 + $0x8] sm:$0xff] }
 0xa80   :  { %6096 = vmatpush.xpose.msk.msrb.mxu1 %vm128_vm0, %v8223_v43  ;;  %v2813_v58 = vmul.f32 0.17677669, %v8223_v43 }
 0xa81   :  { %v2491_v61 = vsel %vm1072_vm9, %v2485_v27, 0.0 }
 0xa82   :  { %2492 = vadd.xlane.f32.xlu1 %v2491_v61  ;;  %v8294_v61 = vperm.slane %v8209_v17, 2 }
 0xa83   :  { %6097 = vmatmul.msk.f32.vlgmr.msrb.gmra.mxu1 %vm128_vm0, %v2813_v58 }
 0xa86   :  { %v2478_v53 = vpop.f32.mrf.mxu2 }
 0xa87   :  { %v2479_v10 = vadd.f32 %v2478_v53, %v2442_v0  ;;  %v2762_v53 = vld [vmem:[%s9139_s3] sm:$0xff] }
 0xa89   :  { %v2486_v60 = vadd.f32 %v2479_v10, %v7628_v48 }
 0xa8b   :  { %v2494_v52 = vsel %vm1072_vm9, %v2486_v60, 0.0 }
 0xa8c   :  { %2495 = vadd.xlane.f32.xlu0 %v2494_v52 }
 0xa8e   :  { %v2481_v50 = vpop.f32.mrf.mxu2 }
 0xa8f   :  { %v2482_v45 = vadd.f32 %v2481_v50, %v2442_v0 }
 0xa91   :  { %v2487_v23 = vadd.f32 %v2482_v45, %v7617_v57 }
 0xa93   :  { %v2497_v56 = vsel %vm1072_vm9, %v2487_v23, 0.0 }
 0xa94   :  { %2498 = vadd.xlane.f32.xlu2 %v2497_v56  ;;  %v2842_v56 = vpop.f32.mrf.mxu1 }
 0xaa0   :  { %2796 = vrot.lane.b32.xlu0 %v8223_v43, %s6665_s21 }
 0xaac   :  { %6247 = vrot.lane.b32.xlu2 %v6246_v13, %s6672_s0 }
 0xae8   :  { %v2490_v48 = vpop.xlane.xlu2 %2489 }
 0xae9   :  { %v2500_v41 = vmul.f32 %v2490_v48, %v7485_v3 }
 0xaeb   :  { %v8229_v35 = vsub.f32 %v2484_v21, %v2500_v41 }
 0xaed   :  { %v2508_v57 = vmul.f32 %v8229_v35, %v8229_v35 }
 0xaef   :  { %v2512_v51 = vsel %vm1072_vm9, %v2508_v57, 0.0 }
 0xaf0   :  { %2513 = vadd.xlane.f32.xlu1 %v2512_v51 }
 0xaf5   :  { %v2493_v37 = vpop.xlane.xlu1 %2492 }
 0xaf6   :  { %v2501_v62 = vmul.f32 %v2493_v37, %v7485_v3 }
 0xaf8   :  { %v8244_v2 = vsub.f32 %v2485_v27, %v2501_v62 }
 0xafa   :  { %v2509_v38 = vmul.f32 %v8244_v2, %v8244_v2 }
 0xafc   :  { %v2515_v34 = vsel %vm1072_vm9, %v2509_v38, 0.0 }
 0xafd   :  { %2516 = vadd.xlane.f32.xlu0 %v2515_v34 }
 0xaff   :  { %v2496_v18 = vpop.xlane.xlu0 %2495 }
 0xb00   :  { %v2502_v63 = vmul.f32 %v2496_v18, %v7485_v3 }
 0xb02   :  { %v8250_v36 = vsub.f32 %v2486_v60, %v2502_v63 }
 0xb04   :  { %v2510_v32 = vmul.f32 %v8250_v36, %v8250_v36 }
 0xb06   :  { %v2518_v13 = vsel %vm1072_vm9, %v2510_v32, 0.0 }
 0xb07   :  { %2519 = vadd.xlane.f32.xlu2 %v2518_v13  ;;  %v2499_v22 = vpop.xlane.xlu2 %2498 }
 0xb08   :  { %v2503_v19 = vmul.f32 %v2499_v22, %v7485_v3 }
 0xb09   :  { %6242 = vrot.lane.b32.xlu1 %v6241_v47, %s6672_s0 }
 0xb0a   :  { %v8258_v12 = vsub.f32 %v2487_v23, %v2503_v19 }
 0xb0c   :  { %v2511_v44 = vmul.f32 %v8258_v12, %v8258_v12 }
 0xb0e   :  { %v2521_v9 = vsel %vm1072_vm9, %v2511_v44, 0.0 }
 0xb0f   :  { %2522 = vadd.xlane.f32.xlu0 %v2521_v9  ;;  %v6248_v11 = vpop.permute.xlu2 %6247 }
 0xb10   :  { %v6249_v10 = vunpack.i.l.bf16 %v6248_v11  ;;  %v6250_v48 = vunpack.i.h.bf16 %v6248_v11 }
 0xb11   :  { %2794 = vrot.lane.b32.xlu1 %v8236_v15, %s6665_s21 }
 0xb12   :  { %v8269_v26 = vpop.permute.xlu0 %2796 }
 0xb13   :  { %v2815_v46 = vmul.f32 0.17677669, %v8269_v26  ;;  %6100 = vmatpush.xpose.msk.msra.mxu2 %vm128_vm0, %v8269_v26 }
 0xb16   :  { %6101 = vmatmul.msk.f32.vlgmr.msra.gmra.mxu2 %vm128_vm0, %v2815_v46 }
 0xb19   :  { %2808 = vrot.lane.b32.xlu1 %v8223_v43, %s6666_s26 }
 0xb1f   :  { %2806 = vrot.lane.b32.xlu2 %v8236_v15, %s6666_s26 }
 0xb23   :  { %2800 = vrot.lane.b32.xlu0 %v8236_v15, %s6667_s27 }
 0xb27   :  { %2802 = vrot.lane.b32.xlu2 %v8223_v43, %s6667_s27 }
 0xb63   :  { %v2514_v6 = vpop.xlane.xlu1 %2513 }
 0xb64   :  { %v2524_v40 = vmul.f32 %v2514_v6, %v7485_v3 }
 0xb66   :  { %v2528_v47 = vadd.f32 1e-05, %v2524_v40 }
 0xb68   :  { %6437 = vrsqrt.f32 %v2528_v47  ;;  %vm2538_vm12 = vweird.f32 %v2528_v47 }
 0xb6e   :  { %v6438_v14 = vpop.eup %6437 }
 0xb6f   :  { %v2533_v29 = vmul.f32 %v6438_v14, %v2528_v47  ;;  %vm2539_vm14 = vweird.f32 %v6438_v14 }
 0xb70   :  { %v2517_v33 = vpop.xlane.xlu0 %2516  ;;  %vm2540_vm15 = vmor %vm2538_vm12, %vm2539_vm14 }
 0xb71   :  { %v2534_v7 = vmul.f32 %v6438_v14, %v2533_v29  ;;  %v2525_v25 = vmul.f32 %v2517_v33, %v7485_v3 }
 0xb73   :  { %v2535_v1 = vmul.f32 0.5, %v2534_v7  ;;  %v2529_v5 = vadd.f32 1e-05, %v2525_v25 }
 0xb75   :  { %v2536_v55 = vsub.f32 1.5, %v2535_v1  ;;  %6439 = vrsqrt.f32 %v2529_v5  ;;  %vm2548_vm13 = vweird.f32 %v2529_v5 }
 0xb77   :  { %v2537_v39 = vmul.f32 %v6438_v14, %v2536_v55 }
 0xb79   :  { %v2541_v30 = vsel %vm2540_vm15, %v6438_v14, %v2537_v39 }
 0xb7a   :  { %v2520_v20 = vpop.xlane.xlu2 %2519  ;;  %v2572_v0 = vmul.f32 %v2541_v30, %v8229_v35  ;;  %v8301_v35 = vadd.f32 %v2842_v56, %v2762_v53  ;;  %v2768_v53 = vld [vmem:[%s9139_s3 + $0x30] sm:$0xff] }
 0xb7b   :  { %v2526_v28 = vmul.f32 %v2520_v20, %v7485_v3  ;;  %v6440_v31 = vpop.eup %6439  ;;  %v6243_v8 = vpop.permute.xlu1 %6242 }
 0xb7c   :  { %v2543_v16 = vmul.f32 %v6440_v31, %v2529_v5  ;;  %v6245_v21 = vunpack.i.h.bf16 %v6243_v8  ;;  %v6244_v4 = vunpack.i.l.bf16 %v6243_v8  ;;  %v2577_v49 = vmul.f32 %v8289_v54, %v2572_v0  ;;  %v6030_v8 = vld [vmem:[%s9142_s6 + $0x68] sm:$0xff]  ;;  %v6027_v0 = vld [vmem:[%s9142_s6 + $0x50] sm:$0xff] }
 0xb7d   :  { %v2530_v59 = vadd.f32 1e-05, %v2526_v28  ;;  %vm2549_vm2 = vweird.f32 %v6440_v31  ;;  %v3020_v32 = vsel %vm128_vm0, %v8301_v35, -inf }
 0xb7e   :  { %v2544_v24 = vmul.f32 %v6440_v31, %v2543_v16  ;;  %2627 = vmatpush.msrb.mxu3 %v6244_v4  ;;  %v2582_v38 = vadd.f32 %v8294_v61, %v2577_v49  ;;  %vm2550_vm5 = vmor %vm2548_vm13, %vm2549_vm2  ;;  %3021 = vmax.xlane.f32.xlu1 %v3020_v32  ;;  %v6026_v16 = vld [vmem:[%s9142_s6 + $0x48] sm:$0xff] }
 0xb7f   :  { %6441 = vrsqrt.f32 %v2530_v59  ;;  %vm2558_vm7 = vweird.f32 %v2530_v59 }
 0xb80   :  { %v2545_v27 = vmul.f32 0.5, %v2544_v24  ;;  %2628 = vmatpush.msrb.mxu3 %v6245_v21  ;;  %v2867_v21 = vpop.f32.mrf.mxu1  ;;  %v2764_v24 = vld [vmem:[%s9139_s3 + $0x10] sm:$0xff] }
 0xb82   :  { %v2523_v60 = vpop.xlane.xlu0 %2522  ;;  %v2807_v52 = vpop.permute.xlu2 %2806  ;;  %v2546_v50 = vsub.f32 1.5, %v2545_v27  ;;  %2629 = vmatpush.msrb.mxu3 %v6249_v10 }
 0xb83   :  { %v2527_v45 = vmul.f32 %v2523_v60, %v7485_v3  ;;  %v2818_v23 = vmul.f32 0.17677669, %v2807_v52  ;;  %6106 = vmatpush.xpose.msk.msrb.mxu2 %vm128_vm0, %v2807_v52  ;;  %v2795_v41 = vpop.permute.xlu1 %2794  ;;  %v2765_v60 = vld [vmem:[%s9139_s3 + $0x18] sm:$0xff] }
 0xb84   :  { %v2547_v51 = vmul.f32 %v6440_v31, %v2546_v50  ;;  %v2814_v62 = vmul.f32 0.17677669, %v2795_v41  ;;  %6098 = vmatpush.xpose.msk.msra.mxu1 %vm128_vm0, %v2795_v41  ;;  %2630 = vmatpush.msrb.mxu3 %v6250_v48 }
 0xb85   :  { %v6442_v57 = vpop.eup %6441  ;;  %v2531_v37 = vadd.f32 1e-05, %v2527_v45  ;;  %6086 = vmatmul.msk.f32.vlgmr.msrb.gmra.mxu3 %vm1072_vm9, %v2582_v38 }
 0xb86   :  { %v2553_v34 = vmul.f32 %v6442_v57, %v2530_v59  ;;  %6107 = vmatmul.msk.f32.vlgmr.msrb.gmra.mxu2 %vm128_vm0, %v2818_v23  ;;  %v2551_v18 = vsel %vm2550_vm5, %v6440_v31, %v2547_v51  ;;  %vm2559_vm6 = vweird.f32 %v6442_v57  ;;  %v6031_v31 = vld [vmem:[%s9142_s6 + $0x70] sm:$0xff]  ;;  %v6025_v59 = vld [vmem:[%s9142_s6 + $0x40] sm:$0xff]  ;;  %v2763_v23 = vld [vmem:[%s9139_s3 + $0x8] sm:$0xff] }
 0xb87   :  { %3276 = vmatpush.msra.mxu2 %v2795_v41  ;;  %6443 = vrsqrt.f32 %v2531_v37  ;;  %6099 = vmatmul.msk.f32.vlgmr.msra.gmra.mxu1 %vm128_vm0, %v2814_v62  ;;  %v2573_v42 = vmul.f32 %v2551_v18, %v8244_v2  ;;  %vm2560_vm4 = vmor %vm2558_vm7, %vm2559_vm6  ;;  %vm2568_vm10 = vweird.f32 %v2531_v37  ;;  %v2868_v51 = vadd.f32 %v2867_v21, %v2763_v23 }
 0xb88   :  { %v2554_v63 = vmul.f32 %v6442_v57, %v2553_v34 }
 0xb89   :  { %3368 = vmatpush.msrb.mxu2 %v2807_v52  ;;  %v2578_v22 = vmul.f32 %v8289_v54, %v2573_v42  ;;  %v3023_v38 = vsel %vm128_vm0, %v2868_v51, -inf }
 0xb8a   :  { %v2555_v13 = vmul.f32 0.5, %v2554_v63  ;;  %v2803_v2 = vpop.permute.xlu2 %2802 }
 0xb8b   :  { %v8314_v9 = vadd.f32 %v8294_v61, %v2578_v22  ;;  %v2817_v58 = vmul.f32 0.17677669, %v2803_v2  ;;  %6104 = vmatpush.xpose.msk.msrb.mxu1 %vm128_vm0, %v2803_v2  ;;  %v2809_v1 = vpop.permute.xlu1 %2808 }
 0xb8c   :  { %v2556_v19 = vsub.f32 1.5, %v2555_v13  ;;  %v2819_v28 = vmul.f32 0.17677669, %v2809_v1 }
 0xb8d   :  { %v6444_v44 = vpop.eup %6443  ;;  %6087 = vmatmul.msk.f32.gmra.mxu3 %vm1072_vm9, %v8314_v9 }
 0xb8e   :  { %v2557_v46 = vmul.f32 %v6442_v57, %v2556_v19  ;;  %v2563_v6 = vmul.f32 %v6444_v44, %v2531_v37  ;;  %vm2569_vm3 = vweird.f32 %v6444_v44 }
 0xb8f   :  { %3253 = vmatpush.msra.mxu1 %v8223_v43  ;;  %vm2570_vm14 = vmor %vm2568_vm10, %vm2569_vm3 }
 0xb90   :  { %v2564_v40 = vmul.f32 %v6444_v44, %v2563_v6  ;;  %v2561_v47 = vsel %vm2560_vm4, %v6442_v57, %v2557_v46  ;;  %6105 = vmatmul.msk.f32.vlgmr.msrb.gmra.mxu1 %vm128_vm0, %v2817_v58 }
 0xb91   :  { %v2574_v14 = vmul.f32 %v2561_v47, %v8250_v36  ;;  %3345 = vmatpush.msrb.mxu1 %v2803_v2  ;;  %v2767_v47 = vld [vmem:[%s9139_s3 + $0x28] sm:$0xff] }
 0xb92   :  { %v2565_v29 = vmul.f32 0.5, %v2564_v40 }
 0xb93   :  { %v2579_v33 = vmul.f32 %v8289_v54, %v2574_v14 }
 0xb94   :  { %v2566_v11 = vsub.f32 1.5, %v2565_v29 }
 0xb95   :  { %v2584_v7 = vadd.f32 %v8294_v61, %v2579_v33  ;;  %v2801_v25 = vpop.permute.xlu0 %2800 }
 0xb96   :  { %v2567_v5 = vmul.f32 %v6444_v44, %v2566_v11  ;;  %6102 = vmatpush.xpose.msk.msra.mxu3 %vm128_vm0, %v2801_v25  ;;  %v2816_v20 = vmul.f32 0.17677669, %v2801_v25  ;;  %v2769_v11 = vld [vmem:[%s9139_s3 + $0x38] sm:$0xff] }
 0xb97   :  { %6088 = vmatmul.msk.f32.gmra.mxu3 %vm1072_vm9, %v2584_v7 }
 0xb98   :  { %v2571_v36 = vsel %vm2570_vm14, %v6444_v44, %v2567_v5  ;;  %v2766_v44 = vld [vmem:[%s9139_s3 + $0x20] sm:$0xff] }
 0xb99   :  { %v2575_v55 = vmul.f32 %v2571_v36, %v8258_v12  ;;  %v6032_v12 = vld [vmem:[%s9142_s6 + $0x78] sm:$0xff]  ;;  %v2917_v4 = vpop.f32.mrf.mxu2 }
 0xb9a   :  { %6108 = vmatpush.xpose.msk.msrb.mxu3 %vm128_vm0, %v2809_v1  ;;  %2669 = vmatpush.msrb.mxu0 %v6032_v12  ;;  %v2918_v48 = vadd.f32 %v2917_v4, %v2765_v60 }
 0xb9b   :  { %v2580_v39 = vmul.f32 %v8289_v54, %v2575_v55  ;;  %v6028_v54 = vld [vmem:[%s9142_s6 + $0x58] sm:$0xff] }
 0xb9c   :  { %2670 = vmatpush.msrb.mxu0 %v6031_v31  ;;  %v3029_v37 = vsel %vm128_vm0, %v2918_v48, -inf }
 0xb9d   :  { %v8330_v30 = vadd.f32 %v8294_v61, %v2580_v39  ;;  %v2586_v61 = vperm.slane %v8209_v17, 3 }
 0xb9e   :  { %2671 = vmatpush.msrb.mxu0 %v6030_v8 }
 0xb9f   :  { %6089 = vmatmul.msk.f32.gmra.mxu3 %vm1072_vm9, %v8330_v30 }
 0xba7   :  { %6103 = vmatmul.msk.f32.vlgmr.msra.gmra.mxu3 %vm128_vm0, %v2816_v20 }
 0xba8   :  { %3299 = vmatpush.msra.mxu3 %v8269_v26  ;;  %v6029_v26 = vld [vmem:[%s9142_s6 + $0x60] sm:$0xff]  ;;  %s5949_s6 = sshll.u32 %s9147_s11, 4  ;;  %s5950_s6 = int_to_ptr.hbm [resolvable:$true] %s5949_s6 }
 0xba9   :  { %2672 = vmatpush.msrb.mxu0 %v6029_v26 }
 0xbab   :  { %2673 = vmatpush.msrb.mxu0 %v6028_v54 }
 0xbad   :  { %2674 = vmatpush.msrb.mxu0 %v6027_v0 }
 0xbaf   :  { %6109 = vmatmul.msk.f32.vlgmr.msrb.gmra.mxu3 %vm128_vm0, %v2819_v28  ;;  %2675 = vmatpush.msrb.mxu0 %v6026_v16 }
 0xbb0   :  { %3391 = vmatpush.msrb.mxu3 %v2809_v1 }
 0xbb1   :  { %2676 = vmatpush.msrb.mxu0 %v6025_v59 }
 0xbb3   :  { %3230 = vmatpush.msra.mxu0 %v8236_v15 }
 0xbf1   :  { %v3022_v46 = vpop.xlane.xlu1 %3021 }
 0xbf2   :  { %v3044_v40 = vsub.f32 %v8301_v35, %v3022_v46 }
 0xbf4   :  { %v3052_v33 = vmul.f32 1.442695, %v3044_v40 }
 0xbf6   :  { %6445 = vpow2.f32 %v3052_v33 }
 0xbfc   :  { %v8396_v5 = vpop.eup %6445 }
 0xbfd   :  { %v3068_v36 = vsel %vm128_vm0, %v8396_v5, 0.0 }
 0xc04   :  { %v2892_v49 = vpop.f32.mrf.mxu1 }
 0xc05   :  { %v2893_v27 = vadd.f32 %v2892_v49, %v2764_v24 }
 0xc07   :  { %v3026_v10 = vsel %vm128_vm0, %v2893_v27, -inf }
 0xc08   :  { %3027 = vmax.xlane.f32.xlu0 %v3026_v10  ;;  %v2632_v50 = vpop.f32.mrf.mxu3 }
 0xc09   :  { %v2992_v52 = vpop.f32.mrf.mxu2  ;;  %v2633_v56 = vadd.f32 %v2632_v50, %v2586_v61 }
 0xc0a   :  { %v2993_v45 = vadd.f32 %v2992_v52, %v2768_v53 }
 0xc0b   :  { %v2644_v57 = vmax.f32 %v2633_v56, 0.0 }
 0xc0c   :  { %v3038_v41 = vsel %vm128_vm0, %v2993_v45, -inf }
 0xc0d   :  { %3039 = vmax.xlane.f32.xlu2 %v3038_v41  ;;  %6090 = vmatmul.msk.f32.vlgmr.msrb.gmra.mxu0 %vm1286_vm11, %v2644_v57  ;;  %v2967_v58 = vpop.f32.mrf.mxu1 }
 0xc0e   :  { %3322 = vmatpush.msrb.mxu0 %v2801_v25  ;;  %v2968_v29 = vadd.f32 %v2967_v58, %v2767_v47 }
 0xc10   :  { %3030 = vmax.xlane.f32.xlu0 %v3029_v37  ;;  %v2635_v62 = vpop.f32.mrf.mxu3  ;;  %v3035_v1 = vsel %vm128_vm0, %v2968_v29, -inf }
 0xc11   :  { %v2636_v34 = vadd.f32 %v2635_v62, %v2586_v61 }
 0xc13   :  { %v2645_v18 = vmax.f32 %v2636_v34, 0.0 }
 0xc15   :  { %3024 = vmax.xlane.f32.xlu2 %v3023_v38  ;;  %6091 = vmatmul.msk.f32.gmra.mxu0 %vm1286_vm11, %v2645_v18 }
 0xc1a   :  { %v2638_v63 = vpop.f32.mrf.mxu3 }
 0xc1b   :  { %v2639_v42 = vadd.f32 %v2638_v63, %v2586_v61 }
 0xc1d   :  { %v2646_v32 = vmax.f32 %v2639_v42, 0.0 }
 0xc1f   :  { %6092 = vmatmul.msk.f32.gmra.mxu0 %vm1286_vm11, %v2646_v32 }
 0xc22   :  { %v2641_v13 = vpop.f32.mrf.mxu3 }
 0xc23   :  { %v2642_v22 = vadd.f32 %v2641_v13, %v2586_v61 }
 0xc25   :  { %v2647_v19 = vmax.f32 %v2642_v22, 0.0 }
 0xc27   :  { %6093 = vmatmul.msk.f32.gmra.mxu0 %vm1286_vm11, %v2647_v19 }
 0xc2a   :  { %v2942_v6 = vpop.f32.mrf.mxu3 }
 0xc2b   :  { %v2943_v2 = vadd.f32 %v2942_v6, %v2766_v44 }
 0xc2d   :  { %v3032_v14 = vsel %vm128_vm0, %v2943_v2, -inf }
 0xc2e   :  { %3033 = vmax.xlane.f32.xlu1 %v3032_v14 }
 0xc32   :  { %v3017_v7 = vpop.f32.mrf.mxu3 }
 0xc33   :  { %v3018_v25 = vadd.f32 %v3017_v7, %v2769_v11 }
 0xc35   :  { %v3041_v35 = vsel %vm128_vm0, %v3018_v25, -inf }
 0xc36   :  { %3042 = vmax.xlane.f32.xlu0 %v3041_v35  ;;  %3036 = vmax.xlane.f32.xlu1 %v3035_v1 }
 0xc3e   :  { %3069 = vadd.xlane.f32.xlu0 %v3068_v36 }
 0xc7b   :  { %v3028_v55 = vpop.xlane.xlu0 %3027 }
 0xc7c   :  { %v3046_v39 = vsub.f32 %v2893_v27, %v3028_v55 }
 0xc7e   :  { %v3056_v20 = vmul.f32 1.442695, %v3046_v39 }
 0xc80   :  { %v3040_v28 = vpop.xlane.xlu2 %3039  ;;  %6447 = vpow2.f32 %v3056_v20 }
 0xc81   :  { %v3050_v12 = vsub.f32 %v2993_v45, %v3040_v28 }
 0xc83   :  { %v3064_v31 = vmul.f32 1.442695, %v3050_v12  ;;  %v3031_v8 = vpop.xlane.xlu0 %3030 }
 0xc84   :  { %v3047_v26 = vsub.f32 %v2918_v48, %v3031_v8 }
 0xc85   :  { %6449 = vpow2.f32 %v3064_v31 }
 0xc86   :  { %v8400_v54 = vpop.eup %6447  ;;  %v3058_v0 = vmul.f32 1.442695, %v3047_v26 }
 0xc87   :  { %v3074_v16 = vsel %vm128_vm0, %v8400_v54, 0.0 }
 0xc88   :  { %v3025_v59 = vpop.xlane.xlu2 %3024  ;;  %6451 = vpow2.f32 %v3058_v0  ;;  %3075 = vadd.xlane.f32.xlu2 %v3074_v16 }
 0xc89   :  { %v3045_v21 = vsub.f32 %v2868_v51, %v3025_v59 }
 0xc8a   :  { %v2678_v49 = vpop.f32.mrf.mxu0 }
 0xc8b   :  { %v8404_v4 = vpop.eup %6449  ;;  %v3054_v24 = vmul.f32 1.442695, %v3045_v21 }
 0xc8c   :  { %v3086_v27 = vsel %vm128_vm0, %v8404_v4, 0.0 }
 0xc8d   :  { %6453 = vpow2.f32 %v3054_v24  ;;  %3087 = vadd.xlane.f32.xlu1 %v3086_v27 }
 0xc8e   :  { %v8408_v61 = vpop.eup %6451 }
 0xc8f   :  { %v3077_v53 = vsel %vm128_vm0, %v8408_v61, 0.0 }
 0xc90   :  { %3078 = vadd.xlane.f32.xlu2 %v3077_v53 }
 0xc92   :  { %v8414_v60 = vpop.f32.mrf.mxu0 }
 0xc93   :  { %v8412_v10 = vpop.eup %6453 }
 0xc94   :  { %v3071_v52 = vsel %vm128_vm0, %v8412_v10, 0.0 }
 0xc95   :  { %3072 = vadd.xlane.f32.xlu1 %v3071_v52 }
 0xc9c   :  { %v2683_v50 = vpop.f32.mrf.mxu0 }
 0xca1   :  { %v3034_v45 = vpop.xlane.xlu1 %3033 }
 0xca2   :  { %v3048_v23 = vsub.f32 %v2943_v2, %v3034_v45 }
 0xca4   :  { %v3060_v56 = vmul.f32 1.442695, %v3048_v23 }
 0xca6   :  { %6455 = vpow2.f32 %v3060_v56 }
 0xca9   :  { %v3043_v48 = vpop.xlane.xlu0 %3042  ;;  %v3037_v41 = vpop.xlane.xlu1 %3036 }
 0xcaa   :  { %v3051_v57 = vsub.f32 %v3018_v25, %v3043_v48  ;;  %v3049_v51 = vsub.f32 %v2968_v29, %v3037_v41 }
 0xcac   :  { %v8418_v37 = vpop.eup %6455  ;;  %v3066_v62 = vmul.f32 1.442695, %v3051_v57  ;;  %v3062_v38 = vmul.f32 1.442695, %v3049_v51 }
 0xcad   :  { %v3080_v34 = vsel %vm128_vm0, %v8418_v37, 0.0 }
 0xcae   :  { %6457 = vpow2.f32 %v3066_v62  ;;  %3081 = vadd.xlane.f32.xlu0 %v3080_v34 }
 0xcaf   :  { %6459 = vpow2.f32 %v3062_v38 }
 0xcb1   :  { %v3070_v18 = vpop.xlane.xlu0 %3069 }
 0xcb2   :  { %6461 = vrcp.f32 %v3070_v18  ;;  %v3103_v46 = vand.u32 2147483648, %v3070_v18  ;;  %v3101_v2 = vand.u32 2147483647, %v3070_v18  ;;  %vm3097_vm15 = vweird.f32 %v3070_v18 }
 0xcb4   :  { %v8422_v63 = vpop.eup %6457  ;;  %v3104_v47 = vor.u32 1.1754944e-38, %v3103_v46  ;;  %vm3102_vm13 = vcmp.eq.f32.partialorder %v3101_v2, 8.507059e+37 }
 0xcb5   :  { %v8424_v42 = vpop.eup %6459  ;;  %v3089_v32 = vsel %vm128_vm0, %v8422_v63, 0.0 }
 0xcb6   :  { %3090 = vadd.xlane.f32.xlu2 %v3089_v32  ;;  %v3083_v13 = vsel %vm128_vm0, %v8424_v42, 0.0 }
 0xcb7   :  { %3084 = vadd.xlane.f32.xlu0 %v3083_v13 }
 0xcb8   :  { %v6462_v22 = vpop.eup %6461 }
 0xcb9   :  { %v3093_v19 = vmul.f32 %v6462_v22, %v3070_v18  ;;  %vm3098_vm12 = vweird.f32 %v6462_v22 }
 0xcba   :  { %vm3099_vm2 = vmor %vm3097_vm15, %vm3098_vm12 }
 0xcbb   :  { %v3094_v44 = vsub.f32 1.0, %v3093_v19 }
 0xcbd   :  { %v3095_v6 = vmul.f32 %v6462_v22, %v3094_v44 }
 0xcbf   :  { %v3096_v40 = vadd.f32 %v6462_v22, %v3095_v6 }
 0xcc1   :  { %v3100_v58 = vsel %vm3099_vm2, %v6462_v22, %v3096_v40 }
 0xcc2   :  { %v3105_v14 = vsel %vm3102_vm13, %v3104_v47, %v3100_v58 }
 0xcc3   :  { %v3106_v29 = vmul.f32 %v8396_v5, %v3105_v14 }
 0xcc5   :  { %6110 = vmatmul.msk.f32.vlgmr.msra.gmra.mxu0 %vm128_vm0, %v3106_v29 }
 0xcfb   :  { %v3076_v33 = vpop.xlane.xlu2 %3075 }
 0xcfc   :  { %6463 = vrcp.f32 %v3076_v33  ;;  %v3131_v55 = vand.u32 2147483647, %v3076_v33  ;;  %v3133_v39 = vand.u32 2147483648, %v3076_v33  ;;  %vm3127_vm6 = vweird.f32 %v3076_v33 }
 0xcfe   :  { %vm3132_vm4 = vcmp.eq.f32.partialorder %v3131_v55, 8.507059e+37  ;;  %v3134_v26 = vor.u32 1.1754944e-38, %v3133_v39 }
 0xd00   :  { %v3088_v11 = vpop.xlane.xlu1 %3087 }
 0xd01   :  { %6465 = vrcp.f32 %v3088_v11  ;;  %vm3187_vm10 = vweird.f32 %v3088_v11  ;;  %v3193_v24 = vand.u32 2147483648, %v3088_v11  ;;  %v3191_v53 = vand.u32 2147483647, %v3088_v11 }
 0xd02   :  { %v6464_v7 = vpop.eup %6463 }
 0xd03   :  { %v3123_v25 = vmul.f32 %v6464_v7, %v3076_v33  ;;  %v3079_v1 = vpop.xlane.xlu2 %3078  ;;  %vm3128_vm5 = vweird.f32 %v6464_v7  ;;  %v3194_v57 = vor.u32 1.1754944e-38, %v3193_v24  ;;  %vm3192_vm15 = vcmp.eq.f32.partialorder %v3191_v53, 8.507059e+37 }
 0xd04   :  { %6467 = vrcp.f32 %v3079_v1  ;;  %vm3129_vm7 = vmor %vm3127_vm6, %vm3128_vm5  ;;  %v3146_v45 = vand.u32 2147483647, %v3079_v1  ;;  %v3148_v23 = vand.u32 2147483648, %v3079_v1  ;;  %vm3142_vm2 = vweird.f32 %v3079_v1 }
 0xd05   :  { %v3124_v35 = vsub.f32 1.0, %v3123_v25 }
 0xd06   :  { %vm3147_vm5 = vcmp.eq.f32.partialorder %v3146_v45, 8.507059e+37 }
 0xd07   :  { %v6466_v36 = vpop.eup %6465  ;;  %v3125_v20 = vmul.f32 %v6464_v7, %v3124_v35 }
 0xd08   :  { %v3183_v28 = vmul.f32 %v6466_v36, %v3088_v11  ;;  %v3073_v12 = vpop.xlane.xlu1 %3072  ;;  %vm3188_vm3 = vweird.f32 %v6466_v36 }
 0xd09   :  { %6469 = vrcp.f32 %v3073_v12  ;;  %v3126_v5 = vadd.f32 %v6464_v7, %v3125_v20  ;;  %vm3189_vm14 = vmor %vm3187_vm10, %vm3188_vm3  ;;  %v3118_v34 = vand.u32 2147483648, %v3073_v12  ;;  %v3116_v13 = vand.u32 2147483647, %v3073_v12 }
 0xd0a   :  { %v3184_v31 = vsub.f32 1.0, %v3183_v28  ;;  %v6468_v8 = vpop.eup %6467 }
 0xd0b   :  { %v3130_v0 = vsel %vm3129_vm7, %v6464_v7, %v3126_v5  ;;  %v3138_v59 = vmul.f32 %v6468_v8, %v3079_v1  ;;  %vm3143_vm12 = vweird.f32 %v6468_v8  ;;  %vm3112_vm7 = vweird.f32 %v3073_v12 }
 0xd0c   :  { %v3185_v16 = vmul.f32 %v6466_v36, %v3184_v31  ;;  %v3135_v21 = vsel %vm3132_vm4, %v3134_v26, %v3130_v0  ;;  %vm3144_vm13 = vmor %vm3142_vm2, %vm3143_vm12  ;;  %v3119_v6 = vor.u32 1.1754944e-38, %v3118_v34  ;;  %vm3117_vm3 = vcmp.eq.f32.partialorder %v3116_v13, 8.507059e+37 }
 0xd0d   :  { %v3136_v49 = vmul.f32 %v8400_v54, %v3135_v21  ;;  %v3139_v52 = vsub.f32 1.0, %v3138_v59  ;;  %v3149_v54 = vor.u32 1.1754944e-38, %v3148_v23 }
 0xd0e   :  { %v3186_v27 = vadd.f32 %v6466_v36, %v3185_v16 }
 0xd0f   :  { %v6470_v50 = vpop.eup %6469  ;;  %v3140_v48 = vmul.f32 %v6468_v8, %v3139_v52  ;;  %6112 = vmatmul.msk.f32.vlgmr.msra.gmra.mxu2 %vm128_vm0, %v3136_v49 }
 0xd10   :  { %v3190_v56 = vsel %vm3189_vm14, %v6466_v36, %v3186_v27  ;;  %v3108_v41 = vmul.f32 %v6470_v50, %v3073_v12  ;;  %vm3113_vm6 = vweird.f32 %v6470_v50 }
 0xd11   :  { %v3141_v51 = vadd.f32 %v6468_v8, %v3140_v48  ;;  %v3195_v38 = vsel %vm3192_vm15, %v3194_v57, %v3190_v56  ;;  %vm3114_vm4 = vmor %vm3112_vm7, %vm3113_vm6 }
 0xd12   :  { %v3109_v62 = vsub.f32 1.0, %v3108_v41  ;;  %v3196_v19 = vmul.f32 %v8404_v4, %v3195_v38 }
 0xd13   :  { %v3145_v18 = vsel %vm3144_vm13, %v6468_v8, %v3141_v51  ;;  %v2685_v51 = vpop.f32.mrf.mxu0 }
 0xd14   :  { %v3110_v32 = vmul.f32 %v6470_v50, %v3109_v62  ;;  %v3150_v22 = vsel %vm3147_vm5, %v3149_v54, %v3145_v18 }
 0xd15   :  { %v3151_v44 = vmul.f32 %v8408_v61, %v3150_v22 }
 0xd16   :  { %v3111_v46 = vadd.f32 %v6470_v50, %v3110_v32 }
 0xd17   :  { %6113 = vmatmul.msk.f32.vlgmr.msra.gmra.mxu3 %vm128_vm0, %v3151_v44  ;;  %6116 = vmatmul.msk.f32.vlgmr.msrb.gmra.mxu2 %vm128_vm0, %v3196_v19  ;;  %v2780_v44 = vld [vmem:[%s9144_s8 + $0x10] sm:$0xff] }
 0xd18   :  { %v3115_v2 = vsel %vm3114_vm4, %v6470_v50, %v3111_v46  ;;  %v2779_v46 = vld [vmem:[%s9144_s8 + $0x8] sm:$0xff] }
 0xd19   :  { %v3120_v40 = vsel %vm3117_vm3, %v3119_v6, %v3115_v2 }
 0xd1a   :  { %v3121_v47 = vmul.f32 %v8412_v10, %v3120_v40 }
 0xd1c   :  { %6111 = vmatmul.msk.f32.vlgmr.msra.gmra.mxu1 %vm128_vm0, %v3121_v47 }
 0xd21   :  { %v3082_v58 = vpop.xlane.xlu0 %3081 }
 0xd22   :  { %6471 = vrcp.f32 %v3082_v58  ;;  %v3163_v11 = vand.u32 2147483648, %v3082_v58  ;;  %v3161_v25 = vand.u32 2147483647, %v3082_v58  ;;  %vm3157_vm14 = vweird.f32 %v3082_v58 }
 0xd24   :  { %v3164_v10 = vor.u32 1.1754944e-38, %v3163_v11  ;;  %vm3162_vm15 = vcmp.eq.f32.partialorder %v3161_v25, 8.507059e+37 }
 0xd28   :  { %v6472_v4 = vpop.eup %6471 }
 0xd29   :  { %v3153_v14 = vmul.f32 %v6472_v4, %v3082_v58  ;;  %v3091_v61 = vpop.xlane.xlu2 %3090  ;;  %vm3158_vm10 = vweird.f32 %v6472_v4 }
 0xd2a   :  { %6473 = vrcp.f32 %v3091_v61  ;;  %v3085_v29 = vpop.xlane.xlu0 %3084  ;;  %vm3159_vm12 = vmor %vm3157_vm14, %vm3158_vm10  ;;  %v3208_v31 = vand.u32 2147483648, %v3091_v61  ;;  %v3206_v0 = vand.u32 2147483647, %v3091_v61  ;;  %vm3202_vm5 = vweird.f32 %v3091_v61 }
 0xd2b   :  { %v3154_v33 = vsub.f32 1.0, %v3153_v14  ;;  %6475 = vrcp.f32 %v3085_v29  ;;  %v3178_v16 = vand.u32 2147483648, %v3085_v29  ;;  %v3176_v21 = vand.u32 2147483647, %v3085_v29 }
 0xd2c   :  { %v3209_v49 = vor.u32 1.1754944e-38, %v3208_v31  ;;  %vm3172_vm7 = vweird.f32 %v3085_v29  ;;  %vm3207_vm4 = vcmp.eq.f32.partialorder %v3206_v0, 8.507059e+37 }
 0xd2d   :  { %v3155_v7 = vmul.f32 %v6472_v4, %v3154_v33  ;;  %vm3177_vm10 = vcmp.eq.f32.partialorder %v3176_v21, 8.507059e+37 }
 0xd2f   :  { %v3156_v1 = vadd.f32 %v6472_v4, %v3155_v7 }
 0xd30   :  { %v6474_v35 = vpop.eup %6473 }
 0xd31   :  { %v6476_v36 = vpop.eup %6475  ;;  %v3160_v55 = vsel %vm3159_vm12, %v6472_v4, %v3156_v1  ;;  %v3198_v39 = vmul.f32 %v6474_v35, %v3091_v61  ;;  %vm3203_vm2 = vweird.f32 %v6474_v35  ;;  %v8485_v1 = vld [vmem:[%s9146_s10] sm:$0xff] }
 0xd32   :  { %v3165_v20 = vsel %vm3162_vm15, %v3164_v10, %v3160_v55  ;;  %v3168_v28 = vmul.f32 %v6476_v36, %v3085_v29  ;;  %vm3173_vm13 = vweird.f32 %v6476_v36  ;;  %vm3204_vm6 = vmor %vm3202_vm5, %vm3203_vm2 }
 0xd33   :  { %v3166_v12 = vmul.f32 %v8418_v37, %v3165_v20  ;;  %v3199_v5 = vsub.f32 1.0, %v3198_v39  ;;  %vm3174_vm3 = vmor %vm3172_vm7, %vm3173_vm13  ;;  %v3179_v37 = vor.u32 1.1754944e-38, %v3178_v16 }
 0xd34   :  { %v3169_v8 = vsub.f32 1.0, %v3168_v28 }
 0xd35   :  { %v3200_v26 = vmul.f32 %v6474_v35, %v3199_v5  ;;  %6114 = vmatmul.msk.f32.vlgmr.msrb.gmra.mxu0 %vm128_vm0, %v3166_v12 }
 0xd36   :  { %v3170_v59 = vmul.f32 %v6476_v36, %v3169_v8 }
 0xd37   :  { %v3201_v24 = vadd.f32 %v6474_v35, %v3200_v26 }
 0xd38   :  { %v3171_v27 = vadd.f32 %v6476_v36, %v3170_v59 }
 0xd39   :  { %v3205_v53 = vsel %vm3204_vm6, %v6474_v35, %v3201_v24  ;;  %v3426_v35 = vperm.slane %v8485_v1, 0 }
 0xd3a   :  { %v3210_v52 = vsel %vm3207_vm4, %v3209_v49, %v3205_v53  ;;  %v3175_v50 = vsel %vm3174_vm3, %v6476_v36, %v3171_v27 }
 0xd3b   :  { %v3211_v45 = vmul.f32 %v8422_v63, %v3210_v52  ;;  %v3180_v23 = vsel %vm3177_vm10, %v3179_v37, %v3175_v50 }
 0xd3c   :  { %v3181_v56 = vmul.f32 %v8424_v42, %v3180_v23  ;;  %v2648_v42 = vperm.slane %v8209_v17, 4  ;;  %v2781_v17 = vld [vmem:[%s9144_s8 + $0x18] sm:$0xff] }
 0xd3d   :  { %6117 = vmatmul.msk.f32.vlgmr.msrb.gmra.mxu3 %vm128_vm0, %v3211_v45  ;;  %3445 = vmatpush.msra.mxu0 %v2781_v17 }
 0xd3e   :  { %6115 = vmatmul.msk.f32.vlgmr.msrb.gmra.mxu1 %vm128_vm0, %v3181_v56  ;;  %v2681_v34 = vadd.f32 %v8414_v60, %v2648_v42  ;;  %v2686_v22 = vadd.f32 %v2685_v51, %v2648_v42  ;;  %v8463_v60 = vpack.i.bf16 %v2780_v44, %v2781_v17 }
 0xd3f   :  { %3446 = vmatpush.msra.mxu0 %v2780_v44 }
 0xd40   :  { %v2688_v32 = vadd.f32 %v2681_v34, %v8314_v9  ;;  %v2689_v19 = vadd.f32 %v2686_v22, %v8330_v30  ;;  %v2778_v30 = vld [vmem:[%s9144_s8] sm:$0xff] }
 0xd41   :  { %3447 = vmatpush.msra.mxu0 %v2779_v46  ;;  %v8472_v6 = vpack.i.bf16 %v2778_v30, %v2779_v46 }
 0xd42   :  { %v3232_v62 = vpop.f32.mrf.mxu0  ;;  %v2690_v13 = vsel %vm1072_vm9, %v2688_v32, 0.0  ;;  %v2693_v9 = vsel %vm1072_vm9, %v2689_v19, 0.0 }
 0xd43   :  { %3448 = vmatpush.msra.mxu0 %v2778_v30 }
 0xd92   :  { %v3278_v48 = vpop.f32.mrf.mxu2 }
 0xd93   :  { %3398 = vrot.lane.b32.xlu1 %v3278_v48, %s6668_s28 }
 0xd99   :  { %v3255_v63 = vpop.f32.mrf.mxu1 }
 0xd9a   :  { %v3301_v41 = vpop.f32.mrf.mxu3  ;;  %v3370_v57 = vpop.f32.mrf.mxu2 }
 0xd9b   :  { %3400 = vrot.lane.b32.xlu1 %v3301_v41, %s6668_s28  ;;  %3414 = vrot.lane.b32.xlu0 %v3370_v57, %s6670_s30 }
 0xdb2   :  { %v3324_v38 = vpop.f32.mrf.mxu0 }
 0xdb3   :  { %3406 = vrot.lane.b32.xlu2 %v3324_v38, %s6669_s29  ;;  %v6621_v38 = vld [vmem:[%s9143_s7 + $0x8] sm:$0xff] }
 0xdbb   :  { %v3347_v54 = vpop.f32.mrf.mxu1 }
 0xdbc   :  { %3408 = vrot.lane.b32.xlu0 %v3347_v54, %s6669_s29  ;;  %v2737_v54 = vperm.slane %v6621_v38, 6 }
 0xdc0   :  { %v3393_v18 = vpop.f32.mrf.mxu3 }
 0xdc1   :  { %3416 = vrot.lane.b32.xlu2 %v3393_v18, %s6670_s30 }
 0xdc5   :  { %2691 = vadd.xlane.f32.xlu1 %v2690_v13 }
 0xdea   :  { %2694 = vadd.xlane.f32.xlu2 %v2693_v9 }
 0xe05   :  { %v3399_v2 = vpop.permute.xlu1 %3398 }
 0xe06   :  { %v3420_v40 = vsel %vm128_vm0, %v3232_v62, %v3399_v2 }
 0xe0d   :  { %v3407_v47 = vpop.permute.xlu2 %3406  ;;  %v3415_v58 = vpop.permute.xlu0 %3414 }
 0xe0e   :  { %v3422_v4 = vsel %vm393_vm1, %v3420_v40, %v3407_v47  ;;  %v3401_v61 = vpop.permute.xlu1 %3400 }
 0xe0f   :  { %v3424_v14 = vsel %vm1066_vm8, %v3422_v4, %v3415_v58  ;;  %v3421_v29 = vsel %vm128_vm0, %v3255_v63, %v3401_v61  ;;  %v2734_v63 = vperm.slane %v6621_v38, 5 }
 0xe10   :  { %6118 = vmatmul.msk.f32.vlgmr.msra.gmra.mxu0 %vm1072_vm9, %v3424_v14 }
 0xe1b   :  { %v3417_v11 = vpop.permute.xlu2 %3416 }
 0xe2e   :  { %v3409_v33 = vpop.permute.xlu0 %3408 }
 0xe2f   :  { %v3423_v7 = vsel %vm393_vm1, %v3421_v29, %v3409_v33 }
 0xe30   :  { %v3425_v25 = vsel %vm1066_vm8, %v3423_v7, %v3417_v11 }
 0xe31   :  { %6119 = vmatmul.msk.f32.gmra.mxu0 %vm1072_vm9, %v3425_v25 }
 0xe38   :  { %v2692_v10 = vpop.xlane.xlu1 %2691 }
 0xe39   :  { %v2696_v55 = vmul.f32 %v2692_v10, %v7485_v3 }
 0xe3b   :  { %v2698_v28 = vsub.f32 %v2688_v32, %v2696_v55 }
 0xe3d   :  { %v2700_v5 = vmul.f32 %v2698_v28, %v2698_v28 }
 0xe3f   :  { %v2702_v31 = vsel %vm1072_vm9, %v2700_v5, 0.0  ;;  %v3502_v5 = vperm.slane %v8485_v1, 1 }
 0xe5d   :  { %v2695_v8 = vpop.xlane.xlu2 %2694 }
 0xe5e   :  { %v2697_v0 = vmul.f32 %v2695_v8, %v7485_v3 }
 0xe60   :  { %v2699_v21 = vsub.f32 %v2689_v19, %v2697_v0 }
 0xe8d   :  { %v3450_v36 = vpop.f32.mrf.mxu0 }
 0xe8e   :  { %v3451_v39 = vadd.f32 %v3450_v36, %v3426_v35 }
 0xe90   :  { %v3456_v20 = vadd.f32 %v3451_v39, %v8236_v15  ;;  %v2701_v15 = vmul.f32 %v2699_v21, %v2699_v21 }
 0xe92   :  { %v3458_v12 = vsel %vm1072_vm9, %v3456_v20, 0.0  ;;  %v2705_v49 = vsel %vm1072_vm9, %v2701_v15, 0.0 }
 0xe93   :  { %3459 = vadd.xlane.f32.xlu0 %v3458_v12 }
 0xe9b   :  { %2703 = vadd.xlane.f32.xlu0 %v2702_v31 }
 0xeae   :  { %v3453_v26 = vpop.f32.mrf.mxu0 }
 0xeaf   :  { %v3454_v16 = vadd.f32 %v3453_v26, %v3426_v35  ;;  %v3505_v26 = vperm.slane %v8485_v1, 2 }
 0xeb1   :  { %v3457_v59 = vadd.f32 %v3454_v16, %v8223_v43 }
 0xeb3   :  { %v3461_v24 = vsel %vm1072_vm9, %v3457_v59, 0.0 }
 0xeb4   :  { %3462 = vadd.xlane.f32.xlu1 %v3461_v24 }
 0xebc   :  { %2706 = vadd.xlane.f32.xlu1 %v2705_v49 }
 0xf06   :  { %v3460_v27 = vpop.xlane.xlu0 %3459 }
 0xf07   :  { %v3464_v53 = vmul.f32 %v3460_v27, %v7485_v3 }
 0xf09   :  { %v8497_v37 = vsub.f32 %v3456_v20, %v3464_v53 }
 0xf0b   :  { %v3468_v52 = vmul.f32 %v8497_v37, %v8497_v37 }
 0xf0d   :  { %v3470_v50 = vsel %vm1072_vm9, %v3468_v52, 0.0 }
 0xf0e   :  { %3471 = vadd.xlane.f32.xlu2 %v3470_v50  ;;  %v2704_v43 = vpop.xlane.xlu0 %2703 }
 0xf0f   :  { %v2708_v45 = vmul.f32 %v2704_v43, %v7485_v3 }
 0xf11   :  { %v2710_v23 = vadd.f32 1e-05, %v2708_v45 }
 0xf13   :  { %6477 = vrsqrt.f32 %v2710_v23  ;;  %vm2718_vm12 = vweird.f32 %v2710_v23 }
 0xf19   :  { %v6478_v56 = vpop.eup %6477 }
 0xf1a   :  { %v2713_v48 = vmul.f32 %v6478_v56, %v2710_v23  ;;  %vm2719_vm14 = vweird.f32 %v6478_v56 }
 0xf1b   :  { %vm2720_vm15 = vmor %vm2718_vm12, %vm2719_vm14 }
 0xf1c   :  { %v2714_v41 = vmul.f32 %v6478_v56, %v2713_v48 }
 0xf1e   :  { %v2715_v57 = vmul.f32 0.5, %v2714_v41 }
 0xf20   :  { %v2716_v51 = vsub.f32 1.5, %v2715_v57 }
 0xf22   :  { %v2717_v62 = vmul.f32 %v6478_v56, %v2716_v51 }
 0xf24   :  { %v2721_v42 = vsel %vm2720_vm15, %v6478_v56, %v2717_v62 }
 0xf25   :  { %v2732_v34 = vmul.f32 %v2721_v42, %v2698_v28 }
 0xf27   :  { %v2735_v18 = vmul.f32 %v2734_v63, %v2732_v34  ;;  %v3463_v32 = vpop.xlane.xlu1 %3462 }
 0xf28   :  { %v3465_v13 = vmul.f32 %v3463_v32, %v7485_v3 }
 0xf29   :  { %v8507_v22 = vadd.f32 %v2737_v54, %v2735_v18 }
 0xf2a   :  { %v8509_v19 = vsub.f32 %v3457_v59, %v3465_v13 }
 0xf2b   :  { %2748 = vrot.lane.b32.xlu1 %v8507_v22, %s6667_s27  ;;  %2742 = vrot.lane.b32.xlu2 %v8507_v22, %s6665_s21 }
 0xf2c   :  { %6120 = vmatpush.xpose.msk.msra.mxu1 %vm128_vm0, %v8507_v22  ;;  %v3469_v17 = vmul.f32 %v8509_v19, %v8509_v19 }
 0xf2e   :  { %v3473_v44 = vsel %vm1072_vm9, %v3469_v17, 0.0 }
 0xf2f   :  { %3474 = vadd.xlane.f32.xlu0 %v3473_v44  ;;  %v2707_v9 = vpop.xlane.xlu1 %2706 }
 0xf30   :  { %v2709_v46 = vmul.f32 %v2707_v9, %v7485_v3 }
 0xf32   :  { %v2711_v30 = vadd.f32 1e-05, %v2709_v46 }
 0xf34   :  { %6479 = vrsqrt.f32 %v2711_v30  ;;  %vm2728_vm13 = vweird.f32 %v2711_v30 }
 0xf3a   :  { %v6480_v2 = vpop.eup %6479 }
 0xf3b   :  { %v2723_v40 = vmul.f32 %v6480_v2, %v2711_v30  ;;  %vm2729_vm2 = vweird.f32 %v6480_v2 }
 0xf3c   :  { %vm2730_vm5 = vmor %vm2728_vm13, %vm2729_vm2 }
 0xf3d   :  { %v2724_v47 = vmul.f32 %v6480_v2, %v2723_v40 }
 0xf3f   :  { %v2725_v58 = vmul.f32 0.5, %v2724_v47 }
 0xf41   :  { %v2726_v4 = vsub.f32 1.5, %v2725_v58  ;;  %v2771_v58 = vld [vmem:[%s9140_s4 + $0x8] sm:$0xff] }
 0xf43   :  { %v2727_v14 = vmul.f32 %v6480_v2, %v2726_v4 }
 0xf45   :  { %v2731_v61 = vsel %vm2730_vm5, %v6480_v2, %v2727_v14 }
 0xf46   :  { %v2733_v29 = vmul.f32 %v2731_v61, %v2699_v21 }
 0xf48   :  { %v2736_v33 = vmul.f32 %v2734_v63, %v2733_v29  ;;  %v2774_v29 = vld [vmem:[%s9140_s4 + $0x20] sm:$0xff] }
 0xf4a   :  { %v8521_v11 = vadd.f32 %v2737_v54, %v2736_v33  ;;  %v2770_v54 = vld [vmem:[%s9140_s4] sm:$0xff] }
 0xf4c   :  { %6122 = vmatpush.xpose.msk.msra.mxu2 %vm128_vm0, %v8521_v11 }
 0xf81   :  { %v3472_v7 = vpop.xlane.xlu2 %3471 }
 0xf82   :  { %v3476_v25 = vmul.f32 %v3472_v7, %v7485_v3 }
 0xf84   :  { %v3478_v35 = vadd.f32 1e-05, %v3476_v25 }
 0xf86   :  { %6481 = vrsqrt.f32 %v3478_v35  ;;  %vm3486_vm7 = vweird.f32 %v3478_v35 }
 0xf89   :  { %v8526_v10 = vpop.permute.xlu2 %2742 }
 0xf8a   :  { %6124 = vmatpush.xpose.msk.msra.mxu3 %vm128_vm0, %v8526_v10 }
 0xf8c   :  { %v6482_v36 = vpop.eup %6481 }
 0xf8d   :  { %v3481_v55 = vmul.f32 %v6482_v36, %v3478_v35  ;;  %vm3487_vm6 = vweird.f32 %v6482_v36  ;;  %v2772_v35 = vld [vmem:[%s9140_s4 + $0x10] sm:$0xff] }
 0xf8e   :  { %vm3488_vm4 = vmor %vm3486_vm7, %vm3487_vm6 }
 0xf8f   :  { %v3482_v39 = vmul.f32 %v6482_v36, %v3481_v55 }
 0xf91   :  { %v3483_v20 = vmul.f32 0.5, %v3482_v39 }
 0xf93   :  { %v3484_v28 = vsub.f32 1.5, %v3483_v20 }
 0xf95   :  { %v3485_v12 = vmul.f32 %v6482_v36, %v3484_v28 }
 0xf97   :  { %v3489_v31 = vsel %vm3488_vm4, %v6482_v36, %v3485_v12 }
 0xf98   :  { %v3500_v8 = vmul.f32 %v3489_v31, %v8497_v37 }
 0xf9a   :  { %v3503_v0 = vmul.f32 %v3502_v5, %v3500_v8 }
 0xf9c   :  { %v8533_v16 = vadd.f32 %v3505_v26, %v3503_v0 }
 0xf9d   :  { %v8535_v59 = vpop.permute.xlu1 %2748 }
 0xf9e   :  { %3516 = vrot.lane.b32.xlu2 %v8533_v16, %s6667_s27  ;;  %3510 = vrot.lane.b32.xlu0 %v8533_v16, %s6665_s21  ;;  %v3528_v21 = vmul.f32 0.17677669, %v8533_v16 }
 0xf9f   :  { %6128 = vmatpush.xpose.msk.msrb.mxu2 %vm128_vm0, %v8535_v59 }
 0xfa0   :  { %6121 = vmatmul.msk.f32.vlgmr.msra.gmra.mxu1 %vm128_vm0, %v3528_v21 }
 0xfa2   :  { %v3475_v24 = vpop.xlane.xlu0 %3474 }
 0xfa3   :  { %v3477_v15 = vmul.f32 %v3475_v24, %v7485_v3  ;;  %v2775_v24 = vld [vmem:[%s9140_s4 + $0x28] sm:$0xff] }
 0xfa5   :  { %v3479_v49 = vadd.f32 1e-05, %v3477_v15 }
 0xfa6   :  { %2744 = vrot.lane.b32.xlu2 %v8521_v11, %s6665_s21  ;;  %2750 = vrot.lane.b32.xlu0 %v8521_v11, %s6667_s27 }
 0xfa7   :  { %6483 = vrsqrt.f32 %v3479_v49  ;;  %vm3496_vm10 = vweird.f32 %v3479_v49 }
 0xfad   :  { %v6484_v27 = vpop.eup %6483 }
 0xfae   :  { %v3491_v53 = vmul.f32 %v6484_v27, %v3479_v49  ;;  %3522 = vrot.lane.b32.xlu2 %v8533_v16, %s6666_s26  ;;  %2754 = vrot.lane.b32.xlu0 %v8507_v22, %s6666_s26  ;;  %vm3497_vm3 = vweird.f32 %v6484_v27  ;;  %v2773_v49 = vld [vmem:[%s9140_s4 + $0x18] sm:$0xff] }
 0xfaf   :  { %vm3498_vm14 = vmor %vm3496_vm10, %vm3497_vm3 }
 0xfb0   :  { %v3492_v37 = vmul.f32 %v6484_v27, %v3491_v53 }
 0xfb2   :  { %v3493_v52 = vmul.f32 0.5, %v3492_v37 }
 0xfb4   :  { %v3494_v50 = vsub.f32 1.5, %v3493_v52 }
 0xfb6   :  { %v3495_v43 = vmul.f32 %v6484_v27, %v3494_v50  ;;  %2756 = vrot.lane.b32.xlu0 %v8521_v11, %s6666_s26 }
 0xfb8   :  { %v3499_v45 = vsel %vm3498_vm14, %v6484_v27, %v3495_v43 }
 0xfb9   :  { %v3501_v23 = vmul.f32 %v3499_v45, %v8509_v19 }
 0xfbb   :  { %v3504_v56 = vmul.f32 %v3502_v5, %v3501_v23  ;;  %v2776_v5 = vld [vmem:[%s9140_s4 + $0x30] sm:$0xff] }
 0xfbd   :  { %v8557_v48 = vadd.f32 %v3505_v26, %v3504_v56  ;;  %v2777_v56 = vld [vmem:[%s9140_s4 + $0x38] sm:$0xff] }
 0xfbf   :  { %3518 = vrot.lane.b32.xlu1 %v8557_v48, %s6667_s27  ;;  %v3529_v41 = vmul.f32 0.17677669, %v8557_v48 }
 0xfc1   :  { %6123 = vmatmul.msk.f32.vlgmr.msra.gmra.mxu2 %vm128_vm0, %v3529_v41 }
 0xfc2   :  { %3946 = vmatpush.msra.mxu2 %v8507_v22 }
 0xfc7   :  { %3512 = vrot.lane.b32.xlu1 %v8557_v48, %s6665_s21 }
 0xfcf   :  { %3524 = vrot.lane.b32.xlu1 %v8557_v48, %s6666_s26 }
 0xff8   :  { %v3517_v57 = vpop.permute.xlu2 %3516 }
 0xff9   :  { %v3532_v51 = vmul.f32 0.17677669, %v3517_v57 }
 0xffb   :  { %6129 = vmatmul.msk.f32.vlgmr.msrb.gmra.mxu2 %vm128_vm0, %v3532_v51 }
 0xffc   :  { %4038 = vmatpush.msrb.mxu2 %v8535_v59 }
0x1000   :  { %v8570_v62 = vpop.permute.xlu2 %2744 }
0x1001   :  { %6126 = vmatpush.xpose.msk.msrb.mxu1 %vm128_vm0, %v8570_v62 }
0x1008   :  { %v3523_v32 = vpop.permute.xlu2 %3522 }
0x1009   :  { %v3534_v17 = vmul.f32 0.17677669, %v3523_v32 }
0x1010   :  { %v3511_v38 = vpop.permute.xlu0 %3510 }
0x1011   :  { %v3530_v63 = vmul.f32 0.17677669, %v3511_v38 }
0x1013   :  { %6125 = vmatmul.msk.f32.vlgmr.msra.gmra.mxu3 %vm128_vm0, %v3530_v63 }
0x1018   :  { %v8575_v42 = vpop.permute.xlu0 %2750 }
0x1019   :  { %6130 = vmatpush.xpose.msk.msrb.mxu3 %vm128_vm0, %v8575_v42 }
0x101d   :  { %3969 = vmatpush.msra.mxu3 %v8521_v11  ;;  %v3558_v34 = vpop.f32.mrf.mxu1 }
0x101e   :  { %v3559_v18 = vadd.f32 %v3558_v34, %v2770_v54 }
0x1020   :  { %v8583_v13 = vpop.permute.xlu0 %2754  ;;  %v3736_v19 = vsel %vm128_vm0, %v3559_v18, -inf }
0x1021   :  { %3737 = vmax.xlane.f32.xlu2 %v3736_v19  ;;  %6132 = vmatpush.xpose.msk.msrb.mxu0 %vm128_vm0, %v8583_v13 }
0x1024   :  { %6133 = vmatmul.msk.f32.vlgmr.msrb.gmra.mxu0 %vm128_vm0, %v3534_v17 }
0x1025   :  { %3992 = vmatpush.msra.mxu0 %v8526_v10 }
0x1027   :  { %4084 = vmatpush.msrb.mxu0 %v8583_v13 }
0x1028   :  { %v8591_v44 = vpop.permute.xlu0 %2756 }
0x1029   :  { %6134 = vmatpush.xpose.msk.msra.mxu1 %vm128_vm0, %v8591_v44 }
0x1031   :  { %v3519_v9 = vpop.permute.xlu1 %3518 }
0x1032   :  { %v3533_v46 = vmul.f32 0.17677669, %v3519_v9 }
0x1034   :  { %6131 = vmatmul.msk.f32.vlgmr.msrb.gmra.mxu3 %vm128_vm0, %v3533_v46 }
0x1035   :  { %4061 = vmatpush.msrb.mxu3 %v8575_v42 }
0x1039   :  { %v3513_v30 = vpop.permute.xlu1 %3512 }
0x103a   :  { %v3531_v2 = vmul.f32 0.17677669, %v3513_v30 }
0x103c   :  { %6127 = vmatmul.msk.f32.vlgmr.msrb.gmra.mxu1 %vm128_vm0, %v3531_v2 }
0x103d   :  { %4015 = vmatpush.msrb.mxu1 %v8570_v62 }
0x1041   :  { %v3525_v40 = vpop.permute.xlu1 %3524 }
0x1042   :  { %v3535_v47 = vmul.f32 0.17677669, %v3525_v40 }
0x1044   :  { %v3583_v4 = vpop.f32.mrf.mxu2  ;;  %6135 = vmatmul.msk.f32.vlgmr.msra.gmra.mxu1 %vm128_vm0, %v3535_v47 }
0x1045   :  { %v3584_v14 = vadd.f32 %v3583_v4, %v2771_v58  ;;  %4107 = vmatpush.msra.mxu1 %v8591_v44 }
0x1047   :  { %v3739_v61 = vsel %vm128_vm0, %v3584_v14, -inf }
0x1048   :  { %3740 = vmax.xlane.f32.xlu1 %v3739_v61 }
0x107e   :  { %v3658_v33 = vpop.f32.mrf.mxu2 }
0x107f   :  { %v3659_v7 = vadd.f32 %v3658_v33, %v2774_v29 }
0x1081   :  { %v3748_v25 = vsel %vm128_vm0, %v3659_v7, -inf }
0x1082   :  { %3749 = vmax.xlane.f32.xlu2 %v3748_v25 }
0x1094   :  { %v3738_v39 = vpop.xlane.xlu2 %3737 }
0x1095   :  { %v3760_v28 = vsub.f32 %v3559_v18, %v3738_v39 }
0x1096   :  { %v3608_v36 = vpop.f32.mrf.mxu3 }
0x1097   :  { %v3609_v55 = vadd.f32 %v3608_v36, %v2772_v35  ;;  %v3768_v12 = vmul.f32 1.442695, %v3760_v28 }
0x1099   :  { %v3742_v20 = vsel %vm128_vm0, %v3609_v55, -inf  ;;  %6485 = vpow2.f32 %v3768_v12 }
0x109a   :  { %3743 = vmax.xlane.f32.xlu0 %v3742_v20 }
0x109f   :  { %v8617_v0 = vpop.eup %6485 }
0x10a0   :  { %v3784_v21 = vsel %vm128_vm0, %v8617_v0, 0.0 }
0x10a1   :  { %v3708_v31 = vpop.f32.mrf.mxu0 }
0x10a2   :  { %v3709_v8 = vadd.f32 %v3708_v31, %v2776_v5 }
0x10a4   :  { %v3754_v26 = vsel %vm128_vm0, %v3709_v8, -inf }
0x10a5   :  { %3755 = vmax.xlane.f32.xlu1 %v3754_v26 }
0x10ad   :  { %3785 = vadd.xlane.f32.xlu1 %v3784_v21 }
0x10b7   :  { %v3683_v15 = vpop.f32.mrf.mxu3 }
0x10b8   :  { %v3684_v27 = vadd.f32 %v3683_v15, %v2775_v24 }
0x10b9   :  { %v3633_v53 = vpop.f32.mrf.mxu1 }
0x10ba   :  { %v3634_v37 = vadd.f32 %v3633_v53, %v2773_v49  ;;  %v3751_v52 = vsel %vm128_vm0, %v3684_v27, -inf }
0x10bb   :  { %3752 = vmax.xlane.f32.xlu2 %v3751_v52  ;;  %v3741_v50 = vpop.xlane.xlu1 %3740 }
0x10bc   :  { %v3761_v43 = vsub.f32 %v3584_v14, %v3741_v50  ;;  %v3745_v45 = vsel %vm128_vm0, %v3634_v37, -inf }
0x10bd   :  { %3746 = vmax.xlane.f32.xlu0 %v3745_v45 }
0x10be   :  { %v3770_v23 = vmul.f32 1.442695, %v3761_v43 }
0x10c0   :  { %6487 = vpow2.f32 %v3770_v23 }
0x10c1   :  { %v3733_v41 = vpop.f32.mrf.mxu1 }
0x10c2   :  { %v3734_v57 = vadd.f32 %v3733_v41, %v2777_v56 }
0x10c4   :  { %v3757_v51 = vsel %vm128_vm0, %v3734_v57, -inf }
0x10c5   :  { %3758 = vmax.xlane.f32.xlu0 %v3757_v51 }
0x10c6   :  { %v8633_v38 = vpop.eup %6487 }
0x10c7   :  { %v3787_v63 = vsel %vm128_vm0, %v8633_v38, 0.0 }
0x10cd   :  { %3788 = vadd.xlane.f32.xlu0 %v3787_v63 }
0x10f5   :  { %v3750_v54 = vpop.xlane.xlu2 %3749 }
0x10f6   :  { %v3764_v34 = vsub.f32 %v3659_v7, %v3750_v54 }
0x10f8   :  { %v3776_v18 = vmul.f32 1.442695, %v3764_v34 }
0x10fa   :  { %6489 = vpow2.f32 %v3776_v18 }
0x1100   :  { %v8637_v32 = vpop.eup %6489 }
0x1101   :  { %v3796_v19 = vsel %vm128_vm0, %v8637_v32, 0.0 }
0x1102   :  { %3797 = vadd.xlane.f32.xlu1 %v3796_v19 }
0x110d   :  { %v3744_v17 = vpop.xlane.xlu0 %3743 }
0x110e   :  { %v3762_v9 = vsub.f32 %v3609_v55, %v3744_v17 }
0x1110   :  { %v3772_v46 = vmul.f32 1.442695, %v3762_v9 }
0x1112   :  { %6491 = vpow2.f32 %v3772_v46 }
0x1118   :  { %v8641_v30 = vpop.eup %6491  ;;  %v3756_v2 = vpop.xlane.xlu1 %3755 }
0x1119   :  { %v3766_v40 = vsub.f32 %v3709_v8, %v3756_v2  ;;  %v3790_v47 = vsel %vm128_vm0, %v8641_v30, 0.0 }
0x111a   :  { %3791 = vadd.xlane.f32.xlu2 %v3790_v47 }
0x111b   :  { %v3780_v58 = vmul.f32 1.442695, %v3766_v40 }
0x111d   :  { %6493 = vpow2.f32 %v3780_v58 }
0x1120   :  { %v3786_v4 = vpop.xlane.xlu1 %3785 }
0x1121   :  { %6495 = vrcp.f32 %v3786_v4  ;;  %v3819_v25 = vand.u32 2147483648, %v3786_v4  ;;  %v3817_v36 = vand.u32 2147483647, %v3786_v4  ;;  %vm3813_vm15 = vweird.f32 %v3786_v4 }
0x1123   :  { %v8645_v14 = vpop.eup %6493  ;;  %v3820_v20 = vor.u32 1.1754944e-38, %v3819_v25  ;;  %vm3818_vm13 = vcmp.eq.f32.partialorder %v3817_v36, 8.507059e+37 }
0x1124   :  { %v3802_v61 = vsel %vm128_vm0, %v8645_v14, 0.0 }
0x1125   :  { %3803 = vadd.xlane.f32.xlu0 %v3802_v61 }
0x1127   :  { %v6496_v29 = vpop.eup %6495 }
0x1128   :  { %v3809_v33 = vmul.f32 %v6496_v29, %v3786_v4  ;;  %vm3814_vm12 = vweird.f32 %v6496_v29 }
0x1129   :  { %vm3815_vm2 = vmor %vm3813_vm15, %vm3814_vm12 }
0x112a   :  { %v3810_v7 = vsub.f32 1.0, %v3809_v33 }
0x112c   :  { %v3811_v35 = vmul.f32 %v6496_v29, %v3810_v7 }
0x112e   :  { %v3812_v55 = vadd.f32 %v6496_v29, %v3811_v35  ;;  %v3753_v39 = vpop.xlane.xlu2 %3752 }
0x112f   :  { %v3765_v28 = vsub.f32 %v3684_v27, %v3753_v39 }
0x1130   :  { %v3816_v12 = vsel %vm3815_vm2, %v6496_v29, %v3812_v55  ;;  %v3747_v5 = vpop.xlane.xlu0 %3746 }
0x1131   :  { %v3821_v31 = vsel %vm3818_vm13, %v3820_v20, %v3816_v12  ;;  %v3778_v8 = vmul.f32 1.442695, %v3765_v28  ;;  %v3763_v26 = vsub.f32 %v3634_v37, %v3747_v5 }
0x1132   :  { %v3822_v21 = vmul.f32 %v8617_v0, %v3821_v31 }
0x1133   :  { %6497 = vpow2.f32 %v3778_v8  ;;  %v3774_v24 = vmul.f32 1.442695, %v3763_v26 }
0x1134   :  { %6136 = vmatmul.msk.f32.vlgmr.msra.gmra.mxu2 %vm128_vm0, %v3822_v21 }
0x1135   :  { %6499 = vpow2.f32 %v3774_v24 }
0x1138   :  { %v3759_v15 = vpop.xlane.xlu0 %3758 }
0x1139   :  { %v8651_v49 = vpop.eup %6497  ;;  %v3767_v53 = vsub.f32 %v3734_v57, %v3759_v15  ;;  %6252 = vrot.lane.b32.xlu0 %v8463_v60, %s6672_s0 }
0x113a   :  { %v3799_v27 = vsel %vm128_vm0, %v8651_v49, 0.0 }
0x113b   :  { %v8657_v52 = vpop.eup %6499  ;;  %v3782_v37 = vmul.f32 1.442695, %v3767_v53  ;;  %3800 = vadd.xlane.f32.xlu1 %v3799_v27 }
0x113c   :  { %v3793_v0 = vsel %vm128_vm0, %v8657_v52, 0.0 }
0x113d   :  { %6501 = vpow2.f32 %v3782_v37  ;;  %3794 = vadd.xlane.f32.xlu2 %v3793_v0 }
0x1140   :  { %v3789_v50 = vpop.xlane.xlu0 %3788 }
0x1141   :  { %6503 = vrcp.f32 %v3789_v50  ;;  %v3834_v57 = vand.u32 2147483648, %v3789_v50  ;;  %v3832_v63 = vand.u32 2147483647, %v3789_v50  ;;  %vm3828_vm6 = vweird.f32 %v3789_v50 }
0x1143   :  { %v8661_v43 = vpop.eup %6501  ;;  %v3835_v34 = vor.u32 1.1754944e-38, %v3834_v57  ;;  %vm3833_vm4 = vcmp.eq.f32.partialorder %v3832_v63, 8.507059e+37 }
0x1144   :  { %v3805_v45 = vsel %vm128_vm0, %v8661_v43, 0.0 }
0x1145   :  { %3806 = vadd.xlane.f32.xlu2 %v3805_v45 }
0x1147   :  { %v6504_v23 = vpop.eup %6503 }
0x1148   :  { %v3824_v56 = vmul.f32 %v6504_v23, %v3789_v50  ;;  %vm3829_vm5 = vweird.f32 %v6504_v23 }
0x1149   :  { %vm3830_vm7 = vmor %vm3828_vm6, %vm3829_vm5 }
0x114a   :  { %v3825_v41 = vsub.f32 1.0, %v3824_v56 }
0x114c   :  { %v3826_v51 = vmul.f32 %v6504_v23, %v3825_v41 }
0x114e   :  { %v3827_v54 = vadd.f32 %v6504_v23, %v3826_v51 }
0x1150   :  { %v3831_v18 = vsel %vm3830_vm7, %v6504_v23, %v3827_v54 }
0x1151   :  { %v3836_v19 = vsel %vm3833_vm4, %v3835_v34, %v3831_v18 }
0x1152   :  { %v3837_v17 = vmul.f32 %v8633_v38, %v3836_v19 }
0x1154   :  { %6137 = vmatmul.msk.f32.vlgmr.msra.gmra.mxu3 %vm128_vm0, %v3837_v17 }
0x115d   :  { %6257 = vrot.lane.b32.xlu2 %v8472_v6, %s6672_s0 }
0x1175   :  { %v3798_v9 = vpop.xlane.xlu1 %3797 }
0x1176   :  { %6505 = vrcp.f32 %v3798_v9  ;;  %v3879_v47 = vand.u32 2147483648, %v3798_v9  ;;  %v3877_v4 = vand.u32 2147483647, %v3798_v9  ;;  %vm3873_vm10 = vweird.f32 %v3798_v9 }
0x1178   :  { %v3880_v29 = vor.u32 1.1754944e-38, %v3879_v47  ;;  %vm3878_vm12 = vcmp.eq.f32.partialorder %v3877_v4, 8.507059e+37 }
0x117c   :  { %v6506_v46 = vpop.eup %6505 }
0x117d   :  { %v3869_v2 = vmul.f32 %v6506_v46, %v3798_v9  ;;  %vm3874_vm3 = vweird.f32 %v6506_v46 }
0x117e   :  { %vm3875_vm14 = vmor %vm3873_vm10, %vm3874_vm3 }
0x117f   :  { %v3870_v40 = vsub.f32 1.0, %v3869_v2 }
0x1181   :  { %v3871_v58 = vmul.f32 %v6506_v46, %v3870_v40 }
0x1183   :  { %v3872_v61 = vadd.f32 %v6506_v46, %v3871_v58 }
0x1185   :  { %v3876_v33 = vsel %vm3875_vm14, %v6506_v46, %v3872_v61 }
0x1186   :  { %v3881_v38 = vsel %vm3878_vm12, %v3880_v29, %v3876_v33 }
0x1187   :  { %v3882_v7 = vmul.f32 %v8637_v32, %v3881_v38 }
0x1189   :  { %6140 = vmatmul.msk.f32.vlgmr.msrb.gmra.mxu2 %vm128_vm0, %v3882_v7 }
0x118d   :  { %v3792_v25 = vpop.xlane.xlu2 %3791 }
0x118e   :  { %6507 = vrcp.f32 %v3792_v25  ;;  %v3849_v39 = vand.u32 2147483648, %v3792_v25  ;;  %v3847_v12 = vand.u32 2147483647, %v3792_v25  ;;  %vm3843_vm2 = vweird.f32 %v3792_v25 }
0x1190   :  { %v3850_v31 = vor.u32 1.1754944e-38, %v3849_v39  ;;  %vm3848_vm5 = vcmp.eq.f32.partialorder %v3847_v12, 8.507059e+37 }
0x1194   :  { %v6508_v35 = vpop.eup %6507 }
0x1195   :  { %v3839_v36 = vmul.f32 %v6508_v35, %v3792_v25  ;;  %vm3844_vm15 = vweird.f32 %v6508_v35 }
0x1196   :  { %vm3845_vm13 = vmor %vm3843_vm2, %vm3844_vm15 }
0x1197   :  { %v3840_v55 = vsub.f32 1.0, %v3839_v36 }
0x1198   :  { %v3804_v20 = vpop.xlane.xlu0 %3803 }
0x1199   :  { %v3841_v28 = vmul.f32 %v6508_v35, %v3840_v55  ;;  %6509 = vrcp.f32 %v3804_v20  ;;  %v3909_v53 = vand.u32 2147483648, %v3804_v20  ;;  %v3907_v37 = vand.u32 2147483647, %v3804_v20 }
0x119a   :  { %vm3903_vm7 = vweird.f32 %v3804_v20 }
0x119b   :  { %v3842_v5 = vadd.f32 %v6508_v35, %v3841_v28  ;;  %v3910_v50 = vor.u32 1.1754944e-38, %v3909_v53  ;;  %vm3908_vm3 = vcmp.eq.f32.partialorder %v3907_v37, 8.507059e+37 }
0x119d   :  { %v3846_v8 = vsel %vm3845_vm13, %v6508_v35, %v3842_v5 }
0x119e   :  { %v3851_v32 = vsel %vm3848_vm5, %v3850_v31, %v3846_v8 }
0x119f   :  { %v6510_v26 = vpop.eup %6509  ;;  %v3852_v21 = vmul.f32 %v8641_v30, %v3851_v32 }
0x11a0   :  { %v3899_v24 = vmul.f32 %v6510_v26, %v3804_v20  ;;  %vm3904_vm6 = vweird.f32 %v6510_v26 }
0x11a1   :  { %6138 = vmatmul.msk.f32.vlgmr.msra.gmra.mxu0 %vm128_vm0, %v3852_v21  ;;  %vm3905_vm4 = vmor %vm3903_vm7, %vm3904_vm6 }
0x11a2   :  { %v3900_v15 = vsub.f32 1.0, %v3899_v24 }
0x11a4   :  { %v3901_v27 = vmul.f32 %v6510_v26, %v3900_v15 }
0x11a6   :  { %v3902_v0 = vadd.f32 %v6510_v26, %v3901_v27 }
0x11a8   :  { %v3906_v45 = vsel %vm3905_vm4, %v6510_v26, %v3902_v0 }
0x11a9   :  { %v3911_v23 = vsel %vm3908_vm3, %v3910_v50, %v3906_v45 }
0x11aa   :  { %v3912_v56 = vmul.f32 %v8645_v14, %v3911_v23 }
0x11ab   :  { %v6253_v15 = vpop.permute.xlu0 %6252 }
0x11ac   :  { %6142 = vmatmul.msk.f32.vlgmr.msrb.gmra.mxu0 %vm128_vm0, %v3912_v56  ;;  %v6255_v53 = vunpack.i.h.bf16 %v6253_v15  ;;  %v6254_v27 = vunpack.i.l.bf16 %v6253_v15 }
0x11ae   :  { %v3801_v30 = vpop.xlane.xlu1 %3800  ;;  %4177 = vmatpush.msra.mxu2 %v6254_v27  ;;  %v4234_v27 = vperm.slane %v8485_v1, 4 }
0x11af   :  { %6511 = vrcp.f32 %v3801_v30  ;;  %v3894_v19 = vand.u32 2147483648, %v3801_v30  ;;  %v3892_v9 = vand.u32 2147483647, %v3801_v30  ;;  %vm3888_vm14 = vweird.f32 %v3801_v30 }
0x11b0   :  { %v3795_v41 = vpop.xlane.xlu2 %3794  ;;  %4178 = vmatpush.msra.mxu2 %v6255_v53 }
0x11b1   :  { %6513 = vrcp.f32 %v3795_v41  ;;  %v3864_v14 = vand.u32 2147483648, %v3795_v41  ;;  %v3862_v47 = vand.u32 2147483647, %v3795_v41  ;;  %v3895_v58 = vor.u32 1.1754944e-38, %v3894_v19 }
0x11b2   :  { %vm3893_vm2 = vcmp.eq.f32.partialorder %v3892_v9, 8.507059e+37  ;;  %vm3858_vm13 = vweird.f32 %v3795_v41 }
0x11b3   :  { %v3865_v38 = vor.u32 1.1754944e-38, %v3864_v14  ;;  %vm3863_vm6 = vcmp.eq.f32.partialorder %v3862_v47, 8.507059e+37  ;;  %v4142_v14 = vperm.slane %v8485_v1, 3 }
0x11b5   :  { %v6512_v57 = vpop.eup %6511 }
0x11b6   :  { %v3884_v51 = vmul.f32 %v6512_v57, %v3801_v30  ;;  %vm3889_vm10 = vweird.f32 %v6512_v57 }
0x11b7   :  { %v6514_v63 = vpop.eup %6513  ;;  %vm3890_vm15 = vmor %vm3888_vm14, %vm3889_vm10 }
0x11b8   :  { %v3885_v54 = vsub.f32 1.0, %v3884_v51  ;;  %v3854_v34 = vmul.f32 %v6514_v63, %v3795_v41  ;;  %v3807_v18 = vpop.xlane.xlu2 %3806  ;;  %vm3859_vm12 = vweird.f32 %v6514_v63 }
0x11b9   :  { %6515 = vrcp.f32 %v3807_v18  ;;  %vm3860_vm5 = vmor %vm3858_vm13, %vm3859_vm12  ;;  %v3924_v20 = vand.u32 2147483648, %v3807_v18  ;;  %v3922_v12 = vand.u32 2147483647, %v3807_v18  ;;  %vm3918_vm4 = vweird.f32 %v3807_v18 }
0x11ba   :  { %v3886_v17 = vmul.f32 %v6512_v57, %v3885_v54  ;;  %v3855_v46 = vsub.f32 1.0, %v3854_v34 }
0x11bb   :  { %v3925_v31 = vor.u32 1.1754944e-38, %v3924_v20  ;;  %vm3923_vm10 = vcmp.eq.f32.partialorder %v3922_v12, 8.507059e+37 }
0x11bc   :  { %v3887_v2 = vadd.f32 %v6512_v57, %v3886_v17  ;;  %v3856_v40 = vmul.f32 %v6514_v63, %v3855_v46 }
0x11be   :  { %v3891_v4 = vsel %vm3890_vm15, %v6512_v57, %v3887_v2  ;;  %v3857_v61 = vadd.f32 %v6514_v63, %v3856_v40 }
0x11bf   :  { %v6516_v29 = vpop.eup %6515  ;;  %v3896_v33 = vsel %vm3893_vm2, %v3895_v58, %v3891_v4 }
0x11c0   :  { %v3897_v7 = vmul.f32 %v8651_v49, %v3896_v33  ;;  %v3861_v25 = vsel %vm3860_vm5, %v6514_v63, %v3857_v61  ;;  %v3914_v35 = vmul.f32 %v6516_v29, %v3807_v18  ;;  %vm3919_vm7 = vweird.f32 %v6516_v29  ;;  %v6258_v37 = vpop.permute.xlu2 %6257 }
0x11c1   :  { %v3866_v36 = vsel %vm3863_vm6, %v3865_v38, %v3861_v25  ;;  %vm3920_vm3 = vmor %vm3918_vm4, %vm3919_vm7  ;;  %v6259_v0 = vunpack.i.l.bf16 %v6258_v37  ;;  %v6260_v50 = vunpack.i.h.bf16 %v6258_v37 }
0x11c2   :  { %v3867_v55 = vmul.f32 %v8657_v52, %v3866_v36  ;;  %v3915_v39 = vsub.f32 1.0, %v3914_v35  ;;  %6141 = vmatmul.msk.f32.vlgmr.msrb.gmra.mxu3 %vm128_vm0, %v3897_v7  ;;  %v3948_v52 = vpop.f32.mrf.mxu2 }
0x11c3   :  { %4179 = vmatpush.msra.mxu2 %v6259_v0  ;;  %v4237_v0 = vperm.slane %v8485_v1, 5 }
0x11c4   :  { %v3916_v28 = vmul.f32 %v6516_v29, %v3915_v39  ;;  %6139 = vmatmul.msk.f32.vlgmr.msrb.gmra.mxu1 %vm128_vm0, %v3867_v55 }
0x11c5   :  { %4180 = vmatpush.msra.mxu2 %v6260_v50 }
0x11c6   :  { %v3917_v5 = vadd.f32 %v6516_v29, %v3916_v28 }
0x11c8   :  { %v3921_v49 = vsel %vm3920_vm3, %v6516_v29, %v3917_v5 }
0x11c9   :  { %v3926_v8 = vsel %vm3923_vm10, %v3925_v31, %v3921_v49 }
0x11ca   :  { %v3927_v32 = vmul.f32 %v8661_v43, %v3926_v8 }
0x11cc   :  { %6143 = vmatmul.msk.f32.vlgmr.msra.gmra.mxu1 %vm128_vm0, %v3927_v32 }
0x11d7   :  { %v3971_v43 = vpop.f32.mrf.mxu3 }
0x120c   :  { %v4040_v26 = vpop.f32.mrf.mxu2 }
0x120d   :  { %4122 = vrot.lane.b32.xlu0 %v4040_v26, %s6669_s29 }
0x121e   :  { %v3994_v21 = vpop.f32.mrf.mxu0 }
0x121f   :  { %4114 = vrot.lane.b32.xlu1 %v3994_v21, %s6668_s28 }
0x1229   :  { %v4086_v24 = vpop.f32.mrf.mxu0 }
0x122a   :  { %4130 = vrot.lane.b32.xlu2 %v4086_v24, %s6670_s30 }
0x1241   :  { %v4017_v45 = vpop.f32.mrf.mxu1 }
0x1242   :  { %4116 = vrot.lane.b32.xlu0 %v4017_v45, %s6668_s28 }
0x1245   :  { %v4063_v23 = vpop.f32.mrf.mxu3 }
0x1246   :  { %4124 = vrot.lane.b32.xlu1 %v4063_v23, %s6669_s29  ;;  %v2789_v23 = vld [vmem:[%s9145_s9 + $0x38] sm:$0xff] }
0x1247   :  { %4299 = vmatpush.msra.mxu0 %v2789_v23  ;;  %v2791_v23 = vld [vmem:[%s9146_s10 + $0x8] sm:$0xff] }
0x1249   :  { %v4109_v56 = vpop.f32.mrf.mxu1 }
0x124a   :  { %4132 = vrot.lane.b32.xlu2 %v4109_v56, %s6670_s30  ;;  %v2788_v56 = vld [vmem:[%s9145_s9 + $0x30] sm:$0xff] }
0x124b   :  { %4300 = vmatpush.msra.mxu0 %v2788_v56 }
0x127f   :  { %v4123_v41 = vpop.permute.xlu0 %4122 }
0x1284   :  { %v4131_v51 = vpop.permute.xlu2 %4130 }
0x1291   :  { %v4115_v30 = vpop.permute.xlu1 %4114 }
0x1292   :  { %v4136_v57 = vsel %vm128_vm0, %v3948_v52, %v4115_v30  ;;  %v2787_v30 = vld [vmem:[%s9145_s9 + $0x28] sm:$0xff] }
0x1293   :  { %v4138_v63 = vsel %vm393_vm1, %v4136_v57, %v4123_v41  ;;  %v2786_v57 = vld [vmem:[%s9145_s9 + $0x20] sm:$0xff]  ;;  %4301 = vmatpush.msra.mxu0 %v2787_v30 }
0x1294   :  { %v4140_v54 = vsel %vm1066_vm8, %v4138_v63, %v4131_v51  ;;  %v2785_v63 = vld [vmem:[%s9145_s9 + $0x18] sm:$0xff] }
0x1295   :  { %6144 = vmatmul.msk.f32.vlgmr.msra.gmra.mxu2 %vm1072_vm9, %v4140_v54  ;;  %4302 = vmatpush.msra.mxu0 %v2786_v57  ;;  %v4363_v57 = vperm.slane %v2791_v23, 1 }
0x1297   :  { %4303 = vmatpush.msra.mxu0 %v2785_v63 }
0x12a4   :  { %v4133_v17 = vpop.permute.xlu2 %4132 }
0x12b4   :  { %v4117_v34 = vpop.permute.xlu0 %4116 }
0x12b5   :  { %v4137_v18 = vsel %vm128_vm0, %v3971_v43, %v4117_v34 }
0x12b8   :  { %v4125_v19 = vpop.permute.xlu1 %4124 }
0x12b9   :  { %v4139_v9 = vsel %vm393_vm1, %v4137_v18, %v4125_v19 }
0x12ba   :  { %v4141_v46 = vsel %vm1066_vm8, %v4139_v9, %v4133_v17 }
0x12bb   :  { %6145 = vmatmul.msk.f32.gmra.mxu2 %vm1072_vm9, %v4141_v46 }
0x1318   :  { %v4182_v2 = vpop.f32.mrf.mxu2 }
0x1319   :  { %v4183_v40 = vadd.f32 %v4182_v2, %v4142_v14 }
0x131b   :  { %v4188_v47 = vadd.f32 %v4183_v40, %v8533_v16 }
0x131d   :  { %v4190_v58 = vsel %vm1072_vm9, %v4188_v47, 0.0 }
0x131e   :  { %4191 = vadd.xlane.f32.xlu0 %v4190_v58  ;;  %v2783_v58 = vld [vmem:[%s9145_s9 + $0x8] sm:$0xff] }
0x133e   :  { %v4185_v4 = vpop.f32.mrf.mxu2 }
0x133f   :  { %v4186_v61 = vadd.f32 %v4185_v4, %v4142_v14  ;;  %v2782_v4 = vld [vmem:[%s9145_s9] sm:$0xff] }
0x1341   :  { %v4189_v29 = vadd.f32 %v4186_v61, %v8557_v48  ;;  %v6622_v61 = vld [vmem:[%s9146_s10] sm:$0xff] }
0x1343   :  { %v4193_v33 = vsel %vm1072_vm9, %v4189_v29, 0.0 }
0x1344   :  { %4194 = vadd.xlane.f32.xlu1 %v4193_v33 }
0x135d   :  { %6262 = vrot.lane.b32.xlu1 %v8463_v60, %s6673_s18 }
0x1391   :  { %v4192_v38 = vpop.xlane.xlu0 %4191 }
0x1392   :  { %v4196_v7 = vmul.f32 %v4192_v38, %v7485_v3 }
0x1394   :  { %v4198_v25 = vsub.f32 %v4188_v47, %v4196_v7  ;;  %v2784_v47 = vld [vmem:[%s9145_s9 + $0x10] sm:$0xff] }
0x1395   :  { %4304 = vmatpush.msra.mxu0 %v2784_v47 }
0x1396   :  { %v4200_v35 = vmul.f32 %v4198_v25, %v4198_v25 }
0x1397   :  { %4305 = vmatpush.msra.mxu0 %v2783_v58 }
0x1398   :  { %v4202_v16 = vsel %vm1072_vm9, %v4200_v35, 0.0 }
0x1399   :  { %4203 = vadd.xlane.f32.xlu2 %v4202_v16  ;;  %4306 = vmatpush.msra.mxu0 %v2782_v4 }
0x13b1   :  { %6267 = vrot.lane.b32.xlu2 %v8472_v6, %s6673_s18 }
0x13b7   :  { %v4195_v36 = vpop.xlane.xlu1 %4194 }
0x13b8   :  { %v4197_v48 = vmul.f32 %v4195_v36, %v7485_v3  ;;  %v4284_v36 = vperm.slane %v6622_v61, 7 }
0x13ba   :  { %v4199_v55 = vsub.f32 %v4189_v29, %v4197_v48  ;;  %v4240_v29 = vperm.slane %v6622_v61, 6 }
0x13bc   :  { %v4201_v39 = vmul.f32 %v4199_v55, %v4199_v55 }
0x13be   :  { %v4205_v20 = vsel %vm1072_vm9, %v4201_v39, 0.0 }
0x13bf   :  { %4206 = vadd.xlane.f32.xlu0 %v4205_v20 }
0x13cf   :  { %v6263_v60 = vpop.permute.xlu1 %6262 }
0x13d0   :  { %v6265_v28 = vunpack.i.h.bf16 %v6263_v60  ;;  %v6264_v12 = vunpack.i.l.bf16 %v6263_v60 }
0x13d2   :  { %4271 = vmatpush.msra.mxu3 %v6264_v12 }
0x13d4   :  { %4272 = vmatpush.msra.mxu3 %v6265_v28 }
0x140c   :  { %v4204_v5 = vpop.xlane.xlu2 %4203 }
0x140d   :  { %v4208_v31 = vmul.f32 %v4204_v5, %v7485_v3 }
0x140f   :  { %v4210_v49 = vadd.f32 1e-05, %v4208_v31 }
0x1411   :  { %6517 = vrsqrt.f32 %v4210_v49  ;;  %vm4218_vm12 = vweird.f32 %v4210_v49 }
0x1414   :  { %v6268_v8 = vpop.permute.xlu2 %6267 }
0x1415   :  { %v6270_v6 = vunpack.i.h.bf16 %v6268_v8  ;;  %v6269_v32 = vunpack.i.l.bf16 %v6268_v8 }
0x1417   :  { %v6518_v52 = vpop.eup %6517  ;;  %4273 = vmatpush.msra.mxu3 %v6269_v32 }
0x1418   :  { %v4213_v26 = vmul.f32 %v6518_v52, %v4210_v49  ;;  %vm4219_vm14 = vweird.f32 %v6518_v52 }
0x1419   :  { %4274 = vmatpush.msra.mxu3 %v6270_v6  ;;  %vm4220_vm15 = vmor %vm4218_vm12, %vm4219_vm14 }
0x141a   :  { %v4214_v21 = vmul.f32 %v6518_v52, %v4213_v26 }
0x141c   :  { %v4215_v24 = vmul.f32 0.5, %v4214_v21 }
0x141e   :  { %v4216_v15 = vsub.f32 1.5, %v4215_v24 }
0x1420   :  { %v4217_v53 = vmul.f32 %v6518_v52, %v4216_v15 }
0x1422   :  { %v4221_v37 = vsel %vm4220_vm15, %v6518_v52, %v4217_v53 }
0x1423   :  { %v4232_v50 = vmul.f32 %v4221_v37, %v4198_v25 }
0x1425   :  { %v4235_v43 = vmul.f32 %v4234_v27, %v4232_v50 }
0x1427   :  { %v4238_v45 = vadd.f32 %v4237_v0, %v4235_v43 }
0x1429   :  { %6146 = vmatmul.msk.f32.vlgmr.msra.gmra.mxu3 %vm1072_vm9, %v4238_v45 }
0x1432   :  { %v4207_v41 = vpop.xlane.xlu0 %4206 }
0x1433   :  { %v4209_v1 = vmul.f32 %v4207_v41, %v7485_v3  ;;  %v4360_v41 = vperm.slane %v2791_v23, 0 }
0x1435   :  { %v4211_v51 = vadd.f32 1e-05, %v4209_v1 }
0x1437   :  { %6519 = vrsqrt.f32 %v4211_v51  ;;  %vm4228_vm13 = vweird.f32 %v4211_v51 }
0x143d   :  { %v6520_v54 = vpop.eup %6519 }
0x143e   :  { %v4223_v34 = vmul.f32 %v6520_v54, %v4211_v51  ;;  %vm4229_vm2 = vweird.f32 %v6520_v54 }
0x143f   :  { %vm4230_vm5 = vmor %vm4228_vm13, %vm4229_vm2 }
0x1440   :  { %v4224_v18 = vmul.f32 %v6520_v54, %v4223_v34 }
0x1442   :  { %v4225_v19 = vmul.f32 0.5, %v4224_v18 }
0x1444   :  { %v4226_v17 = vsub.f32 1.5, %v4225_v19 }
0x1446   :  { %v4227_v9 = vmul.f32 %v6520_v54, %v4226_v17 }
0x1448   :  { %v4231_v46 = vsel %vm4230_vm5, %v6520_v54, %v4227_v9 }
0x1449   :  { %v4233_v14 = vmul.f32 %v4231_v46, %v4199_v55 }
0x144b   :  { %v4236_v2 = vmul.f32 %v4234_v27, %v4233_v14 }
0x144d   :  { %v4239_v40 = vadd.f32 %v4237_v0, %v4236_v2 }
0x144f   :  { %6147 = vmatmul.msk.f32.gmra.mxu3 %vm1072_vm9, %v4239_v40 }
0x14ac   :  { %v4276_v33 = vpop.f32.mrf.mxu3 }
0x14ad   :  { %v4277_v38 = vadd.f32 %v4276_v33, %v4240_v29 }
0x14af   :  { %v4282_v7 = vmax.f32 %v4277_v38, 0.0 }
0x14b1   :  { %6148 = vmatmul.msk.f32.vlgmr.msra.gmra.mxu0 %vm1286_vm11, %v4282_v7 }
0x14d2   :  { %v4279_v25 = vpop.f32.mrf.mxu3 }
0x14d3   :  { %v4280_v35 = vadd.f32 %v4279_v25, %v4240_v29 }
0x14d5   :  { %v4283_v16 = vmax.f32 %v4280_v35, 0.0 }
0x14d7   :  { %6149 = vmatmul.msk.f32.gmra.mxu0 %vm1286_vm11, %v4283_v16 }
0x152e   :  { %v4308_v48 = vpop.f32.mrf.mxu0 }
0x152f   :  { %v4309_v55 = vadd.f32 %v4308_v48, %v4284_v36  ;;  %v6623_v48 = vld [vmem:[%s9139_s3] sm:$0xff] }
0x1531   :  { %v4314_v39 = vadd.f32 %v4309_v55, %v4238_v45 }
0x1533   :  { %v4316_v20 = vsel %vm1072_vm9, %v4314_v39, 0.0 }
0x1534   :  { %4317 = vadd.xlane.f32.xlu0 %v4316_v20 }
0x1554   :  { %v4311_v60 = vpop.f32.mrf.mxu0 }
0x1555   :  { %v4312_v28 = vadd.f32 %v4311_v60, %v4284_v36 }
0x1557   :  { %v4315_v12 = vadd.f32 %v4312_v28, %v4239_v40 }
0x1559   :  { %v4319_v5 = vsel %vm1072_vm9, %v4315_v12, 0.0 }
0x155a   :  { %4320 = vadd.xlane.f32.xlu0 %v4319_v5 }
0x15a7   :  { %v4318_v31 = vpop.xlane.xlu0 %4317 }
0x15a8   :  { %v4322_v49 = vmul.f32 %v4318_v31, %v7485_v3 }
0x15aa   :  { %v4324_v8 = vsub.f32 %v4314_v39, %v4322_v49 }
0x15ac   :  { %v4326_v6 = vmul.f32 %v4324_v8, %v4324_v8 }
0x15ae   :  { %v4328_v32 = vsel %vm1072_vm9, %v4326_v6, 0.0  ;;  %v6624_v6 = vld [vmem:[%s9139_s3 + $0x8] sm:$0xff] }
0x15af   :  { %4329 = vadd.xlane.f32.xlu0 %v4328_v32 }
0x15cd   :  { %v4321_v52 = vpop.xlane.xlu0 %4320 }
0x15ce   :  { %v4323_v26 = vmul.f32 %v4321_v52, %v7485_v3 }
0x15d0   :  { %v4325_v21 = vsub.f32 %v4315_v12, %v4323_v26 }
0x15d2   :  { %v4327_v24 = vmul.f32 %v4325_v21, %v4325_v21 }
0x15d4   :  { %v4331_v15 = vsel %vm1072_vm9, %v4327_v24, 0.0 }
0x15d5   :  { %4332 = vadd.xlane.f32.xlu1 %v4331_v15 }
0x1622   :  { %v4330_v53 = vpop.xlane.xlu0 %4329 }
0x1623   :  { %v4334_v27 = vmul.f32 %v4330_v53, %v7485_v3 }
0x1625   :  { %v4336_v37 = vadd.f32 1e-05, %v4334_v27  ;;  %v6626_v27 = vld [vmem:[%s9139_s3 + $0x38] sm:$0xff] }
0x1627   :  { %6521 = vrsqrt.f32 %v4336_v37  ;;  %vm4344_vm7 = vweird.f32 %v4336_v37 }
0x162d   :  { %v6522_v0 = vpop.eup %6521 }
0x162e   :  { %v4339_v50 = vmul.f32 %v6522_v0, %v4336_v37  ;;  %vm4345_vm6 = vweird.f32 %v6522_v0 }
0x162f   :  { %vm4346_vm4 = vmor %vm4344_vm7, %vm4345_vm6 }
0x1630   :  { %v4340_v43 = vmul.f32 %v6522_v0, %v4339_v50 }
0x1632   :  { %v4341_v45 = vmul.f32 0.5, %v4340_v43 }
0x1634   :  { %v4342_v56 = vsub.f32 1.5, %v4341_v45 }
0x1636   :  { %v4343_v30 = vmul.f32 %v6522_v0, %v4342_v56  ;;  %v6627_v56 = vld [vmem:[%s9139_s3 + $0x20] sm:$0xff] }
0x1638   :  { %v4347_v1 = vsel %vm4346_vm4, %v6522_v0, %v4343_v30 }
0x1639   :  { %v4358_v51 = vmul.f32 %v4347_v1, %v4324_v8 }
0x163b   :  { %v4361_v63 = vmul.f32 %v4360_v41, %v4358_v51 }
0x163d   :  { %v8753_v54 = vadd.f32 %v4363_v57, %v4361_v63 }
0x163f   :  { %4385 = vrot.lane.b32.xlu2 %v8753_v54, %s6665_s21  ;;  %6164 = vmatpush.xpose.msk.msrb.mxu1 %vm128_vm0, %v8753_v54  ;;  %v4403_v34 = vmul.f32 0.17677669, %v8753_v54 }
0x1642   :  { %6165 = vmatmul.msk.f32.vlgmr.msrb.gmra.mxu1 %vm128_vm0, %v4403_v34 }
0x1647   :  { %4397 = vrot.lane.b32.xlu2 %v8753_v54, %s6666_s26 }
0x1648   :  { %v4333_v18 = vpop.xlane.xlu1 %4332 }
0x1649   :  { %v4335_v19 = vmul.f32 %v4333_v18, %v7485_v3 }
0x164b   :  { %v4337_v17 = vadd.f32 1e-05, %v4335_v19 }
0x164d   :  { %6523 = vrsqrt.f32 %v4337_v17  ;;  %vm4354_vm10 = vweird.f32 %v4337_v17 }
0x1653   :  { %v6524_v9 = vpop.eup %6523 }
0x1654   :  { %v4349_v46 = vmul.f32 %v6524_v9, %v4337_v17  ;;  %vm4355_vm3 = vweird.f32 %v6524_v9 }
0x1655   :  { %vm4356_vm14 = vmor %vm4354_vm10, %vm4355_vm3 }
0x1656   :  { %v4350_v14 = vmul.f32 %v6524_v9, %v4349_v46 }
0x1658   :  { %v4351_v2 = vmul.f32 0.5, %v4350_v14 }
0x165a   :  { %v4352_v40 = vsub.f32 1.5, %v4351_v2 }
0x165c   :  { %v4353_v47 = vmul.f32 %v6524_v9, %v4352_v40 }
0x165e   :  { %v4357_v58 = vsel %vm4356_vm14, %v6524_v9, %v4353_v47  ;;  %v6629_v9 = vld [vmem:[%s9139_s3 + $0x30] sm:$0xff] }
0x165f   :  { %v4359_v4 = vmul.f32 %v4357_v58, %v4325_v21  ;;  %v6625_v21 = vld [vmem:[%s9139_s3 + $0x10] sm:$0xff]  ;;  %v6630_v58 = vld [vmem:[%s9139_s3 + $0x28] sm:$0xff] }
0x1661   :  { %v4362_v61 = vmul.f32 %v4360_v41, %v4359_v4 }
0x1663   :  { %v8764_v29 = vadd.f32 %v4363_v57, %v4362_v61  ;;  %v6628_v57 = vld [vmem:[%s9139_s3 + $0x18] sm:$0xff] }
0x1665   :  { %4387 = vrot.lane.b32.xlu0 %v8764_v29, %s6665_s21  ;;  %4393 = vrot.lane.b32.xlu2 %v8764_v29, %s6667_s27  ;;  %v4404_v33 = vmul.f32 0.17677669, %v8764_v29 }
0x1666   :  { %6166 = vmatpush.xpose.msk.msra.mxu1 %vm128_vm0, %v8764_v29 }
0x1669   :  { %6167 = vmatmul.msk.f32.vlgmr.msra.gmra.mxu1 %vm128_vm0, %v4404_v33 }
0x166d   :  { %4391 = vrot.lane.b32.xlu0 %v8753_v54, %s6667_s27  ;;  %4399 = vrot.lane.b32.xlu2 %v8764_v29, %s6666_s26 }
0x1699   :  { %v4386_v38 = vpop.permute.xlu2 %4385 }
0x169a   :  { %v4405_v7 = vmul.f32 0.17677669, %v4386_v38  ;;  %6168 = vmatpush.xpose.msk.msrb.mxu2 %vm128_vm0, %v4386_v38 }
0x169d   :  { %6169 = vmatmul.msk.f32.vlgmr.msrb.gmra.mxu2 %vm128_vm0, %v4405_v7 }
0x16a1   :  { %v4398_v25 = vpop.permute.xlu2 %4397 }
0x16a2   :  { %v4409_v49 = vmul.f32 0.17677669, %v4398_v25 }
0x16bf   :  { %v4394_v35 = vpop.permute.xlu2 %4393  ;;  %v4433_v16 = vpop.f32.mrf.mxu1 }
0x16c0   :  { %v4408_v36 = vmul.f32 0.17677669, %v4394_v35  ;;  %v8783_v55 = vadd.f32 %v6623_v48, %v4433_v16  ;;  %6174 = vmatpush.xpose.msk.msra.mxu2 %vm128_vm0, %v4394_v35 }
0x16c2   :  { %v4611_v39 = vsel %vm128_vm0, %v8783_v55, -inf }
0x16c3   :  { %6175 = vmatmul.msk.f32.vlgmr.msra.gmra.mxu2 %vm128_vm0, %v4408_v36  ;;  %4612 = vmax.xlane.f32.xlu2 %v4611_v39 }
0x16c4   :  { %4844 = vmatpush.msrb.mxu2 %v8764_v29 }
0x16c6   :  { %4936 = vmatpush.msra.mxu2 %v4394_v35 }
0x16c7   :  { %v4400_v20 = vpop.permute.xlu2 %4399 }
0x16c8   :  { %v4410_v60 = vmul.f32 0.17677669, %v4400_v20  ;;  %6178 = vmatpush.xpose.msk.msrb.mxu0 %vm128_vm0, %v4400_v20 }
0x16cb   :  { %6179 = vmatmul.msk.f32.vlgmr.msrb.gmra.mxu0 %vm128_vm0, %v4410_v60 }
0x16d7   :  { %v4388_v28 = vpop.permute.xlu0 %4387 }
0x16d8   :  { %v4406_v12 = vmul.f32 0.17677669, %v4388_v28  ;;  %6170 = vmatpush.xpose.msk.msrb.mxu3 %vm128_vm0, %v4388_v28  ;;  %4890 = vmatpush.msra.mxu0 %v4388_v28 }
0x16da   :  { %4982 = vmatpush.msrb.mxu0 %v4400_v20 }
0x16db   :  { %6171 = vmatmul.msk.f32.vlgmr.msrb.gmra.mxu3 %vm128_vm0, %v4406_v12 }
0x16dc   :  { %6176 = vmatpush.xpose.msk.msra.mxu3 %vm128_vm0, %v4398_v25 }
0x16df   :  { %v4392_v5 = vpop.permute.xlu0 %4391 }
0x16e0   :  { %4867 = vmatpush.msrb.mxu3 %v4386_v38  ;;  %v4407_v31 = vmul.f32 0.17677669, %v4392_v5  ;;  %6172 = vmatpush.xpose.msk.msrb.mxu1 %vm128_vm0, %v4392_v5 }
0x16e3   :  { %6173 = vmatmul.msk.f32.vlgmr.msrb.gmra.mxu1 %vm128_vm0, %v4407_v31  ;;  %6177 = vmatmul.msk.f32.vlgmr.msra.gmra.mxu3 %vm128_vm0, %v4409_v49 }
0x16e4   :  { %4821 = vmatpush.msra.mxu1 %v8753_v54  ;;  %4959 = vmatpush.msra.mxu3 %v4398_v25 }
0x16e6   :  { %4913 = vmatpush.msrb.mxu1 %v4392_v5  ;;  %v4458_v8 = vpop.f32.mrf.mxu1 }
0x16e7   :  { %v4459_v32 = vadd.f32 %v6624_v6, %v4458_v8 }
0x16e9   :  { %v4614_v52 = vsel %vm128_vm0, %v4459_v32, -inf }
0x16ea   :  { %4615 = vmax.xlane.f32.xlu1 %v4614_v52 }
0x1720   :  { %v4483_v26 = vpop.f32.mrf.mxu2 }
0x1721   :  { %v4484_v24 = vadd.f32 %v6625_v21, %v4483_v26 }
0x1723   :  { %v4617_v15 = vsel %vm128_vm0, %v4484_v24, -inf }
0x1724   :  { %4618 = vmax.xlane.f32.xlu0 %v4617_v15 }
0x1736   :  { %v4613_v17 = vpop.xlane.xlu2 %4612 }
0x1737   :  { %v4635_v14 = vsub.f32 %v8783_v55, %v4613_v17 }
0x1739   :  { %v4643_v47 = vmul.f32 1.442695, %v4635_v14 }
0x1746   :  { %v4558_v40 = vpop.f32.mrf.mxu2 }
0x1747   :  { %v4559_v4 = vadd.f32 %v6630_v58, %v4558_v40 }
0x1748   :  { %v4608_v53 = vpop.f32.mrf.mxu0 }
0x1749   :  { %v4609_v37 = vadd.f32 %v6626_v27, %v4608_v53  ;;  %v4626_v61 = vsel %vm128_vm0, %v4559_v4, -inf }
0x174b   :  { %v4632_v0 = vsel %vm128_vm0, %v4609_v37, -inf }
0x174c   :  { %4633 = vmax.xlane.f32.xlu0 %v4632_v0 }
0x175d   :  { %v4616_v50 = vpop.xlane.xlu1 %4615 }
0x175e   :  { %v4636_v43 = vsub.f32 %v4459_v32, %v4616_v50  ;;  %v4508_v41 = vpop.f32.mrf.mxu3 }
0x175f   :  { %v4509_v51 = vadd.f32 %v6628_v57, %v4508_v41 }
0x1760   :  { %v4645_v45 = vmul.f32 1.442695, %v4636_v43  ;;  %v4533_v23 = vpop.f32.mrf.mxu1 }
0x1761   :  { %v4534_v30 = vadd.f32 %v6627_v56, %v4533_v23  ;;  %v4620_v18 = vsel %vm128_vm0, %v4509_v51, -inf }
0x1762   :  { %6525 = vpow2.f32 %v4645_v45 }
0x1763   :  { %v4623_v1 = vsel %vm128_vm0, %v4534_v30, -inf  ;;  %6527 = vpow2.f32 %v4643_v47 }
0x1764   :  { %4624 = vmax.xlane.f32.xlu1 %v4623_v1 }
0x1766   :  { %v4583_v19 = vpop.f32.mrf.mxu3 }
0x1767   :  { %v4584_v46 = vadd.f32 %v6629_v9, %v4583_v19 }
0x1768   :  { %v8818_v63 = vpop.eup %6525 }
0x1769   :  { %v4662_v34 = vsel %vm128_vm0, %v8818_v63, 0.0  ;;  %v4629_v2 = vsel %vm128_vm0, %v4584_v46, -inf  ;;  %v8832_v33 = vpop.eup %6527 }
0x176a   :  { %4663 = vadd.xlane.f32.xlu0 %v4662_v34  ;;  %v4659_v38 = vsel %vm128_vm0, %v8832_v33, 0.0 }
0x176c   :  { %4621 = vmax.xlane.f32.xlu1 %v4620_v18 }
0x1774   :  { %4630 = vmax.xlane.f32.xlu1 %v4629_v2 }
0x177c   :  { %4627 = vmax.xlane.f32.xlu1 %v4626_v61 }
0x1784   :  { %4660 = vadd.xlane.f32.xlu1 %v4659_v38 }
0x1797   :  { %v4619_v7 = vpop.xlane.xlu0 %4618 }
0x1798   :  { %v4637_v25 = vsub.f32 %v4484_v24, %v4619_v7 }
0x179a   :  { %v4647_v35 = vmul.f32 1.442695, %v4637_v25 }
0x179c   :  { %6529 = vpow2.f32 %v4647_v35 }
0x17a2   :  { %v8836_v16 = vpop.eup %6529 }
0x17a3   :  { %v4665_v36 = vsel %vm128_vm0, %v8836_v16, 0.0 }
0x17a4   :  { %4666 = vadd.xlane.f32.xlu2 %v4665_v36 }
0x17bf   :  { %v4634_v48 = vpop.xlane.xlu0 %4633 }
0x17c0   :  { %v4642_v20 = vsub.f32 %v4609_v37, %v4634_v48 }
0x17c2   :  { %v4657_v12 = vmul.f32 1.442695, %v4642_v20 }
0x17d7   :  { %v4625_v55 = vpop.xlane.xlu1 %4624 }
0x17d8   :  { %v4639_v39 = vsub.f32 %v4534_v30, %v4625_v55 }
0x17da   :  { %v4651_v60 = vmul.f32 1.442695, %v4639_v39 }
0x17dc   :  { %6531 = vpow2.f32 %v4651_v60 }
0x17dd   :  { %v4664_v28 = vpop.xlane.xlu0 %4663 }
0x17de   :  { %6533 = vrcp.f32 %v4664_v28  ;;  %v4709_v15 = vand.u32 2147483648, %v4664_v28  ;;  %v4707_v37 = vand.u32 2147483647, %v4664_v28  ;;  %vm4703_vm15 = vweird.f32 %v4664_v28 }
0x17df   :  { %v4622_v5 = vpop.xlane.xlu1 %4621  ;;  %6535 = vpow2.f32 %v4657_v12 }
0x17e0   :  { %v4638_v31 = vsub.f32 %v4509_v51, %v4622_v5  ;;  %v4710_v56 = vor.u32 1.1754944e-38, %v4709_v15  ;;  %vm4708_vm13 = vcmp.eq.f32.partialorder %v4707_v37, 8.507059e+37 }
0x17e2   :  { %v8840_v49 = vpop.eup %6531  ;;  %v4649_v8 = vmul.f32 1.442695, %v4638_v31 }
0x17e3   :  { %v4671_v6 = vsel %vm128_vm0, %v8840_v49, 0.0 }
0x17e4   :  { %v6534_v32 = vpop.eup %6533  ;;  %6537 = vpow2.f32 %v4649_v8  ;;  %4672 = vadd.xlane.f32.xlu1 %v4671_v6  ;;  %v6153_v8 = vld [vmem:[%s9144_s8 + $0x38] sm:$0xff]  ;;  %v6152_v6 = vld [vmem:[%s9144_s8 + $0x30] sm:$0xff] }
0x17e5   :  { %v4699_v52 = vmul.f32 %v6534_v32, %v4664_v28  ;;  %v8844_v24 = vpop.eup %6535  ;;  %vm4704_vm12 = vweird.f32 %v6534_v32 }
0x17e6   :  { %v4680_v23 = vsel %vm128_vm0, %v8844_v24, 0.0  ;;  %vm4705_vm2 = vmor %vm4703_vm15, %vm4704_vm12 }
0x17e7   :  { %v4700_v26 = vsub.f32 1.0, %v4699_v52  ;;  %v4631_v21 = vpop.xlane.xlu1 %4630 }
0x17e8   :  { %v4641_v53 = vsub.f32 %v4584_v46, %v4631_v21 }
0x17e9   :  { %v4701_v27 = vmul.f32 %v6534_v32, %v4700_v26  ;;  %v6150_v26 = vld [vmem:[%s9144_s8 + $0x20] sm:$0xff] }
0x17ea   :  { %v8846_v0 = vpop.eup %6537  ;;  %v4655_v50 = vmul.f32 1.442695, %v4641_v53 }
0x17eb   :  { %v4702_v43 = vadd.f32 %v6534_v32, %v4701_v27  ;;  %v4668_v45 = vsel %vm128_vm0, %v8846_v0, 0.0 }
0x17ec   :  { %6539 = vpow2.f32 %v4655_v50  ;;  %4669 = vadd.xlane.f32.xlu0 %v4668_v45  ;;  %4681 = vadd.xlane.f32.xlu1 %v4680_v23 }
0x17ed   :  { %v4706_v30 = vsel %vm4705_vm2, %v6534_v32, %v4702_v43  ;;  %v8876_v32 = vpack.i.bf16 %v6152_v6, %v6153_v8 }
0x17ee   :  { %v4711_v41 = vsel %vm4708_vm13, %v4710_v56, %v4706_v30 }
0x17ef   :  { %v4712_v1 = vmul.f32 %v8818_v63, %v4711_v41  ;;  %v4628_v57 = vpop.xlane.xlu1 %4627 }
0x17f0   :  { %v4640_v51 = vsub.f32 %v4559_v4, %v4628_v57 }
0x17f1   :  { %6181 = vmatmul.msk.f32.vlgmr.msrb.gmra.mxu2 %vm128_vm0, %v4712_v1 }
0x17f2   :  { %v8854_v34 = vpop.eup %6539  ;;  %v4653_v18 = vmul.f32 1.442695, %v4640_v51  ;;  %6190 = vmatpush.xpose.msk.msrb.mxu2 %vm128_vm0, %v8507_v22 }
0x17f3   :  { %v4677_v19 = vsel %vm128_vm0, %v8854_v34, 0.0 }
0x17f4   :  { %6541 = vpow2.f32 %v4653_v18  ;;  %4678 = vadd.xlane.f32.xlu2 %v4677_v19 }
0x17f7   :  { %v4661_v17 = vpop.xlane.xlu1 %4660 }
0x17f8   :  { %6543 = vrcp.f32 %v4661_v17  ;;  %v4694_v40 = vand.u32 2147483648, %v4661_v17  ;;  %v4692_v58 = vand.u32 2147483647, %v4661_v17  ;;  %vm4688_vm6 = vweird.f32 %v4661_v17 }
0x17fa   :  { %v8860_v9 = vpop.eup %6541  ;;  %v4695_v61 = vor.u32 1.1754944e-38, %v4694_v40  ;;  %vm4693_vm4 = vcmp.eq.f32.partialorder %v4692_v58, 8.507059e+37 }
0x17fb   :  { %v4674_v63 = vsel %vm128_vm0, %v8860_v9, 0.0 }
0x17fc   :  { %4675 = vadd.xlane.f32.xlu2 %v4674_v63 }
0x17fe   :  { %v6544_v46 = vpop.eup %6543 }
0x17ff   :  { %v4684_v14 = vmul.f32 %v6544_v46, %v4661_v17  ;;  %vm4689_vm5 = vweird.f32 %v6544_v46 }
0x1800   :  { %vm4690_vm7 = vmor %vm4688_vm6, %vm4689_vm5 }
0x1801   :  { %v4685_v2 = vsub.f32 1.0, %v4684_v14 }
0x1803   :  { %v4686_v47 = vmul.f32 %v6544_v46, %v4685_v2 }
0x1805   :  { %v4687_v4 = vadd.f32 %v6544_v46, %v4686_v47 }
0x1807   :  { %v4691_v38 = vsel %vm4690_vm7, %v6544_v46, %v4687_v4 }
0x1808   :  { %v4696_v7 = vsel %vm4693_vm4, %v4695_v61, %v4691_v38 }
0x1809   :  { %v4697_v25 = vmul.f32 %v8832_v33, %v4696_v7 }
0x180b   :  { %6180 = vmatmul.msk.f32.vlgmr.msra.gmra.mxu1 %vm128_vm0, %v4697_v25 }
0x180c   :  { %5036 = vmatpush.msra.mxu1 %v6153_v8 }
0x180e   :  { %5037 = vmatpush.msra.mxu1 %v6152_v6 }
0x1817   :  { %v4667_v35 = vpop.xlane.xlu2 %4666 }
0x1818   :  { %6545 = vrcp.f32 %v4667_v35  ;;  %v4724_v39 = vand.u32 2147483648, %v4667_v35  ;;  %v4722_v60 = vand.u32 2147483647, %v4667_v35  ;;  %vm4718_vm10 = vweird.f32 %v4667_v35 }
0x181a   :  { %v4725_v12 = vor.u32 1.1754944e-38, %v4724_v39  ;;  %vm4723_vm12 = vcmp.eq.f32.partialorder %v4722_v60, 8.507059e+37 }
0x181e   :  { %v6546_v36 = vpop.eup %6545 }
0x181f   :  { %v4714_v48 = vmul.f32 %v6546_v36, %v4667_v35  ;;  %vm4719_vm3 = vweird.f32 %v6546_v36 }
0x1820   :  { %vm4720_vm14 = vmor %vm4718_vm10, %vm4719_vm3 }
0x1821   :  { %v4715_v55 = vsub.f32 1.0, %v4714_v48 }
0x1823   :  { %v4716_v20 = vmul.f32 %v6546_v36, %v4715_v55 }
0x1825   :  { %v4717_v28 = vadd.f32 %v6546_v36, %v4716_v20 }
0x1827   :  { %v4721_v5 = vsel %vm4720_vm14, %v6546_v36, %v4717_v28 }
0x1828   :  { %v4726_v31 = vsel %vm4723_vm12, %v4725_v12, %v4721_v5 }
0x1829   :  { %v4727_v33 = vmul.f32 %v8836_v16, %v4726_v31  ;;  %v6151_v16 = vld [vmem:[%s9144_s8 + $0x28] sm:$0xff] }
0x182a   :  { %5038 = vmatpush.msra.mxu1 %v6151_v16  ;;  %v8884_v21 = vpack.i.bf16 %v6150_v26, %v6151_v16 }
0x182b   :  { %6182 = vmatmul.msk.f32.vlgmr.msrb.gmra.mxu3 %vm128_vm0, %v4727_v33 }
0x182c   :  { %6192 = vmatpush.xpose.msk.msrb.mxu3 %vm128_vm0, %v8521_v11  ;;  %5039 = vmatpush.msra.mxu1 %v6150_v26 }
0x1857   :  { %v4673_v52 = vpop.xlane.xlu1 %4672 }
0x1858   :  { %6547 = vrcp.f32 %v4673_v52  ;;  %v4754_v43 = vand.u32 2147483648, %v4673_v52  ;;  %v4752_v23 = vand.u32 2147483647, %v4673_v52  ;;  %vm4748_vm2 = vweird.f32 %v4673_v52 }
0x185a   :  { %v4755_v41 = vor.u32 1.1754944e-38, %v4754_v43  ;;  %vm4753_vm5 = vcmp.eq.f32.partialorder %v4752_v23, 8.507059e+37 }
0x185e   :  { %v6548_v15 = vpop.eup %6547 }
0x185f   :  { %v4744_v53 = vmul.f32 %v6548_v15, %v4673_v52  ;;  %v4682_v27 = vpop.xlane.xlu1 %4681  ;;  %v4670_v37 = vpop.xlane.xlu0 %4669  ;;  %vm4749_vm15 = vweird.f32 %v6548_v15 }
0x1860   :  { %6549 = vrcp.f32 %v4682_v27  ;;  %vm4750_vm13 = vmor %vm4748_vm2, %vm4749_vm15  ;;  %v4737_v2 = vand.u32 2147483647, %v4670_v37  ;;  %v4739_v40 = vand.u32 2147483648, %v4670_v37  ;;  %vm4733_vm7 = vweird.f32 %v4670_v37 }
0x1861   :  { %v4745_v50 = vsub.f32 1.0, %v4744_v53  ;;  %6551 = vrcp.f32 %v4670_v37  ;;  %v4799_v36 = vand.u32 2147483648, %v4682_v27  ;;  %vm4793_vm14 = vweird.f32 %v4682_v27 }
0x1862   :  { %vm4738_vm3 = vcmp.eq.f32.partialorder %v4737_v2, 8.507059e+37  ;;  %v4740_v38 = vor.u32 1.1754944e-38, %v4739_v40  ;;  %v4797_v39 = vand.u32 2147483647, %v4682_v27 }
0x1863   :  { %v4746_v45 = vmul.f32 %v6548_v15, %v4745_v50  ;;  %v4800_v31 = vor.u32 1.1754944e-38, %v4799_v36 }
0x1865   :  { %v4747_v56 = vadd.f32 %v6548_v15, %v4746_v45 }
0x1866   :  { %v6550_v30 = vpop.eup %6549 }
0x1867   :  { %v6552_v1 = vpop.eup %6551  ;;  %v4751_v57 = vsel %vm4750_vm13, %v6548_v15, %v4747_v56  ;;  %v4789_v51 = vmul.f32 %v6550_v30, %v4682_v27  ;;  %v4679_v18 = vpop.xlane.xlu2 %4678  ;;  %vm4794_vm10 = vweird.f32 %v6550_v30  ;;  %vm4798_vm13 = vcmp.eq.f32.partialorder %v4797_v39, 8.507059e+37 }
0x1868   :  { %v4756_v19 = vsel %vm4753_vm5, %v4755_v41, %v4751_v57  ;;  %v4729_v17 = vmul.f32 %v6552_v1, %v4670_v37  ;;  %6553 = vrcp.f32 %v4679_v18  ;;  %vm4734_vm6 = vweird.f32 %v6552_v1  ;;  %vm4795_vm12 = vmor %vm4793_vm14, %vm4794_vm10 }
0x1869   :  { %v4757_v63 = vmul.f32 %v8840_v49, %v4756_v19  ;;  %v4790_v46 = vsub.f32 1.0, %v4789_v51  ;;  %vm4735_vm4 = vmor %vm4733_vm7, %vm4734_vm6  ;;  %v4784_v60 = vand.u32 2147483648, %v4679_v18  ;;  %v4782_v12 = vand.u32 2147483647, %v4679_v18 }
0x186a   :  { %v4730_v14 = vsub.f32 1.0, %v4729_v17  ;;  %vm4778_vm2 = vweird.f32 %v4679_v18 }
0x186b   :  { %6184 = vmatmul.msk.f32.vlgmr.msrb.gmra.mxu1 %vm128_vm0, %v4757_v63  ;;  %v4791_v47 = vmul.f32 %v6550_v30, %v4790_v46  ;;  %v4785_v6 = vor.u32 1.1754944e-38, %v4784_v60  ;;  %vm4783_vm6 = vcmp.eq.f32.partialorder %v4782_v12, 8.507059e+37 }
0x186c   :  { %v4731_v58 = vmul.f32 %v6552_v1, %v4730_v14  ;;  %6202 = vmatpush.xpose.msk.msrb.mxu1 %vm128_vm0, %v8583_v13 }
0x186d   :  { %v4792_v25 = vadd.f32 %v6550_v30, %v4791_v47 }
0x186e   :  { %v6554_v4 = vpop.eup %6553  ;;  %v4732_v61 = vadd.f32 %v6552_v1, %v4731_v58 }
0x186f   :  { %v4774_v7 = vmul.f32 %v6554_v4, %v4679_v18  ;;  %v4676_v49 = vpop.xlane.xlu2 %4675  ;;  %vm4779_vm15 = vweird.f32 %v6554_v4  ;;  %v4796_v5 = vsel %vm4795_vm12, %v6550_v30, %v4792_v25 }
0x1870   :  { %v4736_v35 = vsel %vm4735_vm4, %v6552_v1, %v4732_v61  ;;  %6555 = vrcp.f32 %v4676_v49  ;;  %vm4780_vm5 = vmor %vm4778_vm2, %vm4779_vm15  ;;  %v4801_v52 = vsel %vm4798_vm13, %v4800_v31, %v4796_v5  ;;  %v4769_v37 = vand.u32 2147483648, %v4676_v49 }
0x1871   :  { %v4741_v48 = vsel %vm4738_vm3, %v4740_v38, %v4736_v35  ;;  %v4775_v55 = vsub.f32 1.0, %v4774_v7  ;;  %v4802_v27 = vmul.f32 %v8844_v24, %v4801_v52  ;;  %v4767_v43 = vand.u32 2147483647, %v4676_v49 }
0x1872   :  { %v4742_v20 = vmul.f32 %v8846_v0, %v4741_v48  ;;  %vm4763_vm4 = vweird.f32 %v4676_v49 }
0x1873   :  { %v4776_v28 = vmul.f32 %v6554_v4, %v4775_v55  ;;  %vm4768_vm10 = vcmp.eq.f32.partialorder %v4767_v43, 8.507059e+37 }
0x1874   :  { %6183 = vmatmul.msk.f32.vlgmr.msra.gmra.mxu0 %vm128_vm0, %v4742_v20  ;;  %v4846_v18 = vpop.f32.mrf.mxu2 }
0x1875   :  { %v4777_v33 = vadd.f32 %v6554_v4, %v4776_v28  ;;  %6194 = vmatpush.xpose.msk.msra.mxu0 %vm128_vm0, %v8526_v10 }
0x1876   :  { %v6556_v8 = vpop.eup %6555 }
0x1877   :  { %v4781_v0 = vsel %vm4780_vm5, %v6554_v4, %v4777_v33  ;;  %v4759_v16 = vmul.f32 %v6556_v8, %v4676_v49  ;;  %vm4764_vm7 = vweird.f32 %v6556_v8  ;;  %v8924_v49 = vld [vmem:[%s9146_s10 + $0x10] sm:$0xff] }
0x1878   :  { %v4786_v26 = vsel %vm4783_vm6, %v4785_v6, %v4781_v0  ;;  %vm4765_vm3 = vmor %vm4763_vm4, %vm4764_vm7  ;;  %v5017_v25 = vperm.slane %v8924_v49, 0 }
0x1879   :  { %v4787_v15 = vmul.f32 %v8854_v34, %v4786_v26  ;;  %v4760_v53 = vsub.f32 1.0, %v4759_v16  ;;  %v4770_v34 = vor.u32 1.1754944e-38, %v4769_v37 }
0x187b   :  { %v4761_v50 = vmul.f32 %v6556_v8, %v4760_v53  ;;  %6186 = vmatmul.msk.f32.vlgmr.msra.gmra.mxu3 %vm128_vm0, %v4787_v15 }
0x187c   :  { %6187 = vmatmul.msk.f32.vlgmr.msrb.gmra.mxu0 %vm128_vm0, %v4802_v27  ;;  %6198 = vmatpush.xpose.msk.msra.mxu3 %vm128_vm0, %v8535_v59 }
0x187d   :  { %v4762_v45 = vadd.f32 %v6556_v8, %v4761_v50  ;;  %6200 = vmatpush.xpose.msk.msrb.mxu0 %vm128_vm0, %v8575_v42 }
0x187f   :  { %v4766_v23 = vsel %vm4765_vm3, %v6556_v8, %v4762_v45 }
0x1880   :  { %v4771_v24 = vsel %vm4768_vm10, %v4770_v34, %v4766_v23 }
0x1881   :  { %v4772_v56 = vmul.f32 %v8860_v9, %v4771_v24 }
0x1883   :  { %6185 = vmatmul.msk.f32.vlgmr.msra.gmra.mxu2 %vm128_vm0, %v4772_v56 }
0x1884   :  { %6196 = vmatpush.xpose.msk.msra.mxu2 %vm128_vm0, %v8570_v62 }
0x1888   :  { %v4823_v41 = vpop.f32.mrf.mxu1 }
0x18ae   :  { %v4869_v30 = vpop.f32.mrf.mxu3 }
0x18af   :  { %4989 = vrot.lane.b32.xlu0 %v4869_v30, %s6668_s28  ;;  %v5093_v30 = vperm.slane %v8924_v49, 1 }
0x18e8   :  { %v4915_v1 = vpop.f32.mrf.mxu1 }
0x18e9   :  { %4997 = vrot.lane.b32.xlu2 %v4915_v1, %s6669_s29 }
0x18f1   :  { %v4892_v57 = vpop.f32.mrf.mxu0 }
0x18f2   :  { %4991 = vrot.lane.b32.xlu0 %v4892_v57, %s6668_s28 }
0x18f9   :  { %v4984_v51 = vpop.f32.mrf.mxu0 }
0x18fa   :  { %5007 = vrot.lane.b32.xlu0 %v4984_v51, %s6670_s30  ;;  %v5096_v51 = vperm.slane %v8924_v49, 2 }
0x18fe   :  { %v4961_v9 = vpop.f32.mrf.mxu3 }
0x18ff   :  { %5005 = vrot.lane.b32.xlu1 %v4961_v9, %s6670_s30 }
0x1906   :  { %v4938_v19 = vpop.f32.mrf.mxu2 }
0x1907   :  { %4999 = vrot.lane.b32.xlu2 %v4938_v19, %s6669_s29 }
0x1921   :  { %v4990_v17 = vpop.permute.xlu0 %4989 }
0x1922   :  { %v5011_v14 = vsel %vm128_vm0, %v4823_v41, %v4990_v17 }
0x1943   :  { %v4998_v46 = vpop.permute.xlu2 %4997 }
0x1944   :  { %v5013_v2 = vsel %vm393_vm1, %v5011_v14, %v4998_v46 }
0x1961   :  { %v5000_v61 = vpop.permute.xlu2 %4999 }
0x1964   :  { %v4992_v63 = vpop.permute.xlu0 %4991 }
0x1965   :  { %v5012_v58 = vsel %vm128_vm0, %v4846_v18, %v4992_v63 }
0x1966   :  { %v5014_v38 = vsel %vm393_vm1, %v5012_v58, %v5000_v61 }
0x196c   :  { %v5008_v4 = vpop.permute.xlu0 %5007 }
0x196d   :  { %v5016_v7 = vsel %vm1066_vm8, %v5014_v38, %v5008_v4 }
0x1971   :  { %v5006_v40 = vpop.permute.xlu1 %5005 }
0x1972   :  { %v5015_v47 = vsel %vm1066_vm8, %v5013_v2, %v5006_v40 }
0x1973   :  { %6188 = vmatmul.msk.f32.vlgmr.msra.gmra.mxu1 %vm1072_vm9, %v5015_v47 }
0x1974   :  { %5567 = vmatpush.msra.mxu1 %v8526_v10 }
0x197b   :  { %6189 = vmatmul.msk.f32.gmra.mxu1 %vm1072_vm9, %v5016_v7 }
0x19f0   :  { %v5041_v35 = vpop.f32.mrf.mxu1 }
0x19f1   :  { %v5042_v36 = vadd.f32 %v5041_v35, %v5017_v25 }
0x19f3   :  { %v5047_v10 = vadd.f32 %v5042_v36, %v8753_v54 }
0x19f5   :  { %v5049_v48 = vsel %vm1072_vm9, %v5047_v10, 0.0 }
0x19f6   :  { %5050 = vadd.xlane.f32.xlu1 %v5049_v48 }
0x19f8   :  { %v5044_v55 = vpop.f32.mrf.mxu1 }
0x19f9   :  { %v5045_v39 = vadd.f32 %v5044_v55, %v5017_v25 }
0x19fb   :  { %v5048_v20 = vadd.f32 %v5045_v39, %v8764_v29 }
0x19fd   :  { %v5052_v60 = vsel %vm1072_vm9, %v5048_v20, 0.0 }
0x19fe   :  { %5053 = vadd.xlane.f32.xlu2 %v5052_v60 }
0x1a69   :  { %v5051_v28 = vpop.xlane.xlu1 %5050 }
0x1a6a   :  { %v5055_v12 = vmul.f32 %v5051_v28, %v7485_v3 }
0x1a6c   :  { %v5057_v5 = vsub.f32 %v5047_v10, %v5055_v12 }
0x1a6e   :  { %v5059_v31 = vmul.f32 %v5057_v5, %v5057_v5 }
0x1a70   :  { %v5061_v33 = vsel %vm1072_vm9, %v5059_v31, 0.0 }
0x1a71   :  { %5062 = vadd.xlane.f32.xlu0 %v5061_v33  ;;  %v5054_v8 = vpop.xlane.xlu2 %5053 }
0x1a72   :  { %v5056_v54 = vmul.f32 %v5054_v8, %v7485_v3  ;;  %v6634_v8 = vld [vmem:[%s9140_s4 + $0x30] sm:$0xff] }
0x1a74   :  { %v5058_v6 = vsub.f32 %v5048_v20, %v5056_v54 }
0x1a76   :  { %v5060_v52 = vmul.f32 %v5058_v6, %v5058_v6 }
0x1a78   :  { %v5064_v0 = vsel %vm1072_vm9, %v5060_v52, 0.0 }
0x1a79   :  { %5065 = vadd.xlane.f32.xlu1 %v5064_v0  ;;  %v6635_v0 = vld [vmem:[%s9140_s4 + $0x10] sm:$0xff] }
0x1ae4   :  { %v5063_v29 = vpop.xlane.xlu0 %5062 }
0x1ae5   :  { %v5067_v16 = vmul.f32 %v5063_v29, %v7485_v3 }
0x1ae7   :  { %v5069_v26 = vadd.f32 1e-05, %v5067_v16 }
0x1ae9   :  { %6557 = vrsqrt.f32 %v5069_v26  ;;  %vm5077_vm12 = vweird.f32 %v5069_v26 }
0x1aec   :  { %v5066_v15 = vpop.xlane.xlu1 %5065 }
0x1aed   :  { %v5068_v53 = vmul.f32 %v5066_v15, %v7485_v3  ;;  %v6636_v15 = vld [vmem:[%s9140_s4 + $0x28] sm:$0xff] }
0x1aef   :  { %v6558_v27 = vpop.eup %6557  ;;  %v5070_v37 = vadd.f32 1e-05, %v5068_v53 }
0x1af0   :  { %v5072_v50 = vmul.f32 %v6558_v27, %v5069_v26  ;;  %vm5078_vm14 = vweird.f32 %v6558_v27 }
0x1af1   :  { %6559 = vrsqrt.f32 %v5070_v37  ;;  %vm5079_vm15 = vmor %vm5077_vm12, %vm5078_vm14  ;;  %vm5087_vm13 = vweird.f32 %v5070_v37 }
0x1af2   :  { %v5073_v43 = vmul.f32 %v6558_v27, %v5072_v50 }
0x1af4   :  { %v5074_v45 = vmul.f32 0.5, %v5073_v43 }
0x1af6   :  { %v5075_v34 = vsub.f32 1.5, %v5074_v45 }
0x1af7   :  { %v6560_v23 = vpop.eup %6559 }
0x1af8   :  { %v5076_v24 = vmul.f32 %v6558_v27, %v5075_v34  ;;  %v5082_v56 = vmul.f32 %v6560_v23, %v5070_v37  ;;  %vm5088_vm2 = vweird.f32 %v6560_v23  ;;  %v6637_v34 = vld [vmem:[%s9140_s4 + $0x18] sm:$0xff] }
0x1af9   :  { %vm5089_vm5 = vmor %vm5087_vm13, %vm5088_vm2 }
0x1afa   :  { %v5080_v41 = vsel %vm5079_vm15, %v6558_v27, %v5076_v24  ;;  %v5083_v1 = vmul.f32 %v6560_v23, %v5082_v56 }
0x1afb   :  { %v5091_v57 = vmul.f32 %v5080_v41, %v5057_v5  ;;  %v6633_v5 = vld [vmem:[%s9140_s4 + $0x20] sm:$0xff] }
0x1afc   :  { %v5084_v18 = vmul.f32 0.5, %v5083_v1  ;;  %v6638_v1 = vld [vmem:[%s9140_s4 + $0x38] sm:$0xff] }
0x1afd   :  { %v5094_v9 = vmul.f32 %v5093_v30, %v5091_v57 }
0x1afe   :  { %v5085_v19 = vsub.f32 1.5, %v5084_v18 }
0x1aff   :  { %v8939_v17 = vadd.f32 %v5096_v51, %v5094_v9 }
0x1b00   :  { %v5086_v63 = vmul.f32 %v6560_v23, %v5085_v19 }
0x1b01   :  { %5101 = vrot.lane.b32.xlu1 %v8939_v17, %s6665_s21  ;;  %5107 = vrot.lane.b32.xlu2 %v8939_v17, %s6667_s27  ;;  %v5119_v46 = vmul.f32 0.17677669, %v8939_v17 }
0x1b02   :  { %v5090_v14 = vsel %vm5089_vm5, %v6560_v23, %v5086_v63 }
0x1b03   :  { %v5092_v2 = vmul.f32 %v5090_v14, %v5058_v6  ;;  %6191 = vmatmul.msk.f32.vlgmr.msrb.gmra.mxu2 %vm128_vm0, %v5119_v46 }
0x1b04   :  { %6204 = vmatpush.xpose.msk.msrb.mxu2 %vm128_vm0, %v8591_v44 }
0x1b05   :  { %v5095_v40 = vmul.f32 %v5093_v30, %v5092_v2 }
0x1b07   :  { %v8949_v47 = vadd.f32 %v5096_v51, %v5095_v40 }
0x1b09   :  { %5103 = vrot.lane.b32.xlu0 %v8949_v47, %s6665_s21  ;;  %5109 = vrot.lane.b32.xlu1 %v8949_v47, %s6667_s27  ;;  %v5120_v58 = vmul.f32 0.17677669, %v8949_v47 }
0x1b0a   :  { %5113 = vrot.lane.b32.xlu2 %v8939_v17, %s6666_s26 }
0x1b0b   :  { %6193 = vmatmul.msk.f32.vlgmr.msrb.gmra.mxu3 %vm128_vm0, %v5120_v58 }
0x1b0c   :  { %5521 = vmatpush.msrb.mxu3 %v8507_v22 }
0x1b11   :  { %5115 = vrot.lane.b32.xlu0 %v8949_v47, %s6666_s26 }
0x1b5b   :  { %v5108_v4 = vpop.permute.xlu2 %5107 }
0x1b5c   :  { %v5123_v61 = vmul.f32 0.17677669, %v5108_v4 }
0x1b5e   :  { %6199 = vmatmul.msk.f32.vlgmr.msra.gmra.mxu3 %vm128_vm0, %v5123_v61 }
0x1b5f   :  { %5613 = vmatpush.msra.mxu3 %v8535_v59 }
0x1b64   :  { %v5114_v38 = vpop.permute.xlu2 %5113 }
0x1b65   :  { %v5125_v7 = vmul.f32 0.17677669, %v5114_v38 }
0x1b67   :  { %6203 = vmatmul.msk.f32.vlgmr.msrb.gmra.mxu1 %vm128_vm0, %v5125_v7 }
0x1b68   :  { %5659 = vmatpush.msrb.mxu1 %v8583_v13 }
0x1b73   :  { %v5102_v25 = vpop.permute.xlu1 %5101 }
0x1b74   :  { %v5121_v35 = vmul.f32 0.17677669, %v5102_v25 }
0x1b76   :  { %6195 = vmatmul.msk.f32.vlgmr.msra.gmra.mxu0 %vm128_vm0, %v5121_v35 }
0x1b77   :  { %5544 = vmatpush.msra.mxu0 %v8521_v11  ;;  %v6631_v11 = vld [vmem:[%s9140_s4] sm:$0xff] }
0x1b7b   :  { %v5110_v22 = vpop.permute.xlu1 %5109  ;;  %v5104_v36 = vpop.permute.xlu0 %5103 }
0x1b7c   :  { %v5124_v10 = vmul.f32 0.17677669, %v5110_v22  ;;  %v5122_v48 = vmul.f32 0.17677669, %v5104_v36 }
0x1b7e   :  { %6197 = vmatmul.msk.f32.vlgmr.msra.gmra.mxu2 %vm128_vm0, %v5122_v48  ;;  %6201 = vmatmul.msk.f32.vlgmr.msrb.gmra.mxu0 %vm128_vm0, %v5124_v10 }
0x1b7f   :  { %5590 = vmatpush.msra.mxu2 %v8570_v62  ;;  %5636 = vmatpush.msrb.mxu0 %v8575_v42  ;;  %v6632_v62 = vld [vmem:[%s9140_s4 + $0x8] sm:$0xff] }
0x1b83   :  { %v5116_v59 = vpop.permute.xlu0 %5115 }
0x1b84   :  { %v5126_v13 = vmul.f32 0.17677669, %v5116_v59 }
0x1b86   :  { %v5147_v55 = vpop.f32.mrf.mxu2  ;;  %6205 = vmatmul.msk.f32.vlgmr.msrb.gmra.mxu2 %vm128_vm0, %v5126_v13 }
0x1b87   :  { %v5148_v39 = vadd.f32 %v6631_v11, %v5147_v55  ;;  %5682 = vmatpush.msrb.mxu2 %v8591_v44 }
0x1b89   :  { %v5311_v20 = vsel %vm128_vm0, %v5148_v39, -inf }
0x1b8a   :  { %5312 = vmax.xlane.f32.xlu0 %v5311_v20 }
0x1b8e   :  { %v5170_v60 = vpop.f32.mrf.mxu3 }
0x1b8f   :  { %v5171_v42 = vadd.f32 %v6632_v62, %v5170_v60 }
0x1b91   :  { %v5314_v28 = vsel %vm128_vm0, %v5171_v42, -inf }
0x1b92   :  { %5315 = vmax.xlane.f32.xlu0 %v5314_v28 }
0x1be1   :  { %v5239_v12 = vpop.f32.mrf.mxu3 }
0x1be2   :  { %v5240_v31 = vadd.f32 %v6633_v5, %v5239_v12 }
0x1be4   :  { %v5323_v44 = vsel %vm128_vm0, %v5240_v31, -inf  ;;  %v5285_v33 = vpop.f32.mrf.mxu1 }
0x1be5   :  { %5324 = vmax.xlane.f32.xlu1 %v5323_v44  ;;  %v5286_v54 = vadd.f32 %v6634_v8, %v5285_v33 }
0x1be7   :  { %v5329_v6 = vsel %vm128_vm0, %v5286_v54, -inf }
0x1bed   :  { %5330 = vmax.xlane.f32.xlu1 %v5329_v6 }
0x1bf3   :  { %v5193_v52 = vpop.f32.mrf.mxu0 }
0x1bf4   :  { %v5194_v29 = vadd.f32 %v6635_v0, %v5193_v52 }
0x1bf6   :  { %v5317_v16 = vsel %vm128_vm0, %v5194_v29, -inf }
0x1bf7   :  { %5318 = vmax.xlane.f32.xlu2 %v5317_v16 }
0x1bfb   :  { %v5262_v26 = vpop.f32.mrf.mxu0 }
0x1bfc   :  { %v5263_v53 = vadd.f32 %v6636_v15, %v5262_v26 }
0x1bfd   :  { %v5313_v27 = vpop.xlane.xlu0 %5312 }
0x1bfe   :  { %v5335_v37 = vsub.f32 %v5148_v39, %v5313_v27  ;;  %v5326_v50 = vsel %vm128_vm0, %v5263_v53, -inf }
0x1bff   :  { %5327 = vmax.xlane.f32.xlu0 %v5326_v50 }
0x1c00   :  { %v5343_v43 = vmul.f32 1.442695, %v5335_v37 }
0x1c01   :  { %v5216_v45 = vpop.f32.mrf.mxu2 }
0x1c02   :  { %6561 = vpow2.f32 %v5343_v43  ;;  %v5217_v23 = vadd.f32 %v6637_v34, %v5216_v45 }
0x1c04   :  { %v5320_v24 = vsel %vm128_vm0, %v5217_v23, -inf }
0x1c05   :  { %5321 = vmax.xlane.f32.xlu2 %v5320_v24  ;;  %v5316_v58 = vpop.xlane.xlu0 %5315 }
0x1c06   :  { %v5336_v25 = vsub.f32 %v5171_v42, %v5316_v58 }
0x1c08   :  { %v9002_v56 = vpop.eup %6561  ;;  %v5345_v22 = vmul.f32 1.442695, %v5336_v25 }
0x1c09   :  { %v5308_v30 = vpop.f32.mrf.mxu2  ;;  %v5359_v41 = vsel %vm128_vm0, %v9002_v56, 0.0 }
0x1c0a   :  { %v5309_v57 = vadd.f32 %v6638_v1, %v5308_v30  ;;  %5360 = vadd.xlane.f32.xlu1 %v5359_v41 }
0x1c0c   :  { %v5332_v51 = vsel %vm128_vm0, %v5309_v57, -inf }
0x1c0d   :  { %5333 = vmax.xlane.f32.xlu2 %v5332_v51 }
0x1c58   :  { %v5325_v18 = vpop.xlane.xlu1 %5324 }
0x1c59   :  { %v5339_v9 = vsub.f32 %v5240_v31, %v5325_v18 }
0x1c5b   :  { %v5351_v19 = vmul.f32 1.442695, %v5339_v9 }
0x1c5d   :  { %6563 = vpow2.f32 %v5351_v19 }
0x1c60   :  { %v5331_v63 = vpop.xlane.xlu1 %5330 }
0x1c61   :  { %v5341_v46 = vsub.f32 %v5286_v54, %v5331_v63 }
0x1c63   :  { %v9010_v14 = vpop.eup %6563  ;;  %v5355_v2 = vmul.f32 1.442695, %v5341_v46 }
0x1c64   :  { %v5371_v40 = vsel %vm128_vm0, %v9010_v14, 0.0 }
0x1c65   :  { %6565 = vpow2.f32 %v5355_v2  ;;  %5372 = vadd.xlane.f32.xlu0 %v5371_v40 }
0x1c6a   :  { %v5319_v4 = vpop.xlane.xlu2 %5318 }
0x1c6b   :  { %v9014_v61 = vpop.eup %6565  ;;  %v5337_v38 = vsub.f32 %v5194_v29, %v5319_v4 }
0x1c6c   :  { %v5377_v7 = vsel %vm128_vm0, %v9014_v61, 0.0 }
0x1c6d   :  { %v5347_v35 = vmul.f32 1.442695, %v5337_v38  ;;  %5378 = vadd.xlane.f32.xlu0 %v5377_v7 }
0x1c6f   :  { %6567 = vpow2.f32 %v5347_v35 }
0x1c70   :  { %6569 = vpow2.f32 %v5345_v22 }
0x1c72   :  { %v5328_v36 = vpop.xlane.xlu0 %5327 }
0x1c73   :  { %v5340_v10 = vsub.f32 %v5263_v53, %v5328_v36 }
0x1c75   :  { %v9018_v48 = vpop.eup %6567  ;;  %v5353_v13 = vmul.f32 1.442695, %v5340_v10 }
0x1c76   :  { %v5365_v59 = vsel %vm128_vm0, %v9018_v48, 0.0  ;;  %v9022_v39 = vpop.eup %6569 }
0x1c77   :  { %5366 = vadd.xlane.f32.xlu2 %v5365_v59  ;;  %6571 = vpow2.f32 %v5353_v13  ;;  %v5362_v62 = vsel %vm128_vm0, %v9022_v39, 0.0 }
0x1c78   :  { %v5322_v55 = vpop.xlane.xlu2 %5321 }
0x1c79   :  { %v5338_v11 = vsub.f32 %v5217_v23, %v5322_v55 }
0x1c7b   :  { %v5349_v20 = vmul.f32 1.442695, %v5338_v11 }
0x1c7d   :  { %6573 = vpow2.f32 %v5349_v20  ;;  %v5361_v60 = vpop.xlane.xlu1 %5360  ;;  %v9028_v12 = vpop.eup %6571 }
0x1c7e   :  { %6575 = vrcp.f32 %v5361_v60  ;;  %v5374_v54 = vsel %vm128_vm0, %v9028_v12, 0.0  ;;  %v5394_v52 = vand.u32 2147483648, %v5361_v60  ;;  %v5392_v29 = vand.u32 2147483647, %v5361_v60 }
0x1c7f   :  { %5363 = vadd.xlane.f32.xlu2 %v5362_v62  ;;  %vm5388_vm7 = vweird.f32 %v5361_v60 }
0x1c80   :  { %v5334_v42 = vpop.xlane.xlu2 %5333  ;;  %v5395_v15 = vor.u32 1.1754944e-38, %v5394_v52  ;;  %vm5393_vm3 = vcmp.eq.f32.partialorder %v5392_v29, 8.507059e+37 }
0x1c81   :  { %v5342_v28 = vsub.f32 %v5309_v57, %v5334_v42  ;;  %6272 = vrot.lane.b32.xlu0 %v8876_v32, %s6672_s0 }
0x1c83   :  { %v9030_v5 = vpop.eup %6573  ;;  %v5357_v31 = vmul.f32 1.442695, %v5342_v28 }
0x1c84   :  { %v6576_v44 = vpop.eup %6575  ;;  %v5368_v33 = vsel %vm128_vm0, %v9030_v5, 0.0 }
0x1c85   :  { %v5384_v8 = vmul.f32 %v6576_v44, %v5361_v60  ;;  %6577 = vpow2.f32 %v5357_v31  ;;  %5369 = vadd.xlane.f32.xlu1 %v5368_v33  ;;  %vm5389_vm6 = vweird.f32 %v6576_v44 }
0x1c86   :  { %vm5390_vm4 = vmor %vm5388_vm7, %vm5389_vm6 }
0x1c87   :  { %v5385_v6 = vsub.f32 1.0, %v5384_v8  ;;  %5375 = vadd.xlane.f32.xlu2 %v5374_v54 }
0x1c89   :  { %v5386_v0 = vmul.f32 %v6576_v44, %v5385_v6 }
0x1c8b   :  { %v9036_v16 = vpop.eup %6577  ;;  %v5387_v26 = vadd.f32 %v6576_v44, %v5386_v0 }
0x1c8c   :  { %v5380_v53 = vsel %vm128_vm0, %v9036_v16, 0.0 }
0x1c8d   :  { %v5391_v27 = vsel %vm5390_vm4, %v6576_v44, %v5387_v26  ;;  %5381 = vadd.xlane.f32.xlu1 %v5380_v53 }
0x1c8e   :  { %v5396_v37 = vsel %vm5393_vm3, %v5395_v15, %v5391_v27 }
0x1c8f   :  { %v5397_v50 = vmul.f32 %v9002_v56, %v5396_v37 }
0x1c91   :  { %6206 = vmatmul.msk.f32.vlgmr.msrb.gmra.mxu3 %vm128_vm0, %v5397_v50 }
0x1c9f   :  { %6277 = vrot.lane.b32.xlu2 %v8884_v21, %s6672_s0 }
0x1cd8   :  { %v5373_v43 = vpop.xlane.xlu0 %5372 }
0x1cd9   :  { %6579 = vrcp.f32 %v5373_v43  ;;  %v5454_v30 = vand.u32 2147483648, %v5373_v43  ;;  %v5452_v1 = vand.u32 2147483647, %v5373_v43  ;;  %vm5448_vm14 = vweird.f32 %v5373_v43 }
0x1cdb   :  { %v5455_v56 = vor.u32 1.1754944e-38, %v5454_v30  ;;  %vm5453_vm15 = vcmp.eq.f32.partialorder %v5452_v1, 8.507059e+37 }
0x1cdf   :  { %v6580_v45 = vpop.eup %6579 }
0x1ce0   :  { %v5444_v34 = vmul.f32 %v6580_v45, %v5373_v43  ;;  %v5379_v23 = vpop.xlane.xlu0 %5378  ;;  %vm5449_vm10 = vweird.f32 %v6580_v45 }
0x1ce1   :  { %6581 = vrcp.f32 %v5379_v23  ;;  %vm5450_vm12 = vmor %vm5448_vm14, %vm5449_vm10  ;;  %v5484_v55 = vand.u32 2147483648, %v5379_v23  ;;  %vm5478_vm4 = vweird.f32 %v5379_v23  ;;  %v5482_v62 = vand.u32 2147483647, %v5379_v23 }
0x1ce2   :  { %v5445_v24 = vsub.f32 1.0, %v5444_v34 }
0x1ce3   :  { %v5485_v8 = vor.u32 1.1754944e-38, %v5484_v55  ;;  %vm5483_vm14 = vcmp.eq.f32.partialorder %v5482_v62, 8.507059e+37 }
0x1ce4   :  { %v5446_v41 = vmul.f32 %v6580_v45, %v5445_v24 }
0x1ce6   :  { %v5447_v57 = vadd.f32 %v6580_v45, %v5446_v41 }
0x1ce7   :  { %v6582_v9 = vpop.eup %6581 }
0x1ce8   :  { %v5451_v51 = vsel %vm5450_vm12, %v6580_v45, %v5447_v57  ;;  %v5474_v46 = vmul.f32 %v6582_v9, %v5379_v23  ;;  %vm5479_vm5 = vweird.f32 %v6582_v9 }
0x1ce9   :  { %v5456_v18 = vsel %vm5453_vm15, %v5455_v56, %v5451_v51  ;;  %vm5480_vm3 = vmor %vm5478_vm4, %vm5479_vm5 }
0x1cea   :  { %v5457_v19 = vmul.f32 %v9010_v14, %v5456_v18  ;;  %v5367_v63 = vpop.xlane.xlu2 %5366  ;;  %v5475_v40 = vsub.f32 1.0, %v5474_v46 }
0x1ceb   :  { %6583 = vrcp.f32 %v5367_v63  ;;  %v5424_v25 = vand.u32 2147483648, %v5367_v63  ;;  %v5422_v22 = vand.u32 2147483647, %v5367_v63  ;;  %vm5418_vm13 = vweird.f32 %v5367_v63 }
0x1cec   :  { %6210 = vmatmul.msk.f32.vlgmr.msra.gmra.mxu3 %vm128_vm0, %v5457_v19  ;;  %v5476_v7 = vmul.f32 %v6582_v9, %v5475_v40 }
0x1ced   :  { %v5425_v13 = vor.u32 1.1754944e-38, %v5424_v25  ;;  %vm5423_vm7 = vcmp.eq.f32.partialorder %v5422_v22, 8.507059e+37 }
0x1cee   :  { %v5477_v59 = vadd.f32 %v6582_v9, %v5476_v7 }
0x1cf0   :  { %v5481_v44 = vsel %vm5480_vm3, %v6582_v9, %v5477_v59 }
0x1cf1   :  { %v6584_v2 = vpop.eup %6583  ;;  %v5486_v0 = vsel %vm5483_vm14, %v5485_v8, %v5481_v44 }
0x1cf2   :  { %v5414_v58 = vmul.f32 %v6584_v2, %v5367_v63  ;;  %v5364_v4 = vpop.xlane.xlu2 %5363  ;;  %vm5419_vm2 = vweird.f32 %v6584_v2  ;;  %v5487_v43 = vmul.f32 %v9014_v61, %v5486_v0 }
0x1cf3   :  { %6585 = vrcp.f32 %v5364_v4  ;;  %vm5420_vm6 = vmor %vm5418_vm13, %vm5419_vm2  ;;  %v5409_v33 = vand.u32 2147483648, %v5364_v4  ;;  %v5407_v6 = vand.u32 2147483647, %v5364_v4  ;;  %vm5403_vm12 = vweird.f32 %v5364_v4 }
0x1cf4   :  { %v5415_v38 = vsub.f32 1.0, %v5414_v58 }
0x1cf5   :  { %v5410_v27 = vor.u32 1.1754944e-38, %v5409_v33  ;;  %vm5408_vm2 = vcmp.eq.f32.partialorder %v5407_v6, 8.507059e+37 }
0x1cf6   :  { %v5416_v35 = vmul.f32 %v6584_v2, %v5415_v38 }
0x1cf8   :  { %v5417_v36 = vadd.f32 %v6584_v2, %v5416_v35  ;;  %v5370_v10 = vpop.xlane.xlu1 %5369 }
0x1cf9   :  { %v6586_v14 = vpop.eup %6585  ;;  %6587 = vrcp.f32 %v5370_v10  ;;  %v5437_v34 = vand.u32 2147483647, %v5370_v10  ;;  %v5439_v23 = vand.u32 2147483648, %v5370_v10  ;;  %vm5433_vm5 = vweird.f32 %v5370_v10 }
0x1cfa   :  { %v5421_v11 = vsel %vm5420_vm6, %v6584_v2, %v5417_v36  ;;  %v5399_v20 = vmul.f32 %v6586_v14, %v5364_v4  ;;  %v5376_v60 = vpop.xlane.xlu2 %5375  ;;  %vm5404_vm10 = vweird.f32 %v6586_v14 }
0x1cfb   :  { %v5426_v42 = vsel %vm5423_vm7, %v5425_v13, %v5421_v11  ;;  %6589 = vrcp.f32 %v5376_v60  ;;  %vm5405_vm15 = vmor %vm5403_vm12, %vm5404_vm10  ;;  %v5469_v1 = vand.u32 2147483648, %v5376_v60  ;;  %v5467_v51 = vand.u32 2147483647, %v5376_v60  ;;  %v6273_v13 = vpop.permute.xlu0 %6272 }
0x1cfc   :  { %v5427_v28 = vmul.f32 %v9018_v48, %v5426_v42  ;;  %v5400_v31 = vsub.f32 1.0, %v5399_v20  ;;  %vm5438_vm4 = vcmp.eq.f32.partialorder %v5437_v34, 8.507059e+37  ;;  %v5440_v61 = vor.u32 1.1754944e-38, %v5439_v23 }
0x1cfd   :  { %vm5463_vm3 = vweird.f32 %v5376_v60  ;;  %v5470_v46 = vor.u32 1.1754944e-38, %v5469_v1  ;;  %vm5468_vm14 = vcmp.eq.f32.partialorder %v5467_v51, 8.507059e+37  ;;  %v6275_v55 = vunpack.i.h.bf16 %v6273_v13 }
0x1cfe   :  { %v5401_v54 = vmul.f32 %v6586_v14, %v5400_v31  ;;  %6208 = vmatmul.msk.f32.vlgmr.msra.gmra.mxu1 %vm128_vm0, %v5427_v28  ;;  %v6274_v11 = vunpack.i.l.bf16 %v6273_v13  ;;  %v5809_v13 = vperm.slane %v8924_v49, 4 }
0x1cff   :  { %v6588_v52 = vpop.eup %6587 }
0x1d00   :  { %v5402_v29 = vadd.f32 %v6586_v14, %v5401_v54  ;;  %v5429_v26 = vmul.f32 %v6588_v52, %v5370_v10  ;;  %v5382_v15 = vpop.xlane.xlu1 %5381  ;;  %vm5434_vm13 = vweird.f32 %v6588_v52  ;;  %5752 = vmatpush.msrb.mxu3 %v6274_v11  ;;  %v6158_v11 = vld [vmem:[%s9145_s9 + $0x60] sm:$0xff] }
0x1d01   :  { %v6590_v53 = vpop.eup %6589  ;;  %6591 = vrcp.f32 %v5382_v15  ;;  %vm5435_vm7 = vmor %vm5433_vm5, %vm5434_vm13  ;;  %v5499_v38 = vand.u32 2147483648, %v5382_v15  ;;  %v5497_v35 = vand.u32 2147483647, %v5382_v15 }
0x1d02   :  { %v5406_v48 = vsel %vm5405_vm15, %v6586_v14, %v5402_v29  ;;  %v5430_v37 = vsub.f32 1.0, %v5429_v26  ;;  %v5459_v50 = vmul.f32 %v6590_v53, %v5376_v60  ;;  %vm5464_vm6 = vweird.f32 %v6590_v53  ;;  %v6278_v20 = vpop.permute.xlu2 %6277  ;;  %5753 = vmatpush.msrb.mxu3 %v6275_v55 }
0x1d03   :  { %v5411_v45 = vsel %vm5408_vm2, %v5410_v27, %v5406_v48  ;;  %vm5465_vm10 = vmor %vm5463_vm3, %vm5464_vm6  ;;  %vm5493_vm15 = vweird.f32 %v5382_v15  ;;  %v5500_v36 = vor.u32 1.1754944e-38, %v5499_v38  ;;  %vm5498_vm13 = vcmp.eq.f32.partialorder %v5497_v35, 8.507059e+37  ;;  %v6161_v35 = vld [vmem:[%s9145_s9 + $0x78] sm:$0xff] }
0x1d04   :  { %v5412_v24 = vmul.f32 %v9022_v39, %v5411_v45  ;;  %v5431_v30 = vmul.f32 %v6588_v52, %v5430_v37  ;;  %v5460_v41 = vsub.f32 1.0, %v5459_v50  ;;  %v6279_v62 = vunpack.i.l.bf16 %v6278_v20  ;;  %5874 = vmatpush.msra.mxu1 %v6161_v35 }
0x1d05   :  { %v6280_v42 = vunpack.i.h.bf16 %v6278_v20  ;;  %v5717_v50 = vperm.slane %v8924_v49, 3 }
0x1d06   :  { %v5432_v57 = vadd.f32 %v6588_v52, %v5431_v30  ;;  %v5461_v56 = vmul.f32 %v6590_v53, %v5460_v41  ;;  %6207 = vmatmul.msk.f32.vlgmr.msra.gmra.mxu0 %vm128_vm0, %v5412_v24  ;;  %6212 = vmatmul.msk.f32.vlgmr.msrb.gmra.mxu1 %vm128_vm0, %v5487_v43 }
0x1d07   :  { %v6592_v18 = vpop.eup %6591  ;;  %5754 = vmatpush.msrb.mxu3 %v6279_v62 }
0x1d08   :  { %v5436_v9 = vsel %vm5435_vm7, %v6588_v52, %v5432_v57  ;;  %v5462_v19 = vadd.f32 %v6590_v53, %v5461_v56  ;;  %v5489_v39 = vmul.f32 %v6592_v18, %v5382_v15  ;;  %vm5494_vm12 = vweird.f32 %v6592_v18 }
0x1d09   :  { %v5441_v63 = vsel %vm5438_vm4, %v5440_v61, %v5436_v9  ;;  %vm5495_vm2 = vmor %vm5493_vm15, %vm5494_vm12  ;;  %5755 = vmatpush.msrb.mxu3 %v6280_v42 }
0x1d0a   :  { %v5442_v2 = vmul.f32 %v9030_v5, %v5441_v63  ;;  %v5466_v40 = vsel %vm5465_vm10, %v6590_v53, %v5462_v19  ;;  %v5490_v58 = vsub.f32 1.0, %v5489_v39 }
0x1d0b   :  { %v5471_v4 = vsel %vm5468_vm14, %v5470_v46, %v5466_v40 }
0x1d0c   :  { %v5472_v7 = vmul.f32 %v9028_v12, %v5471_v4  ;;  %v5491_v25 = vmul.f32 %v6592_v18, %v5490_v58  ;;  %6209 = vmatmul.msk.f32.vlgmr.msra.gmra.mxu2 %vm128_vm0, %v5442_v2 }
0x1d0e   :  { %v5492_v22 = vadd.f32 %v6592_v18, %v5491_v25  ;;  %6211 = vmatmul.msk.f32.vlgmr.msrb.gmra.mxu0 %vm128_vm0, %v5472_v7 }
0x1d10   :  { %v5496_v10 = vsel %vm5495_vm2, %v6592_v18, %v5492_v22 }
0x1d11   :  { %v5501_v5 = vsel %vm5498_vm13, %v5500_v36, %v5496_v10  ;;  %v6159_v10 = vld [vmem:[%s9145_s9 + $0x68] sm:$0xff] }
0x1d12   :  { %v5502_v14 = vmul.f32 %v9036_v16, %v5501_v5 }
0x1d14   :  { %6213 = vmatmul.msk.f32.vlgmr.msrb.gmra.mxu2 %vm128_vm0, %v5502_v14  ;;  %v5523_v59 = vpop.f32.mrf.mxu3 }
0x1d6f   :  { %v5615_v12 = vpop.f32.mrf.mxu3 }
0x1d70   :  { %5697 = vrot.lane.b32.xlu0 %v5615_v12, %s6669_s29 }
0x1d7b   :  { %v5569_v60 = vpop.f32.mrf.mxu1 }
0x1d7c   :  { %5689 = vrot.lane.b32.xlu1 %v5569_v60, %s6668_s28  ;;  %v5812_v60 = vperm.slane %v8924_v49, 5 }
0x1d83   :  { %v5546_v16 = vpop.f32.mrf.mxu0  ;;  %v5661_v28 = vpop.f32.mrf.mxu1 }
0x1d84   :  { %5705 = vrot.lane.b32.xlu0 %v5661_v28, %s6670_s30 }
0x1d8b   :  { %v5638_v31 = vpop.f32.mrf.mxu0 }
0x1d8c   :  { %5699 = vrot.lane.b32.xlu1 %v5638_v31, %s6669_s29 }
0x1d8f   :  { %v5592_v44 = vpop.f32.mrf.mxu2 }
0x1d90   :  { %5691 = vrot.lane.b32.xlu2 %v5592_v44, %s6668_s28 }
0x1d97   :  { %v5684_v33 = vpop.f32.mrf.mxu2 }
0x1d98   :  { %5707 = vrot.lane.b32.xlu0 %v5684_v33, %s6670_s30 }
0x1de2   :  { %v5698_v8 = vpop.permute.xlu0 %5697 }
0x1dea   :  { %v5692_v26 = vpop.permute.xlu2 %5691 }
0x1deb   :  { %v5712_v53 = vsel %vm128_vm0, %v5546_v16, %v5692_v26  ;;  %v6157_v16 = vld [vmem:[%s9145_s9 + $0x58] sm:$0xff] }
0x1dee   :  { %v5690_v54 = vpop.permute.xlu1 %5689 }
0x1def   :  { %v5711_v6 = vsel %vm128_vm0, %v5523_v59, %v5690_v54 }
0x1df0   :  { %v5713_v52 = vsel %vm393_vm1, %v5711_v6, %v5698_v8 }
0x1df6   :  { %v5706_v0 = vpop.permute.xlu0 %5705 }
0x1df7   :  { %v5715_v29 = vsel %vm1066_vm8, %v5713_v52, %v5706_v0 }
0x1df8   :  { %6214 = vmatmul.msk.f32.vlgmr.msrb.gmra.mxu3 %vm1072_vm9, %v5715_v29 }
0x1dfe   :  { %v5700_v15 = vpop.permute.xlu1 %5699 }
0x1dff   :  { %v5714_v27 = vsel %vm393_vm1, %v5712_v53, %v5700_v15  ;;  %v6156_v53 = vld [vmem:[%s9145_s9 + $0x50] sm:$0xff] }
0x1e0a   :  { %v5708_v48 = vpop.permute.xlu0 %5707 }
0x1e0b   :  { %v5716_v37 = vsel %vm1066_vm8, %v5714_v27, %v5708_v48  ;;  %v6155_v27 = vld [vmem:[%s9145_s9 + $0x48] sm:$0xff]  ;;  %v6154_v48 = vld [vmem:[%s9145_s9 + $0x40] sm:$0xff] }
0x1e0c   :  { %6215 = vmatmul.msk.f32.gmra.mxu3 %vm1072_vm9, %v5716_v37  ;;  %v5815_v37 = vperm.slane %v8924_v49, 6 }
0x1e7b   :  { %v5757_v43 = vpop.f32.mrf.mxu3 }
0x1e7c   :  { %v5758_v45 = vadd.f32 %v5757_v43, %v5717_v50 }
0x1e7e   :  { %v5763_v34 = vadd.f32 %v5758_v45, %v8939_v17 }
0x1e80   :  { %v5765_v23 = vsel %vm1072_vm9, %v5763_v34, 0.0 }
0x1e81   :  { %5766 = vadd.xlane.f32.xlu2 %v5765_v23 }
0x1e8f   :  { %v5760_v24 = vpop.f32.mrf.mxu3 }
0x1e90   :  { %v5761_v30 = vadd.f32 %v5760_v24, %v5717_v50 }
0x1e92   :  { %v5764_v41 = vadd.f32 %v5761_v30, %v8949_v47  ;;  %v5859_v30 = vperm.slane %v8924_v49, 7 }
0x1e94   :  { %v5768_v1 = vsel %vm1072_vm9, %v5764_v41, 0.0 }
0x1e95   :  { %5769 = vadd.xlane.f32.xlu1 %v5768_v1 }
0x1eae   :  { %6282 = vrot.lane.b32.xlu1 %v8876_v32, %s6673_s18 }
0x1ef4   :  { %v5767_v57 = vpop.xlane.xlu2 %5766 }
0x1ef5   :  { %v5771_v56 = vmul.f32 %v5767_v57, %v7485_v3 }
0x1ef7   :  { %v5773_v51 = vsub.f32 %v5763_v34, %v5771_v56 }
0x1ef9   :  { %v5775_v18 = vmul.f32 %v5773_v51, %v5773_v51 }
0x1efb   :  { %v5777_v17 = vsel %vm1072_vm9, %v5775_v18, 0.0 }
0x1efc   :  { %5778 = vadd.xlane.f32.xlu0 %v5777_v17 }
0x1f08   :  { %v5770_v61 = vpop.xlane.xlu1 %5769 }
0x1f09   :  { %v5772_v9 = vmul.f32 %v5770_v61, %v7485_v3 }
0x1f0b   :  { %v5774_v19 = vsub.f32 %v5764_v41, %v5772_v9 }
0x1f0d   :  { %v5776_v39 = vmul.f32 %v5774_v19, %v5774_v19 }
0x1f0f   :  { %v5780_v47 = vsel %vm1072_vm9, %v5776_v39, 0.0 }
0x1f10   :  { %5781 = vadd.xlane.f32.xlu2 %v5780_v47  ;;  %6287 = vrot.lane.b32.xlu0 %v8884_v21, %s6673_s18  ;;  %v6160_v21 = vld [vmem:[%s9145_s9 + $0x70] sm:$0xff] }
0x1f11   :  { %5875 = vmatpush.msra.mxu1 %v6160_v21 }
0x1f13   :  { %5876 = vmatpush.msra.mxu1 %v6159_v10 }
0x1f15   :  { %5877 = vmatpush.msra.mxu1 %v6158_v11 }
0x1f17   :  { %5878 = vmatpush.msra.mxu1 %v6157_v16 }
0x1f19   :  { %5879 = vmatpush.msra.mxu1 %v6156_v53 }
0x1f1b   :  { %5880 = vmatpush.msra.mxu1 %v6155_v27 }
0x1f1d   :  { %5881 = vmatpush.msra.mxu1 %v6154_v48 }
0x1f20   :  { %v6283_v32 = vpop.permute.xlu1 %6282 }
0x1f21   :  { %v6285_v63 = vunpack.i.h.bf16 %v6283_v32  ;;  %v6284_v46 = vunpack.i.l.bf16 %v6283_v32 }
0x1f23   :  { %5846 = vmatpush.msra.mxu0 %v6284_v46 }
0x1f25   :  { %5847 = vmatpush.msra.mxu0 %v6285_v63 }
0x1f6f   :  { %v5779_v2 = vpop.xlane.xlu0 %5778 }
0x1f70   :  { %v5783_v40 = vmul.f32 %v5779_v2, %v7485_v3 }
0x1f72   :  { %v5785_v58 = vadd.f32 1e-05, %v5783_v40 }
0x1f74   :  { %6593 = vrsqrt.f32 %v5785_v58  ;;  %vm5793_vm1 = vweird.f32 %v5785_v58 }
0x1f7a   :  { %v6594_v4 = vpop.eup %6593 }
0x1f7b   :  { %v5788_v38 = vmul.f32 %v6594_v4, %v5785_v58  ;;  %vm5794_vm0 = vweird.f32 %v6594_v4 }
0x1f7c   :  { %vm5795_vm8 = vmor %vm5793_vm1, %vm5794_vm0 }
0x1f7d   :  { %v5789_v7 = vmul.f32 %v6594_v4, %v5788_v38 }
0x1f7f   :  { %v5790_v25 = vmul.f32 0.5, %v5789_v7 }
0x1f81   :  { %v5791_v22 = vsub.f32 1.5, %v5790_v25 }
0x1f82   :  { %v6288_v36 = vpop.permute.xlu0 %6287 }
0x1f83   :  { %v5792_v5 = vmul.f32 %v6594_v4, %v5791_v22  ;;  %v5782_v14 = vpop.xlane.xlu2 %5781  ;;  %v6290_v59 = vunpack.i.h.bf16 %v6288_v36  ;;  %v6289_v12 = vunpack.i.l.bf16 %v6288_v36  ;;  %v6163_v22 = vld [vmem:[%s9146_s10 + $0x18] sm:$0xff] }
0x1f84   :  { %v5784_v55 = vmul.f32 %v5782_v14, %v7485_v3  ;;  %v5935_v14 = vperm.slane %v6163_v22, 0  ;;  %v5938_v11 = vperm.slane %v6163_v22, 1 }
0x1f85   :  { %v5796_v20 = vsel %vm5795_vm8, %v6594_v4, %v5792_v5  ;;  %5848 = vmatpush.msra.mxu0 %v6289_v12 }
0x1f86   :  { %v5807_v62 = vmul.f32 %v5796_v20, %v5773_v51  ;;  %v5786_v42 = vadd.f32 1e-05, %v5784_v55 }
0x1f87   :  { %5849 = vmatpush.msra.mxu0 %v6290_v59 }
0x1f88   :  { %v5810_v28 = vmul.f32 %v5809_v13, %v5807_v62  ;;  %6595 = vrsqrt.f32 %v5786_v42  ;;  %vm5803_vm6 = vweird.f32 %v5786_v42 }
0x1f8a   :  { %v5813_v31 = vadd.f32 %v5812_v60, %v5810_v28 }
0x1f8c   :  { %6216 = vmatmul.msk.f32.vlgmr.msra.gmra.mxu0 %vm1072_vm9, %v5813_v31 }
0x1f8e   :  { %v6596_v44 = vpop.eup %6595 }
0x1f8f   :  { %v5798_v33 = vmul.f32 %v6596_v44, %v5786_v42  ;;  %vm5804_vm5 = vweird.f32 %v6596_v44 }
0x1f90   :  { %vm5805_vm7 = vmor %vm5803_vm6, %vm5804_vm5 }
0x1f91   :  { %v5799_v8 = vmul.f32 %v6596_v44, %v5798_v33 }
0x1f93   :  { %v5800_v54 = vmul.f32 0.5, %v5799_v8 }
0x1f95   :  { %v5801_v6 = vsub.f32 1.5, %v5800_v54 }
0x1f97   :  { %v5802_v52 = vmul.f32 %v6596_v44, %v5801_v6 }
0x1f99   :  { %v5806_v0 = vsel %vm5805_vm7, %v6596_v44, %v5802_v52 }
0x1f9a   :  { %v5808_v29 = vmul.f32 %v5806_v0, %v5774_v19 }
0x1f9c   :  { %v5811_v26 = vmul.f32 %v5809_v13, %v5808_v29 }
0x1f9e   :  { %v5814_v15 = vadd.f32 %v5812_v60, %v5811_v26 }
0x1fa0   :  { %6217 = vmatmul.msk.f32.gmra.mxu0 %vm1072_vm9, %v5814_v15 }
0x2009   :  { %v5851_v50 = vpop.f32.mrf.mxu0 }
0x200a   :  { %v5852_v43 = vadd.f32 %v5851_v50, %v5815_v37 }
0x200c   :  { %v5857_v45 = vmax.f32 %v5852_v43, 0.0 }
0x200e   :  { %6218 = vmatmul.msk.f32.vlgmr.msra.gmra.mxu1 %vm1286_vm11, %v5857_v45 }
0x201d   :  { %v5854_v34 = vpop.f32.mrf.mxu0 }
0x201e   :  { %v5855_v23 = vadd.f32 %v5854_v34, %v5815_v37 }
0x2020   :  { %v5858_v24 = vmax.f32 %v5855_v23, 0.0 }
0x2022   :  { %6219 = vmatmul.msk.f32.gmra.mxu1 %vm1286_vm11, %v5858_v24 }
0x208b   :  { %v5883_v41 = vpop.f32.mrf.mxu1 }
0x208c   :  { %v5884_v1 = vadd.f32 %v5883_v41, %v5859_v30 }
0x208e   :  { %v5889_v57 = vadd.f32 %v5884_v1, %v5813_v31 }
0x2090   :  { %v5891_v56 = vsel %vm1072_vm9, %v5889_v57, 0.0 }
0x2091   :  { %5892 = vadd.xlane.f32.xlu2 %v5891_v56 }
0x209f   :  { %v5886_v51 = vpop.f32.mrf.mxu1 }
0x20a0   :  { %v5887_v18 = vadd.f32 %v5886_v51, %v5859_v30 }
0x20a2   :  { %v5890_v17 = vadd.f32 %v5887_v18, %v5814_v15 }
0x20a4   :  { %v5894_v61 = vsel %vm1072_vm9, %v5890_v17, 0.0 }
0x20a5   :  { %5895 = vadd.xlane.f32.xlu2 %v5894_v61 }
0x2104   :  { %v5893_v9 = vpop.xlane.xlu2 %5892 }
0x2105   :  { %v5897_v19 = vmul.f32 %v5893_v9, %v7485_v3 }
0x2107   :  { %v5899_v39 = vsub.f32 %v5889_v57, %v5897_v19 }
0x2109   :  { %v5901_v47 = vmul.f32 %v5899_v39, %v5899_v39 }
0x210b   :  { %v5903_v32 = vsel %vm1072_vm9, %v5901_v47, 0.0 }
0x210c   :  { %5904 = vadd.xlane.f32.xlu2 %v5903_v32 }
0x2118   :  { %v5896_v49 = vpop.xlane.xlu2 %5895 }
0x2119   :  { %v5898_v63 = vmul.f32 %v5896_v49, %v7485_v3 }
0x211b   :  { %v5900_v46 = vsub.f32 %v5890_v17, %v5898_v63 }
0x211d   :  { %v5902_v2 = vmul.f32 %v5900_v46, %v5900_v46 }
0x211f   :  { %v5906_v40 = vsel %vm1072_vm9, %v5902_v2, 0.0 }
0x2120   :  { %5907 = vadd.xlane.f32.xlu0 %v5906_v40 }
0x217f   :  { %v5905_v58 = vpop.xlane.xlu2 %5904 }
0x2180   :  { %v5909_v4 = vmul.f32 %v5905_v58, %v7485_v3 }
0x2182   :  { %v5911_v38 = vadd.f32 1e-05, %v5909_v4 }
0x2184   :  { %6597 = vrsqrt.f32 %v5911_v38  ;;  %vm5919_vm4 = vweird.f32 %v5911_v38 }
0x218a   :  { %v6598_v7 = vpop.eup %6597 }
0x218b   :  { %v5914_v25 = vmul.f32 %v6598_v7, %v5911_v38  ;;  %vm5920_vm11 = vweird.f32 %v6598_v7 }
0x218c   :  { %vm5921_vm3 = vmor %vm5919_vm4, %vm5920_vm11 }
0x218d   :  { %v5915_v35 = vmul.f32 %v6598_v7, %v5914_v25 }
0x218f   :  { %v5916_v21 = vmul.f32 0.5, %v5915_v35 }
0x2191   :  { %v5917_v36 = vsub.f32 1.5, %v5916_v21 }
0x2193   :  { %v5918_v10 = vmul.f32 %v6598_v7, %v5917_v36  ;;  %v5908_v5 = vpop.xlane.xlu0 %5907 }
0x2194   :  { %v5910_v59 = vmul.f32 %v5908_v5, %v7485_v3 }
0x2195   :  { %v5922_v12 = vsel %vm5921_vm3, %v6598_v7, %v5918_v10 }
0x2196   :  { %v5933_v13 = vmul.f32 %v5922_v12, %v5899_v39  ;;  %v5912_v55 = vadd.f32 1e-05, %v5910_v59 }
0x2198   :  { %v5936_v20 = vmul.f32 %v5935_v14, %v5933_v13  ;;  %6599 = vrsqrt.f32 %v5912_v55  ;;  %vm5929_vm14 = vweird.f32 %v5912_v55 }
0x219a   :  { %v5939_v60 = vadd.f32 %v5938_v11, %v5936_v20 }
0x219c   :  { %5941 = vst.msk [vmem:[#allocation2] sm:$0xff] %vm1072_vm9, %v5939_v60 }
0x219e   :  { %v6600_v62 = vpop.eup %6599 }
0x219f   :  { %v5924_v42 = vmul.f32 %v6600_v62, %v5912_v55  ;;  %vm5930_vm10 = vweird.f32 %v6600_v62 }
0x21a0   :  { %vm5931_vm12 = vmor %vm5929_vm14, %vm5930_vm10 }
0x21a1   :  { %v5925_v16 = vmul.f32 %v6600_v62, %v5924_v42 }
0x21a3   :  { %v5926_v28 = vmul.f32 0.5, %v5925_v16 }
0x21a5   :  { %v5927_v31 = vsub.f32 1.5, %v5926_v28 }
0x21a7   :  { %v5928_v44 = vmul.f32 %v6600_v62, %v5927_v31 }
0x21a9   :  { %v5932_v33 = vsel %vm5931_vm12, %v6600_v62, %v5928_v44 }
0x21aa   :  { %v5934_v3 = vmul.f32 %v5932_v33, %v5900_v46 }
0x21ac   :  { %v5937_v8 = vmul.f32 %v5935_v14, %v5934_v3 }
0x21ae   :  { %v5940_v54 = vadd.f32 %v5938_v11, %v5937_v8 }
0x21b0   :  { %5942 = vst.msk [vmem:[#allocation2 + $0x8] sm:$0xff] %vm1072_vm9, %v5940_v54 }
0x21b1   :  { %5955 = dma.vmem_to_hbm [thread:$0]  %s5948_s17, 256, %s5950_s6, [#allocation3], %s6675_s19, %s6675_s19, %s6668_s28  }
0x21b2   :  { %6663 = dma.done.wait [#allocation3], 256  }
0x21b3   :  { %6664 = vsyncadd [#allocation3], 4294967040 }
0x21b4   :  { %5960 = vsyncpa [#allocation3], 1 }

</bundles_post_ra>
